<compile_context>
chip_gen: v7x
topology: tpu7x:2x2x1
jax: 0.10.0
libtpu: 0.0.40
codegen_flags: <defaults>
</compile_context>

<pallas_src>
import numpy as np
import jax
import jax.numpy as jnp
from jax.experimental import pallas as pl
from jax.experimental.pallas import tpu as pltpu

INPUT_CHANNEL = 6
MEMORY_SIZE = 64
ACTION_NUM = 2
IMAGE_EMBEDDING_SIZE = 64
CONCAT_LAYER_SIZE = 14400        # 64 * 15 * 15  -> implies 128x128 spatial input
VGG_SIZE = 4096
EMBED_K_STEPS = 4                # number of K-blocks used to stream the embed weight


def _round_up(n, m):
    return ((n + m - 1) // m) * m


# ------------------------------ Pallas kernels ------------------------------

def _conv_relu_pool_kernel(w_ref, b_ref, p_ref, o_ref):
    # Fused Conv2d(k=2,s=1) + ReLU + MaxPool2d(2,2), channel-major, bf16 MXU inputs.
    #   w: (4*Cout, K) bf16 -- 2x2 kernel embedded at the 4 pool-tap offsets of a 3x3 window
    #   b: (Cout, 1)  f32
    #   p: (K, tn)    bf16  -- stride-2 3x3 input patches, one column per pooled pixel
    #   o: (Cout, tn) bf16  -- lane-dense stores
    z = jnp.dot(w_ref[...], p_ref[...], preferred_element_type=jnp.float32)
    cout = o_ref.shape[0]
    # max over the 4 pool taps FIRST (bias is identical across tap groups and ReLU is
    # monotone, so max -> +bias -> ReLU is bit-identical to ReLU(conv+bias) -> maxpool).
    m = jnp.maximum(
        jnp.maximum(z[0 * cout:1 * cout, :], z[1 * cout:2 * cout, :]),
        jnp.maximum(z[2 * cout:3 * cout, :], z[3 * cout:4 * cout, :]))
    o_ref[...] = jnp.maximum(m + b_ref[...], 0.0).astype(o_ref.dtype)


def _head_kernel(x_ref, h_ref, ew_ref, eb_ref,
                 gru_w_ref, gru_b_ref, mlp_w_ref, mlp_b_ref,
                 tail_w_ref, musig_w_ref, tail_b_ref,
                 mu_ref, sigma_ref, val_ref, mem_ref, acc_ref):
    # embed_linear streamed over the K grid axis (bf16 weight / bf16 activations,
    # f32 accumulation) into a VMEM accumulator; GRU + actor/critic heads in finalize.
    k = pl.program_id(0)
    Hd = MEMORY_SIZE

    @pl.when(k == 0)
    def _init():
        acc_ref[...] = jnp.zeros_like(acc_ref)

    acc_ref[...] += jnp.dot(x_ref[...], ew_ref[...],
                            preferred_element_type=jnp.float32)

    @pl.when(k == pl.num_programs(0) - 1)
    def _finalize():
        def sigmoid(v):
            return 1.0 / (1.0 + jnp.exp(-v))

        def gdot(v, g):                 # GRU gate matmul; rows packed per gate
            return jnp.dot(v, gru_w_ref[g * Hd:(g + 1) * Hd, :],
                           preferred_element_type=jnp.float32)

        x = acc_ref[...] + eb_ref[...]
        h = h_ref[...]
        gb = gru_b_ref[...]             # (6, Hd): b_ir, b_iz, b_in, b_hr, b_hz, b_hn

        # GRUCell (PyTorch gate order r, z, n)
        r = sigmoid(gdot(x, 0) + gb[0:1, :] + gdot(h, 3) + gb[3:4, :])
        zg = sigmoid(gdot(x, 1) + gb[1:2, :] + gdot(h, 4) + gb[4:5, :])
        n = jnp.tanh(gdot(x, 2) + gb[2:3, :] + r * (gdot(h, 5) + gb[5:6, :]))
        hidden = (1.0 - zg) * n + zg * h
        mem_ref[...] = hidden

        # actor / critic hidden layers (weights stacked as (2*Hd, 64))
        mb = mlp_b_ref[...]
        a = jnp.tanh(jnp.dot(hidden, mlp_w_ref[0:Hd, :],
                             preferred_element_type=jnp.float32) + mb[0:1, :])
        c = jnp.tanh(jnp.dot(hidden, mlp_w_ref[Hd:2 * Hd, :],
                             preferred_element_type=jnp.float32) + mb[1:2, :])

        tb = tail_b_ref[...]            # (4,2): actor_b2, mu_b, sigma_b, [critic_b2,0]
        # actor second linear -> (B, ACTION_NUM)
        a2 = jnp.dot(a, tail_w_ref[0:64, :],
                     preferred_element_type=jnp.float32) + tb[0:1, :]
        # actor_mu: Linear -> tanh
        mu_ref[...] = jnp.tanh(jnp.dot(a2, musig_w_ref[0:2, :],
                                       preferred_element_type=jnp.float32) + tb[1:2, :])
        # actor_sigma: Linear -> softplus (beta=1, threshold=20, like torch)
        s = jnp.dot(a2, musig_w_ref[2:4, :],
                    preferred_element_type=jnp.float32) + tb[2:3, :]
        sigma_ref[...] = jnp.where(
            s > 20.0, s, jnp.log(1.0 + jnp.exp(jnp.minimum(s, 20.0))))
        # critic second linear (weight padded to 2 output cols; col 0 is the value)
        v = jnp.dot(c, tail_w_ref[64:128, :],
                    preferred_element_type=jnp.float32) + tb[3:4, :]
        val_ref[...] = v[:, 0:1]


# ------------------------------ wrappers ------------------------------

def conv_relu_pool(x_cbhw, w_cm, b_cm):
    """One fused Conv2d(k=2,s=1)+ReLU+MaxPool2d(2,2) layer, channel-major.

    x_cbhw: (Cin, B, H, W) -> (Cout, B, Hp, Wp) bf16 with Hp=(H-1)//2, Wp=(W-1)//2.
    """
    C, B, H, W = x_cbhw.shape
    Hp, Wp = (H - 1) // 2, (W - 1) // 2
    npix = B * Hp * Wp
    K = C * 9
    cout4 = w_cm.shape[0]
    cout = cout4 // 4

    # stride-2 3x3 patches (union of the 4 conv taps under one pooling cell),
    # feature order (c, r, s), pixel order (b, i, j). Built/fused by XLA, bf16.
    # TODO(synk): build patches in-VMEM inside the kernel to avoid this HBM roundtrip.
    cols = [x_cbhw[:, :, r::2, s::2][:, :, :Hp, :Wp]
            for r in range(3) for s in range(3)]
    p = jnp.stack(cols, axis=1).reshape(K, npix).astype(jnp.bfloat16)

    # exactly 2 pixel tiles per layer: big tiles amortize grid/weight-push overhead and
    # give each v7x TensorCore one block; largest double-buffered block ~1.3 MB (v5e-safe).
    tn = _round_up(pl.cdiv(npix, 2), 128)
    npad = 2 * tn
    p = jnp.pad(p, ((0, 0), (0, npad - npix)))

    out = pl.pallas_call(
        _conv_relu_pool_kernel,
        out_shape=jax.ShapeDtypeStruct((cout, npad), jnp.bfloat16),
        grid=(npad // tn,),
        in_specs=[pl.BlockSpec((cout4, K), lambda i: (0, 0)),
                  pl.BlockSpec((cout, 1), lambda i: (0, 0)),
                  pl.BlockSpec((K, tn), lambda i: (0, i))],
        out_specs=pl.BlockSpec((cout, tn), lambda i: (0, i)),
        compiler_params=pltpu.CompilerParams(dimension_semantics=("parallel",)),
    )(w_cm, b_cm, p)
    return out[:, :npix].reshape(cout, B, Hp, Wp)


def head_forward(params, xcat_p, memory):
    B, Kp = xcat_p.shape
    tk = Kp // EMBED_K_STEPS
    Hd = MEMORY_SIZE

    def const_spec(shape):
        return pl.BlockSpec(tuple(shape), lambda k: (0, 0))

    in_specs = [pl.BlockSpec((B, tk), lambda k: (0, k)),        # xcat  (bf16, streamed)
                const_spec(memory.shape),                       # h0    (fetched once)
                pl.BlockSpec((tk, Hd), lambda k: (k, 0)),       # embed_w (bf16, streamed)
                const_spec(params["embed_b"].shape),
                const_spec(params["gru_w"].shape),
                const_spec(params["gru_b"].shape),
                const_spec(params["mlp_w"].shape),
                const_spec(params["mlp_b"].shape),
                const_spec(params["tail_w"].shape),
                const_spec(params["musig_w"].shape),
                const_spec(params["tail_b"].shape)]

    out_shapes = (jax.ShapeDtypeStruct((B, ACTION_NUM), jnp.float32),   # mu
                  jax.ShapeDtypeStruct((B, ACTION_NUM), jnp.float32),   # sigma
                  jax.ShapeDtypeStruct((B, 1), jnp.float32),            # value (pre-squeeze)
                  jax.ShapeDtypeStruct((B, MEMORY_SIZE), jnp.float32))  # new memory
    out_specs = tuple(const_spec(s.shape) for s in out_shapes)

    mu, sigma, value, new_memory = pl.pallas_call(
        _head_kernel,
        out_shape=out_shapes,
        grid=(EMBED_K_STEPS,),
        in_specs=in_specs,
        out_specs=out_specs,
        scratch_shapes=[pltpu.VMEM((B, MEMORY_SIZE), jnp.float32)],
        compiler_params=pltpu.CompilerParams(dimension_semantics=("arbitrary",)),
    )(xcat_p, memory, params["embed_w"], params["embed_b"],
      params["gru_w"], params["gru_b"], params["mlp_w"], params["mlp_b"],
      params["tail_w"], params["musig_w"], params["tail_b"])
    return mu, sigma, value, new_memory


def ac_model_forward(params, obs, task, map_, vgg_feature, memory):
    """obs: (B,6,H,W), task: (B,7), map_: (B,3,H,W), vgg: (B,4096), memory: (B,64)."""
    B = obs.shape[0]

    # task attention (Linear, no nonlinearity — matches the PyTorch reference) and the
    # per-(B,C) scaling of obs stay in plain JAX so XLA fuses them into the layer-1
    # patch gather (no extra kernel launch / HBM roundtrip for the scaled obs).
    att = jnp.dot(task, params["task_w"]) + params["task_b"]           # (B, 6)
    obs_scaled = obs * att[:, :, None, None]
    x = jnp.concatenate([obs_scaled, map_], axis=1)                    # (B, 9, H, W)
    x = jnp.transpose(x, (1, 0, 2, 3))                                 # (9, B, H, W)

    # image_conv: 3 x fused [Conv2d(k=2) + ReLU + MaxPool2d(2,2)] Pallas kernels
    for w_cm, b_cm in params["convs"]:
        x = conv_relu_pool(x, w_cm, b_cm)                              # (Cout, B, Hp, Wp)

    # flatten in NCHW order to match torch x.view(B, -1)
    Cf, _, Hf, Wf = x.shape
    feat = jnp.transpose(x, (1, 0, 2, 3)).reshape(B, Cf * Hf * Wf)     # bf16
    assert feat.shape[1] == CONCAT_LAYER_SIZE

    # concat with vgg; zero-pad the contraction dim so the head's K grid tiles evenly
    Kc = CONCAT_LAYER_SIZE + VGG_SIZE
    Kp = params["embed_w"].shape[0]
    xcat = jnp.concatenate(
        [feat, vgg_feature.astype(jnp.bfloat16),
         jnp.zeros((B, Kp - Kc), jnp.bfloat16)], axis=-1)

    mu, sigma, value, new_memory = head_forward(params, xcat, memory)
    dist_params = [mu, sigma]
    return dist_params, value[:, 0], new_memory


# ------------------------------ deterministic params ------------------------------

def fuse_conv_pool_params(w, b):
    """Fold Conv2d(k=2) + MaxPool2d(2,2) into one channel-major GEMM weight (bf16).

    w: (Cout, Cin, 2, 2) torch-layout conv weight, b: (Cout,) bias.
    Returns w_cm: (4*Cout, Cin*9) bf16 and b_cm: (Cout, 1) f32. Row group g = dh*2+dw
    holds the 2x2 kernel embedded at offset (dh, dw) inside the stride-2 3x3 pooling
    window; column order is (c, r, s), matching the patch builder.
    """
    cout, cin = w.shape[0], w.shape[1]
    wb = jnp.zeros((4, cout, cin, 3, 3), jnp.float32)
    g = 0
    for dh in range(2):
        for dw in range(2):
            wb = wb.at[g, :, :, dh:dh + 2, dw:dw + 2].set(w)
            g += 1
    w_cm = wb.reshape(4 * cout, cin * 9).astype(jnp.bfloat16)
    b_cm = b.reshape(cout, 1).astype(jnp.float32)
    return w_cm, b_cm


def init_params(key):
    keys = jax.random.split(key, 16)

    def norm_linear(k, out_d, in_d):
        # mimic initialize_parameters: N(0,1) rows, row-normalized, zero bias
        w = jax.random.normal(k, (out_d, in_d), jnp.float32)
        w = w / jnp.sqrt(jnp.sum(w * w, axis=1, keepdims=True))
        return w.T, jnp.zeros((1, out_d), jnp.float32)        # stored as (in,out), (1,out)

    def conv_layer(k, cout, cin):
        w = jax.random.normal(k, (cout, cin, 2, 2), jnp.float32) / np.sqrt(cin * 4.0)
        b = jnp.zeros((cout,), jnp.float32)
        return fuse_conv_pool_params(w, b)

    task_w, task_b = norm_linear(keys[0], INPUT_CHANNEL, 7)
    convs = [conv_layer(keys[1], 16, INPUT_CHANNEL + 3),
             conv_layer(keys[2], 32, 16),
             conv_layer(keys[3], IMAGE_EMBEDDING_SIZE, 32)]

    # embed_linear: pad K so it tiles into EMBED_K_STEPS lane-aligned blocks; store bf16
    Kc = CONCAT_LAYER_SIZE + VGG_SIZE
    Kp = EMBED_K_STEPS * _round_up(pl.cdiv(Kc, EMBED_K_STEPS), 128)
    embed_w, embed_b = norm_linear(keys[4], IMAGE_EMBEDDING_SIZE, Kc)
    embed_w = jnp.pad(embed_w, ((0, Kp - Kc), (0, 0))).astype(jnp.bfloat16)

    # GRUCell params (torch layout (3H, in), gate order r, z, n), packed per gate
    Hd = MEMORY_SIZE
    s = 1.0 / np.sqrt(Hd)
    gk = jax.random.split(keys[5], 4)
    w_ih = jax.random.uniform(gk[0], (3 * Hd, IMAGE_EMBEDDING_SIZE), jnp.float32, -s, s)
    w_hh = jax.random.uniform(gk[1], (3 * Hd, Hd), jnp.float32, -s, s)
    b_ih = jax.random.uniform(gk[2], (3 * Hd,), jnp.float32, -s, s)
    b_hh = jax.random.uniform(gk[3], (3 * Hd,), jnp.float32, -s, s)
    gru_w = jnp.concatenate(
        [w_ih[0:Hd].T, w_ih[Hd:2 * Hd].T, w_ih[2 * Hd:3 * Hd].T,
         w_hh[0:Hd].T, w_hh[Hd:2 * Hd].T, w_hh[2 * Hd:3 * Hd].T], axis=0)   # (384, 64)
    gru_b = jnp.stack(
        [b_ih[0:Hd], b_ih[Hd:2 * Hd], b_ih[2 * Hd:3 * Hd],
         b_hh[0:Hd], b_hh[Hd:2 * Hd], b_hh[2 * Hd:3 * Hd]], axis=0)         # (6, 64)

    actor_w1, actor_b1 = norm_linear(keys[6], 64, MEMORY_SIZE)
    actor_w2, actor_b2 = norm_linear(keys[7], ACTION_NUM, 64)
    mu_w, mu_b = norm_linear(keys[8], ACTION_NUM, ACTION_NUM)
    sigma_w, sigma_b = norm_linear(keys[9], ACTION_NUM, ACTION_NUM)
    critic_w1, critic_b1 = norm_linear(keys[10], 64, MEMORY_SIZE)
    critic_w2, critic_b2 = norm_linear(keys[11], 1, 64)

    # pack the tiny head operands into a few stacked arrays (fewer DMA descriptors)
    mlp_w = jnp.concatenate([actor_w1, critic_w1], axis=0)                  # (128, 64)
    mlp_b = jnp.concatenate([actor_b1, critic_b1], axis=0)                  # (2, 64)
    tail_w = jnp.concatenate(
        [actor_w2, jnp.pad(critic_w2, ((0, 0), (0, 1)))], axis=0)           # (128, 2)
    musig_w = jnp.concatenate([mu_w, sigma_w], axis=0)                      # (4, 2)
    tail_b = jnp.concatenate(
        [actor_b2, mu_b, sigma_b, jnp.pad(critic_b2, ((0, 0), (0, 1)))],
        axis=0)                                                             # (4, 2)

    return dict(task_w=task_w, task_b=task_b, convs=convs,
                embed_w=embed_w, embed_b=embed_b,
                gru_w=gru_w, gru_b=gru_b,
                mlp_w=mlp_w, mlp_b=mlp_b,
                tail_w=tail_w, musig_w=musig_w, tail_b=tail_b)


if __name__ == "__main__":
    # spatial 128x128 is required by the hard-coded concat_layer_size = 14400 (= 64*15*15)
    B, H, W = 2, 128, 128
    key = jax.random.PRNGKey(0)
    ks = jax.random.split(key, 8)
    params = init_params(ks[0])

    obs = jax.random.normal(ks[1], (B, INPUT_CHANNEL, H, W), jnp.float32)
    task = jax.random.normal(ks[2], (B, 7), jnp.float32)
    map_ = jax.random.normal(ks[3], (B, 3, H, W), jnp.float32)
    vgg_feature = jax.random.normal(ks[4], (B, VGG_SIZE), jnp.float32)
    memory = jax.random.normal(ks[5], (B, MEMORY_SIZE), jnp.float32)

    fwd = jax.jit(ac_model_forward)
    dist_params, value, new_memory = fwd(params, obs, task, map_, vgg_feature, memory)
    jax.block_until_ready((dist_params, value, new_memory))

    assert dist_params[0].shape == (B, ACTION_NUM)
    assert dist_params[1].shape == (B, ACTION_NUM)
    assert value.shape == (B,)
    assert new_memory.shape == (B, MEMORY_SIZE)
    assert bool(jnp.all(jnp.isfinite(dist_params[0])))
    assert bool(jnp.all(jnp.isfinite(dist_params[1])))
    assert bool(jnp.all(jnp.isfinite(value)))
    assert bool(jnp.all(jnp.isfinite(new_memory)))
    print("KERNEL_OK")
</pallas_src>

<mosaic_0001>
module attributes {stable_mosaic.version = 11 : i64} {
  func.func @_conv_relu_pool_kernel(%arg0: i32, %arg1: memref<64x81xbf16, #tpu.memory_space<vmem>>, %arg2: memref<16x1xf32, #tpu.memory_space<vmem>>, %arg3: memref<81x4096xbf16, #tpu.memory_space<vmem>>, %arg4: memref<16x4096xbf16, #tpu.memory_space<vmem>>) attributes {dimension_semantics = [#tpu.dimension_semantics<parallel>], iteration_bounds = array<i64: 2>, scalar_prefetch = 0 : i64, scratch_operands = 0 : i64, tpu.core_type = #tpu.core_type<tc>, window_params = [{pipeline_mode = #tpu.pipeline_mode<synchronous>, transform_indices = @transform_0, window_bounds = array<i64: 64, 81>}, {pipeline_mode = #tpu.pipeline_mode<synchronous>, transform_indices = @transform_1, window_bounds = array<i64: 16, 1>}, {transform_indices = @transform_2, window_bounds = array<i64: 81, 4096>}, {transform_indices = @transform_3, window_bounds = array<i64: 16, 4096>}]} {
    %c0 = arith.constant 0 : index
    %c0_0 = arith.constant 0 : index
    %0 = vector.load %arg1[%c0, %c0_0] : memref<64x81xbf16, #tpu.memory_space<vmem>>, vector<64x81xbf16>
    %c0_1 = arith.constant 0 : index
    %c0_2 = arith.constant 0 : index
    %1 = vector.load %arg3[%c0_1, %c0_2] : memref<81x4096xbf16, #tpu.memory_space<vmem>>, vector<81x4096xbf16>
    %cst = arith.constant dense<0.000000e+00> : vector<64x4096xf32>
    %2 = tpu.matmul %0, %1, %cst {dimension_numbers = #tpu.dot_dimension_numbers<[1], [0], [0], [1], [0, 0, 1, 1], [], []>} : vector<64x81xbf16>, vector<81x4096xbf16>, vector<64x4096xf32> -> vector<64x4096xf32>
    %3 = vector.extract_strided_slice %2 {offsets = [0, 0], sizes = [16, 4096], strides = [1, 1]} : vector<64x4096xf32> to vector<16x4096xf32>
    %4 = vector.extract_strided_slice %2 {offsets = [16, 0], sizes = [16, 4096], strides = [1, 1]} : vector<64x4096xf32> to vector<16x4096xf32>
    %5 = arith.maximumf %3, %4 : vector<16x4096xf32>
    %6 = vector.extract_strided_slice %2 {offsets = [32, 0], sizes = [16, 4096], strides = [1, 1]} : vector<64x4096xf32> to vector<16x4096xf32>
    %7 = vector.extract_strided_slice %2 {offsets = [48, 0], sizes = [16, 4096], strides = [1, 1]} : vector<64x4096xf32> to vector<16x4096xf32>
    %8 = arith.maximumf %6, %7 : vector<16x4096xf32>
    %9 = arith.maximumf %5, %8 : vector<16x4096xf32>
    %c0_3 = arith.constant 0 : index
    %c0_4 = arith.constant 0 : index
    %10 = vector.load %arg2[%c0_3, %c0_4] : memref<16x1xf32, #tpu.memory_space<vmem>>, vector<16x1xf32>
    %11 = vector.broadcast %10 : vector<16x1xf32> to vector<16x4096xf32>
    %12 = arith.addf %9, %11 : vector<16x4096xf32>
    %cst_5 = arith.constant 0.000000e+00 : f32
    %13 = vector.broadcast %cst_5 : f32 to vector<16x4096xf32>
    %14 = arith.maximumf %12, %13 : vector<16x4096xf32>
    %15 = arith.truncf %14 : vector<16x4096xf32> to vector<16x4096xbf16>
    %c0_6 = arith.constant 0 : index
    %c0_7 = arith.constant 0 : index
    %16 = vector.load %arg4[%c0_6, %c0_7] : memref<16x4096xbf16, #tpu.memory_space<vmem>>, vector<16x4096xbf16>
    tpu.vector_store %arg4[%c0_6, %c0_7], %15 {strides = array<i32>} : memref<16x4096xbf16, #tpu.memory_space<vmem>>, vector<16x4096xbf16>,
    return
  }
  func.func @transform_0(%arg0: i32) -> (i32, i32) {
    %c0_i32 = arith.constant 0 : i32
    %c0_i32_0 = arith.constant 0 : i32
    %c0_i32_1 = arith.constant 0 : i32
    return %c0_i32, %c0_i32_0 : i32, i32
  }
  func.func @transform_1(%arg0: i32) -> (i32, i32) {
    %c0_i32 = arith.constant 0 : i32
    %c0_i32_0 = arith.constant 0 : i32
    %c0_i32_1 = arith.constant 0 : i32
    return %c0_i32, %c0_i32_0 : i32, i32
  }
  func.func @transform_2(%arg0: i32) -> (i32, i32) {
    %c0_i32 = arith.constant 0 : i32
    %c0_i32_0 = arith.constant 0 : i32
    return %c0_i32, %arg0 : i32, i32
  }
  func.func @transform_3(%arg0: i32) -> (i32, i32) {
    %c0_i32 = arith.constant 0 : i32
    %c0_i32_0 = arith.constant 0 : i32
    return %c0_i32, %arg0 : i32, i32
  }
}

module attributes {stable_mosaic.version = 11 : i64} {
  func.func @_conv_relu_pool_kernel(%arg0: i32, %arg1: memref<128x144xbf16, #tpu.memory_space<vmem>>, %arg2: memref<32x1xf32, #tpu.memory_space<vmem>>, %arg3: memref<144x1024xbf16, #tpu.memory_space<vmem>>, %arg4: memref<32x1024xbf16, #tpu.memory_space<vmem>>) attributes {dimension_semantics = [#tpu.dimension_semantics<parallel>], iteration_bounds = array<i64: 2>, scalar_prefetch = 0 : i64, scratch_operands = 0 : i64, tpu.core_type = #tpu.core_type<tc>, window_params = [{pipeline_mode = #tpu.pipeline_mode<synchronous>, transform_indices = @transform_0, window_bounds = array<i64: 128, 144>}, {pipeline_mode = #tpu.pipeline_mode<synchronous>, transform_indices = @transform_1, window_bounds = array<i64: 32, 1>}, {transform_indices = @transform_2, window_bounds = array<i64: 144, 1024>}, {transform_indices = @transform_3, window_bounds = array<i64: 32, 1024>}]} {
    %c0 = arith.constant 0 : index
    %c0_0 = arith.constant 0 : index
    %0 = vector.load %arg1[%c0, %c0_0] : memref<128x144xbf16, #tpu.memory_space<vmem>>, vector<128x144xbf16>
    %c0_1 = arith.constant 0 : index
    %c0_2 = arith.constant 0 : index
    %1 = vector.load %arg3[%c0_1, %c0_2] : memref<144x1024xbf16, #tpu.memory_space<vmem>>, vector<144x1024xbf16>
    %cst = arith.constant dense<0.000000e+00> : vector<128x1024xf32>
    %2 = tpu.matmul %0, %1, %cst {dimension_numbers = #tpu.dot_dimension_numbers<[1], [0], [0], [1], [0, 0, 1, 1], [], []>} : vector<128x144xbf16>, vector<144x1024xbf16>, vector<128x1024xf32> -> vector<128x1024xf32>
    %3 = vector.extract_strided_slice %2 {offsets = [0, 0], sizes = [32, 1024], strides = [1, 1]} : vector<128x1024xf32> to vector<32x1024xf32>
    %4 = vector.extract_strided_slice %2 {offsets = [32, 0], sizes = [32, 1024], strides = [1, 1]} : vector<128x1024xf32> to vector<32x1024xf32>
    %5 = arith.maximumf %3, %4 : vector<32x1024xf32>
    %6 = vector.extract_strided_slice %2 {offsets = [64, 0], sizes = [32, 1024], strides = [1, 1]} : vector<128x1024xf32> to vector<32x1024xf32>
    %7 = vector.extract_strided_slice %2 {offsets = [96, 0], sizes = [32, 1024], strides = [1, 1]} : vector<128x1024xf32> to vector<32x1024xf32>
    %8 = arith.maximumf %6, %7 : vector<32x1024xf32>
    %9 = arith.maximumf %5, %8 : vector<32x1024xf32>
    %c0_3 = arith.constant 0 : index
    %c0_4 = arith.constant 0 : index
    %10 = vector.load %arg2[%c0_3, %c0_4] : memref<32x1xf32, #tpu.memory_space<vmem>>, vector<32x1xf32>
    %11 = vector.broadcast %10 : vector<32x1xf32> to vector<32x1024xf32>
    %12 = arith.addf %9, %11 : vector<32x1024xf32>
    %cst_5 = arith.constant 0.000000e+00 : f32
    %13 = vector.broadcast %cst_5 : f32 to vector<32x1024xf32>
    %14 = arith.maximumf %12, %13 : vector<32x1024xf32>
    %15 = arith.truncf %14 : vector<32x1024xf32> to vector<32x1024xbf16>
    %c0_6 = arith.constant 0 : index
    %c0_7 = arith.constant 0 : index
    %16 = vector.load %arg4[%c0_6, %c0_7] : memref<32x1024xbf16, #tpu.memory_space<vmem>>, vector<32x1024xbf16>
    tpu.vector_store %arg4[%c0_6, %c0_7], %15 {strides = array<i32>} : memref<32x1024xbf16, #tpu.memory_space<vmem>>, vector<32x1024xbf16>,
    return
  }
  func.func @transform_0(%arg0: i32) -> (i32, i32) {
    %c0_i32 = arith.constant 0 : i32
    %c0_i32_0 = arith.constant 0 : i32
    %c0_i32_1 = arith.constant 0 : i32
    return %c0_i32, %c0_i32_0 : i32, i32
  }
  func.func @transform_1(%arg0: i32) -> (i32, i32) {
    %c0_i32 = arith.constant 0 : i32
    %c0_i32_0 = arith.constant 0 : i32
    %c0_i32_1 = arith.constant 0 : i32
    return %c0_i32, %c0_i32_0 : i32, i32
  }
  func.func @transform_2(%arg0: i32) -> (i32, i32) {
    %c0_i32 = arith.constant 0 : i32
    %c0_i32_0 = arith.constant 0 : i32
    return %c0_i32, %arg0 : i32, i32
  }
  func.func @transform_3(%arg0: i32) -> (i32, i32) {
    %c0_i32 = arith.constant 0 : i32
    %c0_i32_0 = arith.constant 0 : i32
    return %c0_i32, %arg0 : i32, i32
  }
}

module attributes {stable_mosaic.version = 11 : i64} {
  func.func @_conv_relu_pool_kernel(%arg0: i32, %arg1: memref<256x288xbf16, #tpu.memory_space<vmem>>, %arg2: memref<64x1xf32, #tpu.memory_space<vmem>>, %arg3: memref<288x256xbf16, #tpu.memory_space<vmem>>, %arg4: memref<64x256xbf16, #tpu.memory_space<vmem>>) attributes {dimension_semantics = [#tpu.dimension_semantics<parallel>], iteration_bounds = array<i64: 2>, scalar_prefetch = 0 : i64, scratch_operands = 0 : i64, tpu.core_type = #tpu.core_type<tc>, window_params = [{pipeline_mode = #tpu.pipeline_mode<synchronous>, transform_indices = @transform_0, window_bounds = array<i64: 256, 288>}, {pipeline_mode = #tpu.pipeline_mode<synchronous>, transform_indices = @transform_1, window_bounds = array<i64: 64, 1>}, {transform_indices = @transform_2, window_bounds = array<i64: 288, 256>}, {transform_indices = @transform_3, window_bounds = array<i64: 64, 256>}]} {
    %c0 = arith.constant 0 : index
    %c0_0 = arith.constant 0 : index
    %0 = vector.load %arg1[%c0, %c0_0] : memref<256x288xbf16, #tpu.memory_space<vmem>>, vector<256x288xbf16>
    %c0_1 = arith.constant 0 : index
    %c0_2 = arith.constant 0 : index
    %1 = vector.load %arg3[%c0_1, %c0_2] : memref<288x256xbf16, #tpu.memory_space<vmem>>, vector<288x256xbf16>
    %cst = arith.constant dense<0.000000e+00> : vector<256x256xf32>
    %2 = tpu.matmul %0, %1, %cst {dimension_numbers = #tpu.dot_dimension_numbers<[1], [0], [0], [1], [0, 0, 1, 1], [], []>} : vector<256x288xbf16>, vector<288x256xbf16>, vector<256x256xf32> -> vector<256x256xf32>
    %3 = vector.extract_strided_slice %2 {offsets = [0, 0], sizes = [64, 256], strides = [1, 1]} : vector<256x256xf32> to vector<64x256xf32>
    %4 = vector.extract_strided_slice %2 {offsets = [64, 0], sizes = [64, 256], strides = [1, 1]} : vector<256x256xf32> to vector<64x256xf32>
    %5 = arith.maximumf %3, %4 : vector<64x256xf32>
    %6 = vector.extract_strided_slice %2 {offsets = [128, 0], sizes = [64, 256], strides = [1, 1]} : vector<256x256xf32> to vector<64x256xf32>
    %7 = vector.extract_strided_slice %2 {offsets = [192, 0], sizes = [64, 256], strides = [1, 1]} : vector<256x256xf32> to vector<64x256xf32>
    %8 = arith.maximumf %6, %7 : vector<64x256xf32>
    %9 = arith.maximumf %5, %8 : vector<64x256xf32>
    %c0_3 = arith.constant 0 : index
    %c0_4 = arith.constant 0 : index
    %10 = vector.load %arg2[%c0_3, %c0_4] : memref<64x1xf32, #tpu.memory_space<vmem>>, vector<64x1xf32>
    %11 = vector.broadcast %10 : vector<64x1xf32> to vector<64x256xf32>
    %12 = arith.addf %9, %11 : vector<64x256xf32>
    %cst_5 = arith.constant 0.000000e+00 : f32
    %13 = vector.broadcast %cst_5 : f32 to vector<64x256xf32>
    %14 = arith.maximumf %12, %13 : vector<64x256xf32>
    %15 = arith.truncf %14 : vector<64x256xf32> to vector<64x256xbf16>
    %c0_6 = arith.constant 0 : index
    %c0_7 = arith.constant 0 : index
    %16 = vector.load %arg4[%c0_6, %c0_7] : memref<64x256xbf16, #tpu.memory_space<vmem>>, vector<64x256xbf16>
    tpu.vector_store %arg4[%c0_6, %c0_7], %15 {strides = array<i32>} : memref<64x256xbf16, #tpu.memory_space<vmem>>, vector<64x256xbf16>,
    return
  }
  func.func @transform_0(%arg0: i32) -> (i32, i32) {
    %c0_i32 = arith.constant 0 : i32
    %c0_i32_0 = arith.constant 0 : i32
    %c0_i32_1 = arith.constant 0 : i32
    return %c0_i32, %c0_i32_0 : i32, i32
  }
  func.func @transform_1(%arg0: i32) -> (i32, i32) {
    %c0_i32 = arith.constant 0 : i32
    %c0_i32_0 = arith.constant 0 : i32
    %c0_i32_1 = arith.constant 0 : i32
    return %c0_i32, %c0_i32_0 : i32, i32
  }
  func.func @transform_2(%arg0: i32) -> (i32, i32) {
    %c0_i32 = arith.constant 0 : i32
    %c0_i32_0 = arith.constant 0 : i32
    return %c0_i32, %arg0 : i32, i32
  }
  func.func @transform_3(%arg0: i32) -> (i32, i32) {
    %c0_i32 = arith.constant 0 : i32
    %c0_i32_0 = arith.constant 0 : i32
    return %c0_i32, %arg0 : i32, i32
  }
}

module attributes {stable_mosaic.version = 11 : i64} {
  func.func @_head_kernel(%arg0: i32, %arg1: memref<2x4736xbf16, #tpu.memory_space<vmem>>, %arg2: memref<2x64xf32, #tpu.memory_space<vmem>>, %arg3: memref<4736x64xbf16, #tpu.memory_space<vmem>>, %arg4: memref<1x64xf32, #tpu.memory_space<vmem>>, %arg5: memref<384x64xf32, #tpu.memory_space<vmem>>, %arg6: memref<6x64xf32, #tpu.memory_space<vmem>>, %arg7: memref<128x64xf32, #tpu.memory_space<vmem>>, %arg8: memref<2x64xf32, #tpu.memory_space<vmem>>, %arg9: memref<128x2xf32, #tpu.memory_space<vmem>>, %arg10: memref<4x2xf32, #tpu.memory_space<vmem>>, %arg11: memref<4x2xf32, #tpu.memory_space<vmem>>, %arg12: memref<2x2xf32, #tpu.memory_space<vmem>>, %arg13: memref<2x2xf32, #tpu.memory_space<vmem>>, %arg14: memref<2x1xf32, #tpu.memory_space<vmem>>, %arg15: memref<2x64xf32, #tpu.memory_space<vmem>>, %arg16: memref<2x64xf32, #tpu.memory_space<vmem>>) attributes {dimension_semantics = [#tpu.dimension_semantics<arbitrary>], iteration_bounds = array<i64: 4>, scalar_prefetch = 0 : i64, scratch_operands = 1 : i64, tpu.core_type = #tpu.core_type<tc>, window_params = [{transform_indices = @transform_0, window_bounds = array<i64: 2, 4736>}, {pipeline_mode = #tpu.pipeline_mode<synchronous>, transform_indices = @transform_1, window_bounds = array<i64: 2, 64>}, {transform_indices = @transform_2, window_bounds = array<i64: 4736, 64>}, {pipeline_mode = #tpu.pipeline_mode<synchronous>, transform_indices = @transform_3, window_bounds = array<i64: 1, 64>}, {pipeline_mode = #tpu.pipeline_mode<synchronous>, transform_indices = @transform_4, window_bounds = array<i64: 384, 64>}, {pipeline_mode = #tpu.pipeline_mode<synchronous>, transform_indices = @transform_5, window_bounds = array<i64: 6, 64>}, {pipeline_mode = #tpu.pipeline_mode<synchronous>, transform_indices = @transform_6, window_bounds = array<i64: 128, 64>}, {pipeline_mode = #tpu.pipeline_mode<synchronous>, transform_indices = @transform_7, window_bounds = array<i64: 2, 64>}, {pipeline_mode = #tpu.pipeline_mode<synchronous>, transform_indices = @transform_8, window_bounds = array<i64: 128, 2>}, {pipeline_mode = #tpu.pipeline_mode<synchronous>, transform_indices = @transform_9, window_bounds = array<i64: 4, 2>}, {pipeline_mode = #tpu.pipeline_mode<synchronous>, transform_indices = @transform_10, window_bounds = array<i64: 4, 2>}, {pipeline_mode = #tpu.pipeline_mode<synchronous>, transform_indices = @transform_11, window_bounds = array<i64: 2, 2>}, {pipeline_mode = #tpu.pipeline_mode<synchronous>, transform_indices = @transform_12, window_bounds = array<i64: 2, 2>}, {pipeline_mode = #tpu.pipeline_mode<synchronous>, transform_indices = @transform_13, window_bounds = array<i64: 2, 1>}, {pipeline_mode = #tpu.pipeline_mode<synchronous>, transform_indices = @transform_14, window_bounds = array<i64: 2, 64>}]} {
    %c0_i32 = arith.constant 0 : i32
    %0 = arith.cmpi eq, %arg0, %c0_i32 : i32
    %1 = arith.extui %0 : i1 to i32
    %c0_i32_0 = arith.constant 0 : i32
    %2 = arith.cmpi ne, %1, %c0_i32_0 : i32
    scf.if %2 {
      %cst_9 = arith.constant 0.000000e+00 : f32
      %12 = vector.broadcast %cst_9 : f32 to vector<2x64xf32>
      %c0_10 = arith.constant 0 : index
      %c0_11 = arith.constant 0 : index
      %13 = vector.load %arg16[%c0_10, %c0_11] : memref<2x64xf32, #tpu.memory_space<vmem>>, vector<2x64xf32>
      tpu.vector_store %arg16[%c0_10, %c0_11], %12 {strides = array<i32>} : memref<2x64xf32, #tpu.memory_space<vmem>>, vector<2x64xf32>,
    } else {
    }
    %c0 = arith.constant 0 : index
    %c0_1 = arith.constant 0 : index
    %3 = vector.load %arg16[%c0, %c0_1] : memref<2x64xf32, #tpu.memory_space<vmem>>, vector<2x64xf32>
    %c0_2 = arith.constant 0 : index
    %c0_3 = arith.constant 0 : index
    %4 = vector.load %arg1[%c0_2, %c0_3] : memref<2x4736xbf16, #tpu.memory_space<vmem>>, vector<2x4736xbf16>
    %c0_4 = arith.constant 0 : index
    %c0_5 = arith.constant 0 : index
    %5 = vector.load %arg3[%c0_4, %c0_5] : memref<4736x64xbf16, #tpu.memory_space<vmem>>, vector<4736x64xbf16>
    %cst = arith.constant dense<0.000000e+00> : vector<2x64xf32>
    %6 = tpu.matmul %4, %5, %cst {dimension_numbers = #tpu.dot_dimension_numbers<[1], [0], [0], [1], [0, 0, 1, 1], [], []>} : vector<2x4736xbf16>, vector<4736x64xbf16>, vector<2x64xf32> -> vector<2x64xf32>
    %7 = arith.addf %3, %6 : vector<2x64xf32>
    %c0_6 = arith.constant 0 : index
    %c0_7 = arith.constant 0 : index
    %8 = vector.load %arg16[%c0_6, %c0_7] : memref<2x64xf32, #tpu.memory_space<vmem>>, vector<2x64xf32>
    tpu.vector_store %arg16[%c0_6, %c0_7], %7 {strides = array<i32>} : memref<2x64xf32, #tpu.memory_space<vmem>>, vector<2x64xf32>,
    %c3_i32 = arith.constant 3 : i32
    %9 = arith.cmpi eq, %arg0, %c3_i32 : i32
    %10 = arith.extui %9 : i1 to i32
    %c0_i32_8 = arith.constant 0 : i32
    %11 = arith.cmpi ne, %10, %c0_i32_8 : i32
    scf.if %11 {
      %c0_9 = arith.constant 0 : index
      %c0_10 = arith.constant 0 : index
      %12 = vector.load %arg16[%c0_9, %c0_10] : memref<2x64xf32, #tpu.memory_space<vmem>>, vector<2x64xf32>
      %c0_11 = arith.constant 0 : index
      %c0_12 = arith.constant 0 : index
      %13 = vector.load %arg4[%c0_11, %c0_12] : memref<1x64xf32, #tpu.memory_space<vmem>>, vector<1x64xf32>
      %14 = vector.broadcast %13 : vector<1x64xf32> to vector<2x64xf32>
      %15 = arith.addf %12, %14 : vector<2x64xf32>
      %c0_13 = arith.constant 0 : index
      %c0_14 = arith.constant 0 : index
      %16 = vector.load %arg2[%c0_13, %c0_14] : memref<2x64xf32, #tpu.memory_space<vmem>>, vector<2x64xf32>
      %c0_15 = arith.constant 0 : index
      %c0_16 = arith.constant 0 : index
      %17 = vector.load %arg6[%c0_15, %c0_16] : memref<6x64xf32, #tpu.memory_space<vmem>>, vector<6x64xf32>
      %c0_17 = arith.constant 0 : index
      %c0_18 = arith.constant 0 : index
      %18 = vector.load %arg5[%c0_17, %c0_18] : memref<384x64xf32, #tpu.memory_space<vmem>>, vector<64x64xf32>
      %cst_19 = arith.constant dense<0.000000e+00> : vector<2x64xf32>
      %19 = tpu.matmul %15, %18, %cst_19 {dimension_numbers = #tpu.dot_dimension_numbers<[1], [0], [0], [1], [0, 0, 1, 1], [], []>} : vector<2x64xf32>, vector<64x64xf32>, vector<2x64xf32> -> vector<2x64xf32>
      %20 = vector.extract_strided_slice %17 {offsets = [0, 0], sizes = [1, 64], strides = [1, 1]} : vector<6x64xf32> to vector<1x64xf32>
      %21 = vector.broadcast %20 : vector<1x64xf32> to vector<2x64xf32>
      %22 = arith.addf %19, %21 : vector<2x64xf32>
      %c192 = arith.constant 192 : index
      %c0_20 = arith.constant 0 : index
      %23 = vector.load %arg5[%c192, %c0_20] : memref<384x64xf32, #tpu.memory_space<vmem>>, vector<64x64xf32>
      %cst_21 = arith.constant dense<0.000000e+00> : vector<2x64xf32>
      %24 = tpu.matmul %16, %23, %cst_21 {dimension_numbers = #tpu.dot_dimension_numbers<[1], [0], [0], [1], [0, 0, 1, 1], [], []>} : vector<2x64xf32>, vector<64x64xf32>, vector<2x64xf32> -> vector<2x64xf32>
      %25 = arith.addf %22, %24 : vector<2x64xf32>
      %26 = vector.extract_strided_slice %17 {offsets = [3, 0], sizes = [1, 64], strides = [1, 1]} : vector<6x64xf32> to vector<1x64xf32>
      %27 = vector.broadcast %26 : vector<1x64xf32> to vector<2x64xf32>
      %28 = arith.addf %25, %27 : vector<2x64xf32>
      %cst_22 = arith.constant 0.000000e+00 : f32
      %29 = vector.broadcast %cst_22 : f32 to vector<2x64xf32>
      %30 = arith.subf %29, %28 : vector<2x64xf32>
      %31 = math.exp %30 : vector<2x64xf32>
      %cst_23 = arith.constant 1.000000e+00 : f32
      %32 = vector.broadcast %cst_23 : f32 to vector<2x64xf32>
      %33 = arith.addf %32, %31 : vector<2x64xf32>
      %cst_24 = arith.constant 1.000000e+00 : f32
      %34 = vector.broadcast %cst_24 : f32 to vector<2x64xf32>
      %35 = arith.divf %34, %33 : vector<2x64xf32>
      %c64 = arith.constant 64 : index
      %c0_25 = arith.constant 0 : index
      %36 = vector.load %arg5[%c64, %c0_25] : memref<384x64xf32, #tpu.memory_space<vmem>>, vector<64x64xf32>
      %cst_26 = arith.constant dense<0.000000e+00> : vector<2x64xf32>
      %37 = tpu.matmul %15, %36, %cst_26 {dimension_numbers = #tpu.dot_dimension_numbers<[1], [0], [0], [1], [0, 0, 1, 1], [], []>} : vector<2x64xf32>, vector<64x64xf32>, vector<2x64xf32> -> vector<2x64xf32>
      %38 = vector.extract_strided_slice %17 {offsets = [1, 0], sizes = [1, 64], strides = [1, 1]} : vector<6x64xf32> to vector<1x64xf32>
      %39 = vector.broadcast %38 : vector<1x64xf32> to vector<2x64xf32>
      %40 = arith.addf %37, %39 : vector<2x64xf32>
      %c256 = arith.constant 256 : index
      %c0_27 = arith.constant 0 : index
      %41 = vector.load %arg5[%c256, %c0_27] : memref<384x64xf32, #tpu.memory_space<vmem>>, vector<64x64xf32>
      %cst_28 = arith.constant dense<0.000000e+00> : vector<2x64xf32>
      %42 = tpu.matmul %16, %41, %cst_28 {dimension_numbers = #tpu.dot_dimension_numbers<[1], [0], [0], [1], [0, 0, 1, 1], [], []>} : vector<2x64xf32>, vector<64x64xf32>, vector<2x64xf32> -> vector<2x64xf32>
      %43 = arith.addf %40, %42 : vector<2x64xf32>
      %44 = vector.extract_strided_slice %17 {offsets = [4, 0], sizes = [1, 64], strides = [1, 1]} : vector<6x64xf32> to vector<1x64xf32>
      %45 = vector.broadcast %44 : vector<1x64xf32> to vector<2x64xf32>
      %46 = arith.addf %43, %45 : vector<2x64xf32>
      %cst_29 = arith.constant 0.000000e+00 : f32
      %47 = vector.broadcast %cst_29 : f32 to vector<2x64xf32>
      %48 = arith.subf %47, %46 : vector<2x64xf32>
      %49 = math.exp %48 : vector<2x64xf32>
      %cst_30 = arith.constant 1.000000e+00 : f32
      %50 = vector.broadcast %cst_30 : f32 to vector<2x64xf32>
      %51 = arith.addf %50, %49 : vector<2x64xf32>
      %cst_31 = arith.constant 1.000000e+00 : f32
      %52 = vector.broadcast %cst_31 : f32 to vector<2x64xf32>
      %53 = arith.divf %52, %51 : vector<2x64xf32>
      %c128 = arith.constant 128 : index
      %c0_32 = arith.constant 0 : index
      %54 = vector.load %arg5[%c128, %c0_32] : memref<384x64xf32, #tpu.memory_space<vmem>>, vector<64x64xf32>
      %cst_33 = arith.constant dense<0.000000e+00> : vector<2x64xf32>
      %55 = tpu.matmul %15, %54, %cst_33 {dimension_numbers = #tpu.dot_dimension_numbers<[1], [0], [0], [1], [0, 0, 1, 1], [], []>} : vector<2x64xf32>, vector<64x64xf32>, vector<2x64xf32> -> vector<2x64xf32>
      %56 = vector.extract_strided_slice %17 {offsets = [2, 0], sizes = [1, 64], strides = [1, 1]} : vector<6x64xf32> to vector<1x64xf32>
      %57 = vector.broadcast %56 : vector<1x64xf32> to vector<2x64xf32>
      %58 = arith.addf %55, %57 : vector<2x64xf32>
      %c320 = arith.constant 320 : index
      %c0_34 = arith.constant 0 : index
      %59 = vector.load %arg5[%c320, %c0_34] : memref<384x64xf32, #tpu.memory_space<vmem>>, vector<64x64xf32>
      %cst_35 = arith.constant dense<0.000000e+00> : vector<2x64xf32>
      %60 = tpu.matmul %16, %59, %cst_35 {dimension_numbers = #tpu.dot_dimension_numbers<[1], [0], [0], [1], [0, 0, 1, 1], [], []>} : vector<2x64xf32>, vector<64x64xf32>, vector<2x64xf32> -> vector<2x64xf32>
      %61 = vector.extract_strided_slice %17 {offsets = [5, 0], sizes = [1, 64], strides = [1, 1]} : vector<6x64xf32> to vector<1x64xf32>
      %62 = vector.broadcast %61 : vector<1x64xf32> to vector<2x64xf32>
      %63 = arith.addf %60, %62 : vector<2x64xf32>
      %64 = arith.mulf %35, %63 : vector<2x64xf32>
      %65 = arith.addf %58, %64 : vector<2x64xf32>
      %66 = math.tanh %65 : vector<2x64xf32>
      %cst_36 = arith.constant 1.000000e+00 : f32
      %67 = vector.broadcast %cst_36 : f32 to vector<2x64xf32>
      %68 = arith.subf %67, %53 : vector<2x64xf32>
      %69 = arith.mulf %68, %66 : vector<2x64xf32>
      %70 = arith.mulf %53, %16 : vector<2x64xf32>
      %71 = arith.addf %69, %70 : vector<2x64xf32>
      %c0_37 = arith.constant 0 : index
      %c0_38 = arith.constant 0 : index
      %72 = vector.load %arg15[%c0_37, %c0_38] : memref<2x64xf32, #tpu.memory_space<vmem>>, vector<2x64xf32>
      tpu.vector_store %arg15[%c0_37, %c0_38], %71 {strides = array<i32>} : memref<2x64xf32, #tpu.memory_space<vmem>>, vector<2x64xf32>,
      %c0_39 = arith.constant 0 : index
      %c0_40 = arith.constant 0 : index
      %73 = vector.load %arg8[%c0_39, %c0_40] : memref<2x64xf32, #tpu.memory_space<vmem>>, vector<2x64xf32>
      %c0_41 = arith.constant 0 : index
      %c0_42 = arith.constant 0 : index
      %74 = vector.load %arg7[%c0_41, %c0_42] : memref<128x64xf32, #tpu.memory_space<vmem>>, vector<64x64xf32>
      %cst_43 = arith.constant dense<0.000000e+00> : vector<2x64xf32>
      %75 = tpu.matmul %71, %74, %cst_43 {dimension_numbers = #tpu.dot_dimension_numbers<[1], [0], [0], [1], [0, 0, 1, 1], [], []>} : vector<2x64xf32>, vector<64x64xf32>, vector<2x64xf32> -> vector<2x64xf32>
      %76 = vector.extract_strided_slice %73 {offsets = [0, 0], sizes = [1, 64], strides = [1, 1]} : vector<2x64xf32> to vector<1x64xf32>
      %77 = vector.broadcast %76 : vector<1x64xf32> to vector<2x64xf32>
      %78 = arith.addf %75, %77 : vector<2x64xf32>
      %79 = math.tanh %78 : vector<2x64xf32>
      %c64_44 = arith.constant 64 : index
      %c0_45 = arith.constant 0 : index
      %80 = vector.load %arg7[%c64_44, %c0_45] : memref<128x64xf32, #tpu.memory_space<vmem>>, vector<64x64xf32>
      %cst_46 = arith.constant dense<0.000000e+00> : vector<2x64xf32>
      %81 = tpu.matmul %71, %80, %cst_46 {dimension_numbers = #tpu.dot_dimension_numbers<[1], [0], [0], [1], [0, 0, 1, 1], [], []>} : vector<2x64xf32>, vector<64x64xf32>, vector<2x64xf32> -> vector<2x64xf32>
      %82 = vector.extract_strided_slice %73 {offsets = [1, 0], sizes = [1, 64], strides = [1, 1]} : vector<2x64xf32> to vector<1x64xf32>
      %83 = vector.broadcast %82 : vector<1x64xf32> to vector<2x64xf32>
      %84 = arith.addf %81, %83 : vector<2x64xf32>
      %85 = math.tanh %84 : vector<2x64xf32>
      %c0_47 = arith.constant 0 : index
      %c0_48 = arith.constant 0 : index
      %86 = vector.load %arg11[%c0_47, %c0_48] : memref<4x2xf32, #tpu.memory_space<vmem>>, vector<4x2xf32>
      %c0_49 = arith.constant 0 : index
      %c0_50 = arith.constant 0 : index
      %87 = vector.load %arg9[%c0_49, %c0_50] : memref<128x2xf32, #tpu.memory_space<vmem>>, vector<64x2xf32>
      %cst_51 = arith.constant dense<0.000000e+00> : vector<2x2xf32>
      %88 = tpu.matmul %79, %87, %cst_51 {dimension_numbers = #tpu.dot_dimension_numbers<[1], [0], [0], [1], [0, 0, 1, 1], [], []>} : vector<2x64xf32>, vector<64x2xf32>, vector<2x2xf32> -> vector<2x2xf32>
      %89 = vector.extract_strided_slice %86 {offsets = [0, 0], sizes = [1, 2], strides = [1, 1]} : vector<4x2xf32> to vector<1x2xf32>
      %90 = vector.broadcast %89 : vector<1x2xf32> to vector<2x2xf32>
      %91 = arith.addf %88, %90 : vector<2x2xf32>
      %c0_52 = arith.constant 0 : index
      %c0_53 = arith.constant 0 : index
      %92 = vector.load %arg10[%c0_52, %c0_53] : memref<4x2xf32, #tpu.memory_space<vmem>>, vector<2x2xf32>
      %cst_54 = arith.constant dense<0.000000e+00> : vector<2x2xf32>
      %93 = tpu.matmul %91, %92, %cst_54 {dimension_numbers = #tpu.dot_dimension_numbers<[1], [0], [0], [1], [0, 0, 1, 1], [], []>} : vector<2x2xf32>, vector<2x2xf32>, vector<2x2xf32> -> vector<2x2xf32>
      %94 = vector.extract_strided_slice %86 {offsets = [1, 0], sizes = [1, 2], strides = [1, 1]} : vector<4x2xf32> to vector<1x2xf32>
      %95 = vector.broadcast %94 : vector<1x2xf32> to vector<2x2xf32>
      %96 = arith.addf %93, %95 : vector<2x2xf32>
      %97 = math.tanh %96 : vector<2x2xf32>
      %c0_55 = arith.constant 0 : index
      %c0_56 = arith.constant 0 : index
      %98 = vector.load %arg12[%c0_55, %c0_56] : memref<2x2xf32, #tpu.memory_space<vmem>>, vector<2x2xf32>
      tpu.vector_store %arg12[%c0_55, %c0_56], %97 {strides = array<i32>} : memref<2x2xf32, #tpu.memory_space<vmem>>, vector<2x2xf32>,
      %c2 = arith.constant 2 : index
      %c0_57 = arith.constant 0 : index
      %99 = vector.load %arg10[%c2, %c0_57] : memref<4x2xf32, #tpu.memory_space<vmem>>, vector<2x2xf32>
      %cst_58 = arith.constant dense<0.000000e+00> : vector<2x2xf32>
      %100 = tpu.matmul %91, %99, %cst_58 {dimension_numbers = #tpu.dot_dimension_numbers<[1], [0], [0], [1], [0, 0, 1, 1], [], []>} : vector<2x2xf32>, vector<2x2xf32>, vector<2x2xf32> -> vector<2x2xf32>
      %101 = vector.extract_strided_slice %86 {offsets = [2, 0], sizes = [1, 2], strides = [1, 1]} : vector<4x2xf32> to vector<1x2xf32>
      %102 = vector.broadcast %101 : vector<1x2xf32> to vector<2x2xf32>
      %103 = arith.addf %100, %102 : vector<2x2xf32>
      %cst_59 = arith.constant 2.000000e+01 : f32
      %104 = vector.broadcast %cst_59 : f32 to vector<2x2xf32>
      %105 = arith.cmpf ogt, %103, %104 : vector<2x2xf32>
      %cst_60 = arith.constant 2.000000e+01 : f32
      %106 = vector.broadcast %cst_60 : f32 to vector<2x2xf32>
      %107 = arith.minimumf %103, %106 : vector<2x2xf32>
      %108 = math.exp %107 : vector<2x2xf32>
      %cst_61 = arith.constant 1.000000e+00 : f32
      %109 = vector.broadcast %cst_61 : f32 to vector<2x2xf32>
      %110 = arith.addf %109, %108 : vector<2x2xf32>
      %111 = math.log %110 : vector<2x2xf32>
      %112 = arith.select %105, %103, %111 : vector<2x2xi1>, vector<2x2xf32>
      %c0_62 = arith.constant 0 : index
      %c0_63 = arith.constant 0 : index
      %113 = vector.load %arg13[%c0_62, %c0_63] : memref<2x2xf32, #tpu.memory_space<vmem>>, vector<2x2xf32>
      tpu.vector_store %arg13[%c0_62, %c0_63], %112 {strides = array<i32>} : memref<2x2xf32, #tpu.memory_space<vmem>>, vector<2x2xf32>,
      %c64_64 = arith.constant 64 : index
      %c0_65 = arith.constant 0 : index
      %114 = vector.load %arg9[%c64_64, %c0_65] : memref<128x2xf32, #tpu.memory_space<vmem>>, vector<64x2xf32>
      %cst_66 = arith.constant dense<0.000000e+00> : vector<2x2xf32>
      %115 = tpu.matmul %85, %114, %cst_66 {dimension_numbers = #tpu.dot_dimension_numbers<[1], [0], [0], [1], [0, 0, 1, 1], [], []>} : vector<2x64xf32>, vector<64x2xf32>, vector<2x2xf32> -> vector<2x2xf32>
      %116 = vector.extract_strided_slice %86 {offsets = [3, 0], sizes = [1, 2], strides = [1, 1]} : vector<4x2xf32> to vector<1x2xf32>
      %117 = vector.broadcast %116 : vector<1x2xf32> to vector<2x2xf32>
      %118 = arith.addf %115, %117 : vector<2x2xf32>
      %119 = vector.extract_strided_slice %118 {offsets = [0, 0], sizes = [2, 1], strides = [1, 1]} : vector<2x2xf32> to vector<2x1xf32>
      %c0_67 = arith.constant 0 : index
      %c0_68 = arith.constant 0 : index
      %120 = vector.load %arg14[%c0_67, %c0_68] : memref<2x1xf32, #tpu.memory_space<vmem>>, vector<2x1xf32>
      tpu.vector_store %arg14[%c0_67, %c0_68], %119 {strides = array<i32>} : memref<2x1xf32, #tpu.memory_space<vmem>>, vector<2x1xf32>,
    } else {
    }
    return
  }
  func.func @transform_0(%arg0: i32) -> (i32, i32) {
    %c0_i32 = arith.constant 0 : i32
    %c0_i32_0 = arith.constant 0 : i32
    return %c0_i32, %arg0 : i32, i32
  }
  func.func @transform_1(%arg0: i32) -> (i32, i32) {
    %c0_i32 = arith.constant 0 : i32
    %c0_i32_0 = arith.constant 0 : i32
    %c0_i32_1 = arith.constant 0 : i32
    return %c0_i32, %c0_i32_0 : i32, i32
  }
  func.func @transform_2(%arg0: i32) -> (i32, i32) {
    %c0_i32 = arith.constant 0 : i32
    %c0_i32_0 = arith.constant 0 : i32
    return %arg0, %c0_i32 : i32, i32
  }
  func.func @transform_3(%arg0: i32) -> (i32, i32) {
    %c0_i32 = arith.constant 0 : i32
    %c0_i32_0 = arith.constant 0 : i32
    %c0_i32_1 = arith.constant 0 : i32
    return %c0_i32, %c0_i32_0 : i32, i32
  }
  func.func @transform_4(%arg0: i32) -> (i32, i32) {
    %c0_i32 = arith.constant 0 : i32
    %c0_i32_0 = arith.constant 0 : i32
    %c0_i32_1 = arith.constant 0 : i32
    return %c0_i32, %c0_i32_0 : i32, i32
  }
  func.func @transform_5(%arg0: i32) -> (i32, i32) {
    %c0_i32 = arith.constant 0 : i32
    %c0_i32_0 = arith.constant 0 : i32
    %c0_i32_1 = arith.constant 0 : i32
    return %c0_i32, %c0_i32_0 : i32, i32
  }
  func.func @transform_6(%arg0: i32) -> (i32, i32) {
    %c0_i32 = arith.constant 0 : i32
    %c0_i32_0 = arith.constant 0 : i32
    %c0_i32_1 = arith.constant 0 : i32
    return %c0_i32, %c0_i32_0 : i32, i32
  }
  func.func @transform_7(%arg0: i32) -> (i32, i32) {
    %c0_i32 = arith.constant 0 : i32
    %c0_i32_0 = arith.constant 0 : i32
    %c0_i32_1 = arith.constant 0 : i32
    return %c0_i32, %c0_i32_0 : i32, i32
  }
  func.func @transform_8(%arg0: i32) -> (i32, i32) {
    %c0_i32 = arith.constant 0 : i32
    %c0_i32_0 = arith.constant 0 : i32
    %c0_i32_1 = arith.constant 0 : i32
    return %c0_i32, %c0_i32_0 : i32, i32
  }
  func.func @transform_9(%arg0: i32) -> (i32, i32) {
    %c0_i32 = arith.constant 0 : i32
    %c0_i32_0 = arith.constant 0 : i32
    %c0_i32_1 = arith.constant 0 : i32
    return %c0_i32, %c0_i32_0 : i32, i32
  }
  func.func @transform_10(%arg0: i32) -> (i32, i32) {
    %c0_i32 = arith.constant 0 : i32
    %c0_i32_0 = arith.constant 0 : i32
    %c0_i32_1 = arith.constant 0 : i32
    return %c0_i32, %c0_i32_0 : i32, i32
  }
  func.func @transform_11(%arg0: i32) -> (i32, i32) {
    %c0_i32 = arith.constant 0 : i32
    %c0_i32_0 = arith.constant 0 : i32
    %c0_i32_1 = arith.constant 0 : i32
    return %c0_i32, %c0_i32_0 : i32, i32
  }
  func.func @transform_12(%arg0: i32) -> (i32, i32) {
    %c0_i32 = arith.constant 0 : i32
    %c0_i32_0 = arith.constant 0 : i32
    %c0_i32_1 = arith.constant 0 : i32
    return %c0_i32, %c0_i32_0 : i32, i32
  }
  func.func @transform_13(%arg0: i32) -> (i32, i32) {
    %c0_i32 = arith.constant 0 : i32
    %c0_i32_0 = arith.constant 0 : i32
    %c0_i32_1 = arith.constant 0 : i32
    return %c0_i32, %c0_i32_0 : i32, i32
  }
  func.func @transform_14(%arg0: i32) -> (i32, i32) {
    %c0_i32 = arith.constant 0 : i32
    %c0_i32_0 = arith.constant 0 : i32
    %c0_i32_1 = arith.constant 0 : i32
    return %c0_i32, %c0_i32_0 : i32, i32
  }
}

</mosaic_0001>

<bundles_post_ra>
// kernel: ac_model_forward.4
= control target key start
LH: loop header
LB: loop body
LE: loop exit
PB: predicated region body
PF: predicated region fallthrough
CT: control target
= control target key end

     0   :  { %s4055_s12 = smov 0   ;;  %s4057_s13 = smov 0   ;;  %s5110_s0 = inlined_call_operand.vmem [shape: bf16[64,81], index: 0, kind: input, shape index: {}]   ;;  %s5111_s1 = inlined_call_operand.vmem [shape: f32[16,1], index: 1, kind: input, shape index: {}]   ;;  %s5112_s2 = inlined_call_operand.vmem [shape: bf16[81,8192], index: 2, kind: input, shape index: {}]   ;;  %s5113_s3 = inlined_call_operand.vmem [shape: bf16[16,8192], index: 3, kind: output, shape index: {}]  }
   0x1   :  { %s4059_s14 = smov 0  }
   0x2 LB: > { %s3603_s15 = sadd.s32 4294967295, %s4032_s14   ;;  %s4072_s16 = sadd.s32 1, %s4032_s14   ;;  %s4032_s14 = sphi %s4059_s14, %s5117_s14   ;;  %s4028_s13 = sphi %s4057_s13, %s5116_s13   ;;  %s4024_s12 = sphi %s4055_s12, %s5115_s12  }
   0x3   : > { %s59_s17 = ssub.s32 %s4032_s14, %s4072_s16  ;;  %s62_s18 = sadd.s32 1, %s4028_s13 }
   0x4   : > { %p60_p0 = scmp.eq.s32.totalorder %s59_s17, 0  ;;  %p69_p1 = scmp.ne.s32.totalorder %s4028_s13, %s4024_s12 }
   0x5   : > { %p70_p2 = scmp.eq.s32.totalorder %s4032_s14, 0  ;;  %p99_p3 = scmp.eq.s32.totalorder %s3603_s15, 1 }
   0x6   : > { %s4083_s19 = scalar_select %p60_p0, %s4028_s13, %s62_s18  }
   0x7   : > { %p71_p4 = por %p70_p2, %p69_p1  ;;  %p4085_p5 = por %p99_p3, %p69_p1 }
   0x8   : > { %p3606_p6 = scmp.ge.s32.totalorder %s4032_s14, 2 }
   0xa   : > { %127 = sbr.rel (%p3606_p6) target bundleno = 110 (0x6e), region = 24 }
  0x11   : > { %130 = sbr.rel (!%p71_p4) target bundleno = 110 (0x6e), region = 28  ;;  %s132_s21 = sand.u32 (%p71_p4), 1, %s4028_s13  }
  0x12   : > { %s3908_s22 = sshll.u32 (%p71_p4), %s4032_s14, 7  ;;  %s3942_s23 = smul.u32 (%p71_p4), 1408, %s132_s21 }
  0x13   : > { %s4095_s26 = scalar_lea.vmem (%p71_p4), %s5112_s2, %s3908_s22 }
  0x14   : > { %v150_v0 = vld [vmem:[%s4095_s26] sm:$0xff] (%p71_p4)  ;;  %v152_v1 = vld [vmem:[%s4095_s26 + $0x8] sm:$0xff] (%p71_p4)  ;;  %v154_v2 = vld [vmem:[%s4095_s26 + $0x10] sm:$0xff] (%p71_p4)  ;;  %s4103_s27 = scalar_lea.vmem (%p71_p4), [#allocation2], %s3942_s23 }
  0x15   : > { %v156_v3 = vld [vmem:[%s4095_s26 + $0x18] sm:$0xff] (%p71_p4)  ;;  %v158_v4 = vld [vmem:[%s4095_s26 + $0x20] sm:$0xff] (%p71_p4)  ;;  %v160_v5 = vld [vmem:[%s4095_s26 + $0x28] sm:$0xff] (%p71_p4)  ;;  %151 = vst [vmem:[%s4103_s27] sm:$0xff] (%p71_p4), %v150_v0 }
  0x16   : > { %153 = vst [vmem:[%s4103_s27 + $0x8] sm:$0xff] (%p71_p4), %v152_v1  ;;  %155 = vst [vmem:[%s4103_s27 + $0x10] sm:$0xff] (%p71_p4), %v154_v2  ;;  %v162_v6 = vld [vmem:[%s4095_s26 + $0x30] sm:$0xff] (%p71_p4)  ;;  %v164_v7 = vld [vmem:[%s4095_s26 + $0x38] sm:$0xff] (%p71_p4) }
  0x17   : > { %157 = vst [vmem:[%s4103_s27 + $0x18] sm:$0xff] (%p71_p4), %v156_v3  ;;  %159 = vst [vmem:[%s4103_s27 + $0x20] sm:$0xff] (%p71_p4), %v158_v4  ;;  %v166_v8 = vld [vmem:[%s4095_s26 + $0x40] sm:$0xff] (%p71_p4)  ;;  %v168_v9 = vld [vmem:[%s4095_s26 + $0x48] sm:$0xff] (%p71_p4) }
  0x18   : > { %161 = vst [vmem:[%s4103_s27 + $0x28] sm:$0xff] %v160_v5  ;;  %163 = vst [vmem:[%s4103_s27 + $0x30] sm:$0xff] %v162_v6  ;;  %v170_v10 = vld [vmem:[%s4095_s26 + $0x50] sm:$0xff]  ;;  %v172_v11 = vld [vmem:[%s4095_s26 + $0x58] sm:$0xff] }
  0x19   : > { %165 = vst [vmem:[%s4103_s27 + $0x38] sm:$0xff] %v164_v7  ;;  %167 = vst [vmem:[%s4103_s27 + $0x40] sm:$0xff] %v166_v8  ;;  %v174_v12 = vld [vmem:[%s4095_s26 + $0x60] sm:$0xff]  ;;  %v176_v13 = vld [vmem:[%s4095_s26 + $0x68] sm:$0xff] }
  0x1a   : > { %169 = vst [vmem:[%s4103_s27 + $0x48] sm:$0xff] %v168_v9  ;;  %171 = vst [vmem:[%s4103_s27 + $0x50] sm:$0xff] %v170_v10  ;;  %v178_v14 = vld [vmem:[%s4095_s26 + $0x70] sm:$0xff]  ;;  %v180_v15 = vld [vmem:[%s4095_s26 + $0x78] sm:$0xff] }
  0x1b   : > { %173 = vst [vmem:[%s4103_s27 + $0x58] sm:$0xff] %v172_v11  ;;  %175 = vst [vmem:[%s4103_s27 + $0x60] sm:$0xff] %v174_v12  ;;  %v182_v16 = vld [vmem:[%s4095_s26 + $0x100] sm:$0xff]  ;;  %v184_v17 = vld [vmem:[%s4095_s26 + $0x108] sm:$0xff] }
  0x1c   : > { %177 = vst [vmem:[%s4103_s27 + $0x68] sm:$0xff] %v176_v13  ;;  %179 = vst [vmem:[%s4103_s27 + $0x70] sm:$0xff] %v178_v14  ;;  %v186_v18 = vld [vmem:[%s4095_s26 + $0x110] sm:$0xff]  ;;  %v188_v19 = vld [vmem:[%s4095_s26 + $0x118] sm:$0xff] }
  0x1d   : > { %181 = vst [vmem:[%s4103_s27 + $0x78] sm:$0xff] %v180_v15  ;;  %183 = vst [vmem:[%s4103_s27 + $0x80] sm:$0xff] %v182_v16  ;;  %v190_v20 = vld [vmem:[%s4095_s26 + $0x120] sm:$0xff]  ;;  %v192_v21 = vld [vmem:[%s4095_s26 + $0x128] sm:$0xff] }
  0x1e   : > { %185 = vst [vmem:[%s4103_s27 + $0x88] sm:$0xff] %v184_v17  ;;  %187 = vst [vmem:[%s4103_s27 + $0x90] sm:$0xff] %v186_v18  ;;  %v194_v22 = vld [vmem:[%s4095_s26 + $0x130] sm:$0xff]  ;;  %v196_v23 = vld [vmem:[%s4095_s26 + $0x138] sm:$0xff] }
  0x1f   : > { %189 = vst [vmem:[%s4103_s27 + $0x98] sm:$0xff] %v188_v19  ;;  %191 = vst [vmem:[%s4103_s27 + $0xa0] sm:$0xff] %v190_v20  ;;  %v198_v24 = vld [vmem:[%s4095_s26 + $0x140] sm:$0xff]  ;;  %v200_v25 = vld [vmem:[%s4095_s26 + $0x148] sm:$0xff] }
  0x20   : > { %193 = vst [vmem:[%s4103_s27 + $0xa8] sm:$0xff] %v192_v21  ;;  %195 = vst [vmem:[%s4103_s27 + $0xb0] sm:$0xff] %v194_v22  ;;  %v202_v26 = vld [vmem:[%s4095_s26 + $0x150] sm:$0xff]  ;;  %v204_v27 = vld [vmem:[%s4095_s26 + $0x158] sm:$0xff] }
  0x21   : > { %197 = vst [vmem:[%s4103_s27 + $0xb8] sm:$0xff] %v196_v23  ;;  %199 = vst [vmem:[%s4103_s27 + $0xc0] sm:$0xff] %v198_v24  ;;  %v206_v28 = vld [vmem:[%s4095_s26 + $0x160] sm:$0xff]  ;;  %v208_v29 = vld [vmem:[%s4095_s26 + $0x168] sm:$0xff] }
  0x22   : > { %201 = vst [vmem:[%s4103_s27 + $0xc8] sm:$0xff] %v200_v25  ;;  %203 = vst [vmem:[%s4103_s27 + $0xd0] sm:$0xff] %v202_v26  ;;  %v210_v30 = vld [vmem:[%s4095_s26 + $0x170] sm:$0xff]  ;;  %v212_v31 = vld [vmem:[%s4095_s26 + $0x178] sm:$0xff] }
  0x23   : > { %205 = vst [vmem:[%s4103_s27 + $0xd8] sm:$0xff] %v204_v27  ;;  %207 = vst [vmem:[%s4103_s27 + $0xe0] sm:$0xff] %v206_v28  ;;  %v214_v32 = vld [vmem:[%s4095_s26 + $0x200] sm:$0xff]  ;;  %v216_v33 = vld [vmem:[%s4095_s26 + $0x208] sm:$0xff] }
  0x24   : > { %209 = vst [vmem:[%s4103_s27 + $0xe8] sm:$0xff] %v208_v29  ;;  %211 = vst [vmem:[%s4103_s27 + $0xf0] sm:$0xff] %v210_v30  ;;  %v218_v34 = vld [vmem:[%s4095_s26 + $0x210] sm:$0xff]  ;;  %v220_v35 = vld [vmem:[%s4095_s26 + $0x218] sm:$0xff] }
  0x25   : > { %213 = vst [vmem:[%s4103_s27 + $0xf8] sm:$0xff] %v212_v31  ;;  %215 = vst [vmem:[%s4103_s27 + $0x100] sm:$0xff] %v214_v32  ;;  %v222_v36 = vld [vmem:[%s4095_s26 + $0x220] sm:$0xff]  ;;  %v224_v37 = vld [vmem:[%s4095_s26 + $0x228] sm:$0xff] }
  0x26   : > { %217 = vst [vmem:[%s4103_s27 + $0x108] sm:$0xff] %v216_v33  ;;  %219 = vst [vmem:[%s4103_s27 + $0x110] sm:$0xff] %v218_v34  ;;  %v226_v38 = vld [vmem:[%s4095_s26 + $0x230] sm:$0xff]  ;;  %v228_v39 = vld [vmem:[%s4095_s26 + $0x238] sm:$0xff] }
  0x27   : > { %221 = vst [vmem:[%s4103_s27 + $0x118] sm:$0xff] %v220_v35  ;;  %223 = vst [vmem:[%s4103_s27 + $0x120] sm:$0xff] %v222_v36  ;;  %v230_v40 = vld [vmem:[%s4095_s26 + $0x240] sm:$0xff]  ;;  %v232_v41 = vld [vmem:[%s4095_s26 + $0x248] sm:$0xff] }
  0x28   : > { %225 = vst [vmem:[%s4103_s27 + $0x128] sm:$0xff] %v224_v37  ;;  %227 = vst [vmem:[%s4103_s27 + $0x130] sm:$0xff] %v226_v38  ;;  %v234_v42 = vld [vmem:[%s4095_s26 + $0x250] sm:$0xff]  ;;  %v236_v43 = vld [vmem:[%s4095_s26 + $0x258] sm:$0xff] }
  0x29   : > { %229 = vst [vmem:[%s4103_s27 + $0x138] sm:$0xff] %v228_v39  ;;  %231 = vst [vmem:[%s4103_s27 + $0x140] sm:$0xff] %v230_v40  ;;  %v238_v44 = vld [vmem:[%s4095_s26 + $0x260] sm:$0xff]  ;;  %v240_v45 = vld [vmem:[%s4095_s26 + $0x268] sm:$0xff] }
  0x2a   : > { %233 = vst [vmem:[%s4103_s27 + $0x148] sm:$0xff] %v232_v41  ;;  %235 = vst [vmem:[%s4103_s27 + $0x150] sm:$0xff] %v234_v42  ;;  %v242_v46 = vld [vmem:[%s4095_s26 + $0x270] sm:$0xff]  ;;  %v244_v47 = vld [vmem:[%s4095_s26 + $0x278] sm:$0xff] }
  0x2b   : > { %237 = vst [vmem:[%s4103_s27 + $0x158] sm:$0xff] %v236_v43  ;;  %239 = vst [vmem:[%s4103_s27 + $0x160] sm:$0xff] %v238_v44  ;;  %v246_v48 = vld [vmem:[%s4095_s26 + $0x300] sm:$0xff]  ;;  %v248_v49 = vld [vmem:[%s4095_s26 + $0x308] sm:$0xff] }
  0x2c   : > { %241 = vst [vmem:[%s4103_s27 + $0x168] sm:$0xff] %v240_v45  ;;  %243 = vst [vmem:[%s4103_s27 + $0x170] sm:$0xff] %v242_v46  ;;  %v250_v50 = vld [vmem:[%s4095_s26 + $0x310] sm:$0xff]  ;;  %v252_v51 = vld [vmem:[%s4095_s26 + $0x318] sm:$0xff] }
  0x2d   : > { %245 = vst [vmem:[%s4103_s27 + $0x178] sm:$0xff] %v244_v47  ;;  %247 = vst [vmem:[%s4103_s27 + $0x180] sm:$0xff] %v246_v48  ;;  %v254_v52 = vld [vmem:[%s4095_s26 + $0x320] sm:$0xff]  ;;  %v256_v53 = vld [vmem:[%s4095_s26 + $0x328] sm:$0xff] }
  0x2e   : > { %249 = vst [vmem:[%s4103_s27 + $0x188] sm:$0xff] %v248_v49  ;;  %251 = vst [vmem:[%s4103_s27 + $0x190] sm:$0xff] %v250_v50  ;;  %v258_v54 = vld [vmem:[%s4095_s26 + $0x330] sm:$0xff]  ;;  %v260_v55 = vld [vmem:[%s4095_s26 + $0x338] sm:$0xff] }
  0x2f   : > { %253 = vst [vmem:[%s4103_s27 + $0x198] sm:$0xff] %v252_v51  ;;  %255 = vst [vmem:[%s4103_s27 + $0x1a0] sm:$0xff] %v254_v52  ;;  %v262_v56 = vld [vmem:[%s4095_s26 + $0x340] sm:$0xff]  ;;  %v264_v57 = vld [vmem:[%s4095_s26 + $0x348] sm:$0xff] }
  0x30   : > { %257 = vst [vmem:[%s4103_s27 + $0x1a8] sm:$0xff] %v256_v53  ;;  %259 = vst [vmem:[%s4103_s27 + $0x1b0] sm:$0xff] %v258_v54  ;;  %v266_v58 = vld [vmem:[%s4095_s26 + $0x350] sm:$0xff]  ;;  %v268_v59 = vld [vmem:[%s4095_s26 + $0x358] sm:$0xff] }
  0x31   : > { %261 = vst [vmem:[%s4103_s27 + $0x1b8] sm:$0xff] %v260_v55  ;;  %263 = vst [vmem:[%s4103_s27 + $0x1c0] sm:$0xff] %v262_v56  ;;  %v270_v60 = vld [vmem:[%s4095_s26 + $0x360] sm:$0xff]  ;;  %v272_v61 = vld [vmem:[%s4095_s26 + $0x368] sm:$0xff] }
  0x32   : > { %265 = vst [vmem:[%s4103_s27 + $0x1c8] sm:$0xff] %v264_v57  ;;  %267 = vst [vmem:[%s4103_s27 + $0x1d0] sm:$0xff] %v266_v58  ;;  %v274_v62 = vld [vmem:[%s4095_s26 + $0x370] sm:$0xff]  ;;  %v276_v63 = vld [vmem:[%s4095_s26 + $0x378] sm:$0xff] }
  0x33   : > { %269 = vst [vmem:[%s4103_s27 + $0x1d8] sm:$0xff] %v268_v59  ;;  %271 = vst [vmem:[%s4103_s27 + $0x1e0] sm:$0xff] %v270_v60  ;;  %v278_v0 = vld [vmem:[%s4095_s26 + $0x400] sm:$0xff]  ;;  %v280_v1 = vld [vmem:[%s4095_s26 + $0x408] sm:$0xff] }
  0x34   : > { %273 = vst [vmem:[%s4103_s27 + $0x1e8] sm:$0xff] %v272_v61  ;;  %275 = vst [vmem:[%s4103_s27 + $0x1f0] sm:$0xff] %v274_v62  ;;  %v282_v2 = vld [vmem:[%s4095_s26 + $0x410] sm:$0xff]  ;;  %v284_v3 = vld [vmem:[%s4095_s26 + $0x418] sm:$0xff] }
  0x35   : > { %277 = vst [vmem:[%s4103_s27 + $0x1f8] sm:$0xff] %v276_v63  ;;  %279 = vst [vmem:[%s4103_s27 + $0x200] sm:$0xff] %v278_v0  ;;  %v286_v4 = vld [vmem:[%s4095_s26 + $0x420] sm:$0xff]  ;;  %v288_v5 = vld [vmem:[%s4095_s26 + $0x428] sm:$0xff] }
  0x36   : > { %281 = vst [vmem:[%s4103_s27 + $0x208] sm:$0xff] %v280_v1  ;;  %283 = vst [vmem:[%s4103_s27 + $0x210] sm:$0xff] %v282_v2  ;;  %v290_v6 = vld [vmem:[%s4095_s26 + $0x430] sm:$0xff]  ;;  %v292_v7 = vld [vmem:[%s4095_s26 + $0x438] sm:$0xff] }
  0x37   : > { %285 = vst [vmem:[%s4103_s27 + $0x218] sm:$0xff] %v284_v3  ;;  %287 = vst [vmem:[%s4103_s27 + $0x220] sm:$0xff] %v286_v4  ;;  %v294_v8 = vld [vmem:[%s4095_s26 + $0x440] sm:$0xff]  ;;  %v296_v9 = vld [vmem:[%s4095_s26 + $0x448] sm:$0xff] }
  0x38   : > { %289 = vst [vmem:[%s4103_s27 + $0x228] sm:$0xff] %v288_v5  ;;  %291 = vst [vmem:[%s4103_s27 + $0x230] sm:$0xff] %v290_v6  ;;  %v298_v10 = vld [vmem:[%s4095_s26 + $0x450] sm:$0xff]  ;;  %v300_v11 = vld [vmem:[%s4095_s26 + $0x458] sm:$0xff] }
  0x39   : > { %293 = vst [vmem:[%s4103_s27 + $0x238] sm:$0xff] %v292_v7  ;;  %295 = vst [vmem:[%s4103_s27 + $0x240] sm:$0xff] %v294_v8  ;;  %v302_v12 = vld [vmem:[%s4095_s26 + $0x460] sm:$0xff]  ;;  %v304_v13 = vld [vmem:[%s4095_s26 + $0x468] sm:$0xff] }
  0x3a   : > { %297 = vst [vmem:[%s4103_s27 + $0x248] sm:$0xff] %v296_v9  ;;  %299 = vst [vmem:[%s4103_s27 + $0x250] sm:$0xff] %v298_v10  ;;  %v306_v14 = vld [vmem:[%s4095_s26 + $0x470] sm:$0xff]  ;;  %v308_v15 = vld [vmem:[%s4095_s26 + $0x478] sm:$0xff] }
  0x3b   : > { %301 = vst [vmem:[%s4103_s27 + $0x258] sm:$0xff] %v300_v11  ;;  %303 = vst [vmem:[%s4103_s27 + $0x260] sm:$0xff] %v302_v12  ;;  %v310_v16 = vld [vmem:[%s4095_s26 + $0x500] sm:$0xff]  ;;  %v312_v17 = vld [vmem:[%s4095_s26 + $0x508] sm:$0xff] }
  0x3c   : > { %305 = vst [vmem:[%s4103_s27 + $0x268] sm:$0xff] %v304_v13  ;;  %307 = vst [vmem:[%s4103_s27 + $0x270] sm:$0xff] %v306_v14  ;;  %v314_v18 = vld [vmem:[%s4095_s26 + $0x510] sm:$0xff]  ;;  %v316_v19 = vld [vmem:[%s4095_s26 + $0x518] sm:$0xff] }
  0x3d   : > { %309 = vst [vmem:[%s4103_s27 + $0x278] sm:$0xff] %v308_v15  ;;  %311 = vst [vmem:[%s4103_s27 + $0x280] sm:$0xff] %v310_v16  ;;  %v318_v20 = vld [vmem:[%s4095_s26 + $0x520] sm:$0xff]  ;;  %v320_v21 = vld [vmem:[%s4095_s26 + $0x528] sm:$0xff] }
  0x3e   : > { %313 = vst [vmem:[%s4103_s27 + $0x288] sm:$0xff] %v312_v17  ;;  %315 = vst [vmem:[%s4103_s27 + $0x290] sm:$0xff] %v314_v18  ;;  %v322_v22 = vld [vmem:[%s4095_s26 + $0x530] sm:$0xff]  ;;  %v324_v23 = vld [vmem:[%s4095_s26 + $0x538] sm:$0xff] }
  0x3f   : > { %317 = vst [vmem:[%s4103_s27 + $0x298] sm:$0xff] %v316_v19  ;;  %319 = vst [vmem:[%s4103_s27 + $0x2a0] sm:$0xff] %v318_v20  ;;  %v326_v24 = vld [vmem:[%s4095_s26 + $0x540] sm:$0xff]  ;;  %v328_v25 = vld [vmem:[%s4095_s26 + $0x548] sm:$0xff] }
  0x40   : > { %321 = vst [vmem:[%s4103_s27 + $0x2a8] sm:$0xff] %v320_v21  ;;  %323 = vst [vmem:[%s4103_s27 + $0x2b0] sm:$0xff] %v322_v22  ;;  %v330_v26 = vld [vmem:[%s4095_s26 + $0x550] sm:$0xff]  ;;  %v332_v27 = vld [vmem:[%s4095_s26 + $0x558] sm:$0xff] }
  0x41   : > { %325 = vst [vmem:[%s4103_s27 + $0x2b8] sm:$0xff] %v324_v23  ;;  %327 = vst [vmem:[%s4103_s27 + $0x2c0] sm:$0xff] %v326_v24  ;;  %v334_v28 = vld [vmem:[%s4095_s26 + $0x560] sm:$0xff]  ;;  %v336_v29 = vld [vmem:[%s4095_s26 + $0x568] sm:$0xff] }
  0x42   : > { %329 = vst [vmem:[%s4103_s27 + $0x2c8] sm:$0xff] %v328_v25  ;;  %331 = vst [vmem:[%s4103_s27 + $0x2d0] sm:$0xff] %v330_v26  ;;  %v338_v30 = vld [vmem:[%s4095_s26 + $0x570] sm:$0xff]  ;;  %v340_v31 = vld [vmem:[%s4095_s26 + $0x578] sm:$0xff] }
  0x43   : > { %333 = vst [vmem:[%s4103_s27 + $0x2d8] sm:$0xff] %v332_v27  ;;  %335 = vst [vmem:[%s4103_s27 + $0x2e0] sm:$0xff] %v334_v28  ;;  %v342_v32 = vld [vmem:[%s4095_s26 + $0x600] sm:$0xff]  ;;  %v344_v33 = vld [vmem:[%s4095_s26 + $0x608] sm:$0xff] }
  0x44   : > { %337 = vst [vmem:[%s4103_s27 + $0x2e8] sm:$0xff] %v336_v29  ;;  %339 = vst [vmem:[%s4103_s27 + $0x2f0] sm:$0xff] %v338_v30  ;;  %v346_v34 = vld [vmem:[%s4095_s26 + $0x610] sm:$0xff]  ;;  %v348_v35 = vld [vmem:[%s4095_s26 + $0x618] sm:$0xff] }
  0x45   : > { %341 = vst [vmem:[%s4103_s27 + $0x2f8] sm:$0xff] %v340_v31  ;;  %343 = vst [vmem:[%s4103_s27 + $0x300] sm:$0xff] %v342_v32  ;;  %v350_v36 = vld [vmem:[%s4095_s26 + $0x620] sm:$0xff]  ;;  %v352_v37 = vld [vmem:[%s4095_s26 + $0x628] sm:$0xff] }
  0x46   : > { %345 = vst [vmem:[%s4103_s27 + $0x308] sm:$0xff] %v344_v33  ;;  %347 = vst [vmem:[%s4103_s27 + $0x310] sm:$0xff] %v346_v34  ;;  %v354_v38 = vld [vmem:[%s4095_s26 + $0x630] sm:$0xff]  ;;  %v356_v39 = vld [vmem:[%s4095_s26 + $0x638] sm:$0xff] }
  0x47   : > { %349 = vst [vmem:[%s4103_s27 + $0x318] sm:$0xff] %v348_v35  ;;  %351 = vst [vmem:[%s4103_s27 + $0x320] sm:$0xff] %v350_v36  ;;  %v358_v40 = vld [vmem:[%s4095_s26 + $0x640] sm:$0xff]  ;;  %v360_v41 = vld [vmem:[%s4095_s26 + $0x648] sm:$0xff] }
  0x48   : > { %353 = vst [vmem:[%s4103_s27 + $0x328] sm:$0xff] %v352_v37  ;;  %355 = vst [vmem:[%s4103_s27 + $0x330] sm:$0xff] %v354_v38  ;;  %v362_v42 = vld [vmem:[%s4095_s26 + $0x650] sm:$0xff]  ;;  %v364_v43 = vld [vmem:[%s4095_s26 + $0x658] sm:$0xff] }
  0x49   : > { %357 = vst [vmem:[%s4103_s27 + $0x338] sm:$0xff] %v356_v39  ;;  %359 = vst [vmem:[%s4103_s27 + $0x340] sm:$0xff] %v358_v40  ;;  %v366_v44 = vld [vmem:[%s4095_s26 + $0x660] sm:$0xff]  ;;  %v368_v45 = vld [vmem:[%s4095_s26 + $0x668] sm:$0xff] }
  0x4a   : > { %361 = vst [vmem:[%s4103_s27 + $0x348] sm:$0xff] %v360_v41  ;;  %363 = vst [vmem:[%s4103_s27 + $0x350] sm:$0xff] %v362_v42  ;;  %v370_v46 = vld [vmem:[%s4095_s26 + $0x670] sm:$0xff]  ;;  %v372_v47 = vld [vmem:[%s4095_s26 + $0x678] sm:$0xff] }
  0x4b   : > { %365 = vst [vmem:[%s4103_s27 + $0x358] sm:$0xff] %v364_v43  ;;  %367 = vst [vmem:[%s4103_s27 + $0x360] sm:$0xff] %v366_v44  ;;  %v374_v48 = vld [vmem:[%s4095_s26 + $0x700] sm:$0xff]  ;;  %v376_v49 = vld [vmem:[%s4095_s26 + $0x708] sm:$0xff] }
  0x4c   : > { %369 = vst [vmem:[%s4103_s27 + $0x368] sm:$0xff] %v368_v45  ;;  %371 = vst [vmem:[%s4103_s27 + $0x370] sm:$0xff] %v370_v46  ;;  %v378_v50 = vld [vmem:[%s4095_s26 + $0x710] sm:$0xff]  ;;  %v380_v51 = vld [vmem:[%s4095_s26 + $0x718] sm:$0xff] }
  0x4d   : > { %373 = vst [vmem:[%s4103_s27 + $0x378] sm:$0xff] %v372_v47  ;;  %375 = vst [vmem:[%s4103_s27 + $0x380] sm:$0xff] %v374_v48  ;;  %v382_v52 = vld [vmem:[%s4095_s26 + $0x720] sm:$0xff]  ;;  %v384_v53 = vld [vmem:[%s4095_s26 + $0x728] sm:$0xff] }
  0x4e   : > { %377 = vst [vmem:[%s4103_s27 + $0x388] sm:$0xff] %v376_v49  ;;  %379 = vst [vmem:[%s4103_s27 + $0x390] sm:$0xff] %v378_v50  ;;  %v386_v54 = vld [vmem:[%s4095_s26 + $0x730] sm:$0xff]  ;;  %v388_v55 = vld [vmem:[%s4095_s26 + $0x738] sm:$0xff] }
  0x4f   : > { %381 = vst [vmem:[%s4103_s27 + $0x398] sm:$0xff] %v380_v51  ;;  %383 = vst [vmem:[%s4103_s27 + $0x3a0] sm:$0xff] %v382_v52  ;;  %v390_v56 = vld [vmem:[%s4095_s26 + $0x740] sm:$0xff]  ;;  %v392_v57 = vld [vmem:[%s4095_s26 + $0x748] sm:$0xff] }
  0x50   : > { %385 = vst [vmem:[%s4103_s27 + $0x3a8] sm:$0xff] %v384_v53  ;;  %387 = vst [vmem:[%s4103_s27 + $0x3b0] sm:$0xff] %v386_v54  ;;  %v394_v58 = vld [vmem:[%s4095_s26 + $0x750] sm:$0xff]  ;;  %v396_v59 = vld [vmem:[%s4095_s26 + $0x758] sm:$0xff] }
  0x51   : > { %389 = vst [vmem:[%s4103_s27 + $0x3b8] sm:$0xff] %v388_v55  ;;  %391 = vst [vmem:[%s4103_s27 + $0x3c0] sm:$0xff] %v390_v56  ;;  %v398_v60 = vld [vmem:[%s4095_s26 + $0x760] sm:$0xff]  ;;  %v400_v61 = vld [vmem:[%s4095_s26 + $0x768] sm:$0xff] }
  0x52   : > { %393 = vst [vmem:[%s4103_s27 + $0x3c8] sm:$0xff] %v392_v57  ;;  %395 = vst [vmem:[%s4103_s27 + $0x3d0] sm:$0xff] %v394_v58  ;;  %v402_v62 = vld [vmem:[%s4095_s26 + $0x770] sm:$0xff]  ;;  %v404_v63 = vld [vmem:[%s4095_s26 + $0x778] sm:$0xff] }
  0x53   : > { %397 = vst [vmem:[%s4103_s27 + $0x3d8] sm:$0xff] %v396_v59  ;;  %399 = vst [vmem:[%s4103_s27 + $0x3e0] sm:$0xff] %v398_v60  ;;  %v406_v0 = vld [vmem:[%s4095_s26 + $0x800] sm:$0xff]  ;;  %v408_v1 = vld [vmem:[%s4095_s26 + $0x808] sm:$0xff] }
  0x54   : > { %401 = vst [vmem:[%s4103_s27 + $0x3e8] sm:$0xff] %v400_v61  ;;  %403 = vst [vmem:[%s4103_s27 + $0x3f0] sm:$0xff] %v402_v62  ;;  %v410_v2 = vld [vmem:[%s4095_s26 + $0x810] sm:$0xff]  ;;  %v412_v3 = vld [vmem:[%s4095_s26 + $0x818] sm:$0xff] }
  0x55   : > { %405 = vst [vmem:[%s4103_s27 + $0x3f8] sm:$0xff] %v404_v63  ;;  %407 = vst [vmem:[%s4103_s27 + $0x400] sm:$0xff] %v406_v0  ;;  %v414_v4 = vld [vmem:[%s4095_s26 + $0x820] sm:$0xff]  ;;  %v416_v5 = vld [vmem:[%s4095_s26 + $0x828] sm:$0xff] }
  0x56   : > { %409 = vst [vmem:[%s4103_s27 + $0x408] sm:$0xff] %v408_v1  ;;  %411 = vst [vmem:[%s4103_s27 + $0x410] sm:$0xff] %v410_v2  ;;  %v418_v6 = vld [vmem:[%s4095_s26 + $0x830] sm:$0xff]  ;;  %v420_v7 = vld [vmem:[%s4095_s26 + $0x838] sm:$0xff] }
  0x57   : > { %413 = vst [vmem:[%s4103_s27 + $0x418] sm:$0xff] %v412_v3  ;;  %415 = vst [vmem:[%s4103_s27 + $0x420] sm:$0xff] %v414_v4  ;;  %v422_v8 = vld [vmem:[%s4095_s26 + $0x840] sm:$0xff]  ;;  %v424_v9 = vld [vmem:[%s4095_s26 + $0x848] sm:$0xff] }
  0x58   : > { %417 = vst [vmem:[%s4103_s27 + $0x428] sm:$0xff] %v416_v5  ;;  %419 = vst [vmem:[%s4103_s27 + $0x430] sm:$0xff] %v418_v6  ;;  %v426_v10 = vld [vmem:[%s4095_s26 + $0x850] sm:$0xff]  ;;  %v428_v11 = vld [vmem:[%s4095_s26 + $0x858] sm:$0xff] }
  0x59   : > { %421 = vst [vmem:[%s4103_s27 + $0x438] sm:$0xff] %v420_v7  ;;  %423 = vst [vmem:[%s4103_s27 + $0x440] sm:$0xff] %v422_v8  ;;  %v430_v12 = vld [vmem:[%s4095_s26 + $0x860] sm:$0xff]  ;;  %v432_v13 = vld [vmem:[%s4095_s26 + $0x868] sm:$0xff] }
  0x5a   : > { %425 = vst [vmem:[%s4103_s27 + $0x448] sm:$0xff] %v424_v9  ;;  %427 = vst [vmem:[%s4103_s27 + $0x450] sm:$0xff] %v426_v10  ;;  %v434_v14 = vld [vmem:[%s4095_s26 + $0x870] sm:$0xff]  ;;  %v436_v15 = vld [vmem:[%s4095_s26 + $0x878] sm:$0xff] }
  0x5b   : > { %429 = vst [vmem:[%s4103_s27 + $0x458] sm:$0xff] %v428_v11  ;;  %431 = vst [vmem:[%s4103_s27 + $0x460] sm:$0xff] %v430_v12  ;;  %v438_v16 = vld [vmem:[%s4095_s26 + $0x900] sm:$0xff]  ;;  %v440_v17 = vld [vmem:[%s4095_s26 + $0x908] sm:$0xff] }
  0x5c   : > { %433 = vst [vmem:[%s4103_s27 + $0x468] sm:$0xff] %v432_v13  ;;  %435 = vst [vmem:[%s4103_s27 + $0x470] sm:$0xff] %v434_v14  ;;  %v442_v18 = vld [vmem:[%s4095_s26 + $0x910] sm:$0xff]  ;;  %v444_v19 = vld [vmem:[%s4095_s26 + $0x918] sm:$0xff] }
  0x5d   : > { %437 = vst [vmem:[%s4103_s27 + $0x478] sm:$0xff] %v436_v15  ;;  %439 = vst [vmem:[%s4103_s27 + $0x480] sm:$0xff] %v438_v16  ;;  %v446_v20 = vld [vmem:[%s4095_s26 + $0x920] sm:$0xff]  ;;  %v448_v21 = vld [vmem:[%s4095_s26 + $0x928] sm:$0xff] }
  0x5e   : > { %441 = vst [vmem:[%s4103_s27 + $0x488] sm:$0xff] %v440_v17  ;;  %443 = vst [vmem:[%s4103_s27 + $0x490] sm:$0xff] %v442_v18  ;;  %v450_v22 = vld [vmem:[%s4095_s26 + $0x930] sm:$0xff]  ;;  %v452_v23 = vld [vmem:[%s4095_s26 + $0x938] sm:$0xff] }
  0x5f   : > { %445 = vst [vmem:[%s4103_s27 + $0x498] sm:$0xff] %v444_v19  ;;  %447 = vst [vmem:[%s4103_s27 + $0x4a0] sm:$0xff] %v446_v20  ;;  %v454_v24 = vld [vmem:[%s4095_s26 + $0x940] sm:$0xff]  ;;  %v456_v25 = vld [vmem:[%s4095_s26 + $0x948] sm:$0xff] }
  0x60   : > { %449 = vst [vmem:[%s4103_s27 + $0x4a8] sm:$0xff] %v448_v21  ;;  %451 = vst [vmem:[%s4103_s27 + $0x4b0] sm:$0xff] %v450_v22  ;;  %v458_v26 = vld [vmem:[%s4095_s26 + $0x950] sm:$0xff]  ;;  %v460_v27 = vld [vmem:[%s4095_s26 + $0x958] sm:$0xff] }
  0x61   : > { %453 = vst [vmem:[%s4103_s27 + $0x4b8] sm:$0xff] %v452_v23  ;;  %455 = vst [vmem:[%s4103_s27 + $0x4c0] sm:$0xff] %v454_v24  ;;  %v462_v28 = vld [vmem:[%s4095_s26 + $0x960] sm:$0xff]  ;;  %v464_v29 = vld [vmem:[%s4095_s26 + $0x968] sm:$0xff] }
  0x62   : > { %457 = vst [vmem:[%s4103_s27 + $0x4c8] sm:$0xff] %v456_v25  ;;  %459 = vst [vmem:[%s4103_s27 + $0x4d0] sm:$0xff] %v458_v26  ;;  %v466_v30 = vld [vmem:[%s4095_s26 + $0x970] sm:$0xff]  ;;  %v468_v31 = vld [vmem:[%s4095_s26 + $0x978] sm:$0xff] }
  0x63   : > { %461 = vst [vmem:[%s4103_s27 + $0x4d8] sm:$0xff] %v460_v27  ;;  %463 = vst [vmem:[%s4103_s27 + $0x4e0] sm:$0xff] %v462_v28  ;;  %v470_v32 = vld [vmem:[%s4095_s26 + $0xa00] sm:$0xff]  ;;  %v472_v33 = vld [vmem:[%s4095_s26 + $0xa08] sm:$0xff] }
  0x64   : > { %465 = vst [vmem:[%s4103_s27 + $0x4e8] sm:$0xff] %v464_v29  ;;  %467 = vst [vmem:[%s4103_s27 + $0x4f0] sm:$0xff] %v466_v30  ;;  %v474_v34 = vld [vmem:[%s4095_s26 + $0xa10] sm:$0xff]  ;;  %v476_v35 = vld [vmem:[%s4095_s26 + $0xa18] sm:$0xff] }
  0x65   : > { %469 = vst [vmem:[%s4103_s27 + $0x4f8] sm:$0xff] %v468_v31  ;;  %471 = vst [vmem:[%s4103_s27 + $0x500] sm:$0xff] %v470_v32  ;;  %v478_v36 = vld [vmem:[%s4095_s26 + $0xa20] sm:$0xff]  ;;  %v480_v37 = vld [vmem:[%s4095_s26 + $0xa28] sm:$0xff] }
  0x66   : > { %473 = vst [vmem:[%s4103_s27 + $0x508] sm:$0xff] %v472_v33  ;;  %475 = vst [vmem:[%s4103_s27 + $0x510] sm:$0xff] %v474_v34  ;;  %v482_v38 = vld [vmem:[%s4095_s26 + $0xa30] sm:$0xff]  ;;  %v484_v39 = vld [vmem:[%s4095_s26 + $0xa38] sm:$0xff] }
  0x67   : > { %477 = vst [vmem:[%s4103_s27 + $0x518] sm:$0xff] %v476_v35  ;;  %479 = vst [vmem:[%s4103_s27 + $0x520] sm:$0xff] %v478_v36  ;;  %v486_v40 = vld [vmem:[%s4095_s26 + $0xa40] sm:$0xff]  ;;  %v488_v41 = vld [vmem:[%s4095_s26 + $0xa48] sm:$0xff] }
  0x68   : > { %481 = vst [vmem:[%s4103_s27 + $0x528] sm:$0xff] %v480_v37  ;;  %483 = vst [vmem:[%s4103_s27 + $0x530] sm:$0xff] %v482_v38  ;;  %v490_v42 = vld [vmem:[%s4095_s26 + $0xa50] sm:$0xff]  ;;  %v492_v43 = vld [vmem:[%s4095_s26 + $0xa58] sm:$0xff] }
  0x69   : > { %485 = vst [vmem:[%s4103_s27 + $0x538] sm:$0xff] %v484_v39  ;;  %487 = vst [vmem:[%s4103_s27 + $0x540] sm:$0xff] %v486_v40  ;;  %v494_v44 = vld [vmem:[%s4095_s26 + $0xa60] sm:$0xff]  ;;  %v496_v45 = vld [vmem:[%s4095_s26 + $0xa68] sm:$0xff] }
  0x6a   : > { %489 = vst [vmem:[%s4103_s27 + $0x548] sm:$0xff] %v488_v41  ;;  %491 = vst [vmem:[%s4103_s27 + $0x550] sm:$0xff] %v490_v42  ;;  %v498_v46 = vld [vmem:[%s4095_s26 + $0xa70] sm:$0xff]  ;;  %v500_v47 = vld [vmem:[%s4095_s26 + $0xa78] sm:$0xff] }
  0x6b   : > { %493 = vst [vmem:[%s4103_s27 + $0x558] sm:$0xff] %v492_v43  ;;  %495 = vst [vmem:[%s4103_s27 + $0x560] sm:$0xff] %v494_v44 }
  0x6c   : > { %497 = vst [vmem:[%s4103_s27 + $0x568] sm:$0xff] %v496_v45  ;;  %499 = vst [vmem:[%s4103_s27 + $0x570] sm:$0xff] %v498_v46 }
  0x6d   : > { %501 = vst [vmem:[%s4103_s27 + $0x578] sm:$0xff] %v500_v47 }
  0x6e PF: > { %p3609_p7 = scmp.ge.s32.totalorder %s4032_s14, 1  ;;  %p506_p8 = scmp.lt.s32.totalorder %s4032_s14, 3 }
  0x70   : > { %p507_p9 = pnand %p3609_p7, %p506_p8 }
  0x71   : > { %s513_s28 = sand.u32 (!%p507_p9), 1, %s4024_s12   ;;  %v4034_v48 = vmov (!%p507_p9), 0   ;;  %vm1635_vm0 = vcmask (!%p507_p9), 1040384   ;;  %v4499_v44 = vld [vmem:[%s5110_s0] sm:$0xff] (!%p507_p9)   ;;  %vm1622_vm1 = vcmask (!%p507_p9), 662528  }
  0x72   : > { %510 = sbr.rel (%p507_p9) target bundleno = 629 (0x275), region = 51  ;;  %1766 = vmatprep.mubr.bf16.mxu0 (!%p507_p9), %v4034_v48  ;;  %1839 = vmatprep.mubr.bf16.mxu1 (!%p507_p9), %v4034_v48  ;;  %v4484_v26 = vsel (!%p507_p9), %vm1635_vm0, 65535, %v4034_v48  ;;  %s3610_s5 = sshll.u32 (!%p507_p9), %s513_s28, 8 }
  0x73   : > { %s3943_s29 = smul.u32 (!%p507_p9), 1408, %s513_s28  ;;  %3969 = vset.pattern.permute.xlu0 (!%p507_p9), %v4034_v48  ;;  %s4933_s12 = scalar_lea.vmem (!%p507_p9), [#allocation3], %s3610_s5 }
  0x75   : > { %s4459_s30 = scalar_lea.vmem (!%p507_p9), [#allocation2], %s3943_s29 }
  0x76   : > { %v546_v49 = vld [vmem:[%s4459_s30] sm:$0xff] (!%p507_p9)  ;;  %v547_v51 = vld [vmem:[%s4459_s30 + $0x8] sm:$0xff] (!%p507_p9)  ;;  %v548_v34 = vld [vmem:[%s4459_s30 + $0x10] sm:$0xff] (!%p507_p9) }
  0x77   : > { %v562_v50 = vld [vmem:[%s4459_s30 + $0x80] sm:$0xff] (!%p507_p9)  ;;  %v563_v53 = vld [vmem:[%s4459_s30 + $0x88] sm:$0xff] (!%p507_p9)  ;;  %v564_v35 = vld [vmem:[%s4459_s30 + $0x90] sm:$0xff] (!%p507_p9) }
  0x78   : > { %v3616_v52 = vcombine.high (!%p507_p9), %v546_v49, %v562_v50  ;;  %v3615_v54 = vcombine.low (!%p507_p9), %v546_v49, %v562_v50  ;;  %v578_v55 = vld [vmem:[%s4459_s30 + $0x100] sm:$0xff] (!%p507_p9)  ;;  %v3618_v57 = vcombine.high (!%p507_p9), %v547_v51, %v563_v53  ;;  %v3617_v58 = vcombine.low (!%p507_p9), %v547_v51, %v563_v53  ;;  %v579_v60 = vld [vmem:[%s4459_s30 + $0x108] sm:$0xff] (!%p507_p9)  ;;  %v549_v36 = vld [vmem:[%s4459_s30 + $0x18] sm:$0xff] (!%p507_p9) }
  0x79   : > { %v594_v56 = vld [vmem:[%s4459_s30 + $0x180] sm:$0xff]  ;;  %v595_v61 = vld [vmem:[%s4459_s30 + $0x188] sm:$0xff]  ;;  %v565_v37 = vld [vmem:[%s4459_s30 + $0x98] sm:$0xff]  ;;  %v3620_v40 = vcombine.high %v548_v34, %v564_v35  ;;  %v3619_v47 = vcombine.low %v548_v34, %v564_v35  ;;  %s3941_s28 = sshll.u32 (%p4085_p5), %s3603_s15, 7 }
  0x7a   : > { %v3648_v59 = vcombine.high %v578_v55, %v594_v56  ;;  %v610_v62 = vld [vmem:[%s4459_s30 + $0x200] sm:$0xff]  ;;  %1734 = vmatprep.subr.bf16.mxu0 %v3616_v52  ;;  %v3650_v63 = vcombine.high %v579_v60, %v595_v61  ;;  %v611_v1 = vld [vmem:[%s4459_s30 + $0x208] sm:$0xff]  ;;  %1807 = vmatprep.subr.bf16.mxu1 %v3618_v57  ;;  %v3647_v3 = vcombine.low %v578_v55, %v594_v56  ;;  %v580_v42 = vld [vmem:[%s4459_s30 + $0x110] sm:$0xff]  ;;  %s5037_s20 = scalar_lea.vmem (%p4085_p5), %s5113_s3, %s3941_s28 }
  0x7b   : > { %v626_v0 = vld [vmem:[%s4459_s30 + $0x280] sm:$0xff]  ;;  %v627_v2 = vld [vmem:[%s4459_s30 + $0x288] sm:$0xff]  ;;  %1735 = vmatpush1.bf16.msra.mxu0 %v3615_v54  ;;  %1808 = vmatpush1.bf16.msra.mxu1 %v3617_v58  ;;  %v3649_v4 = vcombine.low %v579_v60, %v595_v61  ;;  %v3622_v41 = vcombine.high %v549_v36, %v565_v37  ;;  %v596_v43 = vld [vmem:[%s4459_s30 + $0x190] sm:$0xff]  ;;  %v3621_v49 = vcombine.low %v549_v36, %v565_v37 }
  0x7c   : > { %1736 = vmatprep.subr.bf16.mxu0 %v3648_v59  ;;  %v3680_v5 = vcombine.high %v610_v62, %v626_v0  ;;  %1809 = vmatprep.subr.bf16.mxu1 %v3650_v63  ;;  %v3682_v6 = vcombine.high %v611_v1, %v627_v2  ;;  %v642_v7 = vld [vmem:[%s4459_s30 + $0x300] sm:$0xff]  ;;  %v643_v9 = vld [vmem:[%s4459_s30 + $0x308] sm:$0xff]  ;;  %v3679_v11 = vcombine.low %v610_v62, %v626_v0  ;;  %v581_v45 = vld [vmem:[%s4459_s30 + $0x118] sm:$0xff] }
  0x7d   : > { %v658_v8 = vld [vmem:[%s4459_s30 + $0x380] sm:$0xff]  ;;  %v659_v10 = vld [vmem:[%s4459_s30 + $0x388] sm:$0xff]  ;;  %v3681_v12 = vcombine.low %v611_v1, %v627_v2  ;;  %v597_v46 = vld [vmem:[%s4459_s30 + $0x198] sm:$0xff]  ;;  %v3652_v50 = vcombine.high %v580_v42, %v596_v43  ;;  %v3651_v56 = vcombine.low %v580_v42, %v596_v43 }
  0x7e   : > { %v3712_v13 = vcombine.high %v642_v7, %v658_v8  ;;  %v3714_v14 = vcombine.high %v643_v9, %v659_v10  ;;  %v674_v15 = vld [vmem:[%s4459_s30 + $0x400] sm:$0xff]  ;;  %v675_v18 = vld [vmem:[%s4459_s30 + $0x408] sm:$0xff]  ;;  %v3711_v21 = vcombine.low %v642_v7, %v658_v8  ;;  %v3713_v22 = vcombine.low %v643_v9, %v659_v10  ;;  %v612_v52 = vld [vmem:[%s4459_s30 + $0x210] sm:$0xff] }
  0x7f   : > { %1737 = vmatpush1.bf16.msra.mxu0 %v3647_v3  ;;  %1810 = vmatpush1.bf16.msra.mxu1 %v3649_v4  ;;  %v690_v16 = vld [vmem:[%s4459_s30 + $0x480] sm:$0xff]  ;;  %v691_v19 = vld [vmem:[%s4459_s30 + $0x488] sm:$0xff]  ;;  %v3654_v51 = vcombine.high %v581_v45, %v597_v46  ;;  %v628_v53 = vld [vmem:[%s4459_s30 + $0x290] sm:$0xff]  ;;  %v3653_v57 = vcombine.low %v581_v45, %v597_v46 }
  0x80   : > { %1738 = vmatprep.subr.bf16.mxu0 %v3680_v5  ;;  %1811 = vmatprep.subr.bf16.mxu1 %v3682_v6  ;;  %v706_v17 = vld [vmem:[%s4459_s30 + $0x500] sm:$0x11]  ;;  %v707_v20 = vld [vmem:[%s4459_s30 + $0x508] sm:$0x11]  ;;  %v3744_v23 = vcombine.high %v674_v15, %v690_v16  ;;  %v3746_v25 = vcombine.high %v675_v18, %v691_v19  ;;  %v3743_v28 = vcombine.low %v674_v15, %v690_v16  ;;  %v613_v54 = vld [vmem:[%s4459_s30 + $0x218] sm:$0xff] }
  0x81   : > { %v3776_v24 = vcombine.high %v706_v17, %v706_v17  ;;  %v3778_v27 = vcombine.high %v707_v20, %v707_v20  ;;  %v3775_v29 = vcombine.low %v706_v17, %v706_v17  ;;  %v3745_v30 = vcombine.low %v675_v18, %v691_v19  ;;  %v629_v55 = vld [vmem:[%s4459_s30 + $0x298] sm:$0xff]  ;;  %v4516_v60 = vld [vmem:[%s5110_s0 + $0x8] sm:$0xff]   ;;  %v644_v61 = vld [vmem:[%s4459_s30 + $0x310] sm:$0xff] }
  0x82   : > { %v3777_v32 = vcombine.low %v707_v20, %v707_v20  ;;  %v3684_v58 = vcombine.high %v612_v52, %v628_v53  ;;  %v3686_v59 = vcombine.high %v613_v54, %v629_v55  ;;  %v660_v62 = vld [vmem:[%s4459_s30 + $0x390] sm:$0xff]  ;;  %v3683_v63 = vcombine.low %v612_v52, %v628_v53  ;;  %v645_v0 = vld [vmem:[%s4459_s30 + $0x318] sm:$0xff]  ;;  %v3095_v19 = vld [vmem:[%s5111_s1 + $0x8] sm:$0xff] }
  0x83   : > { %1739 = vmatpush1.bf16.msra.mxu0 %v3679_v11  ;;  %1812 = vmatpush1.bf16.msra.mxu1 %v3681_v12  ;;  %v1642_v31 = vand.u32 %v3776_v24, %v4484_v26  ;;  %v1648_v33 = vand.u32 %v3778_v27, %v4484_v26  ;;  %v1639_v38 = vand.u32 %v3775_v29, %v4484_v26  ;;  %v661_v1 = vld [vmem:[%s4459_s30 + $0x398] sm:$0xff]  ;;  %v676_v4 = vld [vmem:[%s4459_s30 + $0x410] sm:$0xff]  ;;  %v3094_v12 = vld [vmem:[%s5111_s1] sm:$0xff] }
  0x84   : > { %1740 = vmatprep.subr.bf16.mxu0 %v3712_v13  ;;  %1813 = vmatprep.subr.bf16.mxu1 %v3714_v14  ;;  %v1645_v39 = vand.u32 %v3777_v32, %v4484_v26  ;;  %v3685_v2 = vcombine.low %v613_v54, %v629_v55  ;;  %v3716_v3 = vcombine.high %v644_v61, %v660_v62  ;;  %v692_v5 = vld [vmem:[%s4459_s30 + $0x490] sm:$0xff]  ;;  %v677_v7 = vld [vmem:[%s4459_s30 + $0x418] sm:$0xff]  ;;  %v550_v27 = vld [vmem:[%s4459_s30 + $0x20] sm:$0xff] }
  0x85   : > { %v3718_v6 = vcombine.high %v645_v0, %v661_v1  ;;  %v693_v8 = vld [vmem:[%s4459_s30 + $0x498] sm:$0xff]  ;;  %v708_v9 = vld [vmem:[%s4459_s30 + $0x510] sm:$0x11]  ;;  %v3715_v10 = vcombine.low %v644_v61, %v660_v62  ;;  %v3717_v13 = vcombine.low %v645_v0, %v661_v1  ;;  %v3748_v14 = vcombine.high %v676_v4, %v692_v5  ;;  %3098 = vperm.xlu0 %3969, %v3094_v12   ;;  %v551_v29 = vld [vmem:[%s4459_s30 + $0x28] sm:$0xff] }
  0x86   : > { %v709_v11 = vld [vmem:[%s4459_s30 + $0x518] sm:$0x11]  ;;  %v3750_v15 = vcombine.high %v677_v7, %v693_v8  ;;  %v3780_v16 = vcombine.high %v708_v9, %v708_v9  ;;  %v4540_v17 = vld [vmem:[%s5110_s0 + $0x10] sm:$0xff]   ;;  %v3747_v20 = vcombine.low %v676_v4, %v692_v5  ;;  %v582_v36 = vld [vmem:[%s4459_s30 + $0x120] sm:$0xff] }
  0x87   : > { %1741 = vmatpush1.bf16.msra.mxu0 %v3711_v21  ;;  %1814 = vmatpush1.bf16.msra.mxu1 %v3713_v22  ;;  %v3782_v18 = vcombine.high %v709_v11, %v709_v11  ;;  %v3779_v21 = vcombine.low %v708_v9, %v708_v9  ;;  %v3749_v22 = vcombine.low %v677_v7, %v693_v8  ;;  %v4562_v34 = vld [vmem:[%s5110_s0 + $0x18] sm:$0xff]   ;;  %v598_v37 = vld [vmem:[%s4459_s30 + $0x1a0] sm:$0xff]  ;;  %v679_v1 = vld [vmem:[%s4459_s30 + $0x428] sm:$0xff] }
  0x88   : > { %1742 = vmatprep.subr.bf16.mxu0 %v3744_v23  ;;  %1815 = vmatprep.subr.bf16.mxu1 %v3746_v25  ;;  %v1654_v23 = vand.u32 %v3780_v16, %v4484_v26  ;;  %v3781_v24 = vcombine.low %v709_v11, %v709_v11  ;;  %v3656_v42 = vcombine.high %v582_v36, %v598_v37  ;;  %v614_v45 = vld [vmem:[%s4459_s30 + $0x220] sm:$0xff]  ;;  %v711_v5 = vld [vmem:[%s4459_s30 + $0x528] sm:$0x11] }
  0x89   : > { %v1660_v25 = vand.u32 %v3782_v18, %v4484_v26  ;;  %3103 = vperm.xlu0 %3969, %v3095_v19   ;;  %v630_v46 = vld [vmem:[%s4459_s30 + $0x2a0] sm:$0xff]  ;;  %v552_v18 = vld [vmem:[%s4459_s30 + $0x30] sm:$0xff] }
  0x8a   : > { %v1657_v32 = vand.u32 %v3781_v24, %v4484_v26  ;;  %v3688_v52 = vcombine.high %v614_v45, %v630_v46  ;;  %v646_v54 = vld [vmem:[%s4459_s30 + $0x320] sm:$0xff]  ;;  %v568_v19 = vld [vmem:[%s4459_s30 + $0xb0] sm:$0xff] }
  0x8b   : > { %1743 = vmatpush1.bf16.msra.mxu0 %v3743_v28  ;;  %1816 = vmatpush1.bf16.msra.mxu1 %v3745_v30  ;;  %v566_v28 = vld [vmem:[%s4459_s30 + $0xa0] sm:$0xff]  ;;  %v567_v30 = vld [vmem:[%s4459_s30 + $0xa8] sm:$0xff]  ;;  %v3628_v24 = vcombine.high %v552_v18, %v568_v19 }
  0x8c   : > { %1744 = vmatprep.subr.bf16.mxu0 %v1642_v31  ;;  %1817 = vmatprep.subr.bf16.mxu1 %v1648_v33  ;;  %v1651_v31 = vand.u32 %v3779_v21, %v4484_v26  ;;  %v3624_v33 = vcombine.high %v550_v27, %v566_v28  ;;  %v3626_v35 = vcombine.high %v551_v29, %v567_v30  ;;  %v662_v55 = vld [vmem:[%s4459_s30 + $0x3a0] sm:$0xff]  ;;  %v569_v21 = vld [vmem:[%s4459_s30 + $0xb8] sm:$0xff] }
  0x8d   : > { %v3720_v61 = vcombine.high %v646_v54, %v662_v55  ;;  %v678_v62 = vld [vmem:[%s4459_s30 + $0x420] sm:$0xff]  ;;  %v3719_v4 = vcombine.low %v646_v54, %v662_v55  ;;  %v696_v54 = vld [vmem:[%s4459_s30 + $0x4b0] sm:$0xff] }
  0x8f   : > { %1745 = vmatpush1.bf16.msra.mxu0 %v1639_v38  ;;  %1818 = vmatpush1.bf16.msra.mxu1 %v1645_v39  ;;  %v583_v38 = vld [vmem:[%s4459_s30 + $0x128] sm:$0xff] }
  0x90   : > { %1880 = vmatprep.subr.bf16.mxu0 %v3620_v40  ;;  %1953 = vmatprep.subr.bf16.mxu1 %v3622_v41  ;;  %v599_v39 = vld [vmem:[%s4459_s30 + $0x1a8] sm:$0xff]  ;;  %v3623_v40 = vcombine.low %v550_v27, %v566_v28  ;;  %v3625_v41 = vcombine.low %v551_v29, %v567_v30  ;;  %v584_v27 = vld [vmem:[%s4459_s30 + $0x130] sm:$0xff]  ;;  %v585_v29 = vld [vmem:[%s4459_s30 + $0x138] sm:$0xff] }
  0x91   : > { %v3658_v43 = vcombine.high %v583_v38, %v599_v39  ;;  %v600_v28 = vld [vmem:[%s4459_s30 + $0x1b0] sm:$0xff]  ;;  %v601_v30 = vld [vmem:[%s4459_s30 + $0x1b8] sm:$0xff] }
  0x92   : > { %3807 = vmatmul.mubr.msk.bf16.vlgmr.msra.gmra.mrb[0].mxu0 %vm1622_vm1, %v4499_v44  ;;  %3811 = vmatmul.mubr.msk.bf16.vlgmr.msra.gmra.mrb[0].mxu1 %vm1622_vm1, %v4499_v44 }
  0x93   : > { %1881 = vmatpush1.bf16.msra.mxu0 %v3619_v47  ;;  %1954 = vmatpush1.bf16.msra.mxu1 %v3621_v49  ;;  %v615_v47 = vld [vmem:[%s4459_s30 + $0x228] sm:$0xff] }
  0x94   : > { %1882 = vmatprep.subr.bf16.mxu0 %v3652_v50  ;;  %1955 = vmatprep.subr.bf16.mxu1 %v3654_v51  ;;  %v631_v49 = vld [vmem:[%s4459_s30 + $0x2a8] sm:$0xff]  ;;  %v3655_v50 = vcombine.low %v582_v36, %v598_v37  ;;  %v3657_v51 = vcombine.low %v583_v38, %v599_v39  ;;  %v616_v36 = vld [vmem:[%s4459_s30 + $0x230] sm:$0xff]  ;;  %v617_v38 = vld [vmem:[%s4459_s30 + $0x238] sm:$0xff] }
  0x95   : > { %1776 = vmatprep.mubr.bf16.mxu0 %v4034_v48  ;;  %1849 = vmatprep.mubr.bf16.mxu1 %v4034_v48  ;;  %v3690_v53 = vcombine.high %v615_v47, %v631_v49  ;;  %v632_v37 = vld [vmem:[%s4459_s30 + $0x2b0] sm:$0xff]  ;;  %v633_v39 = vld [vmem:[%s4459_s30 + $0x2b8] sm:$0xff] }
  0x97   : > { %1883 = vmatpush1.bf16.msra.mxu0 %v3651_v56  ;;  %1956 = vmatpush1.bf16.msra.mxu1 %v3653_v57  ;;  %v3687_v56 = vcombine.low %v614_v45, %v630_v46  ;;  %v647_v57 = vld [vmem:[%s4459_s30 + $0x328] sm:$0xff]  ;;  %v648_v45 = vld [vmem:[%s4459_s30 + $0x330] sm:$0xff] }
  0x98   : > { %1884 = vmatprep.subr.bf16.mxu0 %v3684_v58  ;;  %1957 = vmatprep.subr.bf16.mxu1 %v3686_v59  ;;  %v663_v58 = vld [vmem:[%s4459_s30 + $0x3a8] sm:$0xff]  ;;  %v3689_v59 = vcombine.low %v615_v47, %v631_v49  ;;  %v664_v46 = vld [vmem:[%s4459_s30 + $0x3b0] sm:$0xff]  ;;  %v3691_v47 = vcombine.low %v616_v36, %v632_v37  ;;  %v649_v49 = vld [vmem:[%s4459_s30 + $0x338] sm:$0xff] }
  0x99   : > { %v3722_v0 = vcombine.high %v647_v57, %v663_v58 }
  0x9a   : > { %3808 = vmatmul.mubr.msk.bf16.gmra.mrb[4].mxu0 %vm1622_vm1, %v4516_v60  ;;  %3812 = vmatmul.mubr.msk.bf16.gmra.mrb[4].mxu1 %vm1622_vm1, %v4516_v60 }
  0x9b   : > { %1885 = vmatpush1.bf16.msra.mxu0 %v3683_v63  ;;  %1958 = vmatpush1.bf16.msra.mxu1 %v3685_v2  ;;  %v694_v63 = vld [vmem:[%s4459_s30 + $0x4a0] sm:$0xff]  ;;  %v695_v2 = vld [vmem:[%s4459_s30 + $0x4a8] sm:$0xff] }
  0x9c   : > { %1786 = vmatprep.mubr.bf16.mxu0 %v4034_v48  ;;  %1859 = vmatprep.mubr.bf16.mxu1 %v4034_v48  ;;  %v3752_v7 = vcombine.high %v678_v62, %v694_v63  ;;  %v3754_v8 = vcombine.high %v679_v1, %v695_v2  ;;  %v3751_v11 = vcombine.low %v678_v62, %v694_v63 }
  0x9d   : > { %1886 = vmatprep.subr.bf16.mxu0 %v3716_v3  ;;  %1959 = vmatprep.subr.bf16.mxu1 %v3718_v6  ;;  %v710_v3 = vld [vmem:[%s4459_s30 + $0x520] sm:$0x11]  ;;  %v3721_v6 = vcombine.low %v647_v57, %v663_v58  ;;  %v697_v57 = vld [vmem:[%s4459_s30 + $0x4b8] sm:$0xff]  ;;  %v712_v58 = vld [vmem:[%s4459_s30 + $0x530] sm:$0x11] }
  0x9e   : > { %v3784_v9 = vcombine.high %v710_v3, %v710_v3  ;;  %v3783_v12 = vcombine.low %v710_v3, %v710_v3 }
  0x9f   : > { %1887 = vmatpush1.bf16.msra.mxu0 %v3715_v10  ;;  %1960 = vmatpush1.bf16.msra.mxu1 %v3717_v13  ;;  %v3786_v10 = vcombine.high %v711_v5, %v711_v5  ;;  %v3753_v13 = vcombine.low %v679_v1, %v695_v2  ;;  %v3788_v1 = vcombine.high %v712_v58, %v712_v58 }
  0xa0   : > { %1888 = vmatprep.subr.bf16.mxu0 %v3748_v14  ;;  %1961 = vmatprep.subr.bf16.mxu1 %v3750_v15  ;;  %v1666_v14 = vand.u32 %v3784_v9, %v4484_v26  ;;  %v3785_v15 = vcombine.low %v711_v5, %v711_v5  ;;  %v554_v9 = vld [vmem:[%s4459_s30 + $0x40] sm:$0xff] }
  0xa1   : > { %v1672_v16 = vand.u32 %v3786_v10, %v4484_v26  ;;  %v570_v10 = vld [vmem:[%s4459_s30 + $0xc0] sm:$0xff] }
  0xa2   : > { %3809 = vmatmul.mubr.msk.bf16.gmra.mrb[8].mxu0 %vm1622_vm1, %v4540_v17  ;;  %3813 = vmatmul.mubr.msk.bf16.gmra.mrb[8].mxu1 %vm1622_vm1, %v4540_v17 }
  0xa3   : > { %1796 = vmatprep.mubr.bf16.mxu0 %v4034_v48  ;;  %1869 = vmatprep.mubr.bf16.mxu1 %v4034_v48 }
  0xa4   : > { %1889 = vmatpush1.bf16.msra.mxu0 %v3747_v20  ;;  %1962 = vmatpush1.bf16.msra.mxu1 %v3749_v22  ;;  %v553_v20 = vld [vmem:[%s4459_s30 + $0x38] sm:$0xff]  ;;  %v1663_v22 = vand.u32 %v3783_v12, %v4484_v26  ;;  %v571_v12 = vld [vmem:[%s4459_s30 + $0xc8] sm:$0xff] }
  0xa5   : > { %1890 = vmatprep.subr.bf16.mxu0 %v1654_v23  ;;  %1963 = vmatprep.subr.bf16.mxu1 %v1660_v25  ;;  %v1669_v23 = vand.u32 %v3785_v15, %v4484_v26  ;;  %v3630_v25 = vcombine.high %v553_v20, %v569_v21  ;;  %v3632_v15 = vcombine.high %v554_v9, %v570_v10 }
  0xa8   : > { %1891 = vmatpush1.bf16.msra.mxu0 %v1651_v31  ;;  %1964 = vmatpush1.bf16.msra.mxu1 %v1657_v32  ;;  %v3627_v31 = vcombine.low %v552_v18, %v568_v19  ;;  %v3629_v32 = vcombine.low %v553_v20, %v569_v21  ;;  %v586_v18 = vld [vmem:[%s4459_s30 + $0x140] sm:$0xff]  ;;  %v587_v20 = vld [vmem:[%s4459_s30 + $0x148] sm:$0xff] }
  0xa9   : > { %2026 = vmatprep.subr.bf16.mxu0 %v3624_v33  ;;  %2099 = vmatprep.subr.bf16.mxu1 %v3626_v35  ;;  %v3660_v33 = vcombine.high %v584_v27, %v600_v28  ;;  %v3662_v35 = vcombine.high %v585_v29, %v601_v30  ;;  %v602_v19 = vld [vmem:[%s4459_s30 + $0x1c0] sm:$0xff]  ;;  %v603_v21 = vld [vmem:[%s4459_s30 + $0x1c8] sm:$0xff] }
  0xaa   : > { %3810 = vmatmul.mubr.msk.bf16.gmra.mrb[12].mxu0 %vm1622_vm1, %v4562_v34  ;;  %3814 = vmatmul.mubr.msk.bf16.gmra.mrb[12].mxu1 %vm1622_vm1, %v4562_v34 }
  0xab   : > { %1912 = vmatprep.mubr.bf16.mxu0 %v4034_v48  ;;  %1985 = vmatprep.mubr.bf16.mxu1 %v4034_v48 }
  0xb2   : > { %3815 = vmatmul.mubr.msk.bf16.vlgmr.msra.gmra.mrb[16].mxu0 %vm1622_vm1, %v4499_v44  ;;  %3819 = vmatmul.mubr.msk.bf16.vlgmr.msra.gmra.mrb[16].mxu1 %vm1622_vm1, %v4499_v44 }
  0xb3   : > { %2027 = vmatpush1.bf16.msra.mxu0 %v3623_v40  ;;  %2100 = vmatpush1.bf16.msra.mxu1 %v3625_v41  ;;  %v3659_v40 = vcombine.low %v584_v27, %v600_v28  ;;  %v3661_v41 = vcombine.low %v585_v29, %v601_v30  ;;  %v618_v27 = vld [vmem:[%s4459_s30 + $0x240] sm:$0xff]  ;;  %v619_v29 = vld [vmem:[%s4459_s30 + $0x248] sm:$0xff] }
  0xb4   : > { %2028 = vmatprep.subr.bf16.mxu0 %v3656_v42  ;;  %2101 = vmatprep.subr.bf16.mxu1 %v3658_v43  ;;  %v3692_v42 = vcombine.high %v616_v36, %v632_v37  ;;  %v3694_v43 = vcombine.high %v617_v38, %v633_v39  ;;  %v634_v28 = vld [vmem:[%s4459_s30 + $0x2c0] sm:$0xff]  ;;  %v635_v30 = vld [vmem:[%s4459_s30 + $0x2c8] sm:$0xff] }
  0xb5   : > { %1922 = vmatprep.mubr.bf16.mxu0 %v4034_v48  ;;  %1995 = vmatprep.mubr.bf16.mxu1 %v4034_v48  ;;  %v650_v36 = vld [vmem:[%s4459_s30 + $0x340] sm:$0xff] }
  0xb6   : > { %v666_v37 = vld [vmem:[%s4459_s30 + $0x3c0] sm:$0xff] }
  0xb7   : > { %2029 = vmatpush1.bf16.msra.mxu0 %v3655_v50  ;;  %2102 = vmatpush1.bf16.msra.mxu1 %v3657_v51  ;;  %v665_v50 = vld [vmem:[%s4459_s30 + $0x3b8] sm:$0xff]  ;;  %v3693_v51 = vcombine.low %v617_v38, %v633_v39  ;;  %v3695_v38 = vcombine.low %v618_v27, %v634_v28  ;;  %v651_v39 = vld [vmem:[%s4459_s30 + $0x348] sm:$0xff] }
  0xb8   : > { %2030 = vmatprep.subr.bf16.mxu0 %v3688_v52  ;;  %2103 = vmatprep.subr.bf16.mxu1 %v3690_v53  ;;  %v3724_v52 = vcombine.high %v648_v45, %v664_v46  ;;  %v680_v53 = vld [vmem:[%s4459_s30 + $0x430] sm:$0xff]  ;;  %v3726_v55 = vcombine.high %v649_v49, %v665_v50  ;;  %v3725_v62 = vcombine.low %v649_v49, %v665_v50  ;;  %v699_v49 = vld [vmem:[%s4459_s30 + $0x4c8] sm:$0xff]  ;;  %v714_v50 = vld [vmem:[%s4459_s30 + $0x540] sm:$0x11] }
  0xb9   : > { %v3756_v63 = vcombine.high %v680_v53, %v696_v54  ;;  %v3755_v3 = vcombine.low %v680_v53, %v696_v54 }
  0xba   : > { %3816 = vmatmul.mubr.msk.bf16.gmra.mrb[20].mxu0 %vm1622_vm1, %v4516_v60  ;;  %3820 = vmatmul.mubr.msk.bf16.gmra.mrb[20].mxu1 %vm1622_vm1, %v4516_v60 }
  0xbb   : > { %2031 = vmatpush1.bf16.msra.mxu0 %v3687_v56  ;;  %2104 = vmatpush1.bf16.msra.mxu1 %v3689_v59  ;;  %v681_v56 = vld [vmem:[%s4459_s30 + $0x438] sm:$0xff]  ;;  %v3723_v59 = vcombine.low %v648_v45, %v664_v46  ;;  %v698_v45 = vld [vmem:[%s4459_s30 + $0x4c0] sm:$0xff] }
  0xbc   : > { %1932 = vmatprep.mubr.bf16.mxu0 %v4034_v48  ;;  %2005 = vmatprep.mubr.bf16.mxu1 %v4034_v48  ;;  %v3757_v5 = vcombine.low %v681_v56, %v697_v57 }
  0xbd   : > { %2032 = vmatprep.subr.bf16.mxu0 %v3720_v61  ;;  %2105 = vmatprep.subr.bf16.mxu1 %v3722_v0  ;;  %v713_v61 = vld [vmem:[%s4459_s30 + $0x538] sm:$0x11]  ;;  %v3758_v0 = vcombine.high %v681_v56, %v697_v57  ;;  %v3792_v56 = vcombine.high %v714_v50, %v714_v50 }
  0xbe   : > { %v3790_v2 = vcombine.high %v713_v61, %v713_v61 }
  0xbf   : > { %2033 = vmatpush1.bf16.msra.mxu0 %v3719_v4  ;;  %2106 = vmatpush1.bf16.msra.mxu1 %v3721_v6  ;;  %v3787_v4 = vcombine.low %v712_v58, %v712_v58  ;;  %v1678_v6 = vand.u32 %v3788_v1, %v4484_v26  ;;  %v556_v1 = vld [vmem:[%s4459_s30 + $0x50] sm:$0xff] }
  0xc0   : > { %2034 = vmatprep.subr.bf16.mxu0 %v3752_v7  ;;  %2107 = vmatprep.subr.bf16.mxu1 %v3754_v8  ;;  %v3789_v7 = vcombine.low %v713_v61, %v713_v61  ;;  %v1684_v8 = vand.u32 %v3790_v2, %v4484_v26  ;;  %v572_v2 = vld [vmem:[%s4459_s30 + $0xd0] sm:$0xff] }
  0xc2   : > { %3817 = vmatmul.mubr.msk.bf16.gmra.mrb[24].mxu0 %vm1622_vm1, %v4540_v17  ;;  %3821 = vmatmul.mubr.msk.bf16.gmra.mrb[24].mxu1 %vm1622_vm1, %v4540_v17 }
  0xc3   : > { %1942 = vmatprep.mubr.bf16.mxu0 %v4034_v48  ;;  %2015 = vmatprep.mubr.bf16.mxu1 %v4034_v48 }
  0xc4   : > { %2035 = vmatpush1.bf16.msra.mxu0 %v3751_v11  ;;  %2108 = vmatpush1.bf16.msra.mxu1 %v3753_v13  ;;  %v555_v11 = vld [vmem:[%s4459_s30 + $0x48] sm:$0xff]  ;;  %v1675_v13 = vand.u32 %v3787_v4, %v4484_v26  ;;  %v573_v4 = vld [vmem:[%s4459_s30 + $0xd8] sm:$0xff] }
  0xc5   : > { %2036 = vmatprep.subr.bf16.mxu0 %v1666_v14  ;;  %2109 = vmatprep.subr.bf16.mxu1 %v1672_v16  ;;  %v1681_v14 = vand.u32 %v3789_v7, %v4484_v26  ;;  %v3634_v16 = vcombine.high %v555_v11, %v571_v12  ;;  %v3636_v7 = vcombine.high %v556_v1, %v572_v2 }
  0xc8   : > { %2037 = vmatpush1.bf16.msra.mxu0 %v1663_v22  ;;  %2110 = vmatpush1.bf16.msra.mxu1 %v1669_v23  ;;  %v3631_v22 = vcombine.low %v554_v9, %v570_v10  ;;  %v3633_v23 = vcombine.low %v555_v11, %v571_v12  ;;  %v588_v9 = vld [vmem:[%s4459_s30 + $0x150] sm:$0xff]  ;;  %v589_v11 = vld [vmem:[%s4459_s30 + $0x158] sm:$0xff] }
  0xc9   : > { %2172 = vmatprep.subr.bf16.mxu0 %v3628_v24  ;;  %2245 = vmatprep.subr.bf16.mxu1 %v3630_v25  ;;  %v3664_v24 = vcombine.high %v586_v18, %v602_v19  ;;  %v3666_v25 = vcombine.high %v587_v20, %v603_v21  ;;  %v604_v10 = vld [vmem:[%s4459_s30 + $0x1d0] sm:$0xff]  ;;  %v605_v12 = vld [vmem:[%s4459_s30 + $0x1d8] sm:$0xff] }
  0xca   : > { %3818 = vmatmul.mubr.msk.bf16.gmra.mrb[28].mxu0 %vm1622_vm1, %v4562_v34  ;;  %3822 = vmatmul.mubr.msk.bf16.gmra.mrb[28].mxu1 %vm1622_vm1, %v4562_v34 }
  0xcb   : > { %2058 = vmatprep.mubr.bf16.mxu0 %v4034_v48  ;;  %2131 = vmatprep.mubr.bf16.mxu1 %v4034_v48 }
  0xd2   : > { %3823 = vmatmul.mubr.msk.bf16.vlgmr.msra.gmra.mrb[32].mxu0 %vm1622_vm1, %v4499_v44  ;;  %3827 = vmatmul.mubr.msk.bf16.vlgmr.msra.gmra.mrb[32].mxu1 %vm1622_vm1, %v4499_v44 }
  0xd3   : > { %2173 = vmatpush1.bf16.msra.mxu0 %v3627_v31  ;;  %2246 = vmatpush1.bf16.msra.mxu1 %v3629_v32  ;;  %v3663_v31 = vcombine.low %v586_v18, %v602_v19  ;;  %v3665_v32 = vcombine.low %v587_v20, %v603_v21  ;;  %v620_v18 = vld [vmem:[%s4459_s30 + $0x250] sm:$0xff]  ;;  %v621_v20 = vld [vmem:[%s4459_s30 + $0x258] sm:$0xff] }
  0xd4   : > { %2174 = vmatprep.subr.bf16.mxu0 %v3660_v33  ;;  %2247 = vmatprep.subr.bf16.mxu1 %v3662_v35  ;;  %v3696_v33 = vcombine.high %v618_v27, %v634_v28  ;;  %v3698_v35 = vcombine.high %v619_v29, %v635_v30  ;;  %v636_v19 = vld [vmem:[%s4459_s30 + $0x2d0] sm:$0xff]  ;;  %v637_v21 = vld [vmem:[%s4459_s30 + $0x2d8] sm:$0xff] }
  0xd5   : > { %2068 = vmatprep.mubr.bf16.mxu0 %v4034_v48  ;;  %2141 = vmatprep.mubr.bf16.mxu1 %v4034_v48  ;;  %v652_v27 = vld [vmem:[%s4459_s30 + $0x350] sm:$0xff] }
  0xd6   : > { %v668_v28 = vld [vmem:[%s4459_s30 + $0x3d0] sm:$0xff] }
  0xd7   : > { %2175 = vmatpush1.bf16.msra.mxu0 %v3659_v40  ;;  %2248 = vmatpush1.bf16.msra.mxu1 %v3661_v41  ;;  %v667_v40 = vld [vmem:[%s4459_s30 + $0x3c8] sm:$0xff]  ;;  %v3697_v41 = vcombine.low %v619_v29, %v635_v30  ;;  %v3699_v29 = vcombine.low %v620_v18, %v636_v19  ;;  %v653_v30 = vld [vmem:[%s4459_s30 + $0x358] sm:$0xff] }
  0xd8   : > { %2176 = vmatprep.subr.bf16.mxu0 %v3692_v42  ;;  %2249 = vmatprep.subr.bf16.mxu1 %v3694_v43  ;;  %v3728_v42 = vcombine.high %v650_v36, %v666_v37  ;;  %v682_v43 = vld [vmem:[%s4459_s30 + $0x440] sm:$0xff]  ;;  %v3730_v46 = vcombine.high %v651_v39, %v667_v40  ;;  %v3729_v53 = vcombine.low %v651_v39, %v667_v40  ;;  %v701_v39 = vld [vmem:[%s4459_s30 + $0x4d8] sm:$0xff]  ;;  %v716_v40 = vld [vmem:[%s4459_s30 + $0x550] sm:$0x11] }
  0xd9   : > { %v3760_v54 = vcombine.high %v682_v43, %v698_v45  ;;  %v3759_v58 = vcombine.low %v682_v43, %v698_v45 }
  0xda   : > { %3824 = vmatmul.mubr.msk.bf16.gmra.mrb[36].mxu0 %vm1622_vm1, %v4516_v60  ;;  %3828 = vmatmul.mubr.msk.bf16.gmra.mrb[36].mxu1 %vm1622_vm1, %v4516_v60 }
  0xdb   : > { %2177 = vmatpush1.bf16.msra.mxu0 %v3691_v47  ;;  %2250 = vmatpush1.bf16.msra.mxu1 %v3693_v51  ;;  %v683_v47 = vld [vmem:[%s4459_s30 + $0x448] sm:$0xff]  ;;  %v3727_v51 = vcombine.low %v650_v36, %v666_v37  ;;  %v700_v36 = vld [vmem:[%s4459_s30 + $0x4d0] sm:$0xff] }
  0xdc   : > { %2078 = vmatprep.mubr.bf16.mxu0 %v4034_v48  ;;  %2151 = vmatprep.mubr.bf16.mxu1 %v4034_v48  ;;  %v3761_v61 = vcombine.low %v683_v47, %v699_v49 }
  0xdd   : > { %2178 = vmatprep.subr.bf16.mxu0 %v3724_v52  ;;  %2251 = vmatprep.subr.bf16.mxu1 %v3726_v55  ;;  %v715_v52 = vld [vmem:[%s4459_s30 + $0x548] sm:$0x11]  ;;  %v3762_v55 = vcombine.high %v683_v47, %v699_v49  ;;  %v3796_v47 = vcombine.high %v716_v40, %v716_v40 }
  0xde   : > { %v3794_v57 = vcombine.high %v715_v52, %v715_v52 }
  0xdf   : > { %2179 = vmatpush1.bf16.msra.mxu0 %v3723_v59  ;;  %2252 = vmatpush1.bf16.msra.mxu1 %v3725_v62  ;;  %v3791_v59 = vcombine.low %v714_v50, %v714_v50  ;;  %v1690_v62 = vand.u32 %v3792_v56, %v4484_v26  ;;  %v558_v56 = vld [vmem:[%s4459_s30 + $0x60] sm:$0xff] }
  0xe0   : > { %2180 = vmatprep.subr.bf16.mxu0 %v3756_v63  ;;  %2253 = vmatprep.subr.bf16.mxu1 %v3758_v0  ;;  %v3793_v63 = vcombine.low %v715_v52, %v715_v52  ;;  %v1696_v0 = vand.u32 %v3794_v57, %v4484_v26  ;;  %v574_v57 = vld [vmem:[%s4459_s30 + $0xe0] sm:$0xff] }
  0xe2   : > { %3825 = vmatmul.mubr.msk.bf16.gmra.mrb[40].mxu0 %vm1622_vm1, %v4540_v17  ;;  %3829 = vmatmul.mubr.msk.bf16.gmra.mrb[40].mxu1 %vm1622_vm1, %v4540_v17 }
  0xe3   : > { %2088 = vmatprep.mubr.bf16.mxu0 %v4034_v48  ;;  %2161 = vmatprep.mubr.bf16.mxu1 %v4034_v48 }
  0xe4   : > { %2181 = vmatpush1.bf16.msra.mxu0 %v3755_v3  ;;  %2254 = vmatpush1.bf16.msra.mxu1 %v3757_v5  ;;  %v557_v3 = vld [vmem:[%s4459_s30 + $0x58] sm:$0xff]  ;;  %v1687_v5 = vand.u32 %v3791_v59, %v4484_v26  ;;  %v575_v59 = vld [vmem:[%s4459_s30 + $0xe8] sm:$0xff] }
  0xe5   : > { %2182 = vmatprep.subr.bf16.mxu0 %v1678_v6  ;;  %2255 = vmatprep.subr.bf16.mxu1 %v1684_v8  ;;  %v1693_v6 = vand.u32 %v3793_v63, %v4484_v26  ;;  %v3638_v8 = vcombine.high %v557_v3, %v573_v4  ;;  %v3640_v63 = vcombine.high %v558_v56, %v574_v57 }
  0xe8   : > { %2183 = vmatpush1.bf16.msra.mxu0 %v1675_v13  ;;  %2256 = vmatpush1.bf16.msra.mxu1 %v1681_v14  ;;  %v3635_v13 = vcombine.low %v556_v1, %v572_v2  ;;  %v3637_v14 = vcombine.low %v557_v3, %v573_v4  ;;  %v590_v1 = vld [vmem:[%s4459_s30 + $0x160] sm:$0xff]  ;;  %v591_v3 = vld [vmem:[%s4459_s30 + $0x168] sm:$0xff] }
  0xe9   : > { %2318 = vmatprep.subr.bf16.mxu0 %v3632_v15  ;;  %2391 = vmatprep.subr.bf16.mxu1 %v3634_v16  ;;  %v3668_v15 = vcombine.high %v588_v9, %v604_v10  ;;  %v3670_v16 = vcombine.high %v589_v11, %v605_v12  ;;  %v606_v2 = vld [vmem:[%s4459_s30 + $0x1e0] sm:$0xff]  ;;  %v607_v4 = vld [vmem:[%s4459_s30 + $0x1e8] sm:$0xff] }
  0xea   : > { %3826 = vmatmul.mubr.msk.bf16.gmra.mrb[44].mxu0 %vm1622_vm1, %v4562_v34  ;;  %3830 = vmatmul.mubr.msk.bf16.gmra.mrb[44].mxu1 %vm1622_vm1, %v4562_v34 }
  0xeb   : > { %2204 = vmatprep.mubr.bf16.mxu0 %v4034_v48  ;;  %2277 = vmatprep.mubr.bf16.mxu1 %v4034_v48 }
  0xf2   : > { %3831 = vmatmul.mubr.msk.bf16.vlgmr.msra.gmra.mrb[48].mxu0 %vm1622_vm1, %v4499_v44  ;;  %3835 = vmatmul.mubr.msk.bf16.vlgmr.msra.gmra.mrb[48].mxu1 %vm1622_vm1, %v4499_v44 }
  0xf3   : > { %2319 = vmatpush1.bf16.msra.mxu0 %v3631_v22  ;;  %2392 = vmatpush1.bf16.msra.mxu1 %v3633_v23  ;;  %v3667_v22 = vcombine.low %v588_v9, %v604_v10  ;;  %v3669_v23 = vcombine.low %v589_v11, %v605_v12  ;;  %v622_v9 = vld [vmem:[%s4459_s30 + $0x260] sm:$0xff]  ;;  %v623_v11 = vld [vmem:[%s4459_s30 + $0x268] sm:$0xff] }
  0xf4   : > { %2320 = vmatprep.subr.bf16.mxu0 %v3664_v24  ;;  %2393 = vmatprep.subr.bf16.mxu1 %v3666_v25  ;;  %v3700_v24 = vcombine.high %v620_v18, %v636_v19  ;;  %v3702_v25 = vcombine.high %v621_v20, %v637_v21  ;;  %v638_v10 = vld [vmem:[%s4459_s30 + $0x2e0] sm:$0xff]  ;;  %v639_v12 = vld [vmem:[%s4459_s30 + $0x2e8] sm:$0xff] }
  0xf5   : > { %2214 = vmatprep.mubr.bf16.mxu0 %v4034_v48  ;;  %2287 = vmatprep.mubr.bf16.mxu1 %v4034_v48  ;;  %v654_v18 = vld [vmem:[%s4459_s30 + $0x360] sm:$0xff] }
  0xf6   : > { %v670_v19 = vld [vmem:[%s4459_s30 + $0x3e0] sm:$0xff] }
  0xf7   : > { %2321 = vmatpush1.bf16.msra.mxu0 %v3663_v31  ;;  %2394 = vmatpush1.bf16.msra.mxu1 %v3665_v32  ;;  %v669_v31 = vld [vmem:[%s4459_s30 + $0x3d8] sm:$0xff]  ;;  %v3701_v32 = vcombine.low %v621_v20, %v637_v21  ;;  %v655_v20 = vld [vmem:[%s4459_s30 + $0x368] sm:$0xff] }
  0xf8   : > { %2322 = vmatprep.subr.bf16.mxu0 %v3696_v33  ;;  %2395 = vmatprep.subr.bf16.mxu1 %v3698_v35  ;;  %v3732_v33 = vcombine.high %v652_v27, %v668_v28  ;;  %v684_v35 = vld [vmem:[%s4459_s30 + $0x450] sm:$0xff]  ;;  %v3734_v37 = vcombine.high %v653_v30, %v669_v31  ;;  %v3733_v43 = vcombine.low %v653_v30, %v669_v31  ;;  %v671_v21 = vld [vmem:[%s4459_s30 + $0x3e8] sm:$0xff]  ;;  %v718_v30 = vld [vmem:[%s4459_s30 + $0x560] sm:$0x11] }
  0xf9   : > { %v3764_v45 = vcombine.high %v684_v35, %v700_v36  ;;  %v3763_v50 = vcombine.low %v684_v35, %v700_v36  ;;  %v3735_v31 = vcombine.low %v654_v18, %v670_v19 }
  0xfa   : > { %3832 = vmatmul.mubr.msk.bf16.gmra.mrb[52].mxu0 %vm1622_vm1, %v4516_v60  ;;  %3836 = vmatmul.mubr.msk.bf16.gmra.mrb[52].mxu1 %vm1622_vm1, %v4516_v60 }
  0xfb   : > { %2323 = vmatpush1.bf16.msra.mxu0 %v3695_v38  ;;  %2396 = vmatpush1.bf16.msra.mxu1 %v3697_v41  ;;  %v685_v38 = vld [vmem:[%s4459_s30 + $0x458] sm:$0xff]  ;;  %v3731_v41 = vcombine.low %v652_v27, %v668_v28  ;;  %v3738_v27 = vcombine.high %v655_v20, %v671_v21  ;;  %v687_v28 = vld [vmem:[%s4459_s30 + $0x468] sm:$0xff] }
  0xfc   : > { %2224 = vmatprep.mubr.bf16.mxu0 %v4034_v48  ;;  %2297 = vmatprep.mubr.bf16.mxu1 %v4034_v48  ;;  %v3765_v52 = vcombine.low %v685_v38, %v701_v39 }
  0xfd   : > { %2324 = vmatprep.subr.bf16.mxu0 %v3728_v42  ;;  %2397 = vmatprep.subr.bf16.mxu1 %v3730_v46  ;;  %v717_v42 = vld [vmem:[%s4459_s30 + $0x558] sm:$0x11]  ;;  %v3766_v46 = vcombine.high %v685_v38, %v701_v39  ;;  %v3799_v39 = vcombine.low %v718_v30, %v718_v30 }
  0xfe   : > { %v3798_v49 = vcombine.high %v717_v42, %v717_v42 }
  0xff   : > { %2325 = vmatpush1.bf16.msra.mxu0 %v3727_v51  ;;  %2398 = vmatpush1.bf16.msra.mxu1 %v3729_v53  ;;  %v3795_v51 = vcombine.low %v716_v40, %v716_v40  ;;  %v1702_v53 = vand.u32 %v3796_v47, %v4484_v26  ;;  %v561_v47 = vld [vmem:[%s4459_s30 + $0x78] sm:$0xff] }
 0x100   : > { %2326 = vmatprep.subr.bf16.mxu0 %v3760_v54  ;;  %2399 = vmatprep.subr.bf16.mxu1 %v3762_v55  ;;  %v3797_v54 = vcombine.low %v717_v42, %v717_v42  ;;  %v1708_v55 = vand.u32 %v3798_v49, %v4484_v26  ;;  %v577_v49 = vld [vmem:[%s4459_s30 + $0xf8] sm:$0xff] }
 0x102   : > { %3833 = vmatmul.mubr.msk.bf16.gmra.mrb[56].mxu0 %vm1622_vm1, %v4540_v17  ;;  %3837 = vmatmul.mubr.msk.bf16.gmra.mrb[56].mxu1 %vm1622_vm1, %v4540_v17 }
 0x103   : > { %2234 = vmatprep.mubr.bf16.mxu0 %v4034_v48  ;;  %2307 = vmatprep.mubr.bf16.mxu1 %v4034_v48 }
 0x104   : > { %2327 = vmatpush1.bf16.msra.mxu0 %v3759_v58  ;;  %2400 = vmatpush1.bf16.msra.mxu1 %v3761_v61  ;;  %v559_v58 = vld [vmem:[%s4459_s30 + $0x68] sm:$0xff]  ;;  %v1699_v61 = vand.u32 %v3795_v51, %v4484_v26 }
 0x105   : > { %2328 = vmatprep.subr.bf16.mxu0 %v1690_v62  ;;  %2401 = vmatprep.subr.bf16.mxu1 %v1696_v0  ;;  %v1705_v62 = vand.u32 %v3797_v54, %v4484_v26  ;;  %v3642_v0 = vcombine.high %v559_v58, %v575_v59  ;;  %v608_v54 = vld [vmem:[%s4459_s30 + $0x1f0] sm:$0xff] }
 0x108   : > { %2329 = vmatpush1.bf16.msra.mxu0 %v1687_v5  ;;  %2402 = vmatpush1.bf16.msra.mxu1 %v1693_v6  ;;  %v3639_v5 = vcombine.low %v558_v56, %v574_v57  ;;  %v3641_v6 = vcombine.low %v559_v58, %v575_v59  ;;  %v609_v56 = vld [vmem:[%s4459_s30 + $0x1f8] sm:$0xff]  ;;  %v3645_v58 = vcombine.low %v561_v47, %v577_v49 }
 0x109   : > { %2464 = vmatprep.subr.bf16.mxu0 %v3636_v7  ;;  %2537 = vmatprep.subr.bf16.mxu1 %v3638_v8  ;;  %v3672_v7 = vcombine.high %v590_v1, %v606_v2  ;;  %v3674_v8 = vcombine.high %v591_v3, %v607_v4 }
 0x10a   : > { %3834 = vmatmul.mubr.msk.bf16.gmra.mrb[60].mxu0 %vm1622_vm1, %v4562_v34  ;;  %3838 = vmatmul.mubr.msk.bf16.gmra.mrb[60].mxu1 %vm1622_vm1, %v4562_v34 }
 0x10b   : > { %2350 = vmatprep.mubr.bf16.mxu0 %v4034_v48  ;;  %2423 = vmatprep.mubr.bf16.mxu1 %v4034_v48 }
 0x112   : > { %3839 = vmatmul.mubr.msk.bf16.vlgmr.msra.gmra.mrb[64].mxu0 %vm1622_vm1, %v4499_v44  ;;  %3843 = vmatmul.mubr.msk.bf16.vlgmr.msra.gmra.mrb[64].mxu1 %vm1622_vm1, %v4499_v44 }
 0x113   : > { %2465 = vmatpush1.bf16.msra.mxu0 %v3635_v13  ;;  %2538 = vmatpush1.bf16.msra.mxu1 %v3637_v14  ;;  %v3671_v13 = vcombine.low %v590_v1, %v606_v2  ;;  %v3673_v14 = vcombine.low %v591_v3, %v607_v4  ;;  %v641_v1 = vld [vmem:[%s4459_s30 + $0x2f8] sm:$0xff] }
 0x114   : > { %2466 = vmatprep.subr.bf16.mxu0 %v3668_v15  ;;  %2539 = vmatprep.subr.bf16.mxu1 %v3670_v16  ;;  %v3704_v15 = vcombine.high %v622_v9, %v638_v10  ;;  %v3706_v16 = vcombine.high %v623_v11, %v639_v12 }
 0x115   : > { %2360 = vmatprep.mubr.bf16.mxu0 %v4034_v48  ;;  %2433 = vmatprep.mubr.bf16.mxu1 %v4034_v48 }
 0x117   : > { %2467 = vmatpush1.bf16.msra.mxu0 %v3667_v22  ;;  %2540 = vmatpush1.bf16.msra.mxu1 %v3669_v23  ;;  %v3705_v22 = vcombine.low %v623_v11, %v639_v12  ;;  %v3736_v23 = vcombine.high %v654_v18, %v670_v19  ;;  %v689_v18 = vld [vmem:[%s4459_s30 + $0x478] sm:$0xff] }
 0x118   : > { %2468 = vmatprep.subr.bf16.mxu0 %v3700_v24  ;;  %2541 = vmatprep.subr.bf16.mxu1 %v3702_v25  ;;  %v686_v24 = vld [vmem:[%s4459_s30 + $0x460] sm:$0xff]  ;;  %v705_v19 = vld [vmem:[%s4459_s30 + $0x4f8] sm:$0xff] }
 0x119   : > { %v702_v25 = vld [vmem:[%s4459_s30 + $0x4e0] sm:$0xff] }
 0x11a   : > { %3840 = vmatmul.mubr.msk.bf16.gmra.mrb[68].mxu0 %vm1622_vm1, %v4516_v60  ;;  %3844 = vmatmul.mubr.msk.bf16.gmra.mrb[68].mxu1 %vm1622_vm1, %v4516_v60  ;;  %v3768_v35 = vcombine.high %v686_v24, %v702_v25 }
 0x11b   : > { %2469 = vmatpush1.bf16.msra.mxu0 %v3699_v29  ;;  %2542 = vmatpush1.bf16.msra.mxu1 %v3701_v32  ;;  %v703_v29 = vld [vmem:[%s4459_s30 + $0x4e8] sm:$0xff] }
 0x11c   : > { %2370 = vmatprep.mubr.bf16.mxu0 %v4034_v48  ;;  %2443 = vmatprep.mubr.bf16.mxu1 %v4034_v48  ;;  %v719_v32 = vld [vmem:[%s4459_s30 + $0x568] sm:$0x11]  ;;  %v3770_v36 = vcombine.high %v687_v28, %v703_v29  ;;  %v3769_v40 = vcombine.low %v687_v28, %v703_v29 }
 0x11d   : > { %2470 = vmatprep.subr.bf16.mxu0 %v3732_v33  ;;  %2543 = vmatprep.subr.bf16.mxu1 %v3734_v37  ;;  %v3737_v33 = vcombine.low %v655_v20, %v671_v21  ;;  %v3800_v37 = vcombine.high %v718_v30, %v718_v30  ;;  %v3802_v38 = vcombine.high %v719_v32, %v719_v32  ;;  %v721_v21 = vld [vmem:[%s4459_s30 + $0x578] sm:$0x11] }
 0x11e   : > { %v3801_v42 = vcombine.low %v719_v32, %v719_v32  ;;  %v3773_v30 = vcombine.low %v689_v18, %v705_v19  ;;  %v3805_v32 = vcombine.low %v721_v21, %v721_v21 }
 0x11f   : > { %2471 = vmatpush1.bf16.msra.mxu0 %v3731_v41  ;;  %2544 = vmatpush1.bf16.msra.mxu1 %v3733_v43  ;;  %v1714_v41 = vand.u32 %v3800_v37, %v4484_v26  ;;  %v1720_v43 = vand.u32 %v3802_v38, %v4484_v26 }
 0x120   : > { %2472 = vmatprep.subr.bf16.mxu0 %v3764_v45  ;;  %2545 = vmatprep.subr.bf16.mxu1 %v3766_v46  ;;  %v560_v45 = vld [vmem:[%s4459_s30 + $0x70] sm:$0xff]  ;;  %v1717_v51 = vand.u32 %v3801_v42, %v4484_v26  ;;  %v1729_v38 = vand.u32 %v3805_v32, %v4484_v26 }
 0x121   : > { %v576_v46 = vld [vmem:[%s4459_s30 + $0xf0] sm:$0xff] }
 0x122   : > { %3841 = vmatmul.mubr.msk.bf16.gmra.mrb[72].mxu0 %vm1622_vm1, %v4540_v17  ;;  %3845 = vmatmul.mubr.msk.bf16.gmra.mrb[72].mxu1 %vm1622_vm1, %v4540_v17  ;;  %v3643_v57 = vcombine.low %v560_v45, %v576_v46 }
 0x123   : > { %2380 = vmatprep.mubr.bf16.mxu0 %v4034_v48  ;;  %2453 = vmatprep.mubr.bf16.mxu1 %v4034_v48 }
 0x124   : > { %2473 = vmatpush1.bf16.msra.mxu0 %v3763_v50  ;;  %2546 = vmatpush1.bf16.msra.mxu1 %v3765_v52  ;;  %v1711_v50 = vand.u32 %v3799_v39, %v4484_v26  ;;  %v3644_v52 = vcombine.high %v560_v45, %v576_v46  ;;  %v4888_v46 = vld [vmem:[%s5110_s0 + $0x18] sm:$0xff]  }
 0x125   : > { %2474 = vmatprep.subr.bf16.mxu0 %v1702_v53  ;;  %2547 = vmatprep.subr.bf16.mxu1 %v1708_v55  ;;  %v592_v53 = vld [vmem:[%s4459_s30 + $0x170] sm:$0xff]  ;;  %v593_v55 = vld [vmem:[%s4459_s30 + $0x178] sm:$0xff] }
 0x126   : > { %v3676_v59 = vcombine.high %v592_v53, %v608_v54  ;;  %v3675_v2 = vcombine.low %v592_v53, %v608_v54  ;;  %v3677_v3 = vcombine.low %v593_v55, %v609_v56 }
 0x128   : > { %2475 = vmatpush1.bf16.msra.mxu0 %v1699_v61  ;;  %2548 = vmatpush1.bf16.msra.mxu1 %v1705_v62  ;;  %v3678_v61 = vcombine.high %v593_v55, %v609_v56  ;;  %v624_v62 = vld [vmem:[%s4459_s30 + $0x270] sm:$0xff] }
 0x129   : > { %2610 = vmatprep.subr.bf16.mxu0 %v3640_v63  ;;  %2683 = vmatprep.subr.bf16.mxu1 %v3642_v0  ;;  %v640_v63 = vld [vmem:[%s4459_s30 + $0x2f0] sm:$0xff]  ;;  %v625_v0 = vld [vmem:[%s4459_s30 + $0x278] sm:$0xff] }
 0x12a   : > { %3842 = vmatmul.mubr.msk.bf16.gmra.mrb[76].mxu0 %vm1622_vm1, %v4562_v34  ;;  %3846 = vmatmul.mubr.msk.bf16.gmra.mrb[76].mxu1 %vm1622_vm1, %v4562_v34  ;;  %v3708_v4 = vcombine.high %v624_v62, %v640_v63  ;;  %v3709_v11 = vcombine.low %v625_v0, %v641_v1 }
 0x12b   : > { %2496 = vmatprep.mubr.bf16.mxu0 %v4034_v48  ;;  %2569 = vmatprep.mubr.bf16.mxu1 %v4034_v48 }
 0x132   : > { %3847 = vmatmul.mubr.msk.bf16.vlgmr.msra.gmra.mrb[80].mxu0 %vm1622_vm1, %v4499_v44  ;;  %3851 = vmatmul.mubr.msk.bf16.vlgmr.msra.gmra.mrb[80].mxu1 %vm1622_vm1, %v4499_v44  ;;  %v3703_v44 = vcombine.low %v622_v9, %v638_v10  ;;  %v657_v9 = vld [vmem:[%s4459_s30 + $0x378] sm:$0xff] }
 0x133   : > { %2611 = vmatpush1.bf16.msra.mxu0 %v3639_v5  ;;  %2684 = vmatpush1.bf16.msra.mxu1 %v3641_v6  ;;  %v3710_v5 = vcombine.high %v625_v0, %v641_v1  ;;  %v656_v6 = vld [vmem:[%s4459_s30 + $0x370] sm:$0xff]  ;;  %v673_v10 = vld [vmem:[%s4459_s30 + $0x3f8] sm:$0xff] }
 0x134   : > { %2612 = vmatprep.subr.bf16.mxu0 %v3672_v7  ;;  %2685 = vmatprep.subr.bf16.mxu1 %v3674_v8  ;;  %v672_v7 = vld [vmem:[%s4459_s30 + $0x3f0] sm:$0xff]  ;;  %v3707_v8 = vcombine.low %v624_v62, %v640_v63 }
 0x135   : > { %2506 = vmatprep.mubr.bf16.mxu0 %v4034_v48  ;;  %2579 = vmatprep.mubr.bf16.mxu1 %v4034_v48  ;;  %v3740_v12 = vcombine.high %v656_v6, %v672_v7  ;;  %v3739_v20 = vcombine.low %v656_v6, %v672_v7  ;;  %v4911_v7 = vpop.permute.xlu0 %3098 }
 0x137   : > { %2613 = vmatpush1.bf16.msra.mxu0 %v3671_v13  ;;  %2686 = vmatpush1.bf16.msra.mxu1 %v3673_v14  ;;  %v688_v13 = vld [vmem:[%s4459_s30 + $0x470] sm:$0xff] }
 0x138   : > { %2614 = vmatprep.subr.bf16.mxu0 %v3704_v15  ;;  %2687 = vmatprep.subr.bf16.mxu1 %v3706_v16  ;;  %v704_v14 = vld [vmem:[%s4459_s30 + $0x4f0] sm:$0xff]  ;;  %v4848_v15 = vld [vmem:[%s5110_s0 + $0x8] sm:$0xff]   ;;  %v3742_v16 = vcombine.high %v657_v9, %v673_v10 }
 0x139   : > { %v3771_v28 = vcombine.low %v688_v13, %v704_v14 }
 0x13a   : > { %3848 = vmatmul.mubr.msk.bf16.gmra.mrb[84].mxu0 %vm1622_vm1, %v4516_v60  ;;  %3852 = vmatmul.mubr.msk.bf16.gmra.mrb[84].mxu1 %vm1622_vm1, %v4516_v60  ;;  %v3767_v60 = vcombine.low %v686_v24, %v702_v25  ;;  %v3774_v24 = vcombine.high %v689_v18, %v705_v19 }
 0x13b   : > { %2615 = vmatpush1.bf16.msra.mxu0 %v3703_v44  ;;  %2688 = vmatpush1.bf16.msra.mxu1 %v3705_v22  ;;  %v720_v44 = vld [vmem:[%s4459_s30 + $0x570] sm:$0x11]  ;;  %v3741_v22 = vcombine.low %v657_v9, %v673_v10 }
 0x13c   : > { %2516 = vmatprep.mubr.bf16.mxu0 %v4034_v48  ;;  %2589 = vmatprep.mubr.bf16.mxu1 %v4034_v48  ;;  %v3804_v25 = vcombine.high %v720_v44, %v720_v44  ;;  %v3803_v29 = vcombine.low %v720_v44, %v720_v44 }
 0x13d   : > { %2616 = vmatprep.subr.bf16.mxu0 %v3736_v23  ;;  %2689 = vmatprep.subr.bf16.mxu1 %v3738_v27  ;;  %v3772_v23 = vcombine.high %v688_v13, %v704_v14  ;;  %v3806_v27 = vcombine.high %v721_v21, %v721_v21 }
 0x13f   : > { %2617 = vmatpush1.bf16.msra.mxu0 %v3735_v31  ;;  %2690 = vmatpush1.bf16.msra.mxu1 %v3737_v33  ;;  %v1726_v31 = vand.u32 %v3804_v25, %v4484_v26  ;;  %v4864_v33 = vld [vmem:[%s5110_s0 + $0x10] sm:$0xff]   ;;  %v4915_v25 = vpop.permute.xlu0 %3103 }
 0x140   : > { %2618 = vmatprep.subr.bf16.mxu0 %v3768_v35  ;;  %2691 = vmatprep.subr.bf16.mxu1 %v3770_v36  ;;  %v1732_v35 = vand.u32 %v3806_v27, %v4484_v26  ;;  %v1723_v36 = vand.u32 %v3803_v29, %v4484_v26 }
 0x142   : > { %3849 = vmatmul.mubr.msk.bf16.gmra.mrb[88].mxu0 %vm1622_vm1, %v4540_v17  ;;  %3853 = vmatmul.mubr.msk.bf16.gmra.mrb[88].mxu1 %vm1622_vm1, %v4540_v17  ;;  %v3646_v17 = vcombine.high %v561_v47, %v577_v49 }
 0x143   : > { %2526 = vmatprep.mubr.bf16.mxu0 %v4034_v48  ;;  %2599 = vmatprep.mubr.bf16.mxu1 %v4034_v48 }
 0x144   : > { %2619 = vmatpush1.bf16.msra.mxu0 %v3767_v60  ;;  %2692 = vmatpush1.bf16.msra.mxu1 %v3769_v40 }
 0x145   : > { %2620 = vmatprep.subr.bf16.mxu0 %v1714_v41  ;;  %2693 = vmatprep.subr.bf16.mxu1 %v1720_v43 }
 0x148   : > { %2621 = vmatpush1.bf16.msra.mxu0 %v1711_v50  ;;  %2694 = vmatpush1.bf16.msra.mxu1 %v1717_v51 }
 0x149   : > { %2756 = vmatprep.subr.bf16.mxu0 %v3644_v52  ;;  %2829 = vmatprep.subr.bf16.mxu1 %v3646_v17 }
 0x14a   : > { %3850 = vmatmul.mubr.msk.bf16.gmra.mrb[92].mxu0 %vm1622_vm1, %v4562_v34  ;;  %3854 = vmatmul.mubr.msk.bf16.gmra.mrb[92].mxu1 %vm1622_vm1, %v4562_v34  ;;  %v4829_v34 = vld [vmem:[%s5110_s0] sm:$0xff]  }
 0x14b   : > { %2642 = vmatprep.mubr.bf16.mxu0 %v4034_v48  ;;  %2715 = vmatprep.mubr.bf16.mxu1 %v4034_v48 }
 0x152   : > { %3855 = vmatmul.mubr.msk.bf16.vlgmr.msra.gmra.mrb[96].mxu0 %vm1622_vm1, %v4829_v34  ;;  %3859 = vmatmul.mubr.msk.bf16.vlgmr.msra.gmra.mrb[96].mxu1 %vm1622_vm1, %v4829_v34 }
 0x153   : > { %2757 = vmatpush1.bf16.msra.mxu0 %v3643_v57  ;;  %2830 = vmatpush1.bf16.msra.mxu1 %v3645_v58 }
 0x154   : > { %2758 = vmatprep.subr.bf16.mxu0 %v3676_v59  ;;  %2831 = vmatprep.subr.bf16.mxu1 %v3678_v61 }
 0x155   : > { %2652 = vmatprep.mubr.bf16.mxu0 %v4034_v48  ;;  %2725 = vmatprep.mubr.bf16.mxu1 %v4034_v48 }
 0x157   : > { %2759 = vmatpush1.bf16.msra.mxu0 %v3675_v2  ;;  %2832 = vmatpush1.bf16.msra.mxu1 %v3677_v3 }
 0x158   : > { %2760 = vmatprep.subr.bf16.mxu0 %v3708_v4  ;;  %2833 = vmatprep.subr.bf16.mxu1 %v3710_v5 }
 0x15a   : > { %3856 = vmatmul.mubr.msk.bf16.gmra.mrb[100].mxu0 %vm1622_vm1, %v4848_v15  ;;  %3860 = vmatmul.mubr.msk.bf16.gmra.mrb[100].mxu1 %vm1622_vm1, %v4848_v15 }
 0x15b   : > { %2761 = vmatpush1.bf16.msra.mxu0 %v3707_v8  ;;  %2834 = vmatpush1.bf16.msra.mxu1 %v3709_v11 }
 0x15c   : > { %2662 = vmatprep.mubr.bf16.mxu0 %v4034_v48  ;;  %2735 = vmatprep.mubr.bf16.mxu1 %v4034_v48 }
 0x15d   : > { %2762 = vmatprep.subr.bf16.mxu0 %v3740_v12  ;;  %2835 = vmatprep.subr.bf16.mxu1 %v3742_v16 }
 0x15f   : > { %2763 = vmatpush1.bf16.msra.mxu0 %v3739_v20  ;;  %2836 = vmatpush1.bf16.msra.mxu1 %v3741_v22 }
 0x160   : > { %2764 = vmatprep.subr.bf16.mxu0 %v3772_v23  ;;  %2837 = vmatprep.subr.bf16.mxu1 %v3774_v24 }
 0x162   : > { %3857 = vmatmul.mubr.msk.bf16.gmra.mrb[104].mxu0 %vm1622_vm1, %v4864_v33  ;;  %3861 = vmatmul.mubr.msk.bf16.gmra.mrb[104].mxu1 %vm1622_vm1, %v4864_v33 }
 0x163   : > { %2672 = vmatprep.mubr.bf16.mxu0 %v4034_v48  ;;  %2745 = vmatprep.mubr.bf16.mxu1 %v4034_v48 }
 0x164   : > { %2765 = vmatpush1.bf16.msra.mxu0 %v3771_v28  ;;  %2838 = vmatpush1.bf16.msra.mxu1 %v3773_v30 }
 0x165   : > { %v1768_v37 = vpop.f32.mrb[0].mxu0  ;;  %2766 = vmatprep.subr.bf16.mxu0 %v1726_v31  ;;  %v1841_v60 = vpop.f32.mrb[0].mxu1  ;;  %2839 = vmatprep.subr.bf16.mxu1 %v1732_v35 }
 0x166   : > { %v1770_v39 = vpop.f32.mrb[1].mxu0  ;;  %v4875_v40 = vpop.f32.mrb[1].mxu1 }
 0x167   : > { %v4877_v41 = vpop.f32.mrb[2].mxu0  ;;  %v4879_v42 = vpop.f32.mrb[2].mxu1 }
 0x168   : > { %v4881_v43 = vpop.f32.mrb[3].mxu0  ;;  %2767 = vmatpush1.bf16.msra.mxu0 %v1723_v36  ;;  %v4883_v45 = vpop.f32.mrb[3].mxu1  ;;  %2840 = vmatpush1.bf16.msra.mxu1 %v1729_v38 }
 0x16a   : > { %3858 = vmatmul.mubr.msk.bf16.gmra.mrb[108].mxu0 %vm1622_vm1, %v4888_v46  ;;  %3862 = vmatmul.mubr.msk.bf16.gmra.mrb[108].mxu1 %vm1622_vm1, %v4888_v46 }
 0x16b   : > { %2788 = vmatprep.mubr.bf16.mxu0 %v4034_v48  ;;  %2861 = vmatprep.mubr.bf16.mxu1 %v4034_v48 }
 0x16d   : > { %v1778_v26 = vpop.f32.mrb[4].mxu0  ;;  %v1851_v49 = vpop.f32.mrb[4].mxu1 }
 0x16e   : > { %v2902_v47 = vmax.f32 %v1768_v37, %v1778_v26  ;;  %v1780_v50 = vpop.f32.mrb[5].mxu0  ;;  %v2904_v51 = vmax.f32 %v1841_v60, %v1851_v49  ;;  %v1853_v17 = vpop.f32.mrb[5].mxu1 }
 0x16f   : > { %v2903_v52 = vmax.f32 %v1770_v39, %v1780_v50  ;;  %v1782_v53 = vpop.f32.mrb[6].mxu0  ;;  %v2905_v54 = vmax.f32 %v4875_v40, %v1853_v17  ;;  %v1855_v56 = vpop.f32.mrb[6].mxu1 }
 0x170   : > { %v2934_v55 = vmax.f32 %v4877_v41, %v1782_v53  ;;  %v1784_v57 = vpop.f32.mrb[7].mxu0  ;;  %v2936_v58 = vmax.f32 %v4879_v42, %v1855_v56  ;;  %v1857_v61 = vpop.f32.mrb[7].mxu1 }
 0x171   : > { %v2935_v59 = vmax.f32 %v4881_v43, %v1784_v57  ;;  %v2937_v62 = vmax.f32 %v4883_v45, %v1857_v61 }
 0x172   : > { %3863 = vmatmul.mubr.msk.bf16.vlgmr.msra.gmra.mrb[112].mxu0 %vm1622_vm1, %v4829_v34  ;;  %3867 = vmatmul.mubr.msk.bf16.vlgmr.msra.gmra.mrb[112].mxu1 %vm1622_vm1, %v4829_v34 }
 0x173   : > { %2798 = vmatprep.mubr.bf16.mxu0 %v4034_v48  ;;  %2871 = vmatprep.mubr.bf16.mxu1 %v4034_v48 }
 0x175   : > { %v1788_v63 = vpop.f32.mrb[8].mxu0  ;;  %v1861_v0 = vpop.f32.mrb[8].mxu1 }
 0x176   : > { %v1790_v1 = vpop.f32.mrb[9].mxu0  ;;  %v1863_v2 = vpop.f32.mrb[9].mxu1 }
 0x177   : > { %v1792_v3 = vpop.f32.mrb[10].mxu0  ;;  %v1865_v4 = vpop.f32.mrb[10].mxu1 }
 0x178   : > { %v1794_v5 = vpop.f32.mrb[11].mxu0  ;;  %v1867_v6 = vpop.f32.mrb[11].mxu1 }
 0x17a   : > { %3864 = vmatmul.mubr.msk.bf16.gmra.mrb[116].mxu0 %vm1622_vm1, %v4848_v15  ;;  %3868 = vmatmul.mubr.msk.bf16.gmra.mrb[116].mxu1 %vm1622_vm1, %v4848_v15 }
 0x17b   : > { %2808 = vmatprep.mubr.bf16.mxu0 %v4034_v48  ;;  %2881 = vmatprep.mubr.bf16.mxu1 %v4034_v48 }
 0x17d   : > { %v1798_v34 = vpop.f32.mrb[12].mxu0  ;;  %v1871_v9 = vpop.f32.mrb[12].mxu1 }
 0x17e   : > { %v2966_v8 = vmax.f32 %v1788_v63, %v1798_v34  ;;  %v1800_v10 = vpop.f32.mrb[13].mxu0  ;;  %v2968_v11 = vmax.f32 %v1861_v0, %v1871_v9  ;;  %v1873_v13 = vpop.f32.mrb[13].mxu1 }
 0x17f   : > { %v2967_v12 = vmax.f32 %v1790_v1, %v1800_v10  ;;  %v1802_v14 = vpop.f32.mrb[14].mxu0  ;;  %v2969_v18 = vmax.f32 %v1863_v2, %v1873_v13  ;;  %v1875_v44 = vpop.f32.mrb[14].mxu1 }
 0x180   : > { %v3030_v16 = vmax.f32 %v2902_v47, %v2966_v8  ;;  %v2998_v19 = vmax.f32 %v1792_v3, %v1802_v14  ;;  %v1804_v20 = vpop.f32.mrb[15].mxu0  ;;  %v3032_v15 = vmax.f32 %v2904_v51, %v2968_v11  ;;  %v3000_v22 = vmax.f32 %v1865_v4, %v1875_v44  ;;  %v1877_v24 = vpop.f32.mrb[15].mxu1 }
 0x181   : > { %v3031_v21 = vmax.f32 %v2903_v52, %v2967_v12  ;;  %v2999_v23 = vmax.f32 %v1794_v5, %v1804_v20  ;;  %v3033_v27 = vmax.f32 %v2905_v54, %v2969_v18  ;;  %v3001_v30 = vmax.f32 %v1867_v6, %v1877_v24 }
 0x182   : > { %v3106_v28 = vadd.f32 %v4911_v7, %v3030_v16  ;;  %v3062_v29 = vmax.f32 %v2934_v55, %v2998_v19  ;;  %3865 = vmatmul.mubr.msk.bf16.gmra.mrb[120].mxu0 %vm1622_vm1, %v4864_v33  ;;  %v3108_v32 = vadd.f32 %v4911_v7, %v3032_v15  ;;  %v3064_v35 = vmax.f32 %v2936_v58, %v3000_v22 }
 0x183   : > { %v3107_v31 = vadd.f32 %v4911_v7, %v3031_v21  ;;  %v3063_v36 = vmax.f32 %v2935_v59, %v2999_v23  ;;  %3869 = vmatmul.mubr.msk.bf16.gmra.mrb[120].mxu1 %vm1622_vm1, %v4864_v33  ;;  %v3109_v37 = vadd.f32 %v4911_v7, %v3033_v27  ;;  %v3065_v60 = vmax.f32 %v2937_v62, %v3001_v30 }
 0x184   : > { %v3170_v38 = vmax.f32 %v3106_v28, 0.0  ;;  %v3138_v39 = vadd.f32 %v4915_v25, %v3062_v29  ;;  %2818 = vmatprep.mubr.bf16.mxu0 %v4034_v48  ;;  %2891 = vmatprep.mubr.bf16.mxu1 %v4034_v48  ;;  %v3172_v41 = vmax.f32 %v3108_v32, 0.0  ;;  %v3140_v43 = vadd.f32 %v4915_v25, %v3064_v35 }
 0x185   : > { %v3171_v40 = vmax.f32 %v3107_v31, 0.0  ;;  %v3139_v42 = vadd.f32 %v4915_v25, %v3063_v36  ;;  %v1914_v45 = vpop.f32.mrb[16].mxu0  ;;  %v3173_v33 = vmax.f32 %v3109_v37, 0.0  ;;  %v3141_v26 = vadd.f32 %v4915_v25, %v3065_v60  ;;  %v1987_v49 = vpop.f32.mrb[16].mxu1 }
 0x186   : > { %v3202_v47 = vmax.f32 %v3138_v39, 0.0  ;;  %v1916_v50 = vpop.f32.mrb[17].mxu0  ;;  %v3204_v17 = vmax.f32 %v3140_v43, 0.0  ;;  %v1989_v53 = vpop.f32.mrb[17].mxu1 }
 0x187   : > { %v3909_v51 = vpack.c.bf16 %v3171_v40, %v3170_v38  ;;  %v3203_v52 = vmax.f32 %v3139_v42, 0.0  ;;  %v1918_v54 = vpop.f32.mrb[18].mxu0  ;;  %v3910_v55 = vpack.c.bf16 %v3173_v33, %v3172_v41  ;;  %v3205_v48 = vmax.f32 %v3141_v26, 0.0  ;;  %v1991_v56 = vpop.f32.mrb[18].mxu1 }
 0x188   : > { %v1920_v57 = vpop.f32.mrb[19].mxu0  ;;  %v1993_v59 = vpop.f32.mrb[19].mxu1 }
 0x189   : > { %v3925_v58 = vpack.c.bf16 %v3203_v52, %v3202_v47  ;;  %3426 = vst [vmem:[%s4933_s12] sm:$0xff] %v3909_v51  ;;  %v3926_v61 = vpack.c.bf16 %v3205_v48, %v3204_v17  ;;  %3427 = vst [vmem:[%s4933_s12 + $0x8] sm:$0xff] %v3910_v55 }
 0x18a   : > { %3866 = vmatmul.mubr.msk.bf16.gmra.mrb[124].mxu0 %vm1622_vm1, %v4888_v46 }
 0x18b   : > { %3442 = vst [vmem:[%s4933_s12 + $0x80] sm:$0xff] %v3925_v58  ;;  %3870 = vmatmul.mubr.msk.bf16.gmra.mrb[124].mxu1 %vm1622_vm1, %v4888_v46  ;;  %3443 = vst [vmem:[%s4933_s12 + $0x88] sm:$0xff] %v3926_v61 }
 0x18d   : > { %v1924_v62 = vpop.f32.mrb[20].mxu0  ;;  %v1997_v0 = vpop.f32.mrb[20].mxu1 }
 0x18e   : > { %v2906_v63 = vmax.f32 %v1914_v45, %v1924_v62  ;;  %v1926_v1 = vpop.f32.mrb[21].mxu0  ;;  %v2908_v2 = vmax.f32 %v1987_v49, %v1997_v0  ;;  %v1999_v4 = vpop.f32.mrb[21].mxu1 }
 0x18f   : > { %v2907_v3 = vmax.f32 %v1916_v50, %v1926_v1  ;;  %v1928_v5 = vpop.f32.mrb[22].mxu0  ;;  %v2909_v6 = vmax.f32 %v1989_v53, %v1999_v4  ;;  %v2001_v8 = vpop.f32.mrb[22].mxu1 }
 0x190   : > { %v2938_v34 = vmax.f32 %v1918_v54, %v1928_v5  ;;  %v1930_v9 = vpop.f32.mrb[23].mxu0  ;;  %v2940_v10 = vmax.f32 %v1991_v56, %v2001_v8  ;;  %v2003_v12 = vpop.f32.mrb[23].mxu1 }
 0x191   : > { %v2939_v11 = vmax.f32 %v1920_v57, %v1930_v9  ;;  %v2941_v13 = vmax.f32 %v1993_v59, %v2003_v12 }
 0x195   : > { %v1934_v14 = vpop.f32.mrb[24].mxu0  ;;  %v2007_v16 = vpop.f32.mrb[24].mxu1 }
 0x196   : > { %v1936_v46 = vpop.f32.mrb[25].mxu0  ;;  %v2009_v18 = vpop.f32.mrb[25].mxu1 }
 0x197   : > { %v1938_v19 = vpop.f32.mrb[26].mxu0  ;;  %v2011_v44 = vpop.f32.mrb[26].mxu1 }
 0x198   : > { %v1940_v20 = vpop.f32.mrb[27].mxu0  ;;  %v2013_v15 = vpop.f32.mrb[27].mxu1 }
 0x19d   : > { %v1944_v21 = vpop.f32.mrb[28].mxu0  ;;  %v2017_v23 = vpop.f32.mrb[28].mxu1 }
 0x19e   : > { %v2970_v22 = vmax.f32 %v1934_v14, %v1944_v21  ;;  %v1946_v24 = vpop.f32.mrb[29].mxu0  ;;  %v2972_v27 = vmax.f32 %v2007_v16, %v2017_v23  ;;  %v2019_v29 = vpop.f32.mrb[29].mxu1 }
 0x19f   : > { %v2971_v28 = vmax.f32 %v1936_v46, %v1946_v24  ;;  %v1948_v30 = vpop.f32.mrb[30].mxu0  ;;  %v2973_v32 = vmax.f32 %v2009_v18, %v2019_v29  ;;  %v2021_v36 = vpop.f32.mrb[30].mxu1 }
 0x1a0   : > { %v3034_v31 = vmax.f32 %v2906_v63, %v2970_v22  ;;  %v3002_v35 = vmax.f32 %v1938_v19, %v1948_v30  ;;  %v1950_v37 = vpop.f32.mrb[31].mxu0  ;;  %v3036_v38 = vmax.f32 %v2908_v2, %v2972_v27  ;;  %v3004_v39 = vmax.f32 %v2011_v44, %v2021_v36  ;;  %v2023_v41 = vpop.f32.mrb[31].mxu1 }
 0x1a1   : > { %v3035_v60 = vmax.f32 %v2907_v3, %v2971_v28  ;;  %v3003_v40 = vmax.f32 %v1940_v20, %v1950_v37  ;;  %v3037_v43 = vmax.f32 %v2909_v6, %v2973_v32  ;;  %v3005_v33 = vmax.f32 %v2013_v15, %v2023_v41 }
 0x1a2   : > { %v3110_v42 = vadd.f32 %v4911_v7, %v3034_v31  ;;  %v3066_v45 = vmax.f32 %v2938_v34, %v3002_v35  ;;  %v3112_v26 = vadd.f32 %v4911_v7, %v3036_v38  ;;  %v3068_v49 = vmax.f32 %v2940_v10, %v3004_v39 }
 0x1a3   : > { %v3111_v47 = vadd.f32 %v4911_v7, %v3035_v60  ;;  %v3067_v50 = vmax.f32 %v2939_v11, %v3003_v40  ;;  %v3113_v52 = vadd.f32 %v4911_v7, %v3037_v43  ;;  %v3069_v53 = vmax.f32 %v2941_v13, %v3005_v33 }
 0x1a4   : > { %v3174_v51 = vmax.f32 %v3110_v42, 0.0  ;;  %v3142_v17 = vadd.f32 %v4915_v25, %v3066_v45  ;;  %v3176_v54 = vmax.f32 %v3112_v26, 0.0  ;;  %v3144_v48 = vadd.f32 %v4915_v25, %v3068_v49 }
 0x1a5   : > { %v3175_v55 = vmax.f32 %v3111_v47, 0.0  ;;  %v3143_v56 = vadd.f32 %v4915_v25, %v3067_v50  ;;  %v2060_v57 = vpop.f32.mrb[32].mxu0  ;;  %v3177_v58 = vmax.f32 %v3113_v52, 0.0  ;;  %v3145_v61 = vadd.f32 %v4915_v25, %v3069_v53  ;;  %v2133_v62 = vpop.f32.mrb[32].mxu1 }
 0x1a6   : > { %v3206_v59 = vmax.f32 %v3142_v17, 0.0  ;;  %v2062_v63 = vpop.f32.mrb[33].mxu0  ;;  %v3208_v1 = vmax.f32 %v3144_v48, 0.0  ;;  %v2135_v3 = vpop.f32.mrb[33].mxu1 }
 0x1a7   : > { %v3911_v0 = vpack.c.bf16 %v3175_v55, %v3174_v51  ;;  %v3207_v2 = vmax.f32 %v3143_v56, 0.0  ;;  %v2064_v4 = vpop.f32.mrb[34].mxu0  ;;  %v3912_v5 = vpack.c.bf16 %v3177_v58, %v3176_v54  ;;  %v3209_v6 = vmax.f32 %v3145_v61, 0.0  ;;  %v2137_v34 = vpop.f32.mrb[34].mxu1 }
 0x1a8   : > { %v2066_v8 = vpop.f32.mrb[35].mxu0  ;;  %v2139_v10 = vpop.f32.mrb[35].mxu1 }
 0x1a9   : > { %3428 = vst [vmem:[%s4933_s12 + $0x10] sm:$0xff] %v3911_v0  ;;  %v3927_v9 = vpack.c.bf16 %v3207_v2, %v3206_v59  ;;  %3429 = vst [vmem:[%s4933_s12 + $0x18] sm:$0xff] %v3912_v5  ;;  %v3928_v11 = vpack.c.bf16 %v3209_v6, %v3208_v1 }
 0x1ab   : > { %3444 = vst [vmem:[%s4933_s12 + $0x90] sm:$0xff] %v3927_v9  ;;  %3445 = vst [vmem:[%s4933_s12 + $0x98] sm:$0xff] %v3928_v11 }
 0x1ad   : > { %v2070_v12 = vpop.f32.mrb[36].mxu0  ;;  %v2143_v14 = vpop.f32.mrb[36].mxu1 }
 0x1ae   : > { %v2910_v13 = vmax.f32 %v2060_v57, %v2070_v12  ;;  %v2072_v16 = vpop.f32.mrb[37].mxu0  ;;  %v2912_v46 = vmax.f32 %v2133_v62, %v2143_v14  ;;  %v2145_v19 = vpop.f32.mrb[37].mxu1 }
 0x1af   : > { %v2911_v18 = vmax.f32 %v2062_v63, %v2072_v16  ;;  %v2074_v44 = vpop.f32.mrb[38].mxu0  ;;  %v2913_v20 = vmax.f32 %v2135_v3, %v2145_v19  ;;  %v2147_v21 = vpop.f32.mrb[38].mxu1 }
 0x1b0   : > { %v2942_v15 = vmax.f32 %v2064_v4, %v2074_v44  ;;  %v2076_v22 = vpop.f32.mrb[39].mxu0  ;;  %v2944_v23 = vmax.f32 %v2137_v34, %v2147_v21  ;;  %v2149_v27 = vpop.f32.mrb[39].mxu1 }
 0x1b1   : > { %v2943_v24 = vmax.f32 %v2066_v8, %v2076_v22  ;;  %v2945_v28 = vmax.f32 %v2139_v10, %v2149_v27 }
 0x1b5   : > { %v2080_v29 = vpop.f32.mrb[40].mxu0  ;;  %v2153_v30 = vpop.f32.mrb[40].mxu1 }
 0x1b6   : > { %v2082_v31 = vpop.f32.mrb[41].mxu0  ;;  %v2155_v32 = vpop.f32.mrb[41].mxu1 }
 0x1b7   : > { %v2084_v35 = vpop.f32.mrb[42].mxu0  ;;  %v2157_v36 = vpop.f32.mrb[42].mxu1 }
 0x1b8   : > { %v2086_v37 = vpop.f32.mrb[43].mxu0  ;;  %v2159_v38 = vpop.f32.mrb[43].mxu1 }
 0x1bd   : > { %v2090_v60 = vpop.f32.mrb[44].mxu0  ;;  %v2163_v40 = vpop.f32.mrb[44].mxu1 }
 0x1be   : > { %v2974_v39 = vmax.f32 %v2080_v29, %v2090_v60  ;;  %v2092_v41 = vpop.f32.mrb[45].mxu0  ;;  %v2976_v42 = vmax.f32 %v2153_v30, %v2163_v40  ;;  %v2165_v45 = vpop.f32.mrb[45].mxu1 }
 0x1bf   : > { %v2975_v43 = vmax.f32 %v2082_v31, %v2092_v41  ;;  %v2094_v33 = vpop.f32.mrb[46].mxu0  ;;  %v2977_v47 = vmax.f32 %v2155_v32, %v2165_v45  ;;  %v2167_v50 = vpop.f32.mrb[46].mxu1 }
 0x1c0   : > { %v3038_v26 = vmax.f32 %v2910_v13, %v2974_v39  ;;  %v3006_v49 = vmax.f32 %v2084_v35, %v2094_v33  ;;  %v2096_v51 = vpop.f32.mrb[47].mxu0  ;;  %v3040_v52 = vmax.f32 %v2912_v46, %v2976_v42  ;;  %v3008_v53 = vmax.f32 %v2157_v36, %v2167_v50  ;;  %v2169_v55 = vpop.f32.mrb[47].mxu1 }
 0x1c1   : > { %v3039_v17 = vmax.f32 %v2911_v18, %v2975_v43  ;;  %v3007_v54 = vmax.f32 %v2086_v37, %v2096_v51  ;;  %v3041_v56 = vmax.f32 %v2913_v20, %v2977_v47  ;;  %v3009_v58 = vmax.f32 %v2159_v38, %v2169_v55 }
 0x1c2   : > { %v3114_v48 = vadd.f32 %v4911_v7, %v3038_v26  ;;  %v3070_v57 = vmax.f32 %v2942_v15, %v3006_v49  ;;  %v3116_v59 = vadd.f32 %v4911_v7, %v3040_v52  ;;  %v3072_v62 = vmax.f32 %v2944_v23, %v3008_v53 }
 0x1c3   : > { %v3115_v61 = vadd.f32 %v4911_v7, %v3039_v17  ;;  %v3071_v63 = vmax.f32 %v2943_v24, %v3007_v54  ;;  %v3117_v1 = vadd.f32 %v4911_v7, %v3041_v56  ;;  %v3073_v3 = vmax.f32 %v2945_v28, %v3009_v58 }
 0x1c4   : > { %v3178_v0 = vmax.f32 %v3114_v48, 0.0  ;;  %v3146_v2 = vadd.f32 %v4915_v25, %v3070_v57  ;;  %v3180_v4 = vmax.f32 %v3116_v59, 0.0  ;;  %v3148_v6 = vadd.f32 %v4915_v25, %v3072_v62 }
 0x1c5   : > { %v3179_v5 = vmax.f32 %v3115_v61, 0.0  ;;  %v3147_v34 = vadd.f32 %v4915_v25, %v3071_v63  ;;  %v2206_v8 = vpop.f32.mrb[48].mxu0  ;;  %v3181_v9 = vmax.f32 %v3117_v1, 0.0  ;;  %v3149_v11 = vadd.f32 %v4915_v25, %v3073_v3  ;;  %v2279_v12 = vpop.f32.mrb[48].mxu1 }
 0x1c6   : > { %v3210_v10 = vmax.f32 %v3146_v2, 0.0  ;;  %v2208_v13 = vpop.f32.mrb[49].mxu0  ;;  %v3212_v16 = vmax.f32 %v3148_v6, 0.0  ;;  %v2281_v18 = vpop.f32.mrb[49].mxu1 }
 0x1c7   : > { %v3913_v14 = vpack.c.bf16 %v3179_v5, %v3178_v0  ;;  %v3211_v46 = vmax.f32 %v3147_v34, 0.0  ;;  %v2210_v19 = vpop.f32.mrb[50].mxu0  ;;  %v3914_v44 = vpack.c.bf16 %v3181_v9, %v3180_v4  ;;  %v3213_v20 = vmax.f32 %v3149_v11, 0.0  ;;  %v2283_v15 = vpop.f32.mrb[50].mxu1 }
 0x1c8   : > { %v2212_v21 = vpop.f32.mrb[51].mxu0  ;;  %v2285_v23 = vpop.f32.mrb[51].mxu1 }
 0x1c9   : > { %3430 = vst [vmem:[%s4933_s12 + $0x20] sm:$0xff] %v3913_v14  ;;  %v3929_v22 = vpack.c.bf16 %v3211_v46, %v3210_v10  ;;  %3431 = vst [vmem:[%s4933_s12 + $0x28] sm:$0xff] %v3914_v44  ;;  %v3930_v24 = vpack.c.bf16 %v3213_v20, %v3212_v16 }
 0x1cb   : > { %3446 = vst [vmem:[%s4933_s12 + $0xa0] sm:$0xff] %v3929_v22  ;;  %3447 = vst [vmem:[%s4933_s12 + $0xa8] sm:$0xff] %v3930_v24 }
 0x1cd   : > { %v2216_v27 = vpop.f32.mrb[52].mxu0  ;;  %v2289_v29 = vpop.f32.mrb[52].mxu1 }
 0x1ce   : > { %v2914_v28 = vmax.f32 %v2206_v8, %v2216_v27  ;;  %v2218_v30 = vpop.f32.mrb[53].mxu0  ;;  %v2916_v31 = vmax.f32 %v2279_v12, %v2289_v29  ;;  %v2291_v35 = vpop.f32.mrb[53].mxu1 }
 0x1cf   : > { %v2915_v32 = vmax.f32 %v2208_v13, %v2218_v30  ;;  %v2220_v36 = vpop.f32.mrb[54].mxu0  ;;  %v2917_v37 = vmax.f32 %v2281_v18, %v2291_v35  ;;  %v2293_v60 = vpop.f32.mrb[54].mxu1 }
 0x1d0   : > { %v2946_v38 = vmax.f32 %v2210_v19, %v2220_v36  ;;  %v2222_v39 = vpop.f32.mrb[55].mxu0  ;;  %v2948_v40 = vmax.f32 %v2283_v15, %v2293_v60  ;;  %v2295_v42 = vpop.f32.mrb[55].mxu1 }
 0x1d1   : > { %v2947_v41 = vmax.f32 %v2212_v21, %v2222_v39  ;;  %v2949_v43 = vmax.f32 %v2285_v23, %v2295_v42 }
 0x1d5   : > { %v2226_v45 = vpop.f32.mrb[56].mxu0  ;;  %v2299_v33 = vpop.f32.mrb[56].mxu1 }
 0x1d6   : > { %v2228_v26 = vpop.f32.mrb[57].mxu0  ;;  %v2301_v47 = vpop.f32.mrb[57].mxu1 }
 0x1d7   : > { %v2230_v49 = vpop.f32.mrb[58].mxu0  ;;  %v2303_v50 = vpop.f32.mrb[58].mxu1 }
 0x1d8   : > { %v2232_v51 = vpop.f32.mrb[59].mxu0  ;;  %v2305_v52 = vpop.f32.mrb[59].mxu1 }
 0x1dd   : > { %v2236_v17 = vpop.f32.mrb[60].mxu0  ;;  %v2309_v54 = vpop.f32.mrb[60].mxu1 }
 0x1de   : > { %v2978_v53 = vmax.f32 %v2226_v45, %v2236_v17  ;;  %v2238_v55 = vpop.f32.mrb[61].mxu0  ;;  %v2980_v48 = vmax.f32 %v2299_v33, %v2309_v54  ;;  %v2311_v57 = vpop.f32.mrb[61].mxu1 }
 0x1df   : > { %v2979_v56 = vmax.f32 %v2228_v26, %v2238_v55  ;;  %v2240_v58 = vpop.f32.mrb[62].mxu0  ;;  %v2981_v61 = vmax.f32 %v2301_v47, %v2311_v57  ;;  %v2313_v63 = vpop.f32.mrb[62].mxu1 }
 0x1e0   : > { %v3042_v59 = vmax.f32 %v2914_v28, %v2978_v53  ;;  %v3010_v62 = vmax.f32 %v2230_v49, %v2240_v58  ;;  %v2242_v0 = vpop.f32.mrb[63].mxu0  ;;  %v3044_v1 = vmax.f32 %v2916_v31, %v2980_v48  ;;  %v3012_v3 = vmax.f32 %v2303_v50, %v2313_v63  ;;  %v2315_v5 = vpop.f32.mrb[63].mxu1 }
 0x1e1   : > { %v3043_v2 = vmax.f32 %v2915_v32, %v2979_v56  ;;  %v3011_v4 = vmax.f32 %v2232_v51, %v2242_v0  ;;  %v3045_v34 = vmax.f32 %v2917_v37, %v2981_v61  ;;  %v3013_v9 = vmax.f32 %v2305_v52, %v2315_v5 }
 0x1e2   : > { %v3118_v6 = vadd.f32 %v4911_v7, %v3042_v59  ;;  %v3074_v8 = vmax.f32 %v2946_v38, %v3010_v62  ;;  %v3120_v10 = vadd.f32 %v4911_v7, %v3044_v1  ;;  %v3076_v12 = vmax.f32 %v2948_v40, %v3012_v3 }
 0x1e3   : > { %v3119_v11 = vadd.f32 %v4911_v7, %v3043_v2  ;;  %v3075_v13 = vmax.f32 %v2947_v41, %v3011_v4  ;;  %v3121_v16 = vadd.f32 %v4911_v7, %v3045_v34  ;;  %v3077_v18 = vmax.f32 %v2949_v43, %v3013_v9 }
 0x1e4   : > { %v3182_v14 = vmax.f32 %v3118_v6, 0.0  ;;  %v3150_v46 = vadd.f32 %v4915_v25, %v3074_v8  ;;  %v3184_v19 = vmax.f32 %v3120_v10, 0.0  ;;  %v3152_v20 = vadd.f32 %v4915_v25, %v3076_v12 }
 0x1e5   : > { %v3183_v44 = vmax.f32 %v3119_v11, 0.0  ;;  %v3151_v15 = vadd.f32 %v4915_v25, %v3075_v13  ;;  %v2352_v21 = vpop.f32.mrb[64].mxu0  ;;  %v3185_v22 = vmax.f32 %v3121_v16, 0.0  ;;  %v3153_v24 = vadd.f32 %v4915_v25, %v3077_v18  ;;  %v2425_v27 = vpop.f32.mrb[64].mxu1 }
 0x1e6   : > { %v3214_v23 = vmax.f32 %v3150_v46, 0.0  ;;  %v2354_v28 = vpop.f32.mrb[65].mxu0  ;;  %v3216_v30 = vmax.f32 %v3152_v20, 0.0  ;;  %v2427_v32 = vpop.f32.mrb[65].mxu1 }
 0x1e7   : > { %v3915_v29 = vpack.c.bf16 %v3183_v44, %v3182_v14  ;;  %v3215_v31 = vmax.f32 %v3151_v15, 0.0  ;;  %v2356_v35 = vpop.f32.mrb[66].mxu0  ;;  %v3916_v36 = vpack.c.bf16 %v3185_v22, %v3184_v19  ;;  %v3217_v37 = vmax.f32 %v3153_v24, 0.0  ;;  %v2429_v38 = vpop.f32.mrb[66].mxu1 }
 0x1e8   : > { %v2358_v60 = vpop.f32.mrb[67].mxu0  ;;  %v2431_v40 = vpop.f32.mrb[67].mxu1 }
 0x1e9   : > { %3432 = vst [vmem:[%s4933_s12 + $0x30] sm:$0xff] %v3915_v29  ;;  %v3931_v39 = vpack.c.bf16 %v3215_v31, %v3214_v23  ;;  %3433 = vst [vmem:[%s4933_s12 + $0x38] sm:$0xff] %v3916_v36  ;;  %v3932_v41 = vpack.c.bf16 %v3217_v37, %v3216_v30 }
 0x1eb   : > { %3448 = vst [vmem:[%s4933_s12 + $0xb0] sm:$0xff] %v3931_v39  ;;  %3449 = vst [vmem:[%s4933_s12 + $0xb8] sm:$0xff] %v3932_v41 }
 0x1ed   : > { %v2362_v42 = vpop.f32.mrb[68].mxu0  ;;  %v2435_v45 = vpop.f32.mrb[68].mxu1 }
 0x1ee   : > { %v2918_v43 = vmax.f32 %v2352_v21, %v2362_v42  ;;  %v2364_v33 = vpop.f32.mrb[69].mxu0  ;;  %v2920_v26 = vmax.f32 %v2425_v27, %v2435_v45  ;;  %v2437_v49 = vpop.f32.mrb[69].mxu1 }
 0x1ef   : > { %v2919_v47 = vmax.f32 %v2354_v28, %v2364_v33  ;;  %v2366_v50 = vpop.f32.mrb[70].mxu0  ;;  %v2921_v51 = vmax.f32 %v2427_v32, %v2437_v49  ;;  %v2439_v17 = vpop.f32.mrb[70].mxu1 }
 0x1f0   : > { %v2950_v52 = vmax.f32 %v2356_v35, %v2366_v50  ;;  %v2368_v53 = vpop.f32.mrb[71].mxu0  ;;  %v2952_v54 = vmax.f32 %v2429_v38, %v2439_v17  ;;  %v2441_v48 = vpop.f32.mrb[71].mxu1 }
 0x1f1   : > { %v2951_v55 = vmax.f32 %v2358_v60, %v2368_v53  ;;  %v2953_v56 = vmax.f32 %v2431_v40, %v2441_v48 }
 0x1f5   : > { %v2372_v57 = vpop.f32.mrb[72].mxu0  ;;  %v2445_v58 = vpop.f32.mrb[72].mxu1 }
 0x1f6   : > { %v2374_v59 = vpop.f32.mrb[73].mxu0  ;;  %v2447_v61 = vpop.f32.mrb[73].mxu1 }
 0x1f7   : > { %v2376_v62 = vpop.f32.mrb[74].mxu0  ;;  %v2449_v63 = vpop.f32.mrb[74].mxu1 }
 0x1f8   : > { %v2378_v0 = vpop.f32.mrb[75].mxu0  ;;  %v2451_v1 = vpop.f32.mrb[75].mxu1 }
 0x1fd   : > { %v2382_v2 = vpop.f32.mrb[76].mxu0  ;;  %v2455_v4 = vpop.f32.mrb[76].mxu1 }
 0x1fe   : > { %v2982_v3 = vmax.f32 %v2372_v57, %v2382_v2  ;;  %v2384_v5 = vpop.f32.mrb[77].mxu0  ;;  %v2984_v6 = vmax.f32 %v2445_v58, %v2455_v4  ;;  %v2457_v8 = vpop.f32.mrb[77].mxu1 }
 0x1ff   : > { %v2983_v34 = vmax.f32 %v2374_v59, %v2384_v5  ;;  %v2386_v9 = vpop.f32.mrb[78].mxu0  ;;  %v2985_v11 = vmax.f32 %v2447_v61, %v2457_v8  ;;  %v2459_v13 = vpop.f32.mrb[78].mxu1 }
 0x200   : > { %v3046_v10 = vmax.f32 %v2918_v43, %v2982_v3  ;;  %v3014_v12 = vmax.f32 %v2376_v62, %v2386_v9  ;;  %v2388_v14 = vpop.f32.mrb[79].mxu0  ;;  %v3048_v16 = vmax.f32 %v2920_v26, %v2984_v6  ;;  %v3016_v18 = vmax.f32 %v2449_v63, %v2459_v13  ;;  %v2461_v44 = vpop.f32.mrb[79].mxu1 }
 0x201   : > { %v3047_v46 = vmax.f32 %v2919_v47, %v2983_v34  ;;  %v3015_v19 = vmax.f32 %v2378_v0, %v2388_v14  ;;  %v3049_v15 = vmax.f32 %v2921_v51, %v2985_v11  ;;  %v3017_v22 = vmax.f32 %v2451_v1, %v2461_v44 }
 0x202   : > { %v3122_v20 = vadd.f32 %v4911_v7, %v3046_v10  ;;  %v3078_v21 = vmax.f32 %v2950_v52, %v3014_v12  ;;  %v3124_v23 = vadd.f32 %v4911_v7, %v3048_v16  ;;  %v3080_v27 = vmax.f32 %v2952_v54, %v3016_v18 }
 0x203   : > { %v3123_v24 = vadd.f32 %v4911_v7, %v3047_v46  ;;  %v3079_v28 = vmax.f32 %v2951_v55, %v3015_v19  ;;  %v3125_v30 = vadd.f32 %v4911_v7, %v3049_v15  ;;  %v3081_v32 = vmax.f32 %v2953_v56, %v3017_v22 }
 0x204   : > { %v3186_v29 = vmax.f32 %v3122_v20, 0.0  ;;  %v3154_v31 = vadd.f32 %v4915_v25, %v3078_v21  ;;  %v3188_v35 = vmax.f32 %v3124_v23, 0.0  ;;  %v3156_v37 = vadd.f32 %v4915_v25, %v3080_v27 }
 0x205   : > { %v3187_v36 = vmax.f32 %v3123_v24, 0.0  ;;  %v3155_v38 = vadd.f32 %v4915_v25, %v3079_v28  ;;  %v2498_v60 = vpop.f32.mrb[80].mxu0  ;;  %v3189_v39 = vmax.f32 %v3125_v30, 0.0  ;;  %v3157_v41 = vadd.f32 %v4915_v25, %v3081_v32  ;;  %v2571_v42 = vpop.f32.mrb[80].mxu1 }
 0x206   : > { %v3218_v40 = vmax.f32 %v3154_v31, 0.0  ;;  %v2500_v43 = vpop.f32.mrb[81].mxu0  ;;  %v3220_v33 = vmax.f32 %v3156_v37, 0.0  ;;  %v2573_v47 = vpop.f32.mrb[81].mxu1 }
 0x207   : > { %v3917_v45 = vpack.c.bf16 %v3187_v36, %v3186_v29  ;;  %v3219_v26 = vmax.f32 %v3155_v38, 0.0  ;;  %v2502_v49 = vpop.f32.mrb[82].mxu0  ;;  %v3918_v50 = vpack.c.bf16 %v3189_v39, %v3188_v35  ;;  %v3221_v51 = vmax.f32 %v3157_v41, 0.0  ;;  %v2575_v52 = vpop.f32.mrb[82].mxu1 }
 0x208   : > { %v2504_v17 = vpop.f32.mrb[83].mxu0  ;;  %v2577_v54 = vpop.f32.mrb[83].mxu1 }
 0x209   : > { %3434 = vst [vmem:[%s4933_s12 + $0x40] sm:$0xff] %v3917_v45  ;;  %v3933_v53 = vpack.c.bf16 %v3219_v26, %v3218_v40  ;;  %3435 = vst [vmem:[%s4933_s12 + $0x48] sm:$0xff] %v3918_v50  ;;  %v3934_v55 = vpack.c.bf16 %v3221_v51, %v3220_v33 }
 0x20b   : > { %3450 = vst [vmem:[%s4933_s12 + $0xc0] sm:$0xff] %v3933_v53  ;;  %3451 = vst [vmem:[%s4933_s12 + $0xc8] sm:$0xff] %v3934_v55 }
 0x20d   : > { %v2508_v48 = vpop.f32.mrb[84].mxu0  ;;  %v2581_v57 = vpop.f32.mrb[84].mxu1 }
 0x20e   : > { %v2922_v56 = vmax.f32 %v2498_v60, %v2508_v48  ;;  %v2510_v58 = vpop.f32.mrb[85].mxu0  ;;  %v2924_v59 = vmax.f32 %v2571_v42, %v2581_v57  ;;  %v2583_v62 = vpop.f32.mrb[85].mxu1 }
 0x20f   : > { %v2923_v61 = vmax.f32 %v2500_v43, %v2510_v58  ;;  %v2512_v63 = vpop.f32.mrb[86].mxu0  ;;  %v2925_v0 = vmax.f32 %v2573_v47, %v2583_v62  ;;  %v2585_v2 = vpop.f32.mrb[86].mxu1 }
 0x210   : > { %v2954_v1 = vmax.f32 %v2502_v49, %v2512_v63  ;;  %v2514_v3 = vpop.f32.mrb[87].mxu0  ;;  %v2956_v4 = vmax.f32 %v2575_v52, %v2585_v2  ;;  %v2587_v6 = vpop.f32.mrb[87].mxu1 }
 0x211   : > { %v2955_v5 = vmax.f32 %v2504_v17, %v2514_v3  ;;  %v2957_v34 = vmax.f32 %v2577_v54, %v2587_v6 }
 0x215   : > { %v2518_v8 = vpop.f32.mrb[88].mxu0  ;;  %v2591_v9 = vpop.f32.mrb[88].mxu1 }
 0x216   : > { %v2520_v10 = vpop.f32.mrb[89].mxu0  ;;  %v2593_v11 = vpop.f32.mrb[89].mxu1 }
 0x217   : > { %v2522_v12 = vpop.f32.mrb[90].mxu0  ;;  %v2595_v13 = vpop.f32.mrb[90].mxu1 }
 0x218   : > { %v2524_v14 = vpop.f32.mrb[91].mxu0  ;;  %v2597_v16 = vpop.f32.mrb[91].mxu1 }
 0x21d   : > { %v2528_v46 = vpop.f32.mrb[92].mxu0  ;;  %v2601_v19 = vpop.f32.mrb[92].mxu1 }
 0x21e   : > { %v2986_v18 = vmax.f32 %v2518_v8, %v2528_v46  ;;  %v2530_v44 = vpop.f32.mrb[93].mxu0  ;;  %v2988_v20 = vmax.f32 %v2591_v9, %v2601_v19  ;;  %v2603_v21 = vpop.f32.mrb[93].mxu1 }
 0x21f   : > { %v2987_v15 = vmax.f32 %v2520_v10, %v2530_v44  ;;  %v2532_v22 = vpop.f32.mrb[94].mxu0  ;;  %v2989_v24 = vmax.f32 %v2593_v11, %v2603_v21  ;;  %v2605_v28 = vpop.f32.mrb[94].mxu1 }
 0x220   : > { %v3050_v23 = vmax.f32 %v2922_v56, %v2986_v18  ;;  %v3018_v27 = vmax.f32 %v2522_v12, %v2532_v22  ;;  %v2534_v29 = vpop.f32.mrb[95].mxu0  ;;  %v3052_v30 = vmax.f32 %v2924_v59, %v2988_v20  ;;  %v3020_v32 = vmax.f32 %v2595_v13, %v2605_v28  ;;  %v2607_v36 = vpop.f32.mrb[95].mxu1 }
 0x221   : > { %v3051_v31 = vmax.f32 %v2923_v61, %v2987_v15  ;;  %v3019_v35 = vmax.f32 %v2524_v14, %v2534_v29  ;;  %v3053_v38 = vmax.f32 %v2925_v0, %v2989_v24  ;;  %v3021_v39 = vmax.f32 %v2597_v16, %v2607_v36 }
 0x222   : > { %v3126_v37 = vadd.f32 %v4911_v7, %v3050_v23  ;;  %v3082_v60 = vmax.f32 %v2954_v1, %v3018_v27  ;;  %v3128_v40 = vadd.f32 %v4911_v7, %v3052_v30  ;;  %v3084_v42 = vmax.f32 %v2956_v4, %v3020_v32 }
 0x223   : > { %v3127_v41 = vadd.f32 %v4911_v7, %v3051_v31  ;;  %v3083_v43 = vmax.f32 %v2955_v5, %v3019_v35  ;;  %v3129_v33 = vadd.f32 %v4911_v7, %v3053_v38  ;;  %v3085_v47 = vmax.f32 %v2957_v34, %v3021_v39 }
 0x224   : > { %v3190_v45 = vmax.f32 %v3126_v37, 0.0  ;;  %v3158_v26 = vadd.f32 %v4915_v25, %v3082_v60  ;;  %v3192_v49 = vmax.f32 %v3128_v40, 0.0  ;;  %v3160_v51 = vadd.f32 %v4915_v25, %v3084_v42 }
 0x225   : > { %v3191_v50 = vmax.f32 %v3127_v41, 0.0  ;;  %v3159_v52 = vadd.f32 %v4915_v25, %v3083_v43  ;;  %v2644_v17 = vpop.f32.mrb[96].mxu0  ;;  %v3193_v53 = vmax.f32 %v3129_v33, 0.0  ;;  %v3161_v55 = vadd.f32 %v4915_v25, %v3085_v47  ;;  %v2717_v48 = vpop.f32.mrb[96].mxu1 }
 0x226   : > { %v3222_v54 = vmax.f32 %v3158_v26, 0.0  ;;  %v2646_v56 = vpop.f32.mrb[97].mxu0  ;;  %v3224_v58 = vmax.f32 %v3160_v51, 0.0  ;;  %v2719_v61 = vpop.f32.mrb[97].mxu1 }
 0x227   : > { %v3919_v57 = vpack.c.bf16 %v3191_v50, %v3190_v45  ;;  %v3223_v59 = vmax.f32 %v3159_v52, 0.0  ;;  %v2648_v62 = vpop.f32.mrb[98].mxu0  ;;  %v3920_v63 = vpack.c.bf16 %v3193_v53, %v3192_v49  ;;  %v3225_v0 = vmax.f32 %v3161_v55, 0.0  ;;  %v2721_v1 = vpop.f32.mrb[98].mxu1 }
 0x228   : > { %v2650_v2 = vpop.f32.mrb[99].mxu0  ;;  %v2723_v4 = vpop.f32.mrb[99].mxu1 }
 0x229   : > { %3436 = vst [vmem:[%s4933_s12 + $0x50] sm:$0xff] %v3919_v57  ;;  %v3935_v3 = vpack.c.bf16 %v3223_v59, %v3222_v54  ;;  %3437 = vst [vmem:[%s4933_s12 + $0x58] sm:$0xff] %v3920_v63  ;;  %v3936_v5 = vpack.c.bf16 %v3225_v0, %v3224_v58 }
 0x22b   : > { %3452 = vst [vmem:[%s4933_s12 + $0xd0] sm:$0xff] %v3935_v3  ;;  %3453 = vst [vmem:[%s4933_s12 + $0xd8] sm:$0xff] %v3936_v5 }
 0x22d   : > { %v2654_v6 = vpop.f32.mrb[100].mxu0  ;;  %v2727_v8 = vpop.f32.mrb[100].mxu1 }
 0x22e   : > { %v2926_v34 = vmax.f32 %v2644_v17, %v2654_v6  ;;  %v2656_v9 = vpop.f32.mrb[101].mxu0  ;;  %v2928_v10 = vmax.f32 %v2717_v48, %v2727_v8  ;;  %v2729_v12 = vpop.f32.mrb[101].mxu1 }
 0x22f   : > { %v2927_v11 = vmax.f32 %v2646_v56, %v2656_v9  ;;  %v2658_v13 = vpop.f32.mrb[102].mxu0  ;;  %v2929_v14 = vmax.f32 %v2719_v61, %v2729_v12  ;;  %v2731_v46 = vpop.f32.mrb[102].mxu1 }
 0x230   : > { %v2958_v16 = vmax.f32 %v2648_v62, %v2658_v13  ;;  %v2660_v18 = vpop.f32.mrb[103].mxu0  ;;  %v2960_v19 = vmax.f32 %v2721_v1, %v2731_v46  ;;  %v2733_v20 = vpop.f32.mrb[103].mxu1 }
 0x231   : > { %v2959_v44 = vmax.f32 %v2650_v2, %v2660_v18  ;;  %v2961_v15 = vmax.f32 %v2723_v4, %v2733_v20 }
 0x235   : > { %v2664_v21 = vpop.f32.mrb[104].mxu0  ;;  %v2737_v22 = vpop.f32.mrb[104].mxu1 }
 0x236   : > { %v2666_v23 = vpop.f32.mrb[105].mxu0  ;;  %v2739_v24 = vpop.f32.mrb[105].mxu1 }
 0x237   : > { %v2668_v27 = vpop.f32.mrb[106].mxu0  ;;  %v2741_v28 = vpop.f32.mrb[106].mxu1 }
 0x238   : > { %v2670_v29 = vpop.f32.mrb[107].mxu0  ;;  %v2743_v30 = vpop.f32.mrb[107].mxu1 }
 0x23d   : > { %v2674_v31 = vpop.f32.mrb[108].mxu0  ;;  %v2747_v35 = vpop.f32.mrb[108].mxu1 }
 0x23e   : > { %v2990_v32 = vmax.f32 %v2664_v21, %v2674_v31  ;;  %v2676_v36 = vpop.f32.mrb[109].mxu0  ;;  %v2992_v37 = vmax.f32 %v2737_v22, %v2747_v35  ;;  %v2749_v60 = vpop.f32.mrb[109].mxu1 }
 0x23f   : > { %v2991_v38 = vmax.f32 %v2666_v23, %v2676_v36  ;;  %v2678_v39 = vpop.f32.mrb[110].mxu0  ;;  %v2993_v41 = vmax.f32 %v2739_v24, %v2749_v60  ;;  %v2751_v43 = vpop.f32.mrb[110].mxu1 }
 0x240   : > { %v3054_v40 = vmax.f32 %v2926_v34, %v2990_v32  ;;  %v3022_v42 = vmax.f32 %v2668_v27, %v2678_v39  ;;  %v2680_v45 = vpop.f32.mrb[111].mxu0  ;;  %v3056_v33 = vmax.f32 %v2928_v10, %v2992_v37  ;;  %v3024_v47 = vmax.f32 %v2741_v28, %v2751_v43  ;;  %v2753_v50 = vpop.f32.mrb[111].mxu1 }
 0x241   : > { %v3055_v26 = vmax.f32 %v2927_v11, %v2991_v38  ;;  %v3023_v49 = vmax.f32 %v2670_v29, %v2680_v45  ;;  %v3057_v52 = vmax.f32 %v2929_v14, %v2993_v41  ;;  %v3025_v53 = vmax.f32 %v2743_v30, %v2753_v50 }
 0x242   : > { %v3130_v51 = vadd.f32 %v4911_v7, %v3054_v40  ;;  %v3086_v17 = vmax.f32 %v2958_v16, %v3022_v42  ;;  %v3132_v54 = vadd.f32 %v4911_v7, %v3056_v33  ;;  %v3088_v48 = vmax.f32 %v2960_v19, %v3024_v47 }
 0x243   : > { %v3131_v55 = vadd.f32 %v4911_v7, %v3055_v26  ;;  %v3087_v56 = vmax.f32 %v2959_v44, %v3023_v49  ;;  %v3133_v58 = vadd.f32 %v4911_v7, %v3057_v52  ;;  %v3089_v61 = vmax.f32 %v2961_v15, %v3025_v53 }
 0x244   : > { %v3194_v57 = vmax.f32 %v3130_v51, 0.0  ;;  %v3162_v59 = vadd.f32 %v4915_v25, %v3086_v17  ;;  %v3196_v62 = vmax.f32 %v3132_v54, 0.0  ;;  %v3164_v0 = vadd.f32 %v4915_v25, %v3088_v48 }
 0x245   : > { %v3195_v63 = vmax.f32 %v3131_v55, 0.0  ;;  %v3163_v1 = vadd.f32 %v4915_v25, %v3087_v56  ;;  %v2790_v2 = vpop.f32.mrb[112].mxu0  ;;  %v3197_v3 = vmax.f32 %v3133_v58, 0.0  ;;  %v3165_v5 = vadd.f32 %v4915_v25, %v3089_v61  ;;  %v2863_v6 = vpop.f32.mrb[112].mxu1 }
 0x246   : > { %v3226_v4 = vmax.f32 %v3162_v59, 0.0  ;;  %v2792_v34 = vpop.f32.mrb[113].mxu0  ;;  %v3228_v9 = vmax.f32 %v3164_v0, 0.0  ;;  %v2865_v11 = vpop.f32.mrb[113].mxu1 }
 0x247   : > { %v3921_v8 = vpack.c.bf16 %v3195_v63, %v3194_v57  ;;  %v3227_v10 = vmax.f32 %v3163_v1, 0.0  ;;  %v2794_v12 = vpop.f32.mrb[114].mxu0  ;;  %v3922_v13 = vpack.c.bf16 %v3197_v3, %v3196_v62  ;;  %v3229_v14 = vmax.f32 %v3165_v5, 0.0  ;;  %v2867_v16 = vpop.f32.mrb[114].mxu1 }
 0x248   : > { %v2796_v46 = vpop.f32.mrb[115].mxu0  ;;  %v2869_v19 = vpop.f32.mrb[115].mxu1 }
 0x249   : > { %3438 = vst [vmem:[%s4933_s12 + $0x60] sm:$0xff] %v3921_v8  ;;  %v3937_v18 = vpack.c.bf16 %v3227_v10, %v3226_v4  ;;  %3439 = vst [vmem:[%s4933_s12 + $0x68] sm:$0xff] %v3922_v13  ;;  %v3938_v44 = vpack.c.bf16 %v3229_v14, %v3228_v9 }
 0x24b   : > { %3454 = vst [vmem:[%s4933_s12 + $0xe0] sm:$0xff] %v3937_v18  ;;  %3455 = vst [vmem:[%s4933_s12 + $0xe8] sm:$0xff] %v3938_v44 }
 0x24d   : > { %v2800_v20 = vpop.f32.mrb[116].mxu0  ;;  %v2873_v21 = vpop.f32.mrb[116].mxu1 }
 0x24e   : > { %v2930_v15 = vmax.f32 %v2790_v2, %v2800_v20  ;;  %v2802_v22 = vpop.f32.mrb[117].mxu0  ;;  %v2932_v23 = vmax.f32 %v2863_v6, %v2873_v21  ;;  %v2875_v27 = vpop.f32.mrb[117].mxu1 }
 0x24f   : > { %v2931_v24 = vmax.f32 %v2792_v34, %v2802_v22  ;;  %v2804_v28 = vpop.f32.mrb[118].mxu0  ;;  %v2933_v29 = vmax.f32 %v2865_v11, %v2875_v27  ;;  %v2877_v31 = vpop.f32.mrb[118].mxu1  ;;  %v3484_v27 = vld [vmem:[%s4933_s12 + $0x10] sm:$0xff] (%p4085_p5) }
 0x250   : > { %v2962_v30 = vmax.f32 %v2794_v12, %v2804_v28  ;;  %v2806_v32 = vpop.f32.mrb[119].mxu0  ;;  %v2964_v35 = vmax.f32 %v2867_v16, %v2877_v31  ;;  %v2879_v37 = vpop.f32.mrb[119].mxu1  ;;  %v3486_v28 = vld [vmem:[%s4933_s12 + $0x18] sm:$0xff] (%p4085_p5)  ;;  %3485 = vst [vmem:[%s5037_s20 + $0x10] sm:$0xff] (%p4085_p5), %v3484_v27  ;;  %v3492_v31 = vld [vmem:[%s4933_s12 + $0x30] sm:$0xff] (%p4085_p5) }
 0x251   : > { %v2963_v36 = vmax.f32 %v2796_v46, %v2806_v32  ;;  %v2965_v38 = vmax.f32 %v2869_v19, %v2879_v37  ;;  %3487 = vst [vmem:[%s5037_s20 + $0x18] sm:$0xff] (%p4085_p5), %v3486_v28  ;;  %v3494_v32 = vld [vmem:[%s4933_s12 + $0x38] sm:$0xff] (%p4085_p5)  ;;  %3493 = vst [vmem:[%s5037_s20 + $0x30] sm:$0xff] (%p4085_p5), %v3492_v31  ;;  %v3500_v37 = vld [vmem:[%s4933_s12 + $0x50] sm:$0xff] (%p4085_p5) }
 0x252   : > { %3495 = vst [vmem:[%s5037_s20 + $0x38] sm:$0xff] (%p4085_p5), %v3494_v32  ;;  %3501 = vst [vmem:[%s5037_s20 + $0x50] sm:$0xff] (%p4085_p5), %v3500_v37 }
 0x255   : > { %v2810_v60 = vpop.f32.mrb[120].mxu0 }
 0x256   : > { %v2883_v39 = vpop.f32.mrb[120].mxu1  ;;  %v2812_v40 = vpop.f32.mrb[121].mxu0 }
 0x257   : > { %v2885_v41 = vpop.f32.mrb[121].mxu1  ;;  %v2814_v42 = vpop.f32.mrb[122].mxu0 }
 0x258   : > { %v2887_v43 = vpop.f32.mrb[122].mxu1  ;;  %v2816_v45 = vpop.f32.mrb[123].mxu0 }
 0x259   : > { %v2889_v33 = vpop.f32.mrb[123].mxu1 }
 0x25d   : > { %v2820_v26 = vpop.f32.mrb[124].mxu0 }
 0x25e   : > { %v2994_v47 = vmax.f32 %v2810_v60, %v2820_v26  ;;  %v2893_v49 = vpop.f32.mrb[124].mxu1  ;;  %v2822_v50 = vpop.f32.mrb[125].mxu0  ;;  %v3504_v60 = vld [vmem:[%s4933_s12 + $0x60] sm:$0xff] (%p4085_p5) }
 0x25f   : > { %v2996_v51 = vmax.f32 %v2883_v39, %v2893_v49  ;;  %v2995_v52 = vmax.f32 %v2812_v40, %v2822_v50  ;;  %v2895_v17 = vpop.f32.mrb[125].mxu1  ;;  %v2824_v53 = vpop.f32.mrb[126].mxu0  ;;  %v3506_v39 = vld [vmem:[%s4933_s12 + $0x68] sm:$0xff] (%p4085_p5)  ;;  %3505 = vst [vmem:[%s5037_s20 + $0x60] sm:$0xff] (%p4085_p5), %v3504_v60  ;;  %v3520_v26 = vld [vmem:[%s4933_s12 + $0xa0] sm:$0xff] (%p4085_p5)  ;;  %v3524_v49 = vld [vmem:[%s4933_s12 + $0xb0] sm:$0xff] (%p4085_p5) }
 0x260   : > { %v3058_v54 = vmax.f32 %v2930_v15, %v2994_v47  ;;  %v2997_v55 = vmax.f32 %v2885_v41, %v2895_v17  ;;  %v3026_v48 = vmax.f32 %v2814_v42, %v2824_v53  ;;  %v2897_v56 = vpop.f32.mrb[126].mxu1  ;;  %v2826_v57 = vpop.f32.mrb[127].mxu0  ;;  %3507 = vst [vmem:[%s5037_s20 + $0x68] sm:$0xff] (%p4085_p5), %v3506_v39  ;;  %v3512_v42 = vld [vmem:[%s4933_s12 + $0x80] sm:$0xff] (%p4085_p5)  ;;  %3521 = vst [vmem:[%s5037_s20 + $0x120] sm:$0xff] (%p4085_p5), %v3520_v26  ;;  %v3522_v47 = vld [vmem:[%s4933_s12 + $0xa8] sm:$0xff] (%p4085_p5) }
 0x261   : > { %v3060_v58 = vmax.f32 %v2932_v23, %v2996_v51  ;;  %v3059_v59 = vmax.f32 %v2931_v24, %v2995_v52  ;;  %v3028_v61 = vmax.f32 %v2887_v43, %v2897_v56  ;;  %v3027_v62 = vmax.f32 %v2816_v45, %v2826_v57  ;;  %v2899_v63 = vpop.f32.mrb[127].mxu1  ;;  %v3482_v24 = vld [vmem:[%s4933_s12 + $0x8] sm:$0xff] (%p4085_p5)  ;;  %3513 = vst [vmem:[%s5037_s20 + $0x100] sm:$0xff] (%p4085_p5), %v3512_v42  ;;  %v3516_v45 = vld [vmem:[%s4933_s12 + $0x90] sm:$0xff] (%p4085_p5)  ;;  %v3526_v50 = vld [vmem:[%s4933_s12 + $0xb8] sm:$0xff] (%p4085_p5) }
 0x262   : > { %v3134_v0 = vadd.f32 %v4911_v7, %v3058_v54  ;;  %v3061_v1 = vmax.f32 %v2933_v29, %v2997_v55  ;;  %v3090_v2 = vmax.f32 %v2962_v30, %v3026_v48  ;;  %v3029_v3 = vmax.f32 %v2889_v33, %v2899_v63  ;;  %v3488_v29 = vld [vmem:[%s4933_s12 + $0x20] sm:$0xff] (%p4085_p5)  ;;  %v3490_v30 = vld [vmem:[%s4933_s12 + $0x28] sm:$0xff] (%p4085_p5)  ;;  %3483 = vst [vmem:[%s5037_s20 + $0x8] sm:$0xff] (%p4085_p5), %v3482_v24  ;;  %v3518_v33 = vld [vmem:[%s4933_s12 + $0x98] sm:$0xff] (%p4085_p5) }
 0x263   : > { %v3136_v4 = vadd.f32 %v4911_v7, %v3060_v58  ;;  %v3135_v5 = vadd.f32 %v4911_v7, %v3059_v59  ;;  %v3092_v6 = vmax.f32 %v2964_v35, %v3028_v61  ;;  %v3091_v34 = vmax.f32 %v2963_v36, %v3027_v62  ;;  %3489 = vst [vmem:[%s5037_s20 + $0x20] sm:$0xff] (%p4085_p5), %v3488_v29  ;;  %v3496_v35 = vld [vmem:[%s4933_s12 + $0x40] sm:$0xff] (%p4085_p5)  ;;  %v3498_v36 = vld [vmem:[%s4933_s12 + $0x48] sm:$0xff] (%p4085_p5)  ;;  %v3532_v17 = vld [vmem:[%s4933_s12 + $0xd0] sm:$0xff] (%p4085_p5) }
 0x264   : > { %v3198_v8 = vmax.f32 %v3134_v0, 0.0  ;;  %v3137_v9 = vadd.f32 %v4911_v7, %v3061_v1  ;;  %v3166_v10 = vadd.f32 %v4915_v25, %v3090_v2  ;;  %v3093_v11 = vmax.f32 %v2965_v38, %v3029_v3  ;;  %3491 = vst [vmem:[%s5037_s20 + $0x28] sm:$0xff] (%p4085_p5), %v3490_v30  ;;  %3497 = vst [vmem:[%s5037_s20 + $0x40] sm:$0xff] (%p4085_p5), %v3496_v35  ;;  %v3502_v38 = vld [vmem:[%s4933_s12 + $0x58] sm:$0xff] (%p4085_p5)  ;;  %v3514_v43 = vld [vmem:[%s4933_s12 + $0x88] sm:$0xff] (%p4085_p5) }
 0x265   : > { %v3200_v12 = vmax.f32 %v3136_v4, 0.0  ;;  %v3199_v13 = vmax.f32 %v3135_v5, 0.0  ;;  %v3168_v14 = vadd.f32 %v4915_v25, %v3092_v6  ;;  %v3167_v16 = vadd.f32 %v4915_v25, %v3091_v34  ;;  %3499 = vst [vmem:[%s5037_s20 + $0x48] sm:$0xff] (%p4085_p5), %v3498_v36  ;;  %3503 = vst [vmem:[%s5037_s20 + $0x58] sm:$0xff] (%p4085_p5), %v3502_v38  ;;  %v3528_v51 = vld [vmem:[%s4933_s12 + $0xc0] sm:$0xff] (%p4085_p5)  ;;  %v3530_v52 = vld [vmem:[%s4933_s12 + $0xc8] sm:$0xff] (%p4085_p5) }
 0x266   : > { %v3201_v46 = vmax.f32 %v3137_v9, 0.0  ;;  %v3230_v18 = vmax.f32 %v3166_v10, 0.0  ;;  %v3169_v19 = vadd.f32 %v4915_v25, %v3093_v11  ;;  %3464 = sbr.rel (!%p4085_p5) target bundleno = 629 (0x275), region = 59  ;;  %v3480_v25 = vld [vmem:[%s4933_s12] sm:$0xff] (%p4085_p5)  ;;  %3515 = vst [vmem:[%s5037_s20 + $0x108] sm:$0xff] (%p4085_p5), %v3514_v43  ;;  %3517 = vst [vmem:[%s5037_s20 + $0x110] sm:$0xff] (%p4085_p5), %v3516_v45 }
 0x267   : > { %v3923_v44 = vpack.c.bf16 %v3199_v13, %v3198_v8  ;;  %v3232_v20 = vmax.f32 %v3168_v14, 0.0  ;;  %v3231_v15 = vmax.f32 %v3167_v16, 0.0  ;;  %3481 = vst [vmem:[%s5037_s20] sm:$0xff] (%p4085_p5), %v3480_v25  ;;  %3519 = vst [vmem:[%s5037_s20 + $0x118] sm:$0xff] (%p4085_p5), %v3518_v33  ;;  %v3534_v53 = vld [vmem:[%s4933_s12 + $0xd8] sm:$0xff] (%p4085_p5)  ;;  %v3536_v54 = vld [vmem:[%s4933_s12 + $0xe0] sm:$0xff] (%p4085_p5) }
 0x268   : > { %v3924_v7 = vpack.c.bf16 %v3201_v46, %v3200_v12  ;;  %v3233_v21 = vmax.f32 %v3169_v19, 0.0  ;;  %3523 = vst [vmem:[%s5037_s20 + $0x128] sm:$0xff] (%p4085_p5), %v3522_v47  ;;  %3525 = vst [vmem:[%s5037_s20 + $0x130] sm:$0xff] (%p4085_p5), %v3524_v49  ;;  %v3538_v55 = vld [vmem:[%s4933_s12 + $0xe8] sm:$0xff] (%p4085_p5) }
 0x269   : > { %3440 = vst [vmem:[%s4933_s12 + $0x70] sm:$0xff] %v3923_v44  ;;  %v3939_v22 = vpack.c.bf16 %v3231_v15, %v3230_v18  ;;  %3527 = vst [vmem:[%s5037_s20 + $0x138] sm:$0xff] (%p4085_p5), %v3526_v50 }
 0x26a   : > { %3441 = vst [vmem:[%s4933_s12 + $0x78] sm:$0xff] %v3924_v7  ;;  %v3940_v23 = vpack.c.bf16 %v3233_v21, %v3232_v20  ;;  %3529 = vst [vmem:[%s5037_s20 + $0x140] sm:$0xff] (%p4085_p5), %v3528_v51 }
 0x26b   : > { %3456 = vst [vmem:[%s4933_s12 + $0xf0] sm:$0xff] %v3939_v22  ;;  %3531 = vst [vmem:[%s5037_s20 + $0x148] sm:$0xff] (%p4085_p5), %v3530_v52 }
 0x26c   : > { %3457 = vst [vmem:[%s4933_s12 + $0xf8] sm:$0xff] %v3940_v23  ;;  %3533 = vst [vmem:[%s5037_s20 + $0x150] sm:$0xff] (%p4085_p5), %v3532_v17 }
 0x26d   : > { %3535 = vst [vmem:[%s5037_s20 + $0x158] sm:$0xff] %v3534_v53  ;;  %3537 = vst [vmem:[%s5037_s20 + $0x160] sm:$0xff] %v3536_v54 }
 0x26e   : > { %3539 = vst [vmem:[%s5037_s20 + $0x168] sm:$0xff] %v3538_v55 }
 0x270   : > { %v3508_v40 = vld [vmem:[%s4933_s12 + $0x70] sm:$0xff] }
 0x271   : > { %3509 = vst [vmem:[%s5037_s20 + $0x70] sm:$0xff] %v3508_v40  ;;  %v3510_v41 = vld [vmem:[%s4933_s12 + $0x78] sm:$0xff] }
 0x272   : > { %3511 = vst [vmem:[%s5037_s20 + $0x78] sm:$0xff] %v3510_v41  ;;  %v3540_v48 = vld [vmem:[%s4933_s12 + $0xf0] sm:$0xff] }
 0x273   : > { %v3542_v56 = vld [vmem:[%s4933_s12 + $0xf8] sm:$0xff]  ;;  %3541 = vst [vmem:[%s5037_s20 + $0x170] sm:$0xff] %v3540_v48 }
 0x274   : > { %3543 = vst [vmem:[%s5037_s20 + $0x178] sm:$0xff] %v3542_v56 }
 0x275 PF: > { %p10_p10 = scmp.ge.s32.totalorder %s4072_s16, 4   ;;  %s5115_s12 = smov %s4028_s13 }
 0x276   : > { %s5116_s13 = smov %s4083_s19  ;;  %s5117_s14 = smov %s4072_s16 }
 0x277   :  { %12 = sbr.rel (!%p10_p10) target bundleno = 2 (0x2), region = 113 }

// kernel: ac_model_forward.5
= control target key start
LH: loop header
LB: loop body
LE: loop exit
PB: predicated region body
PF: predicated region fallthrough
CT: control target
= control target key end

     0   :  { %s2001_s12 = smov 0   ;;  %s2003_s13 = smov 0   ;;  %s2777_s0 = inlined_call_operand.vmem [shape: bf16[128,144], index: 0, kind: input, shape index: {}]   ;;  %s2778_s1 = inlined_call_operand.vmem [shape: f32[32,1], index: 1, kind: input, shape index: {}]   ;;  %s2779_s2 = inlined_call_operand.vmem [shape: bf16[144,2048], index: 2, kind: input, shape index: {}]   ;;  %s2780_s3 = inlined_call_operand.vmem [shape: bf16[32,2048], index: 3, kind: output, shape index: {}]  }
   0x1   :  { %s2005_s14 = smov 0  }
   0x2 LB: > { %s1736_s15 = sadd.s32 4294967295, %s1978_s14   ;;  %s2018_s16 = sadd.s32 1, %s1978_s14   ;;  %s1978_s14 = sphi %s2005_s14, %s2802_s14   ;;  %s1974_s13 = sphi %s2003_s13, %s2801_s13   ;;  %s1970_s12 = sphi %s2001_s12, %s2800_s12  }
   0x3   : > { %s59_s17 = ssub.s32 %s1978_s14, %s2018_s16  ;;  %s62_s18 = sadd.s32 1, %s1974_s13 }
   0x4   : > { %p60_p0 = scmp.eq.s32.totalorder %s59_s17, 0  ;;  %p69_p1 = scmp.ne.s32.totalorder %s1974_s13, %s1970_s12 }
   0x5   : > { %p70_p2 = scmp.eq.s32.totalorder %s1978_s14, 0  ;;  %p99_p3 = scmp.eq.s32.totalorder %s1736_s15, 1 }
   0x6   : > { %s2029_s19 = scalar_select %p60_p0, %s1974_s13, %s62_s18  }
   0x7   : > { %p71_p4 = por %p70_p2, %p69_p1  ;;  %p2031_p5 = por %p99_p3, %p69_p1 }
   0x8   : > { %p1739_p6 = scmp.ge.s32.totalorder %s1978_s14, 2 }
   0xa   : > { %127 = sbr.rel (%p1739_p6) target bundleno = 58 (0x3a), region = 24 }
  0x11   : > { %130 = sbr.rel (!%p71_p4) target bundleno = 58 (0x3a), region = 28  ;;  %s132_s21 = sand.u32 (%p71_p4), 1, %s1974_s13  }
  0x12   : > { %s1885_s22 = sshll.u32 (%p71_p4), %s1978_s14, 5  ;;  %s1903_s23 = smul.u32 (%p71_p4), 576, %s132_s21 }
  0x13   : > { %s2041_s26 = scalar_lea.vmem (%p71_p4), %s2779_s2, %s1885_s22 }
  0x14   : > { %v150_v0 = vld [vmem:[%s2041_s26] sm:$0xff] (%p71_p4)  ;;  %v152_v1 = vld [vmem:[%s2041_s26 + $0x8] sm:$0xff] (%p71_p4)  ;;  %v154_v2 = vld [vmem:[%s2041_s26 + $0x10] sm:$0xff] (%p71_p4)  ;;  %s2049_s27 = scalar_lea.vmem (%p71_p4), [#allocation2], %s1903_s23 }
  0x15   : > { %v156_v3 = vld [vmem:[%s2041_s26 + $0x18] sm:$0xff] (%p71_p4)  ;;  %v158_v4 = vld [vmem:[%s2041_s26 + $0x40] sm:$0xff] (%p71_p4)  ;;  %v160_v5 = vld [vmem:[%s2041_s26 + $0x48] sm:$0xff] (%p71_p4)  ;;  %151 = vst [vmem:[%s2049_s27] sm:$0xff] (%p71_p4), %v150_v0 }
  0x16   : > { %153 = vst [vmem:[%s2049_s27 + $0x8] sm:$0xff] (%p71_p4), %v152_v1  ;;  %155 = vst [vmem:[%s2049_s27 + $0x10] sm:$0xff] (%p71_p4), %v154_v2  ;;  %v162_v6 = vld [vmem:[%s2041_s26 + $0x50] sm:$0xff] (%p71_p4)  ;;  %v164_v7 = vld [vmem:[%s2041_s26 + $0x58] sm:$0xff] (%p71_p4) }
  0x17   : > { %157 = vst [vmem:[%s2049_s27 + $0x18] sm:$0xff] (%p71_p4), %v156_v3  ;;  %159 = vst [vmem:[%s2049_s27 + $0x20] sm:$0xff] (%p71_p4), %v158_v4  ;;  %v166_v8 = vld [vmem:[%s2041_s26 + $0x80] sm:$0xff] (%p71_p4)  ;;  %v168_v9 = vld [vmem:[%s2041_s26 + $0x88] sm:$0xff] (%p71_p4) }
  0x18   : > { %161 = vst [vmem:[%s2049_s27 + $0x28] sm:$0xff] %v160_v5  ;;  %163 = vst [vmem:[%s2049_s27 + $0x30] sm:$0xff] %v162_v6  ;;  %v170_v10 = vld [vmem:[%s2041_s26 + $0x90] sm:$0xff]  ;;  %v172_v11 = vld [vmem:[%s2041_s26 + $0x98] sm:$0xff] }
  0x19   : > { %165 = vst [vmem:[%s2049_s27 + $0x38] sm:$0xff] %v164_v7  ;;  %167 = vst [vmem:[%s2049_s27 + $0x40] sm:$0xff] %v166_v8  ;;  %v174_v12 = vld [vmem:[%s2041_s26 + $0xc0] sm:$0xff]  ;;  %v176_v13 = vld [vmem:[%s2041_s26 + $0xc8] sm:$0xff] }
  0x1a   : > { %169 = vst [vmem:[%s2049_s27 + $0x48] sm:$0xff] %v168_v9  ;;  %171 = vst [vmem:[%s2049_s27 + $0x50] sm:$0xff] %v170_v10  ;;  %v178_v14 = vld [vmem:[%s2041_s26 + $0xd0] sm:$0xff]  ;;  %v180_v15 = vld [vmem:[%s2041_s26 + $0xd8] sm:$0xff] }
  0x1b   : > { %173 = vst [vmem:[%s2049_s27 + $0x58] sm:$0xff] %v172_v11  ;;  %175 = vst [vmem:[%s2049_s27 + $0x60] sm:$0xff] %v174_v12  ;;  %v182_v16 = vld [vmem:[%s2041_s26 + $0x100] sm:$0xff]  ;;  %v184_v17 = vld [vmem:[%s2041_s26 + $0x108] sm:$0xff] }
  0x1c   : > { %177 = vst [vmem:[%s2049_s27 + $0x68] sm:$0xff] %v176_v13  ;;  %179 = vst [vmem:[%s2049_s27 + $0x70] sm:$0xff] %v178_v14  ;;  %v186_v18 = vld [vmem:[%s2041_s26 + $0x110] sm:$0xff]  ;;  %v188_v19 = vld [vmem:[%s2041_s26 + $0x118] sm:$0xff] }
  0x1d   : > { %181 = vst [vmem:[%s2049_s27 + $0x78] sm:$0xff] %v180_v15  ;;  %183 = vst [vmem:[%s2049_s27 + $0x80] sm:$0xff] %v182_v16  ;;  %v190_v20 = vld [vmem:[%s2041_s26 + $0x140] sm:$0xff]  ;;  %v192_v21 = vld [vmem:[%s2041_s26 + $0x148] sm:$0xff] }
  0x1e   : > { %185 = vst [vmem:[%s2049_s27 + $0x88] sm:$0xff] %v184_v17  ;;  %187 = vst [vmem:[%s2049_s27 + $0x90] sm:$0xff] %v186_v18  ;;  %v194_v22 = vld [vmem:[%s2041_s26 + $0x150] sm:$0xff]  ;;  %v196_v23 = vld [vmem:[%s2041_s26 + $0x158] sm:$0xff] }
  0x1f   : > { %189 = vst [vmem:[%s2049_s27 + $0x98] sm:$0xff] %v188_v19  ;;  %191 = vst [vmem:[%s2049_s27 + $0xa0] sm:$0xff] %v190_v20  ;;  %v198_v24 = vld [vmem:[%s2041_s26 + $0x180] sm:$0xff]  ;;  %v200_v25 = vld [vmem:[%s2041_s26 + $0x188] sm:$0xff] }
  0x20   : > { %193 = vst [vmem:[%s2049_s27 + $0xa8] sm:$0xff] %v192_v21  ;;  %195 = vst [vmem:[%s2049_s27 + $0xb0] sm:$0xff] %v194_v22  ;;  %v202_v26 = vld [vmem:[%s2041_s26 + $0x190] sm:$0xff]  ;;  %v204_v27 = vld [vmem:[%s2041_s26 + $0x198] sm:$0xff] }
  0x21   : > { %197 = vst [vmem:[%s2049_s27 + $0xb8] sm:$0xff] %v196_v23  ;;  %199 = vst [vmem:[%s2049_s27 + $0xc0] sm:$0xff] %v198_v24  ;;  %v206_v28 = vld [vmem:[%s2041_s26 + $0x1c0] sm:$0xff]  ;;  %v208_v29 = vld [vmem:[%s2041_s26 + $0x1c8] sm:$0xff] }
  0x22   : > { %201 = vst [vmem:[%s2049_s27 + $0xc8] sm:$0xff] %v200_v25  ;;  %203 = vst [vmem:[%s2049_s27 + $0xd0] sm:$0xff] %v202_v26  ;;  %v210_v30 = vld [vmem:[%s2041_s26 + $0x1d0] sm:$0xff]  ;;  %v212_v31 = vld [vmem:[%s2041_s26 + $0x1d8] sm:$0xff] }
  0x23   : > { %205 = vst [vmem:[%s2049_s27 + $0xd8] sm:$0xff] %v204_v27  ;;  %207 = vst [vmem:[%s2049_s27 + $0xe0] sm:$0xff] %v206_v28  ;;  %v214_v32 = vld [vmem:[%s2041_s26 + $0x200] sm:$0xff]  ;;  %v216_v33 = vld [vmem:[%s2041_s26 + $0x208] sm:$0xff] }
  0x24   : > { %209 = vst [vmem:[%s2049_s27 + $0xe8] sm:$0xff] %v208_v29  ;;  %211 = vst [vmem:[%s2049_s27 + $0xf0] sm:$0xff] %v210_v30  ;;  %v218_v34 = vld [vmem:[%s2041_s26 + $0x210] sm:$0xff]  ;;  %v220_v35 = vld [vmem:[%s2041_s26 + $0x218] sm:$0xff] }
  0x25   : > { %213 = vst [vmem:[%s2049_s27 + $0xf8] sm:$0xff] %v212_v31  ;;  %215 = vst [vmem:[%s2049_s27 + $0x100] sm:$0xff] %v214_v32  ;;  %v222_v36 = vld [vmem:[%s2041_s26 + $0x240] sm:$0xff]  ;;  %v224_v37 = vld [vmem:[%s2041_s26 + $0x248] sm:$0xff] }
  0x26   : > { %217 = vst [vmem:[%s2049_s27 + $0x108] sm:$0xff] %v216_v33  ;;  %219 = vst [vmem:[%s2049_s27 + $0x110] sm:$0xff] %v218_v34  ;;  %v226_v38 = vld [vmem:[%s2041_s26 + $0x250] sm:$0xff]  ;;  %v228_v39 = vld [vmem:[%s2041_s26 + $0x258] sm:$0xff] }
  0x27   : > { %221 = vst [vmem:[%s2049_s27 + $0x118] sm:$0xff] %v220_v35  ;;  %223 = vst [vmem:[%s2049_s27 + $0x120] sm:$0xff] %v222_v36  ;;  %v230_v40 = vld [vmem:[%s2041_s26 + $0x280] sm:$0xff]  ;;  %v232_v41 = vld [vmem:[%s2041_s26 + $0x288] sm:$0xff] }
  0x28   : > { %225 = vst [vmem:[%s2049_s27 + $0x128] sm:$0xff] %v224_v37  ;;  %227 = vst [vmem:[%s2049_s27 + $0x130] sm:$0xff] %v226_v38  ;;  %v234_v42 = vld [vmem:[%s2041_s26 + $0x290] sm:$0xff]  ;;  %v236_v43 = vld [vmem:[%s2041_s26 + $0x298] sm:$0xff] }
  0x29   : > { %229 = vst [vmem:[%s2049_s27 + $0x138] sm:$0xff] %v228_v39  ;;  %231 = vst [vmem:[%s2049_s27 + $0x140] sm:$0xff] %v230_v40  ;;  %v238_v44 = vld [vmem:[%s2041_s26 + $0x2c0] sm:$0xff]  ;;  %v240_v45 = vld [vmem:[%s2041_s26 + $0x2c8] sm:$0xff] }
  0x2a   : > { %233 = vst [vmem:[%s2049_s27 + $0x148] sm:$0xff] %v232_v41  ;;  %235 = vst [vmem:[%s2049_s27 + $0x150] sm:$0xff] %v234_v42  ;;  %v242_v46 = vld [vmem:[%s2041_s26 + $0x2d0] sm:$0xff]  ;;  %v244_v47 = vld [vmem:[%s2041_s26 + $0x2d8] sm:$0xff] }
  0x2b   : > { %237 = vst [vmem:[%s2049_s27 + $0x158] sm:$0xff] %v236_v43  ;;  %239 = vst [vmem:[%s2049_s27 + $0x160] sm:$0xff] %v238_v44  ;;  %v246_v48 = vld [vmem:[%s2041_s26 + $0x300] sm:$0xff]  ;;  %v248_v49 = vld [vmem:[%s2041_s26 + $0x308] sm:$0xff] }
  0x2c   : > { %241 = vst [vmem:[%s2049_s27 + $0x168] sm:$0xff] %v240_v45  ;;  %243 = vst [vmem:[%s2049_s27 + $0x170] sm:$0xff] %v242_v46  ;;  %v250_v50 = vld [vmem:[%s2041_s26 + $0x310] sm:$0xff]  ;;  %v252_v51 = vld [vmem:[%s2041_s26 + $0x318] sm:$0xff] }
  0x2d   : > { %245 = vst [vmem:[%s2049_s27 + $0x178] sm:$0xff] %v244_v47  ;;  %247 = vst [vmem:[%s2049_s27 + $0x180] sm:$0xff] %v246_v48  ;;  %v254_v52 = vld [vmem:[%s2041_s26 + $0x340] sm:$0xff]  ;;  %v256_v53 = vld [vmem:[%s2041_s26 + $0x348] sm:$0xff] }
  0x2e   : > { %249 = vst [vmem:[%s2049_s27 + $0x188] sm:$0xff] %v248_v49  ;;  %251 = vst [vmem:[%s2049_s27 + $0x190] sm:$0xff] %v250_v50  ;;  %v258_v54 = vld [vmem:[%s2041_s26 + $0x350] sm:$0xff]  ;;  %v260_v55 = vld [vmem:[%s2041_s26 + $0x358] sm:$0xff] }
  0x2f   : > { %253 = vst [vmem:[%s2049_s27 + $0x198] sm:$0xff] %v252_v51  ;;  %255 = vst [vmem:[%s2049_s27 + $0x1a0] sm:$0xff] %v254_v52  ;;  %v262_v56 = vld [vmem:[%s2041_s26 + $0x380] sm:$0xff]  ;;  %v264_v57 = vld [vmem:[%s2041_s26 + $0x388] sm:$0xff] }
  0x30   : > { %257 = vst [vmem:[%s2049_s27 + $0x1a8] sm:$0xff] %v256_v53  ;;  %259 = vst [vmem:[%s2049_s27 + $0x1b0] sm:$0xff] %v258_v54  ;;  %v266_v58 = vld [vmem:[%s2041_s26 + $0x390] sm:$0xff]  ;;  %v268_v59 = vld [vmem:[%s2041_s26 + $0x398] sm:$0xff] }
  0x31   : > { %261 = vst [vmem:[%s2049_s27 + $0x1b8] sm:$0xff] %v260_v55  ;;  %263 = vst [vmem:[%s2049_s27 + $0x1c0] sm:$0xff] %v262_v56  ;;  %v270_v60 = vld [vmem:[%s2041_s26 + $0x3c0] sm:$0xff]  ;;  %v272_v61 = vld [vmem:[%s2041_s26 + $0x3c8] sm:$0xff] }
  0x32   : > { %265 = vst [vmem:[%s2049_s27 + $0x1c8] sm:$0xff] %v264_v57  ;;  %267 = vst [vmem:[%s2049_s27 + $0x1d0] sm:$0xff] %v266_v58  ;;  %v274_v62 = vld [vmem:[%s2041_s26 + $0x3d0] sm:$0xff]  ;;  %v276_v63 = vld [vmem:[%s2041_s26 + $0x3d8] sm:$0xff] }
  0x33   : > { %269 = vst [vmem:[%s2049_s27 + $0x1d8] sm:$0xff] %v268_v59  ;;  %271 = vst [vmem:[%s2049_s27 + $0x1e0] sm:$0xff] %v270_v60  ;;  %v278_v0 = vld [vmem:[%s2041_s26 + $0x400] sm:$0xff]  ;;  %v280_v1 = vld [vmem:[%s2041_s26 + $0x408] sm:$0xff] }
  0x34   : > { %273 = vst [vmem:[%s2049_s27 + $0x1e8] sm:$0xff] %v272_v61  ;;  %275 = vst [vmem:[%s2049_s27 + $0x1f0] sm:$0xff] %v274_v62  ;;  %v282_v2 = vld [vmem:[%s2041_s26 + $0x410] sm:$0xff]  ;;  %v284_v3 = vld [vmem:[%s2041_s26 + $0x418] sm:$0xff] }
  0x35   : > { %277 = vst [vmem:[%s2049_s27 + $0x1f8] sm:$0xff] %v276_v63  ;;  %279 = vst [vmem:[%s2049_s27 + $0x200] sm:$0xff] %v278_v0  ;;  %v286_v4 = vld [vmem:[%s2041_s26 + $0x440] sm:$0xff]  ;;  %v288_v5 = vld [vmem:[%s2041_s26 + $0x448] sm:$0xff] }
  0x36   : > { %281 = vst [vmem:[%s2049_s27 + $0x208] sm:$0xff] %v280_v1  ;;  %283 = vst [vmem:[%s2049_s27 + $0x210] sm:$0xff] %v282_v2  ;;  %v290_v6 = vld [vmem:[%s2041_s26 + $0x450] sm:$0xff]  ;;  %v292_v7 = vld [vmem:[%s2041_s26 + $0x458] sm:$0xff] }
  0x37   : > { %285 = vst [vmem:[%s2049_s27 + $0x218] sm:$0xff] %v284_v3  ;;  %287 = vst [vmem:[%s2049_s27 + $0x220] sm:$0xff] %v286_v4 }
  0x38   : > { %289 = vst [vmem:[%s2049_s27 + $0x228] sm:$0xff] %v288_v5  ;;  %291 = vst [vmem:[%s2049_s27 + $0x230] sm:$0xff] %v290_v6 }
  0x39   : > { %293 = vst [vmem:[%s2049_s27 + $0x238] sm:$0xff] %v292_v7 }
  0x3a PF: > { %p1742_p7 = scmp.ge.s32.totalorder %s1978_s14, 1  ;;  %p298_p8 = scmp.lt.s32.totalorder %s1978_s14, 3 }
  0x3c   : > { %p299_p9 = pnand %p1742_p7, %p298_p8 }
  0x3d   : > { %s305_s28 = sand.u32 (!%p299_p9), 1, %s1970_s12   ;;  %v2195_v8 = vld [vmem:[%s2777_s0 + $0x4] ss:$8 sps:$4 sm:$0xff] (!%p299_p9)   ;;  %vm850_vm0 = vcmask (!%p299_p9), 130048  }
  0x3e   : > { %302 = sbr.rel (%p299_p9) target bundleno = 466 (0x1d2), region = 51  ;;  %1832 = vmatprep.mubr.msk.bf16.mxu0 (!%p299_p9), %vm850_vm0, %v2195_v8  ;;  %1840 = vmatprep.mubr.msk.bf16.mxu1 (!%p299_p9), %vm850_vm0, %v2195_v8  ;;  %s2522_s7 = sshll.u32 (!%p299_p9), %s305_s28, 7 }
  0x3f   : > { %s1904_s4 = smul.u32 (!%p299_p9), 576, %s305_s28  ;;  %s2548_s12 = scalar_lea.vmem (!%p299_p9), [#allocation3], %s2522_s7 }
  0x41   : > { %s2203_s5 = scalar_lea.vmem (!%p299_p9), [#allocation2], %s1904_s4 }
  0x42   : > { %v346_v9 = vld [vmem:[%s2203_s5] sm:$0xff] (!%p299_p9)  ;;  %v347_v11 = vld [vmem:[%s2203_s5 + $0x8] sm:$0xff] (!%p299_p9) }
  0x43   : > { %v350_v10 = vld [vmem:[%s2203_s5 + $0x20] sm:$0xff] (!%p299_p9)  ;;  %v351_v13 = vld [vmem:[%s2203_s5 + $0x28] sm:$0xff] (!%p299_p9) }
  0x44   : > { %v1761_v12 = vcombine.high (!%p299_p9), %v346_v9, %v350_v10  ;;  %v1760_v14 = vcombine.low (!%p299_p9), %v346_v9, %v350_v10  ;;  %v354_v15 = vld [vmem:[%s2203_s5 + $0x40] sm:$0xff] (!%p299_p9)  ;;  %v1763_v17 = vcombine.high (!%p299_p9), %v347_v11, %v351_v13  ;;  %v1762_v18 = vcombine.low (!%p299_p9), %v347_v11, %v351_v13  ;;  %v355_v20 = vld [vmem:[%s2203_s5 + $0x48] sm:$0xff] (!%p299_p9) }
  0x45   : > { %v358_v16 = vld [vmem:[%s2203_s5 + $0x60] sm:$0xff]  ;;  %v359_v21 = vld [vmem:[%s2203_s5 + $0x68] sm:$0xff]  ;;  %s1902_s28 = sshll.u32 (%p2031_p5), %s1736_s15, 5 }
  0x46   : > { %v1769_v19 = vcombine.high %v354_v15, %v358_v16  ;;  %v362_v22 = vld [vmem:[%s2203_s5 + $0x80] sm:$0xff]  ;;  %875 = vmatprep.subr.bf16.mxu0 %v1761_v12  ;;  %v1771_v23 = vcombine.high %v355_v20, %v359_v21  ;;  %v363_v25 = vld [vmem:[%s2203_s5 + $0x88] sm:$0xff]  ;;  %988 = vmatprep.subr.bf16.mxu1 %v1763_v17  ;;  %v1768_v27 = vcombine.low %v354_v15, %v358_v16  ;;  %v348_v16 = vld [vmem:[%s2203_s5 + $0x10] sm:$0xff]  ;;  %s1632_s20 = scalar_lea.vmem (%p2031_p5), %s2780_s3, %s1902_s28 }
  0x47   : > { %v366_v24 = vld [vmem:[%s2203_s5 + $0xa0] sm:$0xff]  ;;  %v367_v26 = vld [vmem:[%s2203_s5 + $0xa8] sm:$0xff]  ;;  %876 = vmatpush1.bf16.msra.mxu0 %v1760_v14  ;;  %989 = vmatpush1.bf16.msra.mxu1 %v1762_v18  ;;  %v1770_v28 = vcombine.low %v355_v20, %v359_v21  ;;  %v352_v17 = vld [vmem:[%s2203_s5 + $0x30] sm:$0xff] }
  0x48   : > { %877 = vmatprep.subr.bf16.mxu0 %v1769_v19  ;;  %v1777_v29 = vcombine.high %v362_v22, %v366_v24  ;;  %990 = vmatprep.subr.bf16.mxu1 %v1771_v23  ;;  %v1779_v30 = vcombine.high %v363_v25, %v367_v26  ;;  %v370_v31 = vld [vmem:[%s2203_s5 + $0xc0] sm:$0xff]  ;;  %v371_v33 = vld [vmem:[%s2203_s5 + $0xc8] sm:$0xff]  ;;  %v1776_v35 = vcombine.low %v362_v22, %v366_v24  ;;  %v349_v18 = vld [vmem:[%s2203_s5 + $0x18] sm:$0xff] }
  0x49   : > { %v374_v32 = vld [vmem:[%s2203_s5 + $0xe0] sm:$0xff]  ;;  %v375_v34 = vld [vmem:[%s2203_s5 + $0xe8] sm:$0xff]  ;;  %v1778_v36 = vcombine.low %v363_v25, %v367_v26  ;;  %v353_v19 = vld [vmem:[%s2203_s5 + $0x38] sm:$0xff]  ;;  %v1765_v23 = vcombine.high %v348_v16, %v352_v17  ;;  %v1980_v26 = vmov 0  }
  0x4a   : > { %v1785_v37 = vcombine.high %v370_v31, %v374_v32  ;;  %v1787_v38 = vcombine.high %v371_v33, %v375_v34  ;;  %v378_v39 = vld [vmem:[%s2203_s5 + $0x100] sm:$0xff]  ;;  %v379_v41 = vld [vmem:[%s2203_s5 + $0x108] sm:$0xff]  ;;  %v1784_v43 = vcombine.low %v370_v31, %v374_v32  ;;  %v1786_v44 = vcombine.low %v371_v33, %v375_v34  ;;  %v1425_v24 = vld [vmem:[%s2778_s1 + $0x10] sm:$0xff]  ;;  %1930 = vset.pattern.permute.xlu0 %v1980_v26 }
  0x4b   : > { %878 = vmatpush1.bf16.msra.mxu0 %v1768_v27  ;;  %991 = vmatpush1.bf16.msra.mxu1 %v1770_v28  ;;  %v382_v40 = vld [vmem:[%s2203_s5 + $0x120] sm:$0xff]  ;;  %v383_v42 = vld [vmem:[%s2203_s5 + $0x128] sm:$0xff]  ;;  %v1767_v25 = vcombine.high %v349_v18, %v353_v19  ;;  %v356_v28 = vld [vmem:[%s2203_s5 + $0x50] sm:$0xff]  ;;  %v1766_v34 = vcombine.low %v349_v18, %v353_v19 }
  0x4c   : > { %879 = vmatprep.subr.bf16.mxu0 %v1777_v29  ;;  %992 = vmatprep.subr.bf16.mxu1 %v1779_v30  ;;  %v1793_v45 = vcombine.high %v378_v39, %v382_v40  ;;  %v1795_v46 = vcombine.high %v379_v41, %v383_v42  ;;  %v386_v47 = vld [vmem:[%s2203_s5 + $0x140] sm:$0xff]  ;;  %v387_v49 = vld [vmem:[%s2203_s5 + $0x148] sm:$0xff]  ;;  %v1792_v51 = vcombine.low %v378_v39, %v382_v40  ;;  %v360_v29 = vld [vmem:[%s2203_s5 + $0x70] sm:$0xff] }
  0x4d   : > { %v390_v48 = vld [vmem:[%s2203_s5 + $0x160] sm:$0xff]  ;;  %v391_v50 = vld [vmem:[%s2203_s5 + $0x168] sm:$0xff]  ;;  %v1794_v52 = vcombine.low %v379_v41, %v383_v42  ;;  %1931 = vset.pattern.permute.xlu1 %v1980_v26  ;;  %v1764_v30 = vcombine.low %v348_v16, %v352_v17  ;;  %v357_v31 = vld [vmem:[%s2203_s5 + $0x58] sm:$0xff]  ;;  %v1772_v42 = vcombine.low %v356_v28, %v360_v29 }
  0x4e   : > { %v1801_v53 = vcombine.high %v386_v47, %v390_v48  ;;  %v1803_v54 = vcombine.high %v387_v49, %v391_v50  ;;  %v394_v55 = vld [vmem:[%s2203_s5 + $0x180] sm:$0xff]  ;;  %v395_v57 = vld [vmem:[%s2203_s5 + $0x188] sm:$0xff]  ;;  %v1800_v59 = vcombine.low %v386_v47, %v390_v48  ;;  %v1802_v60 = vcombine.low %v387_v49, %v391_v50  ;;  %v361_v32 = vld [vmem:[%s2203_s5 + $0x78] sm:$0xff]  ;;  %1439 = vperm.xlu1 %1931, %v1425_v24  }
  0x4f   : > { %880 = vmatpush1.bf16.msra.mxu0 %v1776_v35  ;;  %993 = vmatpush1.bf16.msra.mxu1 %v1778_v36  ;;  %v398_v56 = vld [vmem:[%s2203_s5 + $0x1a0] sm:$0xff]  ;;  %v399_v58 = vld [vmem:[%s2203_s5 + $0x1a8] sm:$0xff]  ;;  %v2266_v35 = vld [vmem:[%s2777_s0 + $0x14] ss:$8 sps:$4 sm:$0xff]   ;;  %v1773_v36 = vcombine.high %v356_v28, %v360_v29  ;;  %v1775_v39 = vcombine.high %v357_v31, %v361_v32 }
  0x50   : > { %881 = vmatprep.subr.bf16.mxu0 %v1785_v37  ;;  %994 = vmatprep.subr.bf16.mxu1 %v1787_v38  ;;  %v1809_v61 = vcombine.high %v394_v55, %v398_v56  ;;  %v1811_v62 = vcombine.high %v395_v57, %v399_v58  ;;  %v402_v63 = vld [vmem:[%s2203_s5 + $0x1c0] sm:$0xff]  ;;  %v403_v1 = vld [vmem:[%s2203_s5 + $0x1c8] sm:$0xff]  ;;  %v1808_v3 = vcombine.low %v394_v55, %v398_v56  ;;  %v364_v37 = vld [vmem:[%s2203_s5 + $0x90] sm:$0xff] }
  0x51   : > { %v406_v0 = vld [vmem:[%s2203_s5 + $0x1e0] sm:$0xff]  ;;  %v407_v2 = vld [vmem:[%s2203_s5 + $0x1e8] sm:$0xff]  ;;  %v1810_v4 = vcombine.low %v395_v57, %v399_v58  ;;  %v368_v38 = vld [vmem:[%s2203_s5 + $0xb0] sm:$0xff] }
  0x52   : > { %v1817_v5 = vcombine.high %v402_v63, %v406_v0  ;;  %v1819_v6 = vcombine.high %v403_v1, %v407_v2  ;;  %v410_v7 = vld [vmem:[%s2203_s5 + $0x200] sm:$0xff]  ;;  %v411_v10 = vld [vmem:[%s2203_s5 + $0x208] sm:$0xff]  ;;  %v1816_v12 = vcombine.low %v402_v63, %v406_v0  ;;  %v1818_v13 = vcombine.low %v403_v1, %v407_v2  ;;  %v365_v40 = vld [vmem:[%s2203_s5 + $0x98] sm:$0xff] }
  0x53   : > { %882 = vmatpush1.bf16.msra.mxu0 %v1784_v43  ;;  %995 = vmatpush1.bf16.msra.mxu1 %v1786_v44  ;;  %v414_v9 = vld [vmem:[%s2203_s5 + $0x220] sm:$0xff]  ;;  %v415_v11 = vld [vmem:[%s2203_s5 + $0x228] sm:$0xff]  ;;  %v369_v41 = vld [vmem:[%s2203_s5 + $0xb8] sm:$0xff]  ;;  %v1774_v44 = vcombine.low %v357_v31, %v361_v32 }
  0x54   : > { %883 = vmatprep.subr.bf16.mxu0 %v1793_v45  ;;  %996 = vmatprep.subr.bf16.mxu1 %v1795_v46  ;;  %v1825_v14 = vcombine.high %v410_v7, %v414_v9  ;;  %v1827_v15 = vcombine.high %v411_v10, %v415_v11  ;;  %v1824_v20 = vcombine.low %v410_v7, %v414_v9  ;;  %v1423_v21 = vld [vmem:[%s2778_s1] sm:$0xff]  ;;  %v1424_v33 = vld [vmem:[%s2778_s1 + $0x8] sm:$0xff]  ;;  %v1426_v43 = vld [vmem:[%s2778_s1 + $0x18] sm:$0xff] }
  0x55   : > { %v1826_v22 = vcombine.low %v411_v10, %v415_v11  ;;  %v2254_v27 = vld [vmem:[%s2777_s0] ss:$8 sps:$4 sm:$0xff]   ;;  %1429 = vperm.xlu0 %1930, %v1423_v21   ;;  %v1781_v45 = vcombine.high %v364_v37, %v368_v38  ;;  %v1783_v46 = vcombine.high %v365_v40, %v369_v41  ;;  %v2284_v47 = vld [vmem:[%s2777_s0 + $0x10] ss:$8 sps:$4 sm:$0xff]   ;;  %1444 = vperm.xlu1 %1931, %v1426_v43   ;;  %v2291_v50 = vld [vmem:[%s2777_s0 + $0x24] ss:$8 sps:$4 sm:$0xff]  }
  0x56   : > { %v372_v48 = vld [vmem:[%s2203_s5 + $0xd0] sm:$0xff]  ;;  %v2308_v0 = vld [vmem:[%s2777_s0 + $0x20] ss:$8 sps:$4 sm:$0xff]   ;;  %v405_v24 = vld [vmem:[%s2203_s5 + $0x1d8] sm:$0xff] }
  0x57   : > { %884 = vmatpush1.bf16.msra.mxu0 %v1792_v51  ;;  %997 = vmatpush1.bf16.msra.mxu1 %v1794_v52  ;;  %v376_v49 = vld [vmem:[%s2203_s5 + $0xf0] sm:$0xff]  ;;  %v373_v51 = vld [vmem:[%s2203_s5 + $0xd8] sm:$0xff] }
  0x58   : > { %885 = vmatprep.subr.bf16.mxu0 %v1801_v53  ;;  %998 = vmatprep.subr.bf16.mxu1 %v1803_v54  ;;  %v377_v52 = vld [vmem:[%s2203_s5 + $0xf8] sm:$0xff]  ;;  %v1780_v53 = vcombine.low %v364_v37, %v368_v38  ;;  %v1782_v54 = vcombine.low %v365_v40, %v369_v41  ;;  %v1789_v55 = vcombine.high %v372_v48, %v376_v49  ;;  %v380_v57 = vld [vmem:[%s2203_s5 + $0x110] sm:$0xff] }
  0x59   : > { %1434 = vperm.xlu0 %1930, %v1424_v33   ;;  %v1791_v56 = vcombine.high %v373_v51, %v377_v52  ;;  %v384_v58 = vld [vmem:[%s2203_s5 + $0x130] sm:$0xff]  ;;  %v413_v33 = vld [vmem:[%s2203_s5 + $0x218] sm:$0xff] }
  0x5a   : > { %v1797_v63 = vcombine.high %v380_v57, %v384_v58  ;;  %v388_v2 = vld [vmem:[%s2203_s5 + $0x150] sm:$0xff]  ;;  %v1796_v7 = vcombine.low %v380_v57, %v384_v58 }
  0x5b   : > { %886 = vmatpush1.bf16.msra.mxu0 %v1800_v59  ;;  %999 = vmatpush1.bf16.msra.mxu1 %v1802_v60  ;;  %v381_v59 = vld [vmem:[%s2203_s5 + $0x118] sm:$0xff]  ;;  %v404_v21 = vld [vmem:[%s2203_s5 + $0x1d0] sm:$0xff] }
  0x5c   : > { %887 = vmatprep.subr.bf16.mxu0 %v1809_v61  ;;  %1000 = vmatprep.subr.bf16.mxu1 %v1811_v62  ;;  %v385_v60 = vld [vmem:[%s2203_s5 + $0x138] sm:$0xff]  ;;  %v1788_v61 = vcombine.low %v372_v48, %v376_v49  ;;  %v1790_v62 = vcombine.low %v373_v51, %v377_v52  ;;  %v412_v31 = vld [vmem:[%s2203_s5 + $0x210] sm:$0xff] }
  0x5d   : > { %v1799_v1 = vcombine.high %v381_v59, %v385_v60  ;;  %v1798_v9 = vcombine.low %v381_v59, %v385_v60  ;;  %v2332_v19 = vld [vmem:[%s2777_s0 + $0x30] ss:$8 sps:$4 sm:$0xff]   ;;  %v1947_v41 = vld [vmem:[%s2777_s0 + $0x54] ss:$8 sps:$4 sm:$0xff]  }
  0x5e   : > { %v416_v32 = vld [vmem:[%s2203_s5 + $0x230] sm:$0xff] }
  0x5f   : > { %888 = vmatpush1.bf16.msra.mxu0 %v1808_v3  ;;  %1001 = vmatpush1.bf16.msra.mxu1 %v1810_v4  ;;  %v392_v3 = vld [vmem:[%s2203_s5 + $0x170] sm:$0xff]  ;;  %v1829_v38 = vcombine.high %v412_v31, %v416_v32 }
  0x60   : > { %889 = vmatprep.subr.bf16.mxu0 %v1817_v5  ;;  %1002 = vmatprep.subr.bf16.mxu1 %v1819_v6  ;;  %v2315_v4 = vld [vmem:[%s2777_s0 + $0x34] ss:$8 sps:$4 sm:$0xff]   ;;  %v1805_v10 = vcombine.high %v388_v2, %v392_v3  ;;  %v1804_v16 = vcombine.low %v388_v2, %v392_v3  ;;  %v1955_v49 = vld [vmem:[%s2777_s0 + $0x70] ss:$8 sps:$4 sm:$0xff]  }
  0x61   : > { %v389_v5 = vld [vmem:[%s2203_s5 + $0x158] sm:$0xff] }
  0x62   : > { %v393_v6 = vld [vmem:[%s2203_s5 + $0x178] sm:$0xff] }
  0x63   : > { %890 = vmatpush1.bf16.msra.mxu0 %v1816_v12  ;;  %1003 = vmatpush1.bf16.msra.mxu1 %v1818_v13  ;;  %v1807_v11 = vcombine.high %v389_v5, %v393_v6  ;;  %v396_v12 = vld [vmem:[%s2203_s5 + $0x190] sm:$0xff]  ;;  %v1806_v17 = vcombine.low %v389_v5, %v393_v6 }
  0x64   : > { %891 = vmatprep.subr.bf16.mxu0 %v1825_v14  ;;  %1004 = vmatprep.subr.bf16.mxu1 %v1827_v15  ;;  %v400_v13 = vld [vmem:[%s2203_s5 + $0x1b0] sm:$0xff]  ;;  %v397_v14 = vld [vmem:[%s2203_s5 + $0x198] sm:$0xff] }
  0x65   : > { %v401_v15 = vld [vmem:[%s2203_s5 + $0x1b8] sm:$0xff]  ;;  %v1813_v18 = vcombine.high %v396_v12, %v400_v13  ;;  %v1812_v26 = vcombine.low %v396_v12, %v400_v13 }
  0x66   : > { %v1814_v28 = vcombine.low %v397_v14, %v401_v15  ;;  %v1953_v48 = vld [vmem:[%s2777_s0 + $0x74] ss:$8 sps:$4 sm:$0xff]  }
  0x67   : > { %892 = vmatpush1.bf16.msra.mxu0 %v1824_v20  ;;  %1005 = vmatpush1.bf16.msra.mxu1 %v1826_v22  ;;  %v1815_v20 = vcombine.high %v397_v14, %v401_v15  ;;  %v408_v22 = vld [vmem:[%s2203_s5 + $0x1f0] sm:$0xff] }
  0x68   : > { %1101 = vmatprep.subr.bf16.mxu0 %v1765_v23  ;;  %1214 = vmatprep.subr.bf16.mxu1 %v1767_v25  ;;  %v2339_v23 = vld [vmem:[%s2777_s0 + $0x44] ss:$8 sps:$4 sm:$0xff]   ;;  %v409_v25 = vld [vmem:[%s2203_s5 + $0x1f8] sm:$0xff]  ;;  %v1821_v29 = vcombine.high %v404_v21, %v408_v22 }
  0x69   : > { %v1822_v37 = vcombine.low %v405_v24, %v409_v25 }
  0x6a   : > { %908 = vmatmul.mubr.bf16.vlgmr.msra.gmra.mrb[0].mxu0 %v2254_v27  ;;  %1021 = vmatmul.mubr.bf16.vlgmr.msra.gmra.mrb[0].mxu1 %v2254_v27 }
  0x6b   : > { %1102 = vmatpush1.bf16.msra.mxu0 %v1764_v30  ;;  %1215 = vmatpush1.bf16.msra.mxu1 %v1766_v34  ;;  %v1823_v30 = vcombine.high %v405_v24, %v409_v25  ;;  %v417_v34 = vld [vmem:[%s2203_s5 + $0x238] sm:$0xff] }
  0x6c   : > { %1833 = vmatprep.mubr.msk.bf16.mxu0 %vm850_vm0, %v2266_v35  ;;  %1841 = vmatprep.mubr.msk.bf16.mxu1 %vm850_vm0, %v2266_v35  ;;  %v1831_v40 = vcombine.high %v413_v33, %v417_v34  ;;  %v1830_v43 = vcombine.low %v413_v33, %v417_v34 }
  0x6d   : > { %1103 = vmatprep.subr.bf16.mxu0 %v1773_v36  ;;  %1216 = vmatprep.subr.bf16.mxu1 %v1775_v39  ;;  %v1820_v36 = vcombine.low %v404_v21, %v408_v22  ;;  %v1946_v39 = vld [vmem:[%s2777_s0 + $0x40] ss:$8 sps:$4 sm:$0xff]  }
  0x6f   : > { %1104 = vmatpush1.bf16.msra.mxu0 %v1772_v42  ;;  %1217 = vmatpush1.bf16.msra.mxu1 %v1774_v44  ;;  %v1828_v42 = vcombine.low %v412_v31, %v416_v32  ;;  %v1949_v44 = vld [vmem:[%s2777_s0 + $0x50] ss:$8 sps:$4 sm:$0xff]  }
  0x70   : > { %1105 = vmatprep.subr.bf16.mxu0 %v1781_v45  ;;  %1218 = vmatprep.subr.bf16.mxu1 %v1783_v46  ;;  %v1950_v45 = vld [vmem:[%s2777_s0 + $0x64] ss:$8 sps:$4 sm:$0xff]   ;;  %v1952_v46 = vld [vmem:[%s2777_s0 + $0x60] ss:$8 sps:$4 sm:$0xff]  }
  0x72   : > { %918 = vmatmul.mubr.bf16.gmra.mrb[4].mxu0 %v2284_v47  ;;  %1031 = vmatmul.mubr.bf16.gmra.mrb[4].mxu1 %v2284_v47 }
  0x73   : > { %1834 = vmatprep.mubr.msk.bf16.mxu0 %vm850_vm0, %v2291_v50  ;;  %1842 = vmatprep.mubr.msk.bf16.mxu1 %vm850_vm0, %v2291_v50 }
  0x74   : > { %1106 = vmatpush1.bf16.msra.mxu0 %v1780_v53  ;;  %1219 = vmatpush1.bf16.msra.mxu1 %v1782_v54 }
  0x75   : > { %1107 = vmatprep.subr.bf16.mxu0 %v1789_v55  ;;  %1220 = vmatprep.subr.bf16.mxu1 %v1791_v56 }
  0x78   : > { %1108 = vmatpush1.bf16.msra.mxu0 %v1788_v61  ;;  %1221 = vmatpush1.bf16.msra.mxu1 %v1790_v62 }
  0x79   : > { %1109 = vmatprep.subr.bf16.mxu0 %v1797_v63  ;;  %1222 = vmatprep.subr.bf16.mxu1 %v1799_v1 }
  0x7a   : > { %928 = vmatmul.mubr.bf16.gmra.mrb[8].mxu0 %v2308_v0  ;;  %1041 = vmatmul.mubr.bf16.gmra.mrb[8].mxu1 %v2308_v0 }
  0x7b   : > { %1835 = vmatprep.mubr.msk.bf16.mxu0 %vm850_vm0, %v2315_v4  ;;  %1843 = vmatprep.mubr.msk.bf16.mxu1 %vm850_vm0, %v2315_v4 }
  0x7c   : > { %1110 = vmatpush1.bf16.msra.mxu0 %v1796_v7  ;;  %1223 = vmatpush1.bf16.msra.mxu1 %v1798_v9 }
  0x7d   : > { %1111 = vmatprep.subr.bf16.mxu0 %v1805_v10  ;;  %1224 = vmatprep.subr.bf16.mxu1 %v1807_v11 }
  0x80   : > { %1112 = vmatpush1.bf16.msra.mxu0 %v1804_v16  ;;  %1225 = vmatpush1.bf16.msra.mxu1 %v1806_v17 }
  0x81   : > { %1113 = vmatprep.subr.bf16.mxu0 %v1813_v18  ;;  %1226 = vmatprep.subr.bf16.mxu1 %v1815_v20 }
  0x82   : > { %938 = vmatmul.mubr.bf16.gmra.mrb[12].mxu0 %v2332_v19  ;;  %1051 = vmatmul.mubr.bf16.gmra.mrb[12].mxu1 %v2332_v19 }
  0x83   : > { %1836 = vmatprep.mubr.msk.bf16.mxu0 %vm850_vm0, %v2339_v23  ;;  %1844 = vmatprep.mubr.msk.bf16.mxu1 %vm850_vm0, %v2339_v23 }
  0x84   : > { %1114 = vmatpush1.bf16.msra.mxu0 %v1812_v26  ;;  %1227 = vmatpush1.bf16.msra.mxu1 %v1814_v28 }
  0x85   : > { %1115 = vmatprep.subr.bf16.mxu0 %v1821_v29  ;;  %1228 = vmatprep.subr.bf16.mxu1 %v1823_v30 }
  0x88   : > { %1116 = vmatpush1.bf16.msra.mxu0 %v1820_v36  ;;  %1229 = vmatpush1.bf16.msra.mxu1 %v1822_v37 }
  0x89   : > { %1117 = vmatprep.subr.bf16.mxu0 %v1829_v38  ;;  %1230 = vmatprep.subr.bf16.mxu1 %v1831_v40 }
  0x8a   : > { %948 = vmatmul.mubr.bf16.gmra.mrb[16].mxu0 %v1946_v39  ;;  %1061 = vmatmul.mubr.bf16.gmra.mrb[16].mxu1 %v1946_v39 }
  0x8b   : > { %1837 = vmatprep.mubr.msk.bf16.mxu0 %vm850_vm0, %v1947_v41  ;;  %1845 = vmatprep.mubr.msk.bf16.mxu1 %vm850_vm0, %v1947_v41 }
  0x8c   : > { %1118 = vmatpush1.bf16.msra.mxu0 %v1828_v42  ;;  %1231 = vmatpush1.bf16.msra.mxu1 %v1830_v43 }
  0x92   : > { %958 = vmatmul.mubr.bf16.gmra.mrb[20].mxu0 %v1949_v44  ;;  %1071 = vmatmul.mubr.bf16.gmra.mrb[20].mxu1 %v1949_v44 }
  0x93   : > { %1838 = vmatprep.mubr.msk.bf16.mxu0 %vm850_vm0, %v1950_v45  ;;  %1846 = vmatprep.mubr.msk.bf16.mxu1 %vm850_vm0, %v1950_v45 }
  0x9a   : > { %968 = vmatmul.mubr.bf16.gmra.mrb[24].mxu0 %v1952_v46  ;;  %1081 = vmatmul.mubr.bf16.gmra.mrb[24].mxu1 %v1952_v46 }
  0x9b   : > { %1839 = vmatprep.mubr.msk.bf16.mxu0 %vm850_vm0, %v1953_v48  ;;  %1847 = vmatprep.mubr.msk.bf16.mxu1 %vm850_vm0, %v1953_v48 }
  0xa2   : > { %978 = vmatmul.mubr.bf16.gmra.mrb[28].mxu0 %v1955_v49  ;;  %1091 = vmatmul.mubr.bf16.gmra.mrb[28].mxu1 %v1955_v49 }
  0xa3   : > { %1848 = vmatprep.mubr.msk.bf16.mxu0 %vm850_vm0, %v2195_v8  ;;  %1856 = vmatprep.mubr.msk.bf16.mxu1 %vm850_vm0, %v2195_v8 }
  0xaa   : > { %1134 = vmatmul.mubr.bf16.vlgmr.msra.gmra.mrb[32].mxu0 %v2254_v27  ;;  %1247 = vmatmul.mubr.bf16.vlgmr.msra.gmra.mrb[32].mxu1 %v2254_v27 }
  0xab   : > { %1849 = vmatprep.mubr.msk.bf16.mxu0 %vm850_vm0, %v2266_v35  ;;  %1857 = vmatprep.mubr.msk.bf16.mxu1 %vm850_vm0, %v2266_v35 }
  0xb2   : > { %1144 = vmatmul.mubr.bf16.gmra.mrb[36].mxu0 %v2284_v47  ;;  %1257 = vmatmul.mubr.bf16.gmra.mrb[36].mxu1 %v2284_v47 }
  0xb3   : > { %1850 = vmatprep.mubr.msk.bf16.mxu0 %vm850_vm0, %v2291_v50  ;;  %1858 = vmatprep.mubr.msk.bf16.mxu1 %vm850_vm0, %v2291_v50 }
  0xba   : > { %1154 = vmatmul.mubr.bf16.gmra.mrb[40].mxu0 %v2308_v0  ;;  %1267 = vmatmul.mubr.bf16.gmra.mrb[40].mxu1 %v2308_v0 }
  0xbb   : > { %1851 = vmatprep.mubr.msk.bf16.mxu0 %vm850_vm0, %v2315_v4  ;;  %1859 = vmatprep.mubr.msk.bf16.mxu1 %vm850_vm0, %v2315_v4 }
  0xc2   : > { %1164 = vmatmul.mubr.bf16.gmra.mrb[44].mxu0 %v2332_v19  ;;  %1277 = vmatmul.mubr.bf16.gmra.mrb[44].mxu1 %v2332_v19 }
  0xc3   : > { %1852 = vmatprep.mubr.msk.bf16.mxu0 %vm850_vm0, %v2339_v23  ;;  %1860 = vmatprep.mubr.msk.bf16.mxu1 %vm850_vm0, %v2339_v23 }
  0xca   : > { %1174 = vmatmul.mubr.bf16.gmra.mrb[48].mxu0 %v1946_v39  ;;  %1287 = vmatmul.mubr.bf16.gmra.mrb[48].mxu1 %v1946_v39 }
  0xcb   : > { %1853 = vmatprep.mubr.msk.bf16.mxu0 %vm850_vm0, %v1947_v41  ;;  %1861 = vmatprep.mubr.msk.bf16.mxu1 %vm850_vm0, %v1947_v41 }
  0xd2   : > { %1184 = vmatmul.mubr.bf16.gmra.mrb[52].mxu0 %v1949_v44  ;;  %1297 = vmatmul.mubr.bf16.gmra.mrb[52].mxu1 %v1949_v44 }
  0xd3   : > { %1854 = vmatprep.mubr.msk.bf16.mxu0 %vm850_vm0, %v1950_v45  ;;  %1862 = vmatprep.mubr.msk.bf16.mxu1 %vm850_vm0, %v1950_v45 }
  0xda   : > { %1194 = vmatmul.mubr.bf16.gmra.mrb[56].mxu0 %v1952_v46  ;;  %1307 = vmatmul.mubr.bf16.gmra.mrb[56].mxu1 %v1952_v46 }
  0xdb   : > { %1855 = vmatprep.mubr.msk.bf16.mxu0 %vm850_vm0, %v1953_v48  ;;  %1863 = vmatprep.mubr.msk.bf16.mxu1 %vm850_vm0, %v1953_v48 }
  0xe2   : > { %1204 = vmatmul.mubr.bf16.gmra.mrb[60].mxu0 %v1955_v49  ;;  %1317 = vmatmul.mubr.bf16.gmra.mrb[60].mxu1 %v1955_v49 }
 0x13d   : > { %v2414_v8 = vpop.f32.mrb[0].mxu0  ;;  %v2416_v27 = vpop.f32.mrb[0].mxu1 }
 0x13e   : > { %v2418_v35 = vpop.f32.mrb[1].mxu0  ;;  %v2420_v47 = vpop.f32.mrb[1].mxu1 }
 0x13f   : > { %v2422_v50 = vpop.f32.mrb[2].mxu0  ;;  %v2424_v51 = vpop.f32.mrb[2].mxu1 }
 0x140   : > { %v2426_v52 = vpop.f32.mrb[3].mxu0  ;;  %v2428_v53 = vpop.f32.mrb[3].mxu1 }
 0x145   : > { %v2430_v54 = vpop.f32.mrb[4].mxu0  ;;  %v2432_v55 = vpop.f32.mrb[4].mxu1 }
 0x146   : > { %v2434_v56 = vpop.f32.mrb[5].mxu0  ;;  %v2436_v57 = vpop.f32.mrb[5].mxu1 }
 0x147   : > { %v2438_v58 = vpop.f32.mrb[6].mxu0  ;;  %v2440_v59 = vpop.f32.mrb[6].mxu1 }
 0x148   : > { %v2442_v60 = vpop.f32.mrb[7].mxu0  ;;  %v2444_v61 = vpop.f32.mrb[7].mxu1 }
 0x14d   : > { %v929_v62 = vpop.f32.mrb[8].mxu0  ;;  %v1042_v0 = vpop.f32.mrb[8].mxu1 }
 0x14e   : > { %v1327_v63 = vmax.f32 %v2414_v8, %v929_v62  ;;  %v931_v1 = vpop.f32.mrb[9].mxu0  ;;  %v1329_v2 = vmax.f32 %v2416_v27, %v1042_v0  ;;  %v2449_v4 = vpop.f32.mrb[9].mxu1 }
 0x14f   : > { %v1328_v3 = vmax.f32 %v2418_v35, %v931_v1  ;;  %v2451_v5 = vpop.f32.mrb[10].mxu0  ;;  %v1330_v6 = vmax.f32 %v2420_v47, %v2449_v4  ;;  %v2457_v9 = vpop.f32.mrb[10].mxu1 }
 0x150   : > { %v1335_v7 = vmax.f32 %v2422_v50, %v2451_v5  ;;  %v2459_v10 = vpop.f32.mrb[11].mxu0  ;;  %v1337_v11 = vmax.f32 %v2424_v51, %v2457_v9  ;;  %v2465_v13 = vpop.f32.mrb[11].mxu1 }
 0x151   : > { %v2515_v8 = vpop.permute.xlu0 %1429 }
 0x155   : > { %v2469_v15 = vpop.f32.mrb[12].mxu0  ;;  %v2473_v17 = vpop.f32.mrb[12].mxu1 }
 0x156   : > { %v2475_v18 = vpop.f32.mrb[13].mxu0  ;;  %v2481_v21 = vpop.f32.mrb[13].mxu1 }
 0x157   : > { %v2483_v22 = vpop.f32.mrb[14].mxu0  ;;  %v2489_v25 = vpop.f32.mrb[14].mxu1 }
 0x158   : > { %v2491_v26 = vpop.f32.mrb[15].mxu0  ;;  %v2497_v30 = vpop.f32.mrb[15].mxu1 }
 0x159   : > { %v2517_v12 = vpop.permute.xlu0 %1434 }
 0x15d   : > { %v949_v32 = vpop.f32.mrb[16].mxu0  ;;  %v1062_v33 = vpop.f32.mrb[16].mxu1 }
 0x15e   : > { %v951_v34 = vpop.f32.mrb[17].mxu0  ;;  %v1064_v36 = vpop.f32.mrb[17].mxu1 }
 0x15f   : > { %v953_v37 = vpop.f32.mrb[18].mxu0  ;;  %v1066_v38 = vpop.f32.mrb[18].mxu1 }
 0x160   : > { %v955_v39 = vpop.f32.mrb[19].mxu0  ;;  %v1068_v40 = vpop.f32.mrb[19].mxu1 }
 0x165   : > { %v959_v41 = vpop.f32.mrb[20].mxu0  ;;  %v2501_v42 = vpop.f32.mrb[20].mxu1 }
 0x166   : > { %v2503_v43 = vpop.f32.mrb[21].mxu0  ;;  %v2505_v44 = vpop.f32.mrb[21].mxu1 }
 0x167   : > { %v2507_v45 = vpop.f32.mrb[22].mxu0  ;;  %v2509_v46 = vpop.f32.mrb[22].mxu1 }
 0x168   : > { %v2511_v48 = vpop.f32.mrb[23].mxu0  ;;  %v2513_v49 = vpop.f32.mrb[23].mxu1 }
 0x16d   : > { %v969_v27 = vpop.f32.mrb[24].mxu0  ;;  %v1082_v47 = vpop.f32.mrb[24].mxu1 }
 0x16e   : > { %v1359_v35 = vmax.f32 %v949_v32, %v969_v27  ;;  %v971_v50 = vpop.f32.mrb[25].mxu0  ;;  %v1361_v62 = vmax.f32 %v1062_v33, %v1082_v47  ;;  %v1084_v1 = vpop.f32.mrb[25].mxu1 }
 0x16f   : > { %v1360_v0 = vmax.f32 %v951_v34, %v971_v50  ;;  %v973_v4 = vpop.f32.mrb[26].mxu0  ;;  %v1362_v31 = vmax.f32 %v1064_v36, %v1084_v1  ;;  %v1086_v28 = vpop.f32.mrb[26].mxu1 }
 0x170   : > { %v1391_v5 = vmax.f32 %v1327_v63, %v1359_v35  ;;  %v1367_v29 = vmax.f32 %v953_v37, %v973_v4  ;;  %v975_v24 = vpop.f32.mrb[27].mxu0  ;;  %v1393_v23 = vmax.f32 %v1329_v2, %v1361_v62  ;;  %v1369_v19 = vmax.f32 %v1066_v38, %v1086_v28  ;;  %v1088_v14 = vpop.f32.mrb[27].mxu1 }
 0x171   : > { %v1392_v20 = vmax.f32 %v1328_v3, %v1360_v0  ;;  %v1368_v16 = vmax.f32 %v955_v39, %v975_v24  ;;  %v1394_v32 = vmax.f32 %v1330_v6, %v1362_v31  ;;  %v1370_v34 = vmax.f32 %v1068_v40, %v1088_v14 }
 0x172   : > { %v1447_v27 = vadd.f32 %v2515_v8, %v1391_v5  ;;  %v1399_v33 = vmax.f32 %v1335_v7, %v1367_v29  ;;  %v1449_v36 = vadd.f32 %v2515_v8, %v1393_v23  ;;  %v1401_v2 = vmax.f32 %v1337_v11, %v1369_v19 }
 0x173   : > { %v1448_v63 = vadd.f32 %v2515_v8, %v1392_v20  ;;  %v2782_v3 = vmax.f32 %v2426_v52, %v2459_v10  ;;  %v1450_v6 = vadd.f32 %v2515_v8, %v1394_v32  ;;  %v2783_v7 = vmax.f32 %v2428_v53, %v2465_v13  ;;  %v2537_v20 = vpop.permute.xlu1 %1439 }
 0x174   : > { %v1479_v28 = vmax.f32 %v1447_v27, 0.0  ;;  %v1455_v29 = vadd.f32 %v2517_v12, %v1399_v33  ;;  %v1481_v31 = vmax.f32 %v1449_v36, 0.0  ;;  %v1457_v9 = vadd.f32 %v2517_v12, %v1401_v2 }
 0x175   : > { %v1400_v24 = vmax.f32 %v2782_v3, %v1368_v16  ;;  %v1402_v14 = vmax.f32 %v2783_v7, %v1370_v34  ;;  %v1480_v23 = vmax.f32 %v1448_v63, 0.0  ;;  %v979_v11 = vpop.f32.mrb[28].mxu0  ;;  %v1482_v52 = vmax.f32 %v1450_v6, 0.0  ;;  %v1092_v37 = vpop.f32.mrb[28].mxu1 }
 0x176   : > { %v1487_v16 = vmax.f32 %v1455_v29, 0.0  ;;  %v1375_v19 = vmax.f32 %v959_v41, %v979_v11  ;;  %v981_v53 = vpop.f32.mrb[29].mxu0  ;;  %v1489_v39 = vmax.f32 %v1457_v9, 0.0  ;;  %v1377_v40 = vmax.f32 %v2501_v42, %v1092_v37  ;;  %v1094_v35 = vpop.f32.mrb[29].mxu1 }
 0x177   : > { %v1456_v51 = vadd.f32 %v2517_v12, %v1400_v24  ;;  %v1458_v10 = vadd.f32 %v2517_v12, %v1402_v14  ;;  %v1886_v13 = vpack.c.bf16 %v1480_v23, %v1479_v28  ;;  %v983_v47 = vpop.f32.mrb[30].mxu0  ;;  %v1887_v50 = vpack.c.bf16 %v1482_v52, %v1481_v31  ;;  %v1096_v5 = vpop.f32.mrb[30].mxu1 }
 0x178   : > { %v2784_v0 = vmax.f32 %v2430_v54, %v2469_v15  ;;  %v1376_v4 = vmax.f32 %v2503_v43, %v981_v53  ;;  %v985_v32 = vpop.f32.mrb[31].mxu0  ;;  %v2785_v42 = vmax.f32 %v2432_v55, %v2473_v17  ;;  %v1378_v33 = vmax.f32 %v2505_v44, %v1094_v35  ;;  %v1098_v15 = vpop.f32.mrb[31].mxu1 }
 0x179   : > { %v1488_v38 = vmax.f32 %v1456_v51, 0.0  ;;  %v1490_v62 = vmax.f32 %v1458_v10, 0.0  ;;  %1607 = vst [vmem:[%s2548_s12] sm:$0xff] %v1886_v13  ;;  %v1383_v54 = vmax.f32 %v2507_v45, %v983_v47  ;;  %1608 = vst [vmem:[%s2548_s12 + $0x8] sm:$0xff] %v1887_v50  ;;  %v2786_v34 = vmax.f32 %v2434_v56, %v2475_v18  ;;  %v2562_v3 = vpop.permute.xlu1 %1444 }
 0x17a   : > { %v1407_v1 = vmax.f32 %v2784_v0, %v1375_v19  ;;  %v1409_v27 = vmax.f32 %v2785_v42, %v1377_v40  ;;  %v1385_v2 = vmax.f32 %v2509_v46, %v1096_v5  ;;  %v2787_v55 = vmax.f32 %v2436_v57, %v2481_v21 }
 0x17b   : > { %v1890_v41 = vpack.c.bf16 %v1488_v38, %v1487_v16  ;;  %v1891_v43 = vpack.c.bf16 %v1490_v62, %v1489_v39  ;;  %v1408_v63 = vmax.f32 %v2786_v34, %v1376_v4  ;;  %v2788_v45 = vmax.f32 %v2438_v58, %v2483_v22 }
 0x17c   : > { %v1463_v36 = vadd.f32 %v2537_v20, %v1407_v1  ;;  %v1410_v17 = vmax.f32 %v2787_v55, %v1378_v33  ;;  %v1465_v44 = vadd.f32 %v2537_v20, %v1409_v27  ;;  %v1384_v56 = vmax.f32 %v2511_v48, %v985_v32 }
 0x17d   : > { %1611 = vst [vmem:[%s2548_s12 + $0x20] sm:$0xff] %v1890_v41  ;;  %v1415_v24 = vmax.f32 %v2788_v45, %v1383_v54  ;;  %1612 = vst [vmem:[%s2548_s12 + $0x28] sm:$0xff] %v1891_v43  ;;  %v1464_v18 = vadd.f32 %v2537_v20, %v1408_v63  ;;  %v2789_v46 = vmax.f32 %v2440_v59, %v2489_v25  ;;  %v2584_v48 = vpop.f32.mrb[32].mxu0  ;;  %v2590_v25 = vpop.f32.mrb[32].mxu1 }
 0x17e   : > { %v1495_v6 = vmax.f32 %v1463_v36, 0.0  ;;  %v1386_v7 = vmax.f32 %v2513_v49, %v1098_v15  ;;  %v1466_v57 = vadd.f32 %v2537_v20, %v1410_v17  ;;  %v1497_v21 = vmax.f32 %v1465_v44, 0.0  ;;  %v2592_v49 = vpop.f32.mrb[33].mxu0  ;;  %v2595_v9 = vpop.f32.mrb[33].mxu1 }
 0x17f   : > { %v1417_v28 = vmax.f32 %v2789_v46, %v1385_v2  ;;  %v2790_v14 = vmax.f32 %v2442_v60, %v2491_v26  ;;  %v1471_v22 = vadd.f32 %v2562_v3, %v1415_v24  ;;  %v1496_v29 = vmax.f32 %v1464_v18, 0.0  ;;  %v2597_v11 = vpop.f32.mrb[34].mxu0  ;;  %v2600_v10 = vpop.f32.mrb[34].mxu1 }
 0x180   : > { %v2791_v23 = vmax.f32 %v2444_v61, %v2497_v30  ;;  %v1498_v51 = vmax.f32 %v1466_v57, 0.0  ;;  %v2602_v16 = vpop.f32.mrb[35].mxu0  ;;  %v2604_v53 = vpop.f32.mrb[35].mxu1 }
 0x181   : > { %v1416_v58 = vmax.f32 %v2790_v14, %v1384_v56  ;;  %v1473_v59 = vadd.f32 %v2562_v3, %v1417_v28  ;;  %v1503_v26 = vmax.f32 %v1471_v22, 0.0  ;;  %v1894_v61 = vpack.c.bf16 %v1496_v29, %v1495_v6 }
 0x182   : > { %v1418_v31 = vmax.f32 %v2791_v23, %v1386_v7  ;;  %v1895_v19 = vpack.c.bf16 %v1498_v51, %v1497_v21 }
 0x183   : > { %v1472_v60 = vadd.f32 %v2562_v3, %v1416_v58  ;;  %v1505_v52 = vmax.f32 %v1473_v59, 0.0  ;;  %1615 = vst [vmem:[%s2548_s12 + $0x40] sm:$0xff] %v1894_v61 }
 0x184   : > { %v1474_v30 = vadd.f32 %v2562_v3, %v1418_v31  ;;  %1616 = vst [vmem:[%s2548_s12 + $0x48] sm:$0xff] %v1895_v19 }
 0x185   : > { %v1504_v37 = vmax.f32 %v1472_v60, 0.0  ;;  %v2609_v40 = vpop.f32.mrb[36].mxu0  ;;  %v2612_v35 = vpop.f32.mrb[36].mxu1 }
 0x186   : > { %v1506_v13 = vmax.f32 %v1474_v30, 0.0  ;;  %v2614_v47 = vpop.f32.mrb[37].mxu0  ;;  %v2616_v50 = vpop.f32.mrb[37].mxu1 }
 0x187   : > { %v1898_v38 = vpack.c.bf16 %v1504_v37, %v1503_v26  ;;  %v2618_v62 = vpop.f32.mrb[38].mxu0  ;;  %v2620_v0 = vpop.f32.mrb[38].mxu1 }
 0x188   : > { %v1899_v39 = vpack.c.bf16 %v1506_v13, %v1505_v52  ;;  %v2622_v1 = vpop.f32.mrb[39].mxu0  ;;  %v2624_v4 = vpop.f32.mrb[39].mxu1 }
 0x189   : > { %1619 = vst [vmem:[%s2548_s12 + $0x60] sm:$0xff] %v1898_v38 }
 0x18a   : > { %1620 = vst [vmem:[%s2548_s12 + $0x68] sm:$0xff] %v1899_v39 }
 0x18d   : > { %v1155_v5 = vpop.f32.mrb[40].mxu0  ;;  %v1268_v41 = vpop.f32.mrb[40].mxu1 }
 0x18e   : > { %v1331_v32 = vmax.f32 %v2584_v48, %v1155_v5  ;;  %v1157_v42 = vpop.f32.mrb[41].mxu0  ;;  %v1333_v27 = vmax.f32 %v2590_v25, %v1268_v41  ;;  %v1270_v54 = vpop.f32.mrb[41].mxu1 }
 0x18f   : > { %v1332_v33 = vmax.f32 %v2592_v49, %v1157_v42  ;;  %v1159_v15 = vpop.f32.mrb[42].mxu0  ;;  %v1334_v43 = vmax.f32 %v2595_v9, %v1270_v54  ;;  %v2631_v63 = vpop.f32.mrb[42].mxu1 }
 0x190   : > { %v1339_v34 = vmax.f32 %v2597_v11, %v1159_v15  ;;  %v2633_v36 = vpop.f32.mrb[43].mxu0  ;;  %v1341_v2 = vmax.f32 %v2600_v10, %v2631_v63  ;;  %v2639_v17 = vpop.f32.mrb[43].mxu1 }
 0x191   : > { %v1340_v55 = vmax.f32 %v2602_v16, %v2633_v36  ;;  %v1342_v44 = vmax.f32 %v2604_v53, %v2639_v17 }
 0x195   : > { %v2643_v45 = vpop.f32.mrb[44].mxu0  ;;  %v2647_v56 = vpop.f32.mrb[44].mxu1 }
 0x196   : > { %v2649_v18 = vpop.f32.mrb[45].mxu0  ;;  %v2655_v28 = vpop.f32.mrb[45].mxu1 }
 0x197   : > { %v2657_v7 = vpop.f32.mrb[46].mxu0  ;;  %v2663_v14 = vpop.f32.mrb[46].mxu1 }
 0x198   : > { %v2665_v58 = vpop.f32.mrb[47].mxu0  ;;  %v2671_v29 = vpop.f32.mrb[47].mxu1 }
 0x19d   : > { %v1175_v31 = vpop.f32.mrb[48].mxu0  ;;  %v1288_v59 = vpop.f32.mrb[48].mxu1 }
 0x19e   : > { %v1177_v25 = vpop.f32.mrb[49].mxu0  ;;  %v1290_v49 = vpop.f32.mrb[49].mxu1 }
 0x19f   : > { %v1179_v51 = vpop.f32.mrb[50].mxu0  ;;  %v1292_v60 = vpop.f32.mrb[50].mxu1 }
 0x1a0   : > { %v1181_v26 = vpop.f32.mrb[51].mxu0  ;;  %v1294_v9 = vpop.f32.mrb[51].mxu1 }
 0x1a5   : > { %v1185_v11 = vpop.f32.mrb[52].mxu0  ;;  %v2675_v61 = vpop.f32.mrb[52].mxu1 }
 0x1a6   : > { %v2677_v30 = vpop.f32.mrb[53].mxu0  ;;  %v2679_v52 = vpop.f32.mrb[53].mxu1 }
 0x1a7   : > { %v2681_v10 = vpop.f32.mrb[54].mxu0  ;;  %v2683_v16 = vpop.f32.mrb[54].mxu1 }
 0x1a8   : > { %v2685_v19 = vpop.f32.mrb[55].mxu0  ;;  %v2687_v37 = vpop.f32.mrb[55].mxu1 }
 0x1ad   : > { %v1195_v53 = vpop.f32.mrb[56].mxu0  ;;  %v1308_v38 = vpop.f32.mrb[56].mxu1 }
 0x1ae   : > { %v1363_v13 = vmax.f32 %v1175_v31, %v1195_v53  ;;  %v1197_v39 = vpop.f32.mrb[57].mxu0  ;;  %v1365_v5 = vmax.f32 %v1288_v59, %v1308_v38  ;;  %v1310_v42 = vpop.f32.mrb[57].mxu1 }
 0x1af   : > { %v1364_v41 = vmax.f32 %v1177_v25, %v1197_v39  ;;  %v1199_v54 = vpop.f32.mrb[58].mxu0  ;;  %v1366_v63 = vmax.f32 %v1290_v49, %v1310_v42  ;;  %v1312_v17 = vpop.f32.mrb[58].mxu1 }
 0x1b0   : > { %v1395_v15 = vmax.f32 %v1331_v32, %v1363_v13  ;;  %v1371_v36 = vmax.f32 %v1179_v51, %v1199_v54  ;;  %v1201_v23 = vpop.f32.mrb[59].mxu0  ;;  %v1397_v48 = vmax.f32 %v1333_v27, %v1365_v5  ;;  %v1373_v21 = vmax.f32 %v1292_v60, %v1312_v17  ;;  %v1314_v46 = vpop.f32.mrb[59].mxu1 }
 0x1b1   : > { %v1396_v22 = vmax.f32 %v1332_v33, %v1364_v41  ;;  %v1372_v57 = vmax.f32 %v1181_v26, %v1201_v23  ;;  %v1398_v24 = vmax.f32 %v1334_v43, %v1366_v63  ;;  %v1374_v53 = vmax.f32 %v1294_v9, %v1314_v46 }
 0x1b2   : > { %v1451_v6 = vadd.f32 %v2515_v8, %v1395_v15  ;;  %v1403_v31 = vmax.f32 %v1339_v34, %v1371_v36  ;;  %v1453_v59 = vadd.f32 %v2515_v8, %v1397_v48  ;;  %v1405_v38 = vmax.f32 %v1341_v2, %v1373_v21 }
 0x1b3   : > { %v1452_v25 = vadd.f32 %v2515_v8, %v1396_v22  ;;  %v1404_v32 = vmax.f32 %v1340_v55, %v1372_v57  ;;  %v1454_v51 = vadd.f32 %v2515_v8, %v1398_v24  ;;  %v1406_v33 = vmax.f32 %v1342_v44, %v1374_v53 }
 0x1b4   : > { %v1483_v49 = vmax.f32 %v1451_v6, 0.0  ;;  %v1459_v27 = vadd.f32 %v2517_v12, %v1403_v31  ;;  %v1485_v60 = vmax.f32 %v1453_v59, 0.0  ;;  %v1461_v26 = vadd.f32 %v2517_v12, %v1405_v38 }
 0x1b5   : > { %v1484_v23 = vmax.f32 %v1452_v25, 0.0  ;;  %v1460_v43 = vadd.f32 %v2517_v12, %v1404_v32  ;;  %v1205_v34 = vpop.f32.mrb[60].mxu0  ;;  %v1486_v46 = vmax.f32 %v1454_v51, 0.0  ;;  %v1462_v48 = vadd.f32 %v2517_v12, %v1406_v33  ;;  %v1318_v55 = vpop.f32.mrb[60].mxu1 }
 0x1b6   : > { %v1491_v9 = vmax.f32 %v1459_v27, 0.0  ;;  %v1379_v2 = vmax.f32 %v1185_v11, %v1205_v34  ;;  %v1207_v6 = vpop.f32.mrb[61].mxu0  ;;  %v1493_v8 = vmax.f32 %v1461_v26, 0.0  ;;  %v1381_v44 = vmax.f32 %v2675_v61, %v1318_v55  ;;  %v1320_v21 = vpop.f32.mrb[61].mxu1 }
 0x1b7   : > { %v1888_v57 = vpack.c.bf16 %v1484_v23, %v1483_v49  ;;  %v1492_v24 = vmax.f32 %v1460_v43, 0.0  ;;  %v1209_v22 = vpop.f32.mrb[62].mxu0  ;;  %v1889_v13 = vpack.c.bf16 %v1486_v46, %v1485_v60  ;;  %v1494_v39 = vmax.f32 %v1462_v48, 0.0  ;;  %v1322_v11 = vpop.f32.mrb[62].mxu1  ;;  %v1655_v48 = vld [vmem:[%s2548_s12 + $0x28] sm:$0xff] (%p2031_p5) }
 0x1b8   : > { %v2792_v5 = vmax.f32 %v2609_v40, %v2643_v45  ;;  %v1380_v12 = vmax.f32 %v2677_v30, %v1207_v6  ;;  %v1211_v42 = vpop.f32.mrb[63].mxu0  ;;  %v2793_v15 = vmax.f32 %v2612_v35, %v2647_v56  ;;  %v1382_v63 = vmax.f32 %v2679_v52, %v1320_v21  ;;  %v1324_v17 = vpop.f32.mrb[63].mxu1  ;;  %1656 = vst [vmem:[%s1632_s20 + $0x48] sm:$0xff] (%p2031_p5), %v1655_v48  ;;  %v1661_v6 = vld [vmem:[%s2548_s12 + $0x40] sm:$0xff] (%p2031_p5)  ;;  %v1671_v21 = vld [vmem:[%s2548_s12 + $0x68] sm:$0xff] (%p2031_p5) }
 0x1b9   : > { %1609 = vst [vmem:[%s2548_s12 + $0x10] sm:$0xff] %v1888_v57  ;;  %v1892_v54 = vpack.c.bf16 %v1492_v24, %v1491_v9  ;;  %v1387_v36 = vmax.f32 %v2681_v10, %v1209_v22  ;;  %1610 = vst [vmem:[%s2548_s12 + $0x18] sm:$0xff] %v1889_v13  ;;  %v1893_v40 = vpack.c.bf16 %v1494_v39, %v1493_v8  ;;  %v1653_v9 = vld [vmem:[%s2548_s12 + $0x20] sm:$0xff] (%p2031_p5)  ;;  %v1663_v57 = vld [vmem:[%s2548_s12 + $0x48] sm:$0xff] (%p2031_p5) }
 0x1ba   : > { %v1411_v41 = vmax.f32 %v2792_v5, %v1379_v2  ;;  %v1413_v61 = vmax.f32 %v2793_v15, %v1381_v44  ;;  %v2794_v30 = vmax.f32 %v2614_v47, %v2649_v18  ;;  %v1389_v53 = vmax.f32 %v2683_v16, %v1322_v11  ;;  %1654 = vst [vmem:[%s1632_s20 + $0x40] sm:$0xff] (%p2031_p5), %v1653_v9  ;;  %v1669_v44 = vld [vmem:[%s2548_s12 + $0x60] sm:$0xff] (%p2031_p5) }
 0x1bb   : > { %1613 = vst [vmem:[%s2548_s12 + $0x30] sm:$0xff] %v1892_v54  ;;  %v2795_v35 = vmax.f32 %v2616_v50, %v2655_v28  ;;  %v2796_v52 = vmax.f32 %v2618_v62, %v2657_v7  ;;  %v1388_v25 = vmax.f32 %v2685_v19, %v1211_v42  ;;  %1614 = vst [vmem:[%s2548_s12 + $0x38] sm:$0xff] %v1893_v40 }
 0x1bc   : > { %v1467_v45 = vadd.f32 %v2537_v20, %v1411_v41  ;;  %v1412_v31 = vmax.f32 %v2794_v30, %v1380_v12  ;;  %v1469_v59 = vadd.f32 %v2537_v20, %v1413_v61  ;;  %v2797_v18 = vmax.f32 %v2620_v0, %v2663_v14  ;;  %1662 = vst [vmem:[%s1632_s20 + $0x80] sm:$0xff] (%p2031_p5), %v1661_v6 }
 0x1bd   : > { %v1414_v56 = vmax.f32 %v2795_v35, %v1382_v63  ;;  %v1419_v10 = vmax.f32 %v2796_v52, %v1387_v36  ;;  %v1390_v32 = vmax.f32 %v2687_v37, %v1324_v17  ;;  %v2798_v28 = vmax.f32 %v2622_v1, %v2665_v58  ;;  %1664 = vst [vmem:[%s1632_s20 + $0x88] sm:$0xff] (%p2031_p5), %v1663_v57 }
 0x1be   : > { %v1499_v38 = vmax.f32 %v1467_v45, 0.0  ;;  %v1468_v47 = vadd.f32 %v2537_v20, %v1412_v31  ;;  %v1421_v16 = vmax.f32 %v2797_v18, %v1389_v53  ;;  %v1501_v49 = vmax.f32 %v1469_v59, 0.0  ;;  %1670 = vst [vmem:[%s1632_s20 + $0xc0] sm:$0xff] (%p2031_p5), %v1669_v44  ;;  %1672 = vst [vmem:[%s1632_s20 + $0xc8] sm:$0xff] (%p2031_p5), %v1671_v21 }
 0x1bf   : > { %v1470_v50 = vadd.f32 %v2537_v20, %v1414_v56  ;;  %v1475_v62 = vadd.f32 %v2562_v3, %v1419_v10  ;;  %v1420_v7 = vmax.f32 %v2798_v28, %v1388_v25  ;;  %v2799_v0 = vmax.f32 %v2624_v4, %v2671_v29  ;;  %v1647_v4 = vld [vmem:[%s2548_s12 + $0x8] sm:$0xff] (%p2031_p5) }
 0x1c0   : > { %v1500_v19 = vmax.f32 %v1468_v47, 0.0  ;;  %v1477_v51 = vadd.f32 %v2562_v3, %v1421_v16  ;;  %v1649_v29 = vld [vmem:[%s2548_s12 + $0x10] sm:$0xff] (%p2031_p5)  ;;  %v1651_v46 = vld [vmem:[%s2548_s12 + $0x18] sm:$0xff] (%p2031_p5)  ;;  %1648 = vst [vmem:[%s1632_s20 + $0x8] sm:$0xff] (%p2031_p5), %v1647_v4 }
 0x1c1   : > { %v1422_v14 = vmax.f32 %v2799_v0, %v1390_v32  ;;  %v1502_v37 = vmax.f32 %v1470_v50, 0.0  ;;  %v1507_v27 = vmax.f32 %v1475_v62, 0.0  ;;  %v1476_v20 = vadd.f32 %v2562_v3, %v1420_v7  ;;  %1650 = vst [vmem:[%s1632_s20 + $0x10] sm:$0xff] (%p2031_p5), %v1649_v29  ;;  %1652 = vst [vmem:[%s1632_s20 + $0x18] sm:$0xff] (%p2031_p5), %v1651_v46 }
 0x1c2   : > { %v1896_v33 = vpack.c.bf16 %v1500_v19, %v1499_v38  ;;  %v1509_v60 = vmax.f32 %v1477_v51, 0.0  ;;  %v1657_v2 = vld [vmem:[%s2548_s12 + $0x30] sm:$0xff] (%p2031_p5)  ;;  %v1659_v55 = vld [vmem:[%s2548_s12 + $0x38] sm:$0xff] (%p2031_p5) }
 0x1c3   : > { %v1478_v23 = vadd.f32 %v2562_v3, %v1422_v14  ;;  %v1897_v26 = vpack.c.bf16 %v1502_v37, %v1501_v49  ;;  %v1508_v1 = vmax.f32 %v1476_v20, 0.0  ;;  %1629 = sbr.rel (!%p2031_p5) target bundleno = 466 (0x1d2), region = 59  ;;  %v1645_v3 = vld [vmem:[%s2548_s12] sm:$0xff] (%p2031_p5)  ;;  %1658 = vst [vmem:[%s1632_s20 + $0x50] sm:$0xff] (%p2031_p5), %v1657_v2  ;;  %1660 = vst [vmem:[%s1632_s20 + $0x58] sm:$0xff] (%p2031_p5), %v1659_v55 }
 0x1c4   : > { %1617 = vst [vmem:[%s2548_s12 + $0x50] sm:$0xff] %v1896_v33  ;;  %1646 = vst [vmem:[%s1632_s20] sm:$0xff] (%p2031_p5), %v1645_v3 }
 0x1c5   : > { %v1510_v58 = vmax.f32 %v1478_v23, 0.0  ;;  %1618 = vst [vmem:[%s2548_s12 + $0x58] sm:$0xff] %v1897_v26  ;;  %v1900_v43 = vpack.c.bf16 %v1508_v1, %v1507_v27 }
 0x1c7   : > { %v1901_v34 = vpack.c.bf16 %v1510_v58, %v1509_v60  ;;  %1621 = vst [vmem:[%s2548_s12 + $0x70] sm:$0xff] %v1900_v43 }
 0x1c9   : > { %1622 = vst [vmem:[%s2548_s12 + $0x78] sm:$0xff] %v1901_v34 }
 0x1cb   : > { %v1665_v8 = vld [vmem:[%s2548_s12 + $0x50] sm:$0xff] }
 0x1cc   : > { %v1667_v24 = vld [vmem:[%s2548_s12 + $0x58] sm:$0xff]  ;;  %1666 = vst [vmem:[%s1632_s20 + $0x90] sm:$0xff] %v1665_v8 }
 0x1cd   : > { %1668 = vst [vmem:[%s1632_s20 + $0x98] sm:$0xff] %v1667_v24 }
 0x1ce   : > { %v1673_v22 = vld [vmem:[%s2548_s12 + $0x70] sm:$0xff] }
 0x1cf   : > { %1674 = vst [vmem:[%s1632_s20 + $0xd0] sm:$0xff] %v1673_v22 }
 0x1d0   : > { %v1675_v13 = vld [vmem:[%s2548_s12 + $0x78] sm:$0xff] }
 0x1d1   : > { %1676 = vst [vmem:[%s1632_s20 + $0xd8] sm:$0xff] %v1675_v13 }
 0x1d2 PF: > { %p10_p10 = scmp.ge.s32.totalorder %s2018_s16, 4   ;;  %s2800_s12 = smov %s1974_s13 }
 0x1d3   : > { %s2801_s13 = smov %s2029_s19  ;;  %s2802_s14 = smov %s2018_s16 }
 0x1d4   :  { %12 = sbr.rel (!%p10_p10) target bundleno = 2 (0x2), region = 113 }

// kernel: ac_model_forward.6
= control target key start
LH: loop header
LB: loop body
LE: loop exit
PB: predicated region body
PF: predicated region fallthrough
CT: control target
= control target key end

     0   :  { %s1995_s12 = smov 0   ;;  %s1997_s13 = smov 0   ;;  %s2663_s0 = inlined_call_operand.vmem [shape: bf16[256,288], index: 0, kind: input, shape index: {}]   ;;  %s2664_s1 = inlined_call_operand.vmem [shape: f32[64,1], index: 1, kind: input, shape index: {}]   ;;  %s2665_s2 = inlined_call_operand.vmem [shape: bf16[288,512], index: 2, kind: input, shape index: {}]   ;;  %s2666_s3 = inlined_call_operand.vmem [shape: bf16[64,512], index: 3, kind: output, shape index: {}]  }
   0x1   :  { %s1999_s14 = smov 0  }
   0x2 LB: > { %s1608_s15 = sadd.s32 4294967295, %s1972_s14   ;;  %s2012_s16 = sadd.s32 1, %s1972_s14   ;;  %s1972_s14 = sphi %s1999_s14, %s2732_s14   ;;  %s1968_s13 = sphi %s1997_s13, %s2731_s13   ;;  %s1964_s12 = sphi %s1995_s12, %s2730_s12  }
   0x3   : > { %s59_s17 = ssub.s32 %s1972_s14, %s2012_s16  ;;  %s62_s18 = sadd.s32 1, %s1968_s13 }
   0x4   : > { %p60_p0 = scmp.eq.s32.totalorder %s59_s17, 0  ;;  %p69_p1 = scmp.ne.s32.totalorder %s1968_s13, %s1964_s12 }
   0x5   : > { %p70_p2 = scmp.eq.s32.totalorder %s1972_s14, 0  ;;  %p99_p3 = scmp.eq.s32.totalorder %s1608_s15, 1 }
   0x6   : > { %s2023_s19 = scalar_select %p60_p0, %s1968_s13, %s62_s18  }
   0x7   : > { %p71_p4 = por %p70_p2, %p69_p1  ;;  %p2025_p5 = por %p99_p3, %p69_p1 }
   0x8   : > { %p1611_p6 = scmp.ge.s32.totalorder %s1972_s14, 2 }
   0xa   : > { %127 = sbr.rel (%p1611_p6) target bundleno = 39 (0x27), region = 24 }
  0x11   : > { %130 = sbr.rel (!%p71_p4) target bundleno = 39 (0x27), region = 28  ;;  %s132_s21 = sand.u32 (%p71_p4), 1, %s1968_s13  }
  0x12   : > { %s1729_s22 = sshll.u32 (%p71_p4), %s1972_s14, 3  ;;  %s1803_s23 = smul.u32 (%p71_p4), 288, %s132_s21 }
  0x13   : > { %s2035_s26 = scalar_lea.vmem (%p71_p4), %s2665_s2, %s1729_s22 }
  0x14   : > { %v235_v0 = vld [vmem:[%s2035_s26] sm:$0xff] (%p71_p4)  ;;  %v237_v1 = vld [vmem:[%s2035_s26 + $0x10] sm:$0xff] (%p71_p4)  ;;  %s2043_s27 = scalar_lea.vmem (%p71_p4), [#allocation2], %s1803_s23 }
  0x15   : > { %v239_v2 = vld [vmem:[%s2035_s26 + $0x20] sm:$0xff] (%p71_p4)  ;;  %v241_v3 = vld [vmem:[%s2035_s26 + $0x30] sm:$0xff] (%p71_p4)  ;;  %236 = vst [vmem:[%s2043_s27] sm:$0xff] (%p71_p4), %v235_v0  ;;  %238 = vst [vmem:[%s2043_s27 + $0x8] sm:$0xff] (%p71_p4), %v237_v1 }
  0x16   : > { %v243_v4 = vld [vmem:[%s2035_s26 + $0x40] sm:$0xff] (%p71_p4)  ;;  %v245_v5 = vld [vmem:[%s2035_s26 + $0x50] sm:$0xff] (%p71_p4)  ;;  %240 = vst [vmem:[%s2043_s27 + $0x10] sm:$0xff] (%p71_p4), %v239_v2  ;;  %242 = vst [vmem:[%s2043_s27 + $0x18] sm:$0xff] (%p71_p4), %v241_v3 }
  0x17   : > { %244 = vst [vmem:[%s2043_s27 + $0x20] sm:$0xff] (%p71_p4), %v243_v4  ;;  %246 = vst [vmem:[%s2043_s27 + $0x28] sm:$0xff] (%p71_p4), %v245_v5  ;;  %v247_v6 = vld [vmem:[%s2035_s26 + $0x60] sm:$0xff] (%p71_p4)  ;;  %v249_v7 = vld [vmem:[%s2035_s26 + $0x70] sm:$0xff] (%p71_p4) }
  0x18   : > { %v251_v8 = vld [vmem:[%s2035_s26 + $0x80] sm:$0xff]  ;;  %248 = vst [vmem:[%s2043_s27 + $0x30] sm:$0xff] %v247_v6  ;;  %250 = vst [vmem:[%s2043_s27 + $0x38] sm:$0xff] %v249_v7  ;;  %v253_v9 = vld [vmem:[%s2035_s26 + $0x90] sm:$0xff] }
  0x19   : > { %252 = vst [vmem:[%s2043_s27 + $0x40] sm:$0xff] %v251_v8  ;;  %v255_v10 = vld [vmem:[%s2035_s26 + $0xa0] sm:$0xff]  ;;  %v257_v11 = vld [vmem:[%s2035_s26 + $0xb0] sm:$0xff]  ;;  %254 = vst [vmem:[%s2043_s27 + $0x48] sm:$0xff] %v253_v9 }
  0x1a   : > { %256 = vst [vmem:[%s2043_s27 + $0x50] sm:$0xff] %v255_v10  ;;  %258 = vst [vmem:[%s2043_s27 + $0x58] sm:$0xff] %v257_v11  ;;  %v259_v12 = vld [vmem:[%s2035_s26 + $0xc0] sm:$0xff]  ;;  %v261_v13 = vld [vmem:[%s2035_s26 + $0xd0] sm:$0xff] }
  0x1b   : > { %v263_v14 = vld [vmem:[%s2035_s26 + $0xe0] sm:$0xff]  ;;  %260 = vst [vmem:[%s2043_s27 + $0x60] sm:$0xff] %v259_v12  ;;  %262 = vst [vmem:[%s2043_s27 + $0x68] sm:$0xff] %v261_v13  ;;  %v265_v15 = vld [vmem:[%s2035_s26 + $0xf0] sm:$0xff] }
  0x1c   : > { %264 = vst [vmem:[%s2043_s27 + $0x70] sm:$0xff] %v263_v14  ;;  %v267_v16 = vld [vmem:[%s2035_s26 + $0x100] sm:$0xff]  ;;  %v269_v17 = vld [vmem:[%s2035_s26 + $0x110] sm:$0xff]  ;;  %266 = vst [vmem:[%s2043_s27 + $0x78] sm:$0xff] %v265_v15 }
  0x1d   : > { %268 = vst [vmem:[%s2043_s27 + $0x80] sm:$0xff] %v267_v16  ;;  %270 = vst [vmem:[%s2043_s27 + $0x88] sm:$0xff] %v269_v17  ;;  %v271_v18 = vld [vmem:[%s2035_s26 + $0x120] sm:$0xff]  ;;  %v273_v19 = vld [vmem:[%s2035_s26 + $0x130] sm:$0xff] }
  0x1e   : > { %v275_v20 = vld [vmem:[%s2035_s26 + $0x140] sm:$0xff]  ;;  %272 = vst [vmem:[%s2043_s27 + $0x90] sm:$0xff] %v271_v18  ;;  %274 = vst [vmem:[%s2043_s27 + $0x98] sm:$0xff] %v273_v19  ;;  %v277_v21 = vld [vmem:[%s2035_s26 + $0x150] sm:$0xff] }
  0x1f   : > { %276 = vst [vmem:[%s2043_s27 + $0xa0] sm:$0xff] %v275_v20  ;;  %v279_v22 = vld [vmem:[%s2035_s26 + $0x160] sm:$0xff]  ;;  %v281_v23 = vld [vmem:[%s2035_s26 + $0x170] sm:$0xff]  ;;  %278 = vst [vmem:[%s2043_s27 + $0xa8] sm:$0xff] %v277_v21 }
  0x20   : > { %280 = vst [vmem:[%s2043_s27 + $0xb0] sm:$0xff] %v279_v22  ;;  %282 = vst [vmem:[%s2043_s27 + $0xb8] sm:$0xff] %v281_v23  ;;  %v283_v24 = vld [vmem:[%s2035_s26 + $0x180] sm:$0xff]  ;;  %v285_v25 = vld [vmem:[%s2035_s26 + $0x190] sm:$0xff] }
  0x21   : > { %v287_v26 = vld [vmem:[%s2035_s26 + $0x1a0] sm:$0xff]  ;;  %284 = vst [vmem:[%s2043_s27 + $0xc0] sm:$0xff] %v283_v24  ;;  %286 = vst [vmem:[%s2043_s27 + $0xc8] sm:$0xff] %v285_v25  ;;  %v289_v27 = vld [vmem:[%s2035_s26 + $0x1b0] sm:$0xff] }
  0x22   : > { %288 = vst [vmem:[%s2043_s27 + $0xd0] sm:$0xff] %v287_v26  ;;  %v291_v28 = vld [vmem:[%s2035_s26 + $0x1c0] sm:$0xff]  ;;  %v293_v29 = vld [vmem:[%s2035_s26 + $0x1d0] sm:$0xff]  ;;  %290 = vst [vmem:[%s2043_s27 + $0xd8] sm:$0xff] %v289_v27 }
  0x23   : > { %292 = vst [vmem:[%s2043_s27 + $0xe0] sm:$0xff] %v291_v28  ;;  %294 = vst [vmem:[%s2043_s27 + $0xe8] sm:$0xff] %v293_v29  ;;  %v295_v30 = vld [vmem:[%s2035_s26 + $0x1e0] sm:$0xff]  ;;  %v297_v31 = vld [vmem:[%s2035_s26 + $0x1f0] sm:$0xff] }
  0x24   : > { %v299_v32 = vld [vmem:[%s2035_s26 + $0x200] sm:$0xff]  ;;  %296 = vst [vmem:[%s2043_s27 + $0xf0] sm:$0xff] %v295_v30  ;;  %298 = vst [vmem:[%s2043_s27 + $0xf8] sm:$0xff] %v297_v31  ;;  %v301_v33 = vld [vmem:[%s2035_s26 + $0x210] sm:$0xff] }
  0x25   : > { %300 = vst [vmem:[%s2043_s27 + $0x100] sm:$0xff] %v299_v32  ;;  %v303_v34 = vld [vmem:[%s2035_s26 + $0x220] sm:$0xff]  ;;  %v305_v35 = vld [vmem:[%s2035_s26 + $0x230] sm:$0xff]  ;;  %302 = vst [vmem:[%s2043_s27 + $0x108] sm:$0xff] %v301_v33 }
  0x26   : > { %304 = vst [vmem:[%s2043_s27 + $0x110] sm:$0xff] %v303_v34  ;;  %306 = vst [vmem:[%s2043_s27 + $0x118] sm:$0xff] %v305_v35 }
  0x27 PF: > { %p1614_p7 = scmp.ge.s32.totalorder %s1972_s14, 1  ;;  %p311_p8 = scmp.lt.s32.totalorder %s1972_s14, 3 }
  0x29   : > { %p312_p9 = pnand %p1614_p7, %p311_p8 }
  0x2b   : > { %315 = sbr.rel (%p312_p9) target bundleno = 475 (0x1db), region = 66 }
  0x32   : > { %s318_s28 = sand.u32 1, %s1964_s12   ;;  %v1974_v36 = vmov 0   ;;  %v1889_v37 = vld [vmem:[%s2663_s0 + $0x4] ss:$12 sps:$4 sm:$0xff]   ;;  %v1886_v57 = vld [vmem:[%s2663_s0 + $0x8] ss:$12 sps:$4 sm:$0xff]  }
  0x33   : > { %s1804_s29 = smul.u32 288, %s318_s28  ;;  %1137 = vmatprep.mubr.bf16.mxu0 %v1974_v36  ;;  %1830 = vset.pattern.permute.xlu0 %v1974_v36  ;;  %vm863_vm0 = vcmask 261120   ;;  %v1890_v62 = vld [vmem:[%s2663_s0 + $0x20] ss:$12 sps:$4 sm:$0xff]   ;;  %v1894_v3 = vld [vmem:[%s2663_s0 + $0x38] ss:$12 sps:$4 sm:$0xff]  }
  0x34   : > { %1831 = vset.pattern.permute.xlu1 %v1974_v36  ;;  %944 = vmatprep.mubr.bf16.mxu1 %v1889_v37  ;;  %v1898_v8 = vld [vmem:[%s2663_s0 + $0x50] ss:$12 sps:$4 sm:$0xff]   ;;  %v1902_v13 = vld [vmem:[%s2663_s0 + $0x68] ss:$12 sps:$4 sm:$0xff]   ;;  %v1346_v14 = vld [vmem:[%s2664_s1] sm:$0xff] }
  0x35   : > { %s2122_s5 = scalar_lea.vmem [#allocation2], %s1804_s29  ;;  %v1348_v15 = vld [vmem:[%s2664_s1 + $0x10] sm:$0xff]  ;;  %1356 = vperm.xlu0 %1830, %v1346_v14   ;;  %v1347_v17 = vld [vmem:[%s2664_s1 + $0x8] sm:$0xff]  ;;  %v1349_v18 = vld [vmem:[%s2664_s1 + $0x18] sm:$0xff]  ;;  %s1615_s29 = sshll.u32 %s318_s28, 6 }
  0x36   : > { %v1832_v38 = vld [vmem:[%s2122_s5 + $0x4] ss:$8 sps:$4 sm:$0xff]   ;;  %v1834_v39 = vld [vmem:[%s2122_s5] ss:$8 sps:$4 sm:$0xff]   ;;  %v1835_v40 = vld [vmem:[%s2122_s5 + $0x14] ss:$8 sps:$4 sm:$0xff]   ;;  %1366 = vperm.xlu1 %1831, %v1348_v15  }
  0x37   : > { %912 = vmatprep.subr.bf16.mxu1 %v1832_v38  ;;  %v1837_v41 = vld [vmem:[%s2122_s5 + $0x10] ss:$8 sps:$4 sm:$0xff]   ;;  %v1838_v42 = vld [vmem:[%s2122_s5 + $0x24] ss:$8 sps:$4 sm:$0xff]   ;;  %v1840_v43 = vld [vmem:[%s2122_s5 + $0x20] ss:$8 sps:$4 sm:$0xff]  }
  0x38   : > { %913 = vmatpush1.bf16.msra.mxu1 %v1834_v39  ;;  %v1841_v44 = vld [vmem:[%s2122_s5 + $0x34] ss:$8 sps:$4 sm:$0xff]   ;;  %v1843_v45 = vld [vmem:[%s2122_s5 + $0x30] ss:$8 sps:$4 sm:$0xff]   ;;  %v1844_v46 = vld [vmem:[%s2122_s5 + $0x44] ss:$8 sps:$4 sm:$0xff]  }
  0x39   : > { %914 = vmatprep.subr.bf16.mxu1 %v1835_v40  ;;  %v1846_v47 = vld [vmem:[%s2122_s5 + $0x40] ss:$8 sps:$4 sm:$0xff]   ;;  %v1847_v48 = vld [vmem:[%s2122_s5 + $0x54] ss:$8 sps:$4 sm:$0xff]   ;;  %v1849_v49 = vld [vmem:[%s2122_s5 + $0x50] ss:$8 sps:$4 sm:$0xff]   ;;  %1361 = vperm.xlu0 %1830, %v1347_v17  }
  0x3a   : > { %v1874_v50 = vld [vmem:[%s2122_s5 + $0x104] ss:$8 sps:$4 sm:$0xff]   ;;  %v1876_v51 = vld [vmem:[%s2122_s5 + $0x100] ss:$8 sps:$4 sm:$0xff]   ;;  %v1880_v53 = vld [vmem:[%s2122_s5 + $0x114] ss:$8 sps:$4 sm:$0xff]   ;;  %1371 = vperm.xlu1 %1831, %v1349_v18  }
  0x3b   : > { %v1850_v52 = vld [vmem:[%s2122_s5 + $0x64] ss:$8 sps:$4 sm:$0xff]   ;;  %1105 = vmatprep.subr.bf16.mxu0 %v1874_v50  ;;  %v1882_v54 = vld [vmem:[%s2122_s5 + $0x110] ss:$8 sps:$4 sm:$0xff]   ;;  %v1852_v55 = vld [vmem:[%s2122_s5 + $0x60] ss:$8 sps:$4 sm:$0xff]  }
  0x3c   : > { %915 = vmatpush1.bf16.msra.mxu1 %v1837_v41  ;;  %1106 = vmatpush1.bf16.msra.mxu0 %v1876_v51  ;;  %v1853_v56 = vld [vmem:[%s2122_s5 + $0x74] ss:$8 sps:$4 sm:$0xff]   ;;  %v1855_v58 = vld [vmem:[%s2122_s5 + $0x70] ss:$8 sps:$4 sm:$0xff]   ;;  %v1856_v59 = vld [vmem:[%s2122_s5 + $0x84] ss:$8 sps:$4 sm:$0xff]  }
  0x3d   : > { %916 = vmatprep.subr.bf16.mxu1 %v1838_v42  ;;  %1107 = vmatprep.subr.bf16.mxu0 %v1880_v53  ;;  %v1858_v60 = vld [vmem:[%s2122_s5 + $0x80] ss:$8 sps:$4 sm:$0xff]   ;;  %v1859_v61 = vld [vmem:[%s2122_s5 + $0x94] ss:$8 sps:$4 sm:$0xff]   ;;  %v1861_v63 = vld [vmem:[%s2122_s5 + $0x90] ss:$8 sps:$4 sm:$0xff]  }
  0x3e   : > { %v1862_v0 = vld [vmem:[%s2122_s5 + $0xa4] ss:$8 sps:$4 sm:$0xff]   ;;  %v1864_v1 = vld [vmem:[%s2122_s5 + $0xa0] ss:$8 sps:$4 sm:$0xff]   ;;  %v1865_v2 = vld [vmem:[%s2122_s5 + $0xb4] ss:$8 sps:$4 sm:$0xff]  }
  0x3f   : > { %v1867_v4 = vld [vmem:[%s2122_s5 + $0xb0] ss:$8 sps:$4 sm:$0xff]   ;;  %v1868_v5 = vld [vmem:[%s2122_s5 + $0xc4] ss:$8 sps:$4 sm:$0xff]   ;;  %v1870_v6 = vld [vmem:[%s2122_s5 + $0xc0] ss:$8 sps:$4 sm:$0xff]  }
  0x40   : > { %917 = vmatpush1.bf16.msra.mxu1 %v1840_v43  ;;  %1108 = vmatpush1.bf16.msra.mxu0 %v1882_v54  ;;  %v1871_v7 = vld [vmem:[%s2122_s5 + $0xd4] ss:$8 sps:$4 sm:$0xff]   ;;  %v1873_v9 = vld [vmem:[%s2122_s5 + $0xd0] ss:$8 sps:$4 sm:$0xff]   ;;  %v1877_v10 = vld [vmem:[%s2122_s5 + $0xe4] ss:$8 sps:$4 sm:$0xff]  }
  0x41   : > { %918 = vmatprep.subr.bf16.mxu1 %v1841_v44  ;;  %v1879_v11 = vld [vmem:[%s2122_s5 + $0xe0] ss:$8 sps:$4 sm:$0xff]   ;;  %v1883_v12 = vld [vmem:[%s2122_s5 + $0xf4] ss:$8 sps:$4 sm:$0xff]   ;;  %v1885_v16 = vld [vmem:[%s2122_s5 + $0xf0] ss:$8 sps:$4 sm:$0xff]  }
  0x42   : > { %v1887_v19 = vld [vmem:[%s2663_s0] ss:$12 sps:$4 sm:$0xff]   ;;  %v1891_v20 = vld [vmem:[%s2663_s0 + $0x1c] ss:$12 sps:$4 sm:$0xff]   ;;  %v1352_v24 = vld [vmem:[%s2664_s1 + $0x30] sm:$0xff]  ;;  %s2578_s12 = scalar_lea.vmem [#allocation3], %s1615_s29 }
  0x43   : > { %1700 = vmatmul.mubr.msk.bf16.vlgmr.msra.gmra.mrb[0].mxu0 %vm863_vm0, %v1886_v57  ;;  %v1350_v21 = vld [vmem:[%s2664_s1 + $0x20] sm:$0xff]  ;;  %v1351_v23 = vld [vmem:[%s2664_s1 + $0x28] sm:$0xff]  ;;  %v1353_v25 = vld [vmem:[%s2664_s1 + $0x38] sm:$0xff]  ;;  %s1738_s28 = sshll.u32 (%p2025_p5), %s1608_s15, 3 }
  0x44   : > { %919 = vmatpush1.bf16.msra.mxu1 %v1843_v45  ;;  %1147 = vmatprep.mubr.bf16.mxu0 %v1974_v36  ;;  %v1906_v22 = vld [vmem:[%s2663_s0 + $0x80] ss:$12 sps:$4 sm:$0xff]   ;;  %v1893_v26 = vld [vmem:[%s2663_s0 + $0x18] ss:$12 sps:$4 sm:$0xff]   ;;  %v1897_v29 = vld [vmem:[%s2663_s0 + $0x30] ss:$12 sps:$4 sm:$0xff]   ;;  %s1491_s6 = scalar_lea.vmem (%p2025_p5), %s2666_s3, %s1738_s28 }
  0x45   : > { %920 = vmatprep.subr.bf16.mxu1 %v1844_v46  ;;  %1376 = vperm.xlu0 %1830, %v1350_v21   ;;  %v1895_v27 = vld [vmem:[%s2663_s0 + $0x34] ss:$12 sps:$4 sm:$0xff]   ;;  %v1910_v28 = vld [vmem:[%s2663_s0 + $0x98] ss:$12 sps:$4 sm:$0xff]   ;;  %v1914_v31 = vld [vmem:[%s2663_s0 + $0xb0] ss:$12 sps:$4 sm:$0xff]  }
  0x46   : > { %1381 = vperm.xlu1 %1831, %v1351_v23   ;;  %v1899_v30 = vld [vmem:[%s2663_s0 + $0x4c] ss:$12 sps:$4 sm:$0xff]   ;;  %v1901_v32 = vld [vmem:[%s2663_s0 + $0x48] ss:$12 sps:$4 sm:$0xff]   ;;  %v1903_v33 = vld [vmem:[%s2663_s0 + $0x64] ss:$12 sps:$4 sm:$0xff]  }
  0x47   : > { %v1918_v34 = vld [vmem:[%s2663_s0 + $0xc8] ss:$12 sps:$4 sm:$0xff]   ;;  %v1905_v35 = vld [vmem:[%s2663_s0 + $0x60] ss:$12 sps:$4 sm:$0xff]   ;;  %v1909_v39 = vld [vmem:[%s2663_s0 + $0x78] ss:$12 sps:$4 sm:$0xff]  }
  0x48   : > { %921 = vmatpush1.bf16.msra.mxu1 %v1846_v47  ;;  %v1907_v37 = vld [vmem:[%s2663_s0 + $0x7c] ss:$12 sps:$4 sm:$0xff]   ;;  %v1922_v38 = vld [vmem:[%s2663_s0 + $0xe0] ss:$12 sps:$4 sm:$0xff]   ;;  %v1926_v41 = vld [vmem:[%s2663_s0 + $0xf8] ss:$12 sps:$4 sm:$0xff]  }
  0x49   : > { %922 = vmatprep.subr.bf16.mxu1 %v1847_v48  ;;  %1386 = vperm.xlu0 %1830, %v1352_v24   ;;  %v1911_v40 = vld [vmem:[%s2663_s0 + $0x94] ss:$12 sps:$4 sm:$0xff]   ;;  %v1913_v42 = vld [vmem:[%s2663_s0 + $0x90] ss:$12 sps:$4 sm:$0xff]   ;;  %v1915_v43 = vld [vmem:[%s2663_s0 + $0xac] ss:$12 sps:$4 sm:$0xff]  }
  0x4a   : > { %1391 = vperm.xlu1 %1831, %v1353_v25   ;;  %v1930_v44 = vld [vmem:[%s2663_s0 + $0x110] ss:$12 sps:$4 sm:$0xff]   ;;  %v1917_v45 = vld [vmem:[%s2663_s0 + $0xa8] ss:$12 sps:$4 sm:$0xff]   ;;  %v1921_v48 = vld [vmem:[%s2663_s0 + $0xc0] ss:$12 sps:$4 sm:$0xff]  }
  0x4b   : > { %1701 = vmatmul.mubr.msk.bf16.gmra.mrb[4].mxu0 %vm863_vm0, %v1890_v62  ;;  %v1919_v46 = vld [vmem:[%s2663_s0 + $0xc4] ss:$12 sps:$4 sm:$0xff]   ;;  %v1934_v47 = vld [vmem:[%s2663_s0 + $0x128] ss:$12 sps:$4 sm:$0xff]   ;;  %v1938_v50 = vld [vmem:[%s2663_s0 + $0x140] ss:$12 sps:$4 sm:$0xff]  }
  0x4c   : > { %923 = vmatpush1.bf16.msra.mxu1 %v1849_v49  ;;  %1157 = vmatprep.mubr.bf16.mxu0 %v1974_v36  ;;  %v1923_v49 = vld [vmem:[%s2663_s0 + $0xdc] ss:$12 sps:$4 sm:$0xff]   ;;  %v1925_v51 = vld [vmem:[%s2663_s0 + $0xd8] ss:$12 sps:$4 sm:$0xff]  }
  0x4d   : > { %924 = vmatprep.subr.bf16.mxu1 %v1850_v52  ;;  %v1927_v52 = vld [vmem:[%s2663_s0 + $0xf4] ss:$12 sps:$4 sm:$0xff]   ;;  %v1942_v53 = vld [vmem:[%s2663_s0 + $0x158] ss:$12 sps:$4 sm:$0xff]   ;;  %v1929_v54 = vld [vmem:[%s2663_s0 + $0xf0] ss:$12 sps:$4 sm:$0xff]  }
  0x4e   : > { %v1933_v57 = vld [vmem:[%s2663_s0 + $0x108] ss:$12 sps:$4 sm:$0xff]   ;;  %v1945_v62 = vld [vmem:[%s2663_s0 + $0x150] ss:$12 sps:$4 sm:$0xff]  }
  0x50   : > { %925 = vmatpush1.bf16.msra.mxu1 %v1852_v55  ;;  %v1931_v55 = vld [vmem:[%s2663_s0 + $0x10c] ss:$12 sps:$4 sm:$0xff]  }
  0x51   : > { %926 = vmatprep.subr.bf16.mxu1 %v1853_v56  ;;  %v1946_v56 = vld [vmem:[%s2663_s0 + $0x170] ss:$12 sps:$4 sm:$0xff]  }
  0x53   : > { %1702 = vmatmul.mubr.msk.bf16.gmra.mrb[8].mxu0 %vm863_vm0, %v1894_v3 }
  0x54   : > { %927 = vmatpush1.bf16.msra.mxu1 %v1855_v58  ;;  %1167 = vmatprep.mubr.bf16.mxu0 %v1974_v36  ;;  %v1937_v58 = vld [vmem:[%s2663_s0 + $0x120] ss:$12 sps:$4 sm:$0xff]  }
  0x55   : > { %928 = vmatprep.subr.bf16.mxu1 %v1856_v59  ;;  %v1939_v59 = vld [vmem:[%s2663_s0 + $0x13c] ss:$12 sps:$4 sm:$0xff]  }
  0x58   : > { %929 = vmatpush1.bf16.msra.mxu1 %v1858_v60  ;;  %v1941_v60 = vld [vmem:[%s2663_s0 + $0x138] ss:$12 sps:$4 sm:$0xff]  }
  0x59   : > { %930 = vmatprep.subr.bf16.mxu1 %v1859_v61  ;;  %v1943_v61 = vld [vmem:[%s2663_s0 + $0x154] ss:$12 sps:$4 sm:$0xff]  }
  0x5b   : > { %1703 = vmatmul.mubr.msk.bf16.gmra.mrb[12].mxu0 %vm863_vm0, %v1898_v8 }
  0x5c   : > { %931 = vmatpush1.bf16.msra.mxu1 %v1861_v63  ;;  %1177 = vmatprep.mubr.bf16.mxu0 %v1974_v36  ;;  %v1947_v63 = vld [vmem:[%s2663_s0 + $0x16c] ss:$12 sps:$4 sm:$0xff]  }
  0x5d   : > { %932 = vmatprep.subr.bf16.mxu1 %v1862_v0  ;;  %v1949_v0 = vld [vmem:[%s2663_s0 + $0x168] ss:$12 sps:$4 sm:$0xff]  }
  0x60   : > { %933 = vmatpush1.bf16.msra.mxu1 %v1864_v1 }
  0x61   : > { %934 = vmatprep.subr.bf16.mxu1 %v1865_v2 }
  0x63   : > { %1704 = vmatmul.mubr.msk.bf16.gmra.mrb[16].mxu0 %vm863_vm0, %v1902_v13 }
  0x64   : > { %935 = vmatpush1.bf16.msra.mxu1 %v1867_v4  ;;  %1187 = vmatprep.mubr.bf16.mxu0 %v1974_v36 }
  0x65   : > { %936 = vmatprep.subr.bf16.mxu1 %v1868_v5 }
  0x68   : > { %937 = vmatpush1.bf16.msra.mxu1 %v1870_v6 }
  0x69   : > { %938 = vmatprep.subr.bf16.mxu1 %v1871_v7 }
  0x6b   : > { %1705 = vmatmul.mubr.msk.bf16.gmra.mrb[20].mxu0 %vm863_vm0, %v1906_v22 }
  0x6c   : > { %939 = vmatpush1.bf16.msra.mxu1 %v1873_v9  ;;  %1197 = vmatprep.mubr.bf16.mxu0 %v1974_v36 }
  0x6d   : > { %940 = vmatprep.subr.bf16.mxu1 %v1877_v10 }
  0x70   : > { %941 = vmatpush1.bf16.msra.mxu1 %v1879_v11 }
  0x71   : > { %942 = vmatprep.subr.bf16.mxu1 %v1883_v12 }
  0x73   : > { %1706 = vmatmul.mubr.msk.bf16.gmra.mrb[24].mxu0 %vm863_vm0, %v1910_v28 }
  0x74   : > { %943 = vmatpush1.bf16.msra.mxu1 %v1885_v16  ;;  %1207 = vmatprep.mubr.bf16.mxu0 %v1974_v36 }
  0x77   : > { %945 = vmatmul.mubr.bf16.vlgmr.msra.gmra.mrb[0].mxu1 %v1887_v19 }
  0x78   : > { %954 = vmatprep.mubr.bf16.mxu1 %v1891_v20 }
  0x7b   : > { %1707 = vmatmul.mubr.msk.bf16.gmra.mrb[28].mxu0 %vm863_vm0, %v1914_v31 }
  0x7c   : > { %1217 = vmatprep.mubr.bf16.mxu0 %v1974_v36 }
  0x7f   : > { %955 = vmatmul.mubr.bf16.gmra.mrb[4].mxu1 %v1893_v26 }
  0x80   : > { %964 = vmatprep.mubr.bf16.mxu1 %v1895_v27 }
  0x83   : > { %1708 = vmatmul.mubr.msk.bf16.gmra.mrb[32].mxu0 %vm863_vm0, %v1918_v34 }
  0x84   : > { %1227 = vmatprep.mubr.bf16.mxu0 %v1974_v36 }
  0x87   : > { %965 = vmatmul.mubr.bf16.gmra.mrb[8].mxu1 %v1897_v29 }
  0x88   : > { %974 = vmatprep.mubr.bf16.mxu1 %v1899_v30 }
  0x8b   : > { %1709 = vmatmul.mubr.msk.bf16.gmra.mrb[36].mxu0 %vm863_vm0, %v1922_v38 }
  0x8c   : > { %1237 = vmatprep.mubr.bf16.mxu0 %v1974_v36 }
  0x8f   : > { %975 = vmatmul.mubr.bf16.gmra.mrb[12].mxu1 %v1901_v32 }
  0x90   : > { %984 = vmatprep.mubr.bf16.mxu1 %v1903_v33 }
  0x93   : > { %1710 = vmatmul.mubr.msk.bf16.gmra.mrb[40].mxu0 %vm863_vm0, %v1926_v41 }
  0x94   : > { %1247 = vmatprep.mubr.bf16.mxu0 %v1974_v36 }
  0x97   : > { %985 = vmatmul.mubr.bf16.gmra.mrb[16].mxu1 %v1905_v35 }
  0x98   : > { %994 = vmatprep.mubr.bf16.mxu1 %v1907_v37 }
  0x9b   : > { %1711 = vmatmul.mubr.msk.bf16.gmra.mrb[44].mxu0 %vm863_vm0, %v1930_v44 }
  0x9c   : > { %1257 = vmatprep.mubr.bf16.mxu0 %v1974_v36 }
  0x9f   : > { %995 = vmatmul.mubr.bf16.gmra.mrb[20].mxu1 %v1909_v39 }
  0xa0   : > { %1004 = vmatprep.mubr.bf16.mxu1 %v1911_v40 }
  0xa3   : > { %1712 = vmatmul.mubr.msk.bf16.gmra.mrb[48].mxu0 %vm863_vm0, %v1934_v47 }
  0xa4   : > { %1267 = vmatprep.mubr.bf16.mxu0 %v1974_v36 }
  0xa7   : > { %1005 = vmatmul.mubr.bf16.gmra.mrb[24].mxu1 %v1913_v42 }
  0xa8   : > { %1014 = vmatprep.mubr.bf16.mxu1 %v1915_v43 }
  0xab   : > { %1713 = vmatmul.mubr.msk.bf16.gmra.mrb[52].mxu0 %vm863_vm0, %v1938_v50 }
  0xac   : > { %1277 = vmatprep.mubr.bf16.mxu0 %v1974_v36 }
  0xaf   : > { %1015 = vmatmul.mubr.bf16.gmra.mrb[28].mxu1 %v1917_v45 }
  0xb0   : > { %1024 = vmatprep.mubr.bf16.mxu1 %v1919_v46 }
  0xb3   : > { %1714 = vmatmul.mubr.msk.bf16.gmra.mrb[56].mxu0 %vm863_vm0, %v1942_v53 }
  0xb4   : > { %1287 = vmatprep.mubr.bf16.mxu0 %v1974_v36  ;;  %v1935_v36 = vld [vmem:[%s2663_s0 + $0x124] ss:$12 sps:$4 sm:$0xff]  }
  0xb7   : > { %1025 = vmatmul.mubr.bf16.gmra.mrb[32].mxu1 %v1921_v48 }
  0xb8   : > { %1034 = vmatprep.mubr.bf16.mxu1 %v1923_v49 }
  0xbb   : > { %1715 = vmatmul.mubr.msk.bf16.gmra.mrb[60].mxu0 %vm863_vm0, %v1946_v56 }
  0xbf   : > { %1035 = vmatmul.mubr.bf16.gmra.mrb[36].mxu1 %v1925_v51 }
  0xc0   : > { %1044 = vmatprep.mubr.bf16.mxu1 %v1927_v52 }
  0xc7   : > { %1045 = vmatmul.mubr.bf16.gmra.mrb[40].mxu1 %v1929_v54 }
  0xc8   : > { %1054 = vmatprep.mubr.bf16.mxu1 %v1931_v55 }
  0xcf   : > { %1055 = vmatmul.mubr.bf16.gmra.mrb[44].mxu1 %v1933_v57 }
  0xd0   : > { %1064 = vmatprep.mubr.bf16.mxu1 %v1935_v36 }
  0xd7   : > { %1065 = vmatmul.mubr.bf16.gmra.mrb[48].mxu1 %v1937_v58 }
  0xd8   : > { %1074 = vmatprep.mubr.bf16.mxu1 %v1939_v59 }
  0xdf   : > { %1075 = vmatmul.mubr.bf16.gmra.mrb[52].mxu1 %v1941_v60 }
  0xe0   : > { %1084 = vmatprep.mubr.bf16.mxu1 %v1943_v61 }
  0xe7   : > { %1085 = vmatmul.mubr.bf16.gmra.mrb[56].mxu1 %v1945_v62 }
  0xe8   : > { %1094 = vmatprep.mubr.bf16.mxu1 %v1947_v63 }
  0xef   : > { %1095 = vmatmul.mubr.bf16.gmra.mrb[60].mxu1 %v1949_v0 }
 0x116   : > { %v1139_v1 = vpop.f32.mrb[0].mxu0 }
 0x117   : > { %v1141_v2 = vpop.f32.mrb[1].mxu0 }
 0x118   : > { %v1143_v3 = vpop.f32.mrb[2].mxu0 }
 0x119   : > { %v1145_v4 = vpop.f32.mrb[3].mxu0 }
 0x11e   : > { %v1149_v5 = vpop.f32.mrb[4].mxu0 }
 0x11f   : > { %v1151_v6 = vpop.f32.mrb[5].mxu0 }
 0x120   : > { %v1153_v7 = vpop.f32.mrb[6].mxu0 }
 0x121   : > { %v1155_v8 = vpop.f32.mrb[7].mxu0 }
 0x126   : > { %v1159_v9 = vpop.f32.mrb[8].mxu0 }
 0x127   : > { %v1161_v10 = vpop.f32.mrb[9].mxu0 }
 0x128   : > { %v1163_v11 = vpop.f32.mrb[10].mxu0 }
 0x129   : > { %v1165_v12 = vpop.f32.mrb[11].mxu0 }
 0x12e   : > { %v1169_v13 = vpop.f32.mrb[12].mxu0 }
 0x12f   : > { %v1171_v14 = vpop.f32.mrb[13].mxu0 }
 0x130   : > { %v1173_v15 = vpop.f32.mrb[14].mxu0 }
 0x131   : > { %v1175_v16 = vpop.f32.mrb[15].mxu0 }
 0x136   : > { %v1179_v17 = vpop.f32.mrb[16].mxu0 }
 0x137   : > { %v1181_v18 = vpop.f32.mrb[17].mxu0 }
 0x138   : > { %v1183_v19 = vpop.f32.mrb[18].mxu0 }
 0x139   : > { %v1185_v20 = vpop.f32.mrb[19].mxu0 }
 0x13e   : > { %v1189_v28 = vpop.f32.mrb[20].mxu0 }
 0x13f   : > { %v1191_v30 = vpop.f32.mrb[21].mxu0 }
 0x140   : > { %v1193_v31 = vpop.f32.mrb[22].mxu0 }
 0x141   : > { %v2364_v32 = vpop.f32.mrb[23].mxu0 }
 0x146   : > { %v1199_v41 = vpop.f32.mrb[24].mxu0 }
 0x147   : > { %v1201_v43 = vpop.f32.mrb[25].mxu0 }
 0x148   : > { %v2374_v44 = vpop.f32.mrb[26].mxu0 }
 0x149   : > { %v2376_v45 = vpop.f32.mrb[27].mxu0 }
 0x14a   : > { %v946_v21 = vpop.f32.mrb[0].mxu1 }
 0x14b   : > { %v2356_v22 = vadd.f32 %v1139_v1, %v946_v21  ;;  %v948_v23 = vpop.f32.mrb[1].mxu1 }
 0x14c   : > { %v2358_v24 = vadd.f32 %v1141_v2, %v948_v23  ;;  %v950_v25 = vpop.f32.mrb[2].mxu1 }
 0x14d   : > { %v2360_v26 = vadd.f32 %v1143_v3, %v950_v25  ;;  %v952_v27 = vpop.f32.mrb[3].mxu1 }
 0x14e   : > { %v2362_v29 = vadd.f32 %v1145_v4, %v952_v27  ;;  %v2384_v53 = vpop.f32.mrb[28].mxu0 }
 0x14f   : > { %v2388_v55 = vpop.f32.mrb[29].mxu0 }
 0x150   : > { %v2390_v56 = vpop.f32.mrb[30].mxu0 }
 0x151   : > { %v2392_v57 = vpop.f32.mrb[31].mxu0 }
 0x152   : > { %v956_v33 = vpop.f32.mrb[4].mxu1 }
 0x153   : > { %v2366_v34 = vadd.f32 %v1149_v5, %v956_v33  ;;  %v958_v35 = vpop.f32.mrb[5].mxu1 }
 0x154   : > { %v2368_v37 = vadd.f32 %v1151_v6, %v958_v35  ;;  %v960_v38 = vpop.f32.mrb[6].mxu1 }
 0x155   : > { %v2370_v39 = vadd.f32 %v1153_v7, %v960_v38  ;;  %v962_v40 = vpop.f32.mrb[7].mxu1 }
 0x156   : > { %v2372_v42 = vadd.f32 %v1155_v8, %v962_v40  ;;  %v2400_v0 = vpop.f32.mrb[32].mxu0 }
 0x157   : > { %v2404_v2 = vpop.f32.mrb[33].mxu0 }
 0x158   : > { %v2406_v3 = vpop.f32.mrb[34].mxu0 }
 0x159   : > { %v2408_v4 = vpop.f32.mrb[35].mxu0 }
 0x15a   : > { %v966_v46 = vpop.f32.mrb[8].mxu1 }
 0x15b   : > { %v2378_v47 = vadd.f32 %v1159_v9, %v966_v46  ;;  %v968_v48 = vpop.f32.mrb[9].mxu1 }
 0x15c   : > { %v2380_v49 = vadd.f32 %v1161_v10, %v968_v48  ;;  %v970_v50 = vpop.f32.mrb[10].mxu1 }
 0x15d   : > { %v2382_v51 = vadd.f32 %v1163_v11, %v970_v50  ;;  %v972_v52 = vpop.f32.mrb[11].mxu1 }
 0x15e   : > { %v2386_v54 = vadd.f32 %v1165_v12, %v972_v52 }
 0x15f   : > { %2680 = vst [vmem:[#allocation4_spill] sm:$0xff] %v2382_v51 }
 0x160   : > { %2681 = vst [vmem:[#allocation5_spill] sm:$0xff] %v2386_v54 }
 0x162   : > { %v976_v36 = vpop.f32.mrb[12].mxu1 }
 0x163   : > { %v2394_v58 = vadd.f32 %v1169_v13, %v976_v36  ;;  %v978_v59 = vpop.f32.mrb[13].mxu1  ;;  %v2418_v13 = vpop.f32.mrb[36].mxu0 }
 0x164   : > { %v2396_v60 = vadd.f32 %v1171_v14, %v978_v59  ;;  %v980_v61 = vpop.f32.mrb[14].mxu1 }
 0x165   : > { %2682 = vst [vmem:[#allocation6_spill] sm:$0xff] %v2394_v58  ;;  %v2398_v62 = vadd.f32 %v1173_v15, %v980_v61  ;;  %v982_v63 = vpop.f32.mrb[15].mxu1 }
 0x166   : > { %2683 = vst [vmem:[#allocation7_spill] sm:$0xff] %v2396_v60  ;;  %v2402_v1 = vadd.f32 %v1175_v16, %v982_v63  ;;  %v2424_v16 = vpop.f32.mrb[37].mxu0 }
 0x167   : > { %2684 = vst [vmem:[#allocation8_spill] sm:$0xff] %v2398_v62 }
 0x168   : > { %2685 = vst [vmem:[#allocation9_spill] sm:$0xff] %v2402_v1 }
 0x16a   : > { %v986_v5 = vpop.f32.mrb[16].mxu1 }
 0x16b   : > { %v2410_v6 = vadd.f32 %v1179_v17, %v986_v5  ;;  %v988_v7 = vpop.f32.mrb[17].mxu1 }
 0x16c   : > { %v2412_v8 = vadd.f32 %v1181_v18, %v988_v7  ;;  %v990_v9 = vpop.f32.mrb[18].mxu1  ;;  %v2428_v18 = vpop.f32.mrb[38].mxu0 }
 0x16d   : > { %v2416_v11 = vadd.f32 %v1183_v19, %v990_v9  ;;  %v992_v12 = vpop.f32.mrb[19].mxu1  ;;  %v2432_v19 = vpop.f32.mrb[39].mxu0 }
 0x16e   : > { %v2422_v15 = vadd.f32 %v1185_v20, %v992_v12  ;;  %v2442_v46 = vpop.f32.mrb[40].mxu0 }
 0x172   : > { %v996_v23 = vpop.f32.mrb[20].mxu1 }
 0x173   : > { %v2434_v25 = vadd.f32 %v1189_v28, %v996_v23  ;;  %v998_v27 = vpop.f32.mrb[21].mxu1  ;;  %v2449_v28 = vpop.f32.mrb[41].mxu0 }
 0x174   : > { %v2436_v33 = vadd.f32 %v1191_v30, %v998_v27  ;;  %v1000_v20 = vpop.f32.mrb[22].mxu1  ;;  %v2453_v52 = vpop.f32.mrb[42].mxu0 }
 0x175   : > { %v2440_v38 = vadd.f32 %v1193_v31, %v1000_v20  ;;  %v1002_v40 = vpop.f32.mrb[23].mxu1  ;;  %v2457_v36 = vpop.f32.mrb[43].mxu0 }
 0x176   : > { %v2447_v50 = vadd.f32 %v2364_v32, %v1002_v40  ;;  %v1249_v23 = vpop.f32.mrb[44].mxu0 }
 0x17a   : > { %v1006_v59 = vpop.f32.mrb[24].mxu1 }
 0x17b   : > { %v2459_v61 = vadd.f32 %v1199_v41, %v1006_v59  ;;  %v1008_v63 = vpop.f32.mrb[25].mxu1  ;;  %v1251_v41 = vpop.f32.mrb[45].mxu0 }
 0x17c   : > { %v2461_v5 = vadd.f32 %v1201_v43, %v1008_v63  ;;  %v1010_v32 = vpop.f32.mrb[26].mxu1  ;;  %v1253_v40 = vpop.f32.mrb[46].mxu0 }
 0x17d   : > { %v2466_v9 = vadd.f32 %v2374_v44, %v1010_v32  ;;  %v1012_v12 = vpop.f32.mrb[27].mxu1  ;;  %v1255_v63 = vpop.f32.mrb[47].mxu0 }
 0x17e   : > { %v2471_v20 = vadd.f32 %v2376_v45, %v1012_v12  ;;  %v1259_v30 = vpop.f32.mrb[48].mxu0 }
 0x17f   : > { %2686 = vst [vmem:[#allocation10_spill] sm:$0xff] %v2466_v9 }
 0x180   : > { %2687 = vst [vmem:[#allocation11_spill] sm:$0xff] %v2471_v20 }
 0x182   : > { %v1016_v7 = vpop.f32.mrb[28].mxu1 }
 0x183   : > { %v2478_v44 = vadd.f32 %v2384_v53, %v1016_v7  ;;  %v1018_v32 = vpop.f32.mrb[29].mxu1  ;;  %v1261_v53 = vpop.f32.mrb[49].mxu0 }
 0x184   : > { %v2481_v31 = vadd.f32 %v2388_v55, %v1018_v32  ;;  %v1020_v27 = vpop.f32.mrb[30].mxu1  ;;  %v1263_v7 = vpop.f32.mrb[50].mxu0 }
 0x185   : > { %2688 = vst [vmem:[#allocation12_spill] sm:$0xff] %v2478_v44  ;;  %v2486_v12 = vadd.f32 %v2390_v56, %v1020_v27  ;;  %v1022_v43 = vpop.f32.mrb[31].mxu1  ;;  %v1265_v45 = vpop.f32.mrb[51].mxu0 }
 0x186   : > { %2689 = vst [vmem:[#allocation13_spill] sm:$0xff] %v2481_v31  ;;  %v2491_v48 = vadd.f32 %v2392_v57, %v1022_v43  ;;  %v1269_v43 = vpop.f32.mrb[52].mxu0 }
 0x187   : > { %2690 = vst [vmem:[#allocation14_spill] sm:$0xff] %v2486_v12  ;;  %v2501_v10 = vpop.f32.mrb[53].mxu0 }
 0x188   : > { %2691 = vst [vmem:[#allocation15_spill] sm:$0xff] %v2491_v48  ;;  %v2503_v55 = vpop.f32.mrb[54].mxu0 }
 0x189   : > { %v2505_v12 = vpop.f32.mrb[55].mxu0 }
 0x18a   : > { %v1026_v35 = vpop.f32.mrb[32].mxu1 }
 0x18b   : > { %v1220_v56 = vadd.f32 %v2400_v0, %v1026_v35  ;;  %v1028_v27 = vpop.f32.mrb[33].mxu1 }
 0x18c   : > { %v1222_v21 = vadd.f32 %v2404_v2, %v1028_v27  ;;  %v1030_v17 = vpop.f32.mrb[34].mxu1 }
 0x18d   : > { %v1224_v59 = vadd.f32 %v2406_v3, %v1030_v17  ;;  %v1032_v57 = vpop.f32.mrb[35].mxu1 }
 0x18e   : > { %v1226_v14 = vadd.f32 %v2408_v4, %v1032_v57  ;;  %v2516_v4 = vpop.f32.mrb[56].mxu0 }
 0x18f   : > { %v2521_v57 = vpop.f32.mrb[57].mxu0 }
 0x190   : > { %v2523_v1 = vpop.f32.mrb[58].mxu0 }
 0x192   : > { %v1036_v32 = vpop.f32.mrb[36].mxu1 }
 0x193   : > { %v2508_v48 = vadd.f32 %v2418_v13, %v1036_v32  ;;  %v1038_v0 = vpop.f32.mrb[37].mxu1  ;;  %v2525_v13 = vpop.f32.mrb[59].mxu0 }
 0x194   : > { %v2511_v2 = vadd.f32 %v2424_v16, %v1038_v0  ;;  %v1040_v35 = vpop.f32.mrb[38].mxu1 }
 0x195   : > { %v2514_v3 = vadd.f32 %v2428_v18, %v1040_v35  ;;  %v1042_v17 = vpop.f32.mrb[39].mxu1 }
 0x196   : > { %v2519_v27 = vadd.f32 %v2432_v19, %v1042_v17  ;;  %v2536_v17 = vpop.f32.mrb[60].mxu0 }
 0x197   : > { %2692 = vst [vmem:[#allocation16_spill] sm:$0xff] %v2536_v17  ;;  %v2541_v60 = vpop.f32.mrb[61].mxu0 }
 0x198   : > { %2693 = vst [vmem:[#allocation17_spill] sm:$0xff] %v2541_v60  ;;  %v2543_v44 = vpop.f32.mrb[62].mxu0 }
 0x199   : > { %2694 = vst [vmem:[#allocation18_spill] sm:$0xff] %v2543_v44 }
 0x19a   : > { %v1046_v32 = vpop.f32.mrb[40].mxu1 }
 0x19b   : > { %v2528_v16 = vadd.f32 %v2442_v46, %v1046_v32  ;;  %v1048_v0 = vpop.f32.mrb[41].mxu1  ;;  %v2545_v46 = vpop.f32.mrb[63].mxu0 }
 0x19c   : > { %v2531_v18 = vadd.f32 %v2449_v28, %v1048_v0  ;;  %v1050_v35 = vpop.f32.mrb[42].mxu1  ;;  %2695 = vst [vmem:[#allocation19_spill] sm:$0xff] %v2545_v46 }
 0x19d   : > { %v2534_v62 = vadd.f32 %v2453_v52, %v1050_v35  ;;  %v1052_v19 = vpop.f32.mrb[43].mxu1 }
 0x19e   : > { %v2539_v31 = vadd.f32 %v2457_v36, %v1052_v19  ;;  %v1357_v19 = vpop.permute.xlu0 %1356 }
 0x1a2   : > { %v1056_v32 = vpop.f32.mrb[44].mxu1 }
 0x1a3   : > { %v2547_v58 = vadd.f32 %v1249_v23, %v1056_v32  ;;  %v1058_v28 = vpop.f32.mrb[45].mxu1 }
 0x1a4   : > { %v2549_v0 = vadd.f32 %v1251_v41, %v1058_v28  ;;  %v1060_v52 = vpop.f32.mrb[46].mxu1 }
 0x1a5   : > { %2696 = vst [vmem:[#allocation20_spill] sm:$0xff] %v2547_v58  ;;  %v2551_v35 = vadd.f32 %v1253_v40, %v1060_v52  ;;  %v1062_v20 = vpop.f32.mrb[47].mxu1  ;;  %v2697_v40 = vmax.f32 %v2356_v22, %v2410_v6 }
 0x1a6   : > { %v2553_v17 = vadd.f32 %v1255_v63, %v1062_v20  ;;  %v2698_v20 = vmax.f32 %v2358_v24, %v2412_v8 }
 0x1aa   : > { %v1066_v36 = vpop.f32.mrb[48].mxu1 }
 0x1ab   : > { %v1260_v54 = vadd.f32 %v1259_v30, %v1066_v36  ;;  %v1068_v60 = vpop.f32.mrb[49].mxu1  ;;  %v1362_v30 = vpop.permute.xlu0 %1361 }
 0x1ac   : > { %v1262_v44 = vadd.f32 %v1261_v53, %v1068_v60  ;;  %v1070_v9 = vpop.f32.mrb[50].mxu1  ;;  %v2699_v60 = vmax.f32 %v2360_v26, %v2416_v11 }
 0x1ad   : > { %v1314_v46 = vmax.f32 %v1220_v56, %v1260_v54  ;;  %v1264_v51 = vadd.f32 %v1263_v7, %v1070_v9  ;;  %v1072_v23 = vpop.f32.mrb[51].mxu1 }
 0x1ae   : > { %v1315_v32 = vmax.f32 %v1222_v21, %v1262_v44  ;;  %v1266_v58 = vadd.f32 %v1265_v45, %v1072_v23  ;;  %v1367_v44 = vpop.permute.xlu1 %1366 }
 0x1af   : > { %v1316_v41 = vmax.f32 %v1224_v59, %v1264_v51  ;;  %v1330_v28 = vmax.f32 %v2697_v40, %v1314_v46  ;;  %v2700_v51 = vmax.f32 %v2362_v29, %v2422_v15  ;;  %v2704_v40 = vmax.f32 %v2372_v42, %v2447_v50 }
 0x1b0   : > { %v1317_v52 = vmax.f32 %v1226_v14, %v1266_v58  ;;  %v1331_v63 = vmax.f32 %v2698_v20, %v1315_v32 }
 0x1b1   : > { %v1394_v36 = vadd.f32 %v1357_v19, %v1330_v28  ;;  %v1332_v54 = vmax.f32 %v2699_v60, %v1316_v41 }
 0x1b2   : > { %v1395_v21 = vadd.f32 %v1357_v19, %v1331_v63  ;;  %v1333_v9 = vmax.f32 %v2700_v51, %v1317_v52  ;;  %v1076_v22 = vpop.f32.mrb[52].mxu1 }
 0x1b3   : > { %v1410_v6 = vmax.f32 %v1394_v36, 0.0  ;;  %v1396_v58 = vadd.f32 %v1362_v30, %v1332_v54  ;;  %v1270_v14 = vadd.f32 %v1269_v43, %v1076_v22  ;;  %v1078_v59 = vpop.f32.mrb[53].mxu1  ;;  %v2701_v43 = vmax.f32 %v2366_v34, %v2434_v25 }
 0x1b4   : > { %v1411_v24 = vmax.f32 %v1395_v21, 0.0  ;;  %v1397_v8 = vadd.f32 %v1362_v30, %v1333_v9  ;;  %v1272_v45 = vadd.f32 %v2501_v10, %v1078_v59  ;;  %v1080_v53 = vpop.f32.mrb[54].mxu1  ;;  %v2705_v9 = vmax.f32 %v2378_v47, %v2459_v61  ;;  %v2710_v61 = vld [vmem:[#allocation5_spill] sm:$0xff] }
 0x1b5   : > { %v1412_v26 = vmax.f32 %v1396_v58, 0.0  ;;  %v1318_v11 = vmax.f32 %v2508_v48, %v1270_v14  ;;  %v1274_v7 = vadd.f32 %v2503_v55, %v1080_v53  ;;  %v1082_v56 = vpop.f32.mrb[55].mxu1  ;;  %v2702_v48 = vmax.f32 %v2368_v37, %v2436_v33  ;;  %v1377_v58 = vpop.permute.xlu0 %1376 }
 0x1b6   : > { %v1730_v46 = vpack.c.bf16 %v1411_v24, %v1410_v6  ;;  %v1413_v29 = vmax.f32 %v1397_v8, 0.0  ;;  %v1319_v15 = vmax.f32 %v2511_v2, %v1272_v45  ;;  %v1276_v19 = vadd.f32 %v2505_v12, %v1082_v56  ;;  %v2707_v24 = vld [vmem:[#allocation4_spill] sm:$0xff]  ;;  %v2711_v45 = vld [vmem:[#allocation11_spill] sm:$0xff] }
 0x1b7   : > { %v1334_v23 = vmax.f32 %v2701_v43, %v1318_v11  ;;  %v1320_v32 = vmax.f32 %v2514_v3, %v1274_v7  ;;  %v2703_v12 = vmax.f32 %v2370_v39, %v2440_v38  ;;  %v1372_v3 = vpop.permute.xlu1 %1371  ;;  %v2713_v56 = vld [vmem:[#allocation16_spill] sm:$0xff] }
 0x1b8   : > { %1474 = vst [vmem:[%s2578_s12] sm:$0xff] %v1730_v46  ;;  %v1731_v10 = vpack.c.bf16 %v1413_v29, %v1412_v26  ;;  %v1335_v55 = vmax.f32 %v2702_v48, %v1319_v15  ;;  %v1321_v2 = vmax.f32 %v2519_v27, %v1276_v19  ;;  %v2714_v29 = vld [vmem:[#allocation17_spill] sm:$0xff] }
 0x1b9   : > { %v1398_v41 = vadd.f32 %v1367_v44, %v1334_v23  ;;  %v1336_v34 = vmax.f32 %v2703_v12, %v1320_v32  ;;  %v2715_v23 = vld [vmem:[#allocation20_spill] sm:$0xff] }
 0x1ba   : > { %1475 = vst [vmem:[%s2578_s12 + $0x8] sm:$0xff] %v1731_v10  ;;  %v1399_v25 = vadd.f32 %v1367_v44, %v1335_v55  ;;  %v1337_v28 = vmax.f32 %v2704_v40, %v1321_v2  ;;  %v1086_v52 = vpop.f32.mrb[56].mxu1  ;;  %v2716_v10 = vld [vmem:[#allocation18_spill] sm:$0xff]  ;;  %v2719_v40 = vld [vmem:[#allocation12_spill] sm:$0xff] }
 0x1bb   : > { %v1414_v20 = vmax.f32 %v1398_v41, 0.0  ;;  %v1400_v63 = vadd.f32 %v1372_v3, %v1336_v34  ;;  %v1280_v37 = vadd.f32 %v2516_v4, %v1086_v52  ;;  %v1088_v33 = vpop.f32.mrb[57].mxu1  ;;  %v1382_v44 = vpop.permute.xlu1 %1381  ;;  %v2717_v34 = vld [vmem:[#allocation19_spill] sm:$0xff] }
 0x1bc   : > { %v1415_v27 = vmax.f32 %v1399_v25, 0.0  ;;  %v1401_v30 = vadd.f32 %v1372_v3, %v1337_v28  ;;  %v1282_v36 = vadd.f32 %v2521_v57, %v1088_v33  ;;  %v1090_v39 = vpop.f32.mrb[58].mxu1  ;;  %v2718_v3 = vld [vmem:[#allocation6_spill] sm:$0xff]  ;;  %v2721_v33 = vld [vmem:[#allocation7_spill] sm:$0xff] }
 0x1bd   : > { %v1416_v38 = vmax.f32 %v1400_v63, 0.0  ;;  %v1322_v60 = vmax.f32 %v2528_v16, %v1280_v37  ;;  %v1284_v54 = vadd.f32 %v2523_v1, %v1090_v39  ;;  %v1092_v42 = vpop.f32.mrb[59].mxu1  ;;  %v2706_v16 = vmax.f32 %v2380_v49, %v2461_v5  ;;  %v1387_v37 = vpop.permute.xlu0 %1386 }
 0x1be   : > { %v1732_v50 = vpack.c.bf16 %v1415_v27, %v1414_v20  ;;  %v1417_v21 = vmax.f32 %v1401_v30, 0.0  ;;  %v1323_v51 = vmax.f32 %v2531_v18, %v1282_v36  ;;  %v1286_v4 = vadd.f32 %v2525_v13, %v1092_v42  ;;  %v2708_v18 = vld [vmem:[#allocation10_spill] sm:$0xff]  ;;  %v2722_v27 = vld [vmem:[#allocation13_spill] sm:$0xff] }
 0x1bf   : > { %v1338_v22 = vmax.f32 %v2705_v9, %v1322_v60  ;;  %v1324_v57 = vmax.f32 %v2534_v62, %v1284_v54  ;;  %v2709_v8 = vmax.f32 %v2707_v24, %v2708_v18  ;;  %v2712_v62 = vmax.f32 %v2710_v61, %v2711_v45  ;;  %v2725_v60 = vld [vmem:[#allocation14_spill] sm:$0xff] }
 0x1c0   : > { %1476 = vst [vmem:[%s2578_s12 + $0x10] sm:$0xff] %v1732_v50  ;;  %v1733_v6 = vpack.c.bf16 %v1417_v21, %v1416_v38  ;;  %v1339_v1 = vmax.f32 %v2706_v16, %v1323_v51  ;;  %v1325_v14 = vmax.f32 %v2539_v31, %v1286_v4  ;;  %v2720_v28 = vmax.f32 %v2718_v3, %v2719_v40  ;;  %v2724_v38 = vld [vmem:[#allocation8_spill] sm:$0xff]  ;;  %v1392_v50 = vpop.permute.xlu1 %1391  ;;  %v2728_v51 = vld [vmem:[#allocation15_spill] sm:$0xff] }
 0x1c1   : > { %v1402_v59 = vadd.f32 %v1377_v58, %v1338_v22  ;;  %v1340_v13 = vmax.f32 %v2709_v8, %v1324_v57  ;;  %v2723_v30 = vmax.f32 %v2721_v33, %v2722_v27  ;;  %v2726_v54 = vmax.f32 %v2724_v38, %v2725_v60  ;;  %v1535_v24 = vld [vmem:[%s2578_s12 + $0x8] sm:$0xff] (%p2025_p5) }
 0x1c2   : > { %1477 = vst [vmem:[%s2578_s12 + $0x18] sm:$0xff] %v1733_v6  ;;  %v1403_v47 = vadd.f32 %v1377_v58, %v1339_v1  ;;  %v1341_v53 = vmax.f32 %v2712_v62, %v1325_v14  ;;  %v1096_v26 = vpop.f32.mrb[60].mxu1  ;;  %1536 = vst [vmem:[%s1491_s6 + $0x10] sm:$0xff] (%p2025_p5), %v1535_v24 }
 0x1c3   : > { %v1418_v11 = vmax.f32 %v1402_v59, 0.0  ;;  %v1404_v7 = vadd.f32 %v1382_v44, %v1340_v13  ;;  %v1290_v49 = vadd.f32 %v2713_v56, %v1096_v26  ;;  %v1098_v5 = vpop.f32.mrb[61].mxu1  ;;  %v1533_v59 = vld [vmem:[%s2578_s12] sm:$0xff] (%p2025_p5) }
 0x1c4   : > { %v1419_v31 = vmax.f32 %v1403_v47, 0.0  ;;  %v1405_v46 = vadd.f32 %v1382_v44, %v1341_v53  ;;  %v1292_v15 = vadd.f32 %v2714_v29, %v1098_v5  ;;  %v1100_v19 = vpop.f32.mrb[62].mxu1  ;;  %1534 = vst [vmem:[%s1491_s6] sm:$0xff] (%p2025_p5), %v1533_v59 }
 0x1c5   : > { %v1420_v43 = vmax.f32 %v1404_v7, 0.0  ;;  %v1326_v32 = vmax.f32 %v2715_v23, %v1290_v49  ;;  %v1294_v48 = vadd.f32 %v2716_v10, %v1100_v19  ;;  %v1102_v55 = vpop.f32.mrb[63].mxu1 }
 0x1c6   : > { %v1734_v2 = vpack.c.bf16 %v1419_v31, %v1418_v11  ;;  %v1421_v41 = vmax.f32 %v1405_v46, 0.0  ;;  %v1327_v12 = vmax.f32 %v2549_v0, %v1292_v15  ;;  %v1296_v25 = vadd.f32 %v2717_v34, %v1102_v55 }
 0x1c7   : > { %v1342_v52 = vmax.f32 %v2720_v28, %v1326_v32  ;;  %v1328_v20 = vmax.f32 %v2551_v35, %v1294_v48  ;;  %v2727_v35 = vld [vmem:[#allocation9_spill] sm:$0xff]  ;;  %v1537_v18 = vld [vmem:[%s2578_s12 + $0x10] sm:$0xff] (%p2025_p5) }
 0x1c8   : > { %1478 = vst [vmem:[%s2578_s12 + $0x20] sm:$0xff] %v1734_v2  ;;  %v1735_v63 = vpack.c.bf16 %v1421_v41, %v1420_v43  ;;  %v1343_v36 = vmax.f32 %v2723_v30, %v1327_v12  ;;  %v1329_v39 = vmax.f32 %v2553_v17, %v1296_v25  ;;  %v2729_v4 = vmax.f32 %v2727_v35, %v2728_v51 }
 0x1c9   : > { %v1406_v0 = vadd.f32 %v1387_v37, %v1342_v52  ;;  %v1344_v42 = vmax.f32 %v2726_v54, %v1328_v20  ;;  %v1539_v8 = vld [vmem:[%s2578_s12 + $0x18] sm:$0xff] (%p2025_p5)  ;;  %1538 = vst [vmem:[%s1491_s6 + $0x20] sm:$0xff] (%p2025_p5), %v1537_v18 }
 0x1ca   : > { %1479 = vst [vmem:[%s2578_s12 + $0x28] sm:$0xff] %v1735_v63  ;;  %v1407_v21 = vadd.f32 %v1387_v37, %v1343_v36  ;;  %v1345_v9 = vmax.f32 %v2729_v4, %v1329_v39  ;;  %1540 = vst [vmem:[%s1491_s6 + $0x30] sm:$0xff] (%p2025_p5), %v1539_v8 }
 0x1cb   : > { %v1422_v22 = vmax.f32 %v1406_v0, 0.0  ;;  %v1408_v57 = vadd.f32 %v1392_v50, %v1344_v42 }
 0x1cc   : > { %v1423_v6 = vmax.f32 %v1407_v21, 0.0  ;;  %v1409_v58 = vadd.f32 %v1392_v50, %v1345_v9  ;;  %1488 = sbr.rel (!%p2025_p5) target bundleno = 475 (0x1db), region = 74 }
 0x1cd   : > { %v1424_v16 = vmax.f32 %v1408_v57, 0.0 }
 0x1ce   : > { %v1736_v1 = vpack.c.bf16 %v1423_v6, %v1422_v22  ;;  %v1425_v17 = vmax.f32 %v1409_v58, 0.0 }
 0x1cf   : > { %v1541_v13 = vld [vmem:[%s2578_s12 + $0x20] sm:$0xff] (%p2025_p5) }
 0x1d0   : > { %1480 = vst [vmem:[%s2578_s12 + $0x30] sm:$0xff] %v1736_v1  ;;  %v1737_v14 = vpack.c.bf16 %v1425_v17, %v1424_v16  ;;  %1542 = vst [vmem:[%s1491_s6 + $0x40] sm:$0xff] (%p2025_p5), %v1541_v13 }
 0x1d1   : > { %v1543_v44 = vld [vmem:[%s2578_s12 + $0x28] sm:$0xff] (%p2025_p5) }
 0x1d2   : > { %1481 = vst [vmem:[%s2578_s12 + $0x38] sm:$0xff] %v1737_v14  ;;  %1544 = vst [vmem:[%s1491_s6 + $0x50] sm:$0xff] (%p2025_p5), %v1543_v44 }
 0x1d7   : > { %v1545_v47 = vld [vmem:[%s2578_s12 + $0x30] sm:$0xff] }
 0x1d8   : > { %1546 = vst [vmem:[%s1491_s6 + $0x60] sm:$0xff] %v1545_v47 }
 0x1d9   : > { %v1547_v61 = vld [vmem:[%s2578_s12 + $0x38] sm:$0xff] }
 0x1da   : > { %1548 = vst [vmem:[%s1491_s6 + $0x70] sm:$0xff] %v1547_v61 }
 0x1db PF: > { %p10_p10 = scmp.ge.s32.totalorder %s2012_s16, 4   ;;  %s2730_s12 = smov %s1968_s13 }
 0x1dc   : > { %s2731_s13 = smov %s2023_s19  ;;  %s2732_s14 = smov %s2012_s16 }
 0x1dd   :  { %12 = sbr.rel (!%p10_p10) target bundleno = 2 (0x2), region = 143 }

// kernel: ac_model_forward.7
= control target key start
LH: loop header
LB: loop body
LE: loop exit
PB: predicated region body
PF: predicated region fallthrough
CT: control target
= control target key end

     0   :  { %20 = vsyncpa [#allocation4], 0  ;;  %s7582_s0 = inlined_call_operand.vmem [shape: bf16[2,18944], index: 0, kind: input, shape index: {}]   ;;  %s7583_s1 = inlined_call_operand.vmem [shape: f32[2,64], index: 1, kind: input, shape index: {}]   ;;  %s7584_s2 = inlined_call_operand.vmem [shape: bf16[18944,64], index: 2, kind: input, shape index: {}]   ;;  %s7585_s3 = inlined_call_operand.vmem [shape: f32[1,64], index: 3, kind: input, shape index: {}]   ;;  %s7586_s4 = inlined_call_operand.vmem [shape: f32[384,64], index: 4, kind: input, shape index: {}]   ;;  %s7587_s5 = inlined_call_operand.vmem [shape: f32[6,64], index: 5, kind: input, shape index: {}]   ;;  %s7588_s6 = inlined_call_operand.vmem [shape: f32[128,64], index: 6, kind: input, shape index: {}]   ;;  %s7589_s7 = inlined_call_operand.vmem [shape: f32[2,64], index: 7, kind: input, shape index: {}]   ;;  %s7590_s8 = inlined_call_operand.vmem [shape: f32[128,2], index: 8, kind: input, shape index: {}]   ;;  %s7591_s9 = inlined_call_operand.vmem [shape: f32[4,2], index: 9, kind: input, shape index: {}]   ;;  %s7592_s10 = inlined_call_operand.vmem [shape: f32[4,2], index: 10, kind: input, shape index: {}]   ;;  %s7593_s11 = inlined_call_operand.hbm [shape: f32[2,2], index: 11, kind: output, shape index: {0}]   ;;  %s7594_s12 = inlined_call_operand.hbm [shape: f32[2,2], index: 12, kind: output, shape index: {1}]   ;;  %s7595_s13 = inlined_call_operand.vmem [shape: f32[2,1], index: 13, kind: output, shape index: {2}]   ;;  %s7596_s14 = inlined_call_operand.hbm [shape: f32[2,64], index: 14, kind: output, shape index: {3}]  }
   0x1   :  { %21 = vsyncpa [#allocation6], 0  ;;  %s6748_s29 = smov 0  }
   0x2 LB: > { %s6754_s30 = sadd.s32 4294967295, %s6661_s29   ;;  %p5050_p0 = scmp.ge.s32.totalorder %s6661_s29, 1  ;;  %s6661_s29 = sphi %s6748_s29, %s27_s29  }
   0x3   : > { %p412_p1 = scmp.lt.s32.totalorder %s6661_s29, 5 }
   0x5   : > { %p413_p2 = pnand %p5050_p0, %p412_p1 }
   0x6   : > { %s457_s15 = smul.u32 (!%p413_p2), 37, %s6754_s30  ;;  %p5052_p5 = scmp.ne.s32.totalorder (!%p413_p2), %s6754_s30, 0 }
   0x7   : > { %416 = sbr.rel (%p413_p2) target bundleno = 1595 (0x63b), region = 64 }
   0x8   : > { %s462_s16 = smul.u32 (!%p413_p2), 592, %s6754_s30  ;;  %p458_p3 = scmp.lt.s32.totalorder (!%p413_p2), %s457_s15, 147 }
   0xa   : > { %p463_p4 = scmp.lt.s32.totalorder (!%p413_p2), %s462_s16, 2367 }
   0xe   : > { %s7598_s15 = smov (!%p458_p3, %s457_s15), 147  ;;  %s7600_s16 = smov (!%p463_p4, %s462_s16), 2367 }
   0xf   : > { %s6763_s19 = scalar_lea.vmem %s7582_s0, %s7598_s15  ;;  %s5051_s20 = sshll.u32 %s7600_s16, 2  ;;  %vm473_vm0 = vcmask (!%p5052_p5), 517120   ;;  %v6663_v0 = vmov (!%p5052_p5), 0.0  }
  0x10   : > { %s6768_s23 = scalar_lea.vmem %s7584_s2, %s5051_s20  ;;  %472 = sbr.rel (%p5052_p5) target bundleno = 23 (0x17), region = 68  ;;  %474 = vst.msk [vmem:[#allocation2] sm:$0x3] (!%p5052_p5), %vm473_vm0, %v6663_v0 }
  0x17 PF: > { %v6248_v1 = vld [vmem:[%s6768_s23 + $0x40] sm:$0xff]   ;;  %v6252_v5 = vld [vmem:[%s6768_s23 + $0x48] sm:$0xff]   ;;  %v6256_v9 = vld [vmem:[%s6768_s23 + $0x50] sm:$0xff]   ;;  %v1082_v30 = vlaneseq  ;;  %v6664_v36 = vmov 1966171168   ;;  %vm6666_vm1 = vmmov 0  }
  0x18   : > { %v6249_v2 = vld [vmem:[%s6768_s23 + $0xc0] sm:$0xff]   ;;  %5373 = vmatprep.subr.bf16.mxu0 %v6248_v1  ;;  %v6253_v6 = vld [vmem:[%s6768_s23 + $0xc8] sm:$0xff]   ;;  %v6257_v10 = vld [vmem:[%s6768_s23 + $0xd0] sm:$0xff]   ;;  %v1080_v37 = vunpack.c.l.s4 %v6664_v36  ;;  %vm3887_vm2 = vcmask 517120   ;;  %p5349_p6 = scmp.ne.s32.totalorder %s6754_s30, 3 }
  0x19   : > { %v6250_v3 = vld [vmem:[%s6768_s23] sm:$0xff]   ;;  %5395 = vmatprep.subr.bf16.mxu1 %v6249_v2  ;;  %v6254_v7 = vld [vmem:[%s6768_s23 + $0x8] sm:$0xff]   ;;  %v6258_v11 = vld [vmem:[%s6768_s23 + $0x10] sm:$0xff]   ;;  %v6803_v34 = vshrl.u32 %v1082_v30, 7  ;;  %vm6668_vm3 = vmmov (!%p5349_p6), 0   ;;  %vm3916_vm4 = vcmask (!%p5349_p6), 523264  }
  0x1a   : > { %v6251_v4 = vld [vmem:[%s6768_s23 + $0x80] sm:$0xff]   ;;  %5374 = vmatpush3.bf16.msra.mxu0 %v6250_v3  ;;  %v6255_v8 = vld [vmem:[%s6768_s23 + $0x88] sm:$0xff]   ;;  %v6259_v12 = vld [vmem:[%s6768_s23 + $0x90] sm:$0xff]   ;;  %v1081_v40 = vunpack.c.0.s8 %v1080_v37  ;;  %vm4692_vm5 = vcmask (!%p5349_p6), 1041408   ;;  %vm4688_vm6 = vcmask (!%p5349_p6), 15360   ;;  %vm4767_vm7 = vcmask (!%p5349_p6), 9216  }
  0x1b   : > { %5396 = vmatpush3.bf16.msra.mxu1 %v6251_v4  ;;  %5375 = vmatprep.subr.bf16.mxu0 %v6252_v5  ;;  %v6260_v13 = vld [vmem:[%s6768_s23 + $0x58] sm:$0xff]   ;;  %v6264_v17 = vld [vmem:[%s6768_s23 + $0x60] sm:$0xff]   ;;  %v6268_v21 = vld [vmem:[%s6768_s23 + $0x68] sm:$0xff]   ;;  %vm4941_vm8 = vcmask (!%p5349_p6), 1024  }
  0x1c   : > { %5397 = vmatprep.subr.bf16.mxu1 %v6253_v6  ;;  %v6261_v14 = vld [vmem:[%s6768_s23 + $0xd8] sm:$0xff]   ;;  %v6265_v18 = vld [vmem:[%s6768_s23 + $0xe0] sm:$0xff]   ;;  %v6269_v22 = vld [vmem:[%s6768_s23 + $0xe8] sm:$0xff]   ;;  %v6809_v42 = vsub.s32 %v1081_v40, %v6803_v34 }
  0x1d   : > { %v6262_v15 = vld [vmem:[%s6768_s23 + $0x18] sm:$0xff]   ;;  %v6266_v19 = vld [vmem:[%s6768_s23 + $0x20] sm:$0xff]   ;;  %v6270_v23 = vld [vmem:[%s6768_s23 + $0x28] sm:$0xff]  }
  0x1e   : > { %5376 = vmatpush3.bf16.msra.mxu0 %v6254_v7  ;;  %v6263_v16 = vld [vmem:[%s6768_s23 + $0x98] sm:$0xff]   ;;  %v6267_v20 = vld [vmem:[%s6768_s23 + $0xa0] sm:$0xff]   ;;  %v6271_v24 = vld [vmem:[%s6768_s23 + $0xa8] sm:$0xff]  }
  0x1f   : > { %5398 = vmatpush3.bf16.msra.mxu1 %v6255_v8  ;;  %5377 = vmatprep.subr.bf16.mxu0 %v6256_v9  ;;  %v6272_v25 = vld [vmem:[%s6768_s23 + $0x70] sm:$0xff]   ;;  %v6276_v29 = vld [vmem:[%s6768_s23 + $0x78] sm:$0xff]   ;;  %v6281_v35 = vld [vmem:[%s6768_s23 + $0x140] sm:$0xff]  }
  0x20   : > { %5399 = vmatprep.subr.bf16.mxu1 %v6257_v10  ;;  %v6273_v26 = vld [vmem:[%s6768_s23 + $0xf0] sm:$0xff]   ;;  %v6277_v31 = vld [vmem:[%s6768_s23 + $0xf8] sm:$0xff]   ;;  %v476_v38 = vld [vmem:[%s6763_s19] sm:$0xff] }
  0x21   : > { %v6274_v27 = vld [vmem:[%s6768_s23 + $0x30] sm:$0xff]   ;;  %v6278_v32 = vld [vmem:[%s6768_s23 + $0x38] sm:$0xff]   ;;  %v1078_v39 = vcombine.high %v476_v38, %v476_v38  ;;  %v6283_v41 = vld [vmem:[%s6768_s23 + $0x1c0] sm:$0xff]   ;;  %v1085_v43 = vrot.slane %v476_v38, %v6809_v42 }
  0x22   : > { %5378 = vmatpush3.bf16.msra.mxu0 %v6258_v11  ;;  %v6275_v28 = vld [vmem:[%s6768_s23 + $0xb0] sm:$0xff]   ;;  %v6279_v33 = vld [vmem:[%s6768_s23 + $0xb8] sm:$0xff]   ;;  %v6282_v48 = vld [vmem:[%s6768_s23 + $0x100] sm:$0xff]  }
  0x23   : > { %5400 = vmatpush3.bf16.msra.mxu1 %v6259_v12  ;;  %5379 = vmatprep.subr.bf16.mxu0 %v6260_v13  ;;  %v6813_v44 = vrot.slane %v1078_v39, %v6809_v42  ;;  %v1093_v45 = vcombine.high %v1085_v43, %v1085_v43  ;;  %v1101_v46 = vrot.slane %v1085_v43, %v6809_v42  ;;  %v6284_v50 = vld [vmem:[%s6768_s23 + $0x180] sm:$0xff]   ;;  %v6285_v53 = vld [vmem:[%s6768_s23 + $0x148] sm:$0xff]   ;;  %v6289_v59 = vld [vmem:[%s6768_s23 + $0x150] sm:$0xff]  }
  0x24   : > { %5401 = vmatprep.subr.bf16.mxu1 %v6261_v14  ;;  %v6286_v55 = vld [vmem:[%s6768_s23 + $0x108] sm:$0xff]   ;;  %v6290_v60 = vld [vmem:[%s6768_s23 + $0x110] sm:$0xff]   ;;  %v6293_v63 = vld [vmem:[%s6768_s23 + $0x158] sm:$0xff]  }
  0x25   : > { %v1094_v47 = vcombine.high %v6813_v44, %v6813_v44  ;;  %v1115_v49 = vrot.slane %v1093_v45, %v6809_v42  ;;  %v1123_v52 = vcombine.high %v1101_v46, %v1101_v46  ;;  %v6287_v56 = vld [vmem:[%s6768_s23 + $0x1c8] sm:$0xff]   ;;  %v6291_v61 = vld [vmem:[%s6768_s23 + $0x1d0] sm:$0xff]   ;;  %v6294_v0 = vld [vmem:[%s6768_s23 + $0x118] sm:$0xff]  }
  0x26   : > { %5380 = vmatpush3.bf16.msra.mxu0 %v6262_v15  ;;  %v6288_v58 = vld [vmem:[%s6768_s23 + $0x188] sm:$0xff]   ;;  %v6292_v62 = vld [vmem:[%s6768_s23 + $0x190] sm:$0xff]   ;;  %v6295_v1 = vld [vmem:[%s6768_s23 + $0x1d8] sm:$0xff]  }
  0x27   : > { %5402 = vmatpush3.bf16.msra.mxu1 %v6263_v16  ;;  %5381 = vmatprep.subr.bf16.mxu0 %v6264_v17  ;;  %v1122_v51 = vrot.slane %v1094_v47, %v6809_v42  ;;  %v1125_v54 = vcombine.high %v1115_v49, %v1115_v49  ;;  %v6296_v2 = vld [vmem:[%s6768_s23 + $0x198] sm:$0xff]   ;;  %v6297_v3 = vld [vmem:[%s6768_s23 + $0x160] sm:$0xff]   ;;  %v6301_v7 = vld [vmem:[%s6768_s23 + $0x168] sm:$0xff]  }
  0x28   : > { %5403 = vmatprep.subr.bf16.mxu1 %v6265_v18  ;;  %3158 = vmatprep.mubr.bf16.mxu0 %v1115_v49  ;;  %v6298_v4 = vld [vmem:[%s6768_s23 + $0x120] sm:$0xff]   ;;  %v6302_v8 = vld [vmem:[%s6768_s23 + $0x128] sm:$0xff]   ;;  %v6305_v11 = vld [vmem:[%s6768_s23 + $0x170] sm:$0xff]  }
  0x29   : > { %v1126_v57 = vcombine.high %v1122_v51, %v1122_v51  ;;  %3198 = vmatprep.mubr.bf16.mxu1 %v1125_v54  ;;  %v6299_v5 = vld [vmem:[%s6768_s23 + $0x1e0] sm:$0xff]   ;;  %v6303_v9 = vld [vmem:[%s6768_s23 + $0x1e8] sm:$0xff]   ;;  %v6306_v12 = vld [vmem:[%s6768_s23 + $0x130] sm:$0xff]  }
  0x2a   : > { %5382 = vmatpush3.bf16.msra.mxu0 %v6266_v19  ;;  %v6300_v6 = vld [vmem:[%s6768_s23 + $0x1a0] sm:$0xff]   ;;  %v6304_v10 = vld [vmem:[%s6768_s23 + $0x1a8] sm:$0xff]   ;;  %v6307_v13 = vld [vmem:[%s6768_s23 + $0x1f0] sm:$0xff]   ;;  %v1108_v19 = vrot.slane %v6813_v44, %v6809_v42 }
  0x2b   : > { %5404 = vmatpush3.bf16.msra.mxu1 %v6267_v20  ;;  %5383 = vmatprep.subr.bf16.mxu0 %v6268_v21  ;;  %v6308_v14 = vld [vmem:[%s6768_s23 + $0x1b0] sm:$0xff]   ;;  %v6309_v15 = vld [vmem:[%s6768_s23 + $0x178] sm:$0xff]   ;;  %v6313_v20 = vld [vmem:[%s6768_s23 + $0x240] sm:$0xff]  }
  0x2c   : > { %5405 = vmatprep.subr.bf16.mxu1 %v6269_v22  ;;  %v6310_v16 = vld [vmem:[%s6768_s23 + $0x138] sm:$0xff]   ;;  %v6314_v21 = vld [vmem:[%s6768_s23 + $0x200] sm:$0xff]   ;;  %v6322_v30 = vld [vmem:[%s6768_s23 + $0x210] sm:$0xff]  }
  0x2d   : > { %v6311_v17 = vld [vmem:[%s6768_s23 + $0x1f8] sm:$0xff]   ;;  %v6315_v22 = vld [vmem:[%s6768_s23 + $0x2c0] sm:$0xff]   ;;  %v6333_v43 = vld [vmem:[%s6768_s23 + $0x268] sm:$0xff]  }
  0x2e   : > { %5384 = vmatpush3.bf16.msra.mxu0 %v6270_v23  ;;  %v6312_v18 = vld [vmem:[%s6768_s23 + $0x1b8] sm:$0xff]   ;;  %v6316_v23 = vld [vmem:[%s6768_s23 + $0x280] sm:$0xff]   ;;  %v6334_v44 = vld [vmem:[%s6768_s23 + $0x228] sm:$0xff]  }
  0x2f   : > { %5406 = vmatpush3.bf16.msra.mxu1 %v6271_v24  ;;  %5385 = vmatprep.subr.bf16.mxu0 %v6272_v25  ;;  %v1124_v24 = vcombine.high %v1108_v19, %v1108_v19  ;;  %v6317_v25 = vld [vmem:[%s6768_s23 + $0x248] sm:$0xff]   ;;  %v6327_v36 = vld [vmem:[%s6768_s23 + $0x2d8] sm:$0xff]   ;;  %v6329_v38 = vld [vmem:[%s6768_s23 + $0x260] sm:$0xff]  }
  0x30   : > { %5407 = vmatprep.subr.bf16.mxu1 %v6273_v26  ;;  %v6318_v26 = vld [vmem:[%s6768_s23 + $0x208] sm:$0xff]   ;;  %v6328_v37 = vld [vmem:[%s6768_s23 + $0x298] sm:$0xff]   ;;  %v6330_v39 = vld [vmem:[%s6768_s23 + $0x220] sm:$0xff]  }
  0x31   : > { %v6331_v40 = vld [vmem:[%s6768_s23 + $0x2e0] sm:$0xff]   ;;  %v6335_v45 = vld [vmem:[%s6768_s23 + $0x2e8] sm:$0xff]  }
  0x32   : > { %5386 = vmatpush3.bf16.msra.mxu0 %v6274_v27  ;;  %v6319_v27 = vld [vmem:[%s6768_s23 + $0x2c8] sm:$0xff]  }
  0x33   : > { %5408 = vmatpush3.bf16.msra.mxu1 %v6275_v28  ;;  %5387 = vmatprep.subr.bf16.mxu0 %v6276_v29  ;;  %v6320_v28 = vld [vmem:[%s6768_s23 + $0x288] sm:$0xff]   ;;  %v6321_v29 = vld [vmem:[%s6768_s23 + $0x250] sm:$0xff]  }
  0x34   : > { %5409 = vmatprep.subr.bf16.mxu1 %v6277_v31  ;;  %v6323_v31 = vld [vmem:[%s6768_s23 + $0x2d0] sm:$0xff]   ;;  %v477_v47 = vld [vmem:[%s6763_s19 + $0x8] sm:$0xff] }
  0x35   : > { %v1134_v49 = vrot.slane %v477_v47, %v6809_v42 }
  0x36   : > { %5388 = vmatpush3.bf16.msra.mxu0 %v6278_v32  ;;  %v6324_v32 = vld [vmem:[%s6768_s23 + $0x290] sm:$0xff]  }
  0x37   : > { %5410 = vmatpush3.bf16.msra.mxu1 %v6279_v33  ;;  %5417 = vmatprep.subr.bf16.mxu0 %v6281_v35  ;;  %v6325_v33 = vld [vmem:[%s6768_s23 + $0x258] sm:$0xff]  }
  0x38   : > { %5439 = vmatprep.subr.bf16.mxu1 %v6283_v41  ;;  %v6326_v35 = vld [vmem:[%s6768_s23 + $0x218] sm:$0xff]   ;;  %v6332_v41 = vld [vmem:[%s6768_s23 + $0x2a0] sm:$0xff]  }
  0x39   : > { %3159 = vmatmul.mubr.bf16.vlgmr.msra.gmra.mrb[0].mxu0 %v1101_v46  ;;  %v6336_v46 = vld [vmem:[%s6768_s23 + $0x2a8] sm:$0xff]  }
  0x3a   : > { %5418 = vmatpush3.bf16.msra.mxu0 %v6282_v48  ;;  %3199 = vmatmul.mubr.bf16.vlgmr.msra.gmra.mrb[0].mxu1 %v1123_v52  ;;  %v6337_v48 = vld [vmem:[%s6768_s23 + $0x270] sm:$0xff]  }
  0x3b   : > { %5419 = vmatprep.subr.bf16.mxu0 %v6285_v53  ;;  %5440 = vmatpush3.bf16.msra.mxu1 %v6284_v50  ;;  %v1127_v50 = vcombine.high %v477_v47, %v477_v47  ;;  %v6339_v52 = vld [vmem:[%s6768_s23 + $0x2f0] sm:$0xff]   ;;  %v1142_v53 = vcombine.high %v1134_v49, %v1134_v49 }
  0x3c   : > { %3238 = vmatprep.mubr.bf16.mxu0 %v1122_v51  ;;  %5441 = vmatprep.subr.bf16.mxu1 %v6287_v56  ;;  %v6338_v51 = vld [vmem:[%s6768_s23 + $0x230] sm:$0xff]   ;;  %v6341_v56 = vld [vmem:[%s6768_s23 + $0x278] sm:$0xff]  }
  0x3d   : > { %3278 = vmatprep.mubr.bf16.mxu1 %v1126_v57  ;;  %v6882_v54 = vrot.slane %v1127_v50, %v6809_v42  ;;  %v1164_v57 = vrot.slane %v1142_v53, %v6809_v42  ;;  %v6386_v47 = vld [vmem:[%s6768_s23 + $0x450] sm:$0xff]   ;;  %v6392_v53 = vld [vmem:[%s6768_s23 + $0x4d8] sm:$0xff]  }
  0x3e   : > { %5420 = vmatpush3.bf16.msra.mxu0 %v6286_v55  ;;  %v6340_v55 = vld [vmem:[%s6768_s23 + $0x2b0] sm:$0xff]  }
  0x3f   : > { %5421 = vmatprep.subr.bf16.mxu0 %v6289_v59  ;;  %5442 = vmatpush3.bf16.msra.mxu1 %v6288_v58  ;;  %v6342_v58 = vld [vmem:[%s6768_s23 + $0x238] sm:$0xff]   ;;  %v1143_v59 = vcombine.high %v6882_v54, %v6882_v54  ;;  %v6389_v50 = vld [vmem:[%s6768_s23 + $0x490] sm:$0xff]  }
  0x40   : > { %5443 = vmatprep.subr.bf16.mxu1 %v6291_v61  ;;  %v1174_v61 = vcombine.high %v1164_v57, %v1164_v57 }
  0x42   : > { %5422 = vmatpush3.bf16.msra.mxu0 %v6290_v60  ;;  %v6343_v60 = vld [vmem:[%s6768_s23 + $0x2f8] sm:$0xff]  }
  0x43   : > { %5423 = vmatprep.subr.bf16.mxu0 %v6293_v63  ;;  %5444 = vmatpush3.bf16.msra.mxu1 %v6292_v62  ;;  %v6344_v62 = vld [vmem:[%s6768_s23 + $0x2b8] sm:$0xff]   ;;  %v1150_v63 = vrot.slane %v1134_v49, %v6809_v42  ;;  %v6388_v49 = vld [vmem:[%s6768_s23 + $0x4d0] sm:$0xff]  }
  0x44   : > { %5445 = vmatprep.subr.bf16.mxu1 %v6295_v1  ;;  %v6346_v1 = vld [vmem:[%s6768_s23 + $0x300] sm:$0xff]  }
  0x46   : > { %5424 = vmatpush3.bf16.msra.mxu0 %v6294_v0  ;;  %v6345_v0 = vld [vmem:[%s6768_s23 + $0x340] sm:$0xff]  }
  0x47   : > { %5425 = vmatprep.subr.bf16.mxu0 %v6297_v3  ;;  %5446 = vmatpush3.bf16.msra.mxu1 %v6296_v2  ;;  %v1171_v2 = vrot.slane %v1143_v59, %v6809_v42  ;;  %v6347_v3 = vld [vmem:[%s6768_s23 + $0x3c0] sm:$0xff]   ;;  %v6398_v59 = vld [vmem:[%s6768_s23 + $0x468] sm:$0xff]  }
  0x48   : > { %5447 = vmatprep.subr.bf16.mxu1 %v6299_v5  ;;  %v1172_v5 = vcombine.high %v1150_v63, %v1150_v63 }
  0x4a   : > { %5426 = vmatpush3.bf16.msra.mxu0 %v6298_v4  ;;  %v6348_v4 = vld [vmem:[%s6768_s23 + $0x380] sm:$0xff]  }
  0x4b   : > { %5427 = vmatprep.subr.bf16.mxu0 %v6301_v7  ;;  %5448 = vmatpush3.bf16.msra.mxu1 %v6300_v6  ;;  %v6349_v6 = vld [vmem:[%s6768_s23 + $0x348] sm:$0xff]  }
  0x4c   : > { %5449 = vmatprep.subr.bf16.mxu1 %v6303_v9  ;;  %v6350_v7 = vld [vmem:[%s6768_s23 + $0x308] sm:$0xff]  }
  0x4d   : > { %v6351_v9 = vld [vmem:[%s6768_s23 + $0x3c8] sm:$0xff]  }
  0x4e   : > { %5428 = vmatpush3.bf16.msra.mxu0 %v6302_v8  ;;  %v1175_v8 = vcombine.high %v1171_v2, %v1171_v2 }
  0x4f   : > { %5429 = vmatprep.subr.bf16.mxu0 %v6305_v11  ;;  %5450 = vmatpush3.bf16.msra.mxu1 %v6304_v10  ;;  %v6352_v10 = vld [vmem:[%s6768_s23 + $0x388] sm:$0xff]   ;;  %v6353_v11 = vld [vmem:[%s6768_s23 + $0x350] sm:$0xff]  }
  0x50   : > { %5451 = vmatprep.subr.bf16.mxu1 %v6307_v13  ;;  %v6355_v13 = vld [vmem:[%s6768_s23 + $0x3d0] sm:$0xff]  }
  0x52   : > { %5430 = vmatpush3.bf16.msra.mxu0 %v6306_v12  ;;  %v6354_v12 = vld [vmem:[%s6768_s23 + $0x310] sm:$0xff]  }
  0x53   : > { %5431 = vmatprep.subr.bf16.mxu0 %v6309_v15  ;;  %5452 = vmatpush3.bf16.msra.mxu1 %v6308_v14  ;;  %v6356_v14 = vld [vmem:[%s6768_s23 + $0x390] sm:$0xff]   ;;  %v6357_v15 = vld [vmem:[%s6768_s23 + $0x358] sm:$0xff]  }
  0x54   : > { %5453 = vmatprep.subr.bf16.mxu1 %v6311_v17  ;;  %v6359_v17 = vld [vmem:[%s6768_s23 + $0x3d8] sm:$0xff]  }
  0x56   : > { %5432 = vmatpush3.bf16.msra.mxu0 %v6310_v16  ;;  %v6358_v16 = vld [vmem:[%s6768_s23 + $0x318] sm:$0xff]  }
  0x57   : > { %5461 = vmatprep.subr.bf16.mxu0 %v6313_v20  ;;  %5454 = vmatpush3.bf16.msra.mxu1 %v6312_v18  ;;  %v6360_v18 = vld [vmem:[%s6768_s23 + $0x398] sm:$0xff]   ;;  %v6362_v20 = vld [vmem:[%s6768_s23 + $0x320] sm:$0xff]  }
  0x58   : > { %5483 = vmatprep.subr.bf16.mxu1 %v6315_v22  ;;  %v6364_v22 = vld [vmem:[%s6768_s23 + $0x3a0] sm:$0xff]  }
  0x59   : > { %3239 = vmatmul.mubr.bf16.vlgmr.msra.gmra.mrb[4].mxu0 %v1108_v19  ;;  %v6361_v19 = vld [vmem:[%s6768_s23 + $0x360] sm:$0xff]  }
  0x5a   : > { %5462 = vmatpush3.bf16.msra.mxu0 %v6314_v21  ;;  %3279 = vmatmul.mubr.bf16.vlgmr.msra.gmra.mrb[4].mxu1 %v1124_v24  ;;  %v6363_v21 = vld [vmem:[%s6768_s23 + $0x3e0] sm:$0xff]   ;;  %v6366_v24 = vld [vmem:[%s6768_s23 + $0x328] sm:$0xff]  }
  0x5b   : > { %5463 = vmatprep.subr.bf16.mxu0 %v6317_v25  ;;  %5484 = vmatpush3.bf16.msra.mxu1 %v6316_v23  ;;  %v6365_v23 = vld [vmem:[%s6768_s23 + $0x368] sm:$0xff]  }
  0x5c   : > { %5485 = vmatprep.subr.bf16.mxu1 %v6319_v27  ;;  %3318 = vmatprep.mubr.bf16.mxu0 %v1164_v57  ;;  %v6367_v25 = vld [vmem:[%s6768_s23 + $0x3e8] sm:$0xff]   ;;  %v6369_v27 = vld [vmem:[%s6768_s23 + $0x370] sm:$0xff]   ;;  %v6396_v57 = vld [vmem:[%s6768_s23 + $0x4e0] sm:$0xff]  }
  0x5d   : > { %3358 = vmatprep.mubr.bf16.mxu1 %v1174_v61  ;;  %v6400_v61 = vld [vmem:[%s6768_s23 + $0x4e8] sm:$0xff]  }
  0x5e   : > { %5464 = vmatpush3.bf16.msra.mxu0 %v6318_v26  ;;  %v6368_v26 = vld [vmem:[%s6768_s23 + $0x3a8] sm:$0xff]  }
  0x5f   : > { %5465 = vmatprep.subr.bf16.mxu0 %v6321_v29  ;;  %5486 = vmatpush3.bf16.msra.mxu1 %v6320_v28  ;;  %v6370_v28 = vld [vmem:[%s6768_s23 + $0x330] sm:$0xff]  }
  0x60   : > { %5487 = vmatprep.subr.bf16.mxu1 %v6323_v31  ;;  %v6371_v29 = vld [vmem:[%s6768_s23 + $0x3f0] sm:$0xff]   ;;  %v6373_v31 = vld [vmem:[%s6768_s23 + $0x378] sm:$0xff]  }
  0x62   : > { %5466 = vmatpush3.bf16.msra.mxu0 %v6322_v30  ;;  %v6372_v30 = vld [vmem:[%s6768_s23 + $0x3b0] sm:$0xff]  }
  0x63   : > { %5467 = vmatprep.subr.bf16.mxu0 %v6325_v33  ;;  %5488 = vmatpush3.bf16.msra.mxu1 %v6324_v32  ;;  %v6374_v32 = vld [vmem:[%s6768_s23 + $0x338] sm:$0xff]  }
  0x64   : > { %5489 = vmatprep.subr.bf16.mxu1 %v6327_v36  ;;  %v6375_v33 = vld [vmem:[%s6768_s23 + $0x3f8] sm:$0xff]   ;;  %v1157_v36 = vrot.slane %v6882_v54, %v6809_v42 }
  0x65   : > { %v6393_v54 = vld [vmem:[%s6768_s23 + $0x498] sm:$0xff]  }
  0x66   : > { %5468 = vmatpush3.bf16.msra.mxu0 %v6326_v35  ;;  %v6377_v35 = vld [vmem:[%s6768_s23 + $0x3b8] sm:$0xff]  }
  0x67   : > { %5469 = vmatprep.subr.bf16.mxu0 %v6329_v38  ;;  %5490 = vmatpush3.bf16.msra.mxu1 %v6328_v37  ;;  %v6378_v37 = vld [vmem:[%s6768_s23 + $0x440] sm:$0xff]  }
  0x68   : > { %5491 = vmatprep.subr.bf16.mxu1 %v6331_v40  ;;  %v6379_v38 = vld [vmem:[%s6768_s23 + $0x400] sm:$0xff]  }
  0x69   : > { %v6381_v40 = vld [vmem:[%s6768_s23 + $0x480] sm:$0xff]  }
  0x6a   : > { %5470 = vmatpush3.bf16.msra.mxu0 %v6330_v39  ;;  %v6380_v39 = vld [vmem:[%s6768_s23 + $0x4c0] sm:$0xff]  }
  0x6b   : > { %5471 = vmatprep.subr.bf16.mxu0 %v6333_v43  ;;  %5492 = vmatpush3.bf16.msra.mxu1 %v6332_v41  ;;  %v1173_v41 = vcombine.high %v1157_v36, %v1157_v36  ;;  %v6382_v43 = vld [vmem:[%s6768_s23 + $0x448] sm:$0xff]  }
  0x6c   : > { %5493 = vmatprep.subr.bf16.mxu1 %v6335_v45  ;;  %v6384_v45 = vld [vmem:[%s6768_s23 + $0x4c8] sm:$0xff]  }
  0x6e   : > { %5472 = vmatpush3.bf16.msra.mxu0 %v6334_v44  ;;  %v6383_v44 = vld [vmem:[%s6768_s23 + $0x408] sm:$0xff]  }
  0x6f   : > { %5473 = vmatprep.subr.bf16.mxu0 %v6337_v48  ;;  %5494 = vmatpush3.bf16.msra.mxu1 %v6336_v46  ;;  %v6385_v46 = vld [vmem:[%s6768_s23 + $0x488] sm:$0xff]   ;;  %v6387_v48 = vld [vmem:[%s6768_s23 + $0x410] sm:$0xff]  }
  0x70   : > { %5495 = vmatprep.subr.bf16.mxu1 %v6339_v52  ;;  %v6391_v52 = vld [vmem:[%s6768_s23 + $0x418] sm:$0xff]  }
  0x72   : > { %5474 = vmatpush3.bf16.msra.mxu0 %v6338_v51  ;;  %v6390_v51 = vld [vmem:[%s6768_s23 + $0x458] sm:$0xff]  }
  0x73   : > { %5475 = vmatprep.subr.bf16.mxu0 %v6341_v56  ;;  %5496 = vmatpush3.bf16.msra.mxu1 %v6340_v55  ;;  %v6394_v55 = vld [vmem:[%s6768_s23 + $0x460] sm:$0xff]  }
  0x74   : > { %5497 = vmatprep.subr.bf16.mxu1 %v6343_v60  ;;  %v6395_v56 = vld [vmem:[%s6768_s23 + $0x420] sm:$0xff]   ;;  %v6399_v60 = vld [vmem:[%s6768_s23 + $0x428] sm:$0xff]  }
  0x76   : > { %5476 = vmatpush3.bf16.msra.mxu0 %v6342_v58  ;;  %v6397_v58 = vld [vmem:[%s6768_s23 + $0x4a0] sm:$0xff]  }
  0x77   : > { %5505 = vmatprep.subr.bf16.mxu0 %v6345_v0  ;;  %5498 = vmatpush3.bf16.msra.mxu1 %v6344_v62  ;;  %v6401_v62 = vld [vmem:[%s6768_s23 + $0x4a8] sm:$0xff]   ;;  %v6402_v0 = vld [vmem:[%s6768_s23 + $0x470] sm:$0xff]  }
  0x78   : > { %5527 = vmatprep.subr.bf16.mxu1 %v6347_v3  ;;  %v6403_v3 = vld [vmem:[%s6768_s23 + $0x430] sm:$0xff]  }
  0x79   : > { %3319 = vmatmul.mubr.bf16.vlgmr.msra.gmra.mrb[8].mxu0 %v1150_v63  ;;  %v478_v63 = vld [vmem:[%s6763_s19 + $0x10] sm:$0xff] }
  0x7a   : > { %5506 = vmatpush3.bf16.msra.mxu0 %v6346_v1  ;;  %3398 = vmatprep.mubr.bf16.mxu0 %v1171_v2  ;;  %v1183_v1 = vrot.slane %v478_v63, %v6809_v42  ;;  %v1176_v2 = vcombine.high %v478_v63, %v478_v63  ;;  %v6451_v63 = vld [vmem:[%s6768_s23 + $0x650] sm:$0xff]  }
  0x7b   : > { %3359 = vmatmul.mubr.bf16.vlgmr.msra.gmra.mrb[8].mxu1 %v1172_v5  ;;  %5507 = vmatprep.subr.bf16.mxu0 %v6349_v6 }
  0x7c   : > { %5528 = vmatpush3.bf16.msra.mxu1 %v6348_v4  ;;  %3438 = vmatprep.mubr.bf16.mxu1 %v1175_v8  ;;  %v6404_v4 = vld [vmem:[%s6768_s23 + $0x4f0] sm:$0xff]   ;;  %v1191_v5 = vcombine.high %v1183_v1, %v1183_v1  ;;  %v6958_v6 = vrot.slane %v1176_v2, %v6809_v42  ;;  %v6406_v8 = vld [vmem:[%s6768_s23 + $0x478] sm:$0xff]  }
  0x7d   : > { %5529 = vmatprep.subr.bf16.mxu1 %v6351_v9  ;;  %v6454_v2 = vld [vmem:[%s6768_s23 + $0x690] sm:$0xff]  }
  0x7e   : > { %5508 = vmatpush3.bf16.msra.mxu0 %v6350_v7  ;;  %v6405_v7 = vld [vmem:[%s6768_s23 + $0x4b0] sm:$0xff]   ;;  %v1213_v9 = vrot.slane %v1191_v5, %v6809_v42  ;;  %v6457_v5 = vld [vmem:[%s6768_s23 + $0x6d8] sm:$0xff]  }
  0x7f   : > { %5509 = vmatprep.subr.bf16.mxu0 %v6353_v11  ;;  %v1192_v11 = vcombine.high %v6958_v6, %v6958_v6 }
  0x80   : > { %5530 = vmatpush3.bf16.msra.mxu1 %v6352_v10  ;;  %v6407_v10 = vld [vmem:[%s6768_s23 + $0x438] sm:$0xff]  }
  0x81   : > { %5531 = vmatprep.subr.bf16.mxu1 %v6355_v13  ;;  %v1223_v13 = vcombine.high %v1213_v9, %v1213_v9 }
  0x82   : > { %5510 = vmatpush3.bf16.msra.mxu0 %v6354_v12  ;;  %v6408_v12 = vld [vmem:[%s6768_s23 + $0x4f8] sm:$0xff]  }
  0x83   : > { %5511 = vmatprep.subr.bf16.mxu0 %v6357_v15  ;;  %v1199_v15 = vrot.slane %v1183_v1, %v6809_v42  ;;  %v6453_v1 = vld [vmem:[%s6768_s23 + $0x6d0] sm:$0xff]  }
  0x84   : > { %5532 = vmatpush3.bf16.msra.mxu1 %v6356_v14  ;;  %v6409_v14 = vld [vmem:[%s6768_s23 + $0x4b8] sm:$0xff]  }
  0x85   : > { %5533 = vmatprep.subr.bf16.mxu1 %v6359_v17  ;;  %v6411_v17 = vld [vmem:[%s6768_s23 + $0x500] sm:$0xff]  }
  0x86   : > { %5512 = vmatpush3.bf16.msra.mxu0 %v6358_v16  ;;  %v6410_v16 = vld [vmem:[%s6768_s23 + $0x540] sm:$0xff]  }
  0x87   : > { %5513 = vmatprep.subr.bf16.mxu0 %v6361_v19  ;;  %v6412_v19 = vld [vmem:[%s6768_s23 + $0x5c0] sm:$0xff]  }
  0x88   : > { %5534 = vmatpush3.bf16.msra.mxu1 %v6360_v18  ;;  %v1220_v18 = vrot.slane %v1192_v11, %v6809_v42  ;;  %v6463_v11 = vld [vmem:[%s6768_s23 + $0x668] sm:$0xff]  }
  0x89   : > { %5535 = vmatprep.subr.bf16.mxu1 %v6363_v21  ;;  %v1221_v21 = vcombine.high %v1199_v15, %v1199_v15 }
  0x8a   : > { %5514 = vmatpush3.bf16.msra.mxu0 %v6362_v20  ;;  %v6413_v20 = vld [vmem:[%s6768_s23 + $0x580] sm:$0xff]  }
  0x8b   : > { %5515 = vmatprep.subr.bf16.mxu0 %v6365_v23  ;;  %v6415_v23 = vld [vmem:[%s6768_s23 + $0x508] sm:$0xff]  }
  0x8c   : > { %5536 = vmatpush3.bf16.msra.mxu1 %v6364_v22  ;;  %v6414_v22 = vld [vmem:[%s6768_s23 + $0x548] sm:$0xff]  }
  0x8d   : > { %5537 = vmatprep.subr.bf16.mxu1 %v6367_v25  ;;  %v6416_v25 = vld [vmem:[%s6768_s23 + $0x5c8] sm:$0xff]  }
  0x8e   : > { %5516 = vmatpush3.bf16.msra.mxu0 %v6366_v24  ;;  %v1224_v24 = vcombine.high %v1220_v18, %v1220_v18 }
  0x8f   : > { %5517 = vmatprep.subr.bf16.mxu0 %v6369_v27  ;;  %v6418_v27 = vld [vmem:[%s6768_s23 + $0x550] sm:$0xff]  }
  0x90   : > { %5538 = vmatpush3.bf16.msra.mxu1 %v6368_v26  ;;  %v6417_v26 = vld [vmem:[%s6768_s23 + $0x588] sm:$0xff]  }
  0x91   : > { %5539 = vmatprep.subr.bf16.mxu1 %v6371_v29  ;;  %v6420_v29 = vld [vmem:[%s6768_s23 + $0x5d0] sm:$0xff]  }
  0x92   : > { %5518 = vmatpush3.bf16.msra.mxu0 %v6370_v28  ;;  %v6419_v28 = vld [vmem:[%s6768_s23 + $0x510] sm:$0xff]  }
  0x93   : > { %5519 = vmatprep.subr.bf16.mxu0 %v6373_v31  ;;  %v6422_v31 = vld [vmem:[%s6768_s23 + $0x558] sm:$0xff]  }
  0x94   : > { %5540 = vmatpush3.bf16.msra.mxu1 %v6372_v30  ;;  %v6421_v30 = vld [vmem:[%s6768_s23 + $0x590] sm:$0xff]  }
  0x95   : > { %5541 = vmatprep.subr.bf16.mxu1 %v6375_v33  ;;  %v6424_v33 = vld [vmem:[%s6768_s23 + $0x5d8] sm:$0xff]  }
  0x96   : > { %5520 = vmatpush3.bf16.msra.mxu0 %v6374_v32  ;;  %v6423_v32 = vld [vmem:[%s6768_s23 + $0x518] sm:$0xff]  }
  0x97   : > { %5549 = vmatprep.subr.bf16.mxu0 %v6378_v37  ;;  %v6427_v37 = vld [vmem:[%s6768_s23 + $0x520] sm:$0xff]  }
  0x98   : > { %5542 = vmatpush3.bf16.msra.mxu1 %v6377_v35  ;;  %v6425_v35 = vld [vmem:[%s6768_s23 + $0x598] sm:$0xff]  }
  0x99   : > { %3399 = vmatmul.mubr.bf16.vlgmr.msra.gmra.mrb[12].mxu0 %v1157_v36  ;;  %5571 = vmatprep.subr.bf16.mxu1 %v6380_v39  ;;  %v6426_v36 = vld [vmem:[%s6768_s23 + $0x560] sm:$0xff]  }
  0x9a   : > { %5550 = vmatpush3.bf16.msra.mxu0 %v6379_v38  ;;  %3478 = vmatprep.mubr.bf16.mxu0 %v1213_v9  ;;  %v6428_v38 = vld [vmem:[%s6768_s23 + $0x5e0] sm:$0xff]  }
  0x9b   : > { %3439 = vmatmul.mubr.bf16.vlgmr.msra.gmra.mrb[12].mxu1 %v1173_v41  ;;  %5551 = vmatprep.subr.bf16.mxu0 %v6382_v43  ;;  %v6429_v39 = vld [vmem:[%s6768_s23 + $0x5a0] sm:$0xff]   ;;  %v6431_v41 = vld [vmem:[%s6768_s23 + $0x528] sm:$0xff]  }
  0x9c   : > { %5572 = vmatpush3.bf16.msra.mxu1 %v6381_v40  ;;  %3518 = vmatprep.mubr.bf16.mxu1 %v1223_v13  ;;  %v6430_v40 = vld [vmem:[%s6768_s23 + $0x568] sm:$0xff]   ;;  %v6461_v9 = vld [vmem:[%s6768_s23 + $0x6e0] sm:$0xff]  }
  0x9d   : > { %5573 = vmatprep.subr.bf16.mxu1 %v6384_v45  ;;  %v6432_v43 = vld [vmem:[%s6768_s23 + $0x5e8] sm:$0xff]   ;;  %v6434_v45 = vld [vmem:[%s6768_s23 + $0x570] sm:$0xff]  }
  0x9e   : > { %5552 = vmatpush3.bf16.msra.mxu0 %v6383_v44  ;;  %v6433_v44 = vld [vmem:[%s6768_s23 + $0x5a8] sm:$0xff]  }
  0x9f   : > { %5553 = vmatprep.subr.bf16.mxu0 %v6386_v47  ;;  %v6436_v47 = vld [vmem:[%s6768_s23 + $0x5f0] sm:$0xff]   ;;  %v6465_v13 = vld [vmem:[%s6768_s23 + $0x6e8] sm:$0xff]  }
  0xa0   : > { %5574 = vmatpush3.bf16.msra.mxu1 %v6385_v46  ;;  %v6435_v46 = vld [vmem:[%s6768_s23 + $0x530] sm:$0xff]  }
  0xa1   : > { %5575 = vmatprep.subr.bf16.mxu1 %v6388_v49  ;;  %v6438_v49 = vld [vmem:[%s6768_s23 + $0x578] sm:$0xff]  }
  0xa2   : > { %5554 = vmatpush3.bf16.msra.mxu0 %v6387_v48  ;;  %v6437_v48 = vld [vmem:[%s6768_s23 + $0x5b0] sm:$0xff]  }
  0xa3   : > { %5555 = vmatprep.subr.bf16.mxu0 %v6390_v51  ;;  %v6440_v51 = vld [vmem:[%s6768_s23 + $0x5f8] sm:$0xff]  }
  0xa4   : > { %5576 = vmatpush3.bf16.msra.mxu1 %v6389_v50  ;;  %v6439_v50 = vld [vmem:[%s6768_s23 + $0x538] sm:$0xff]  }
  0xa5   : > { %5577 = vmatprep.subr.bf16.mxu1 %v6392_v53  ;;  %v1206_v53 = vrot.slane %v6958_v6, %v6809_v42  ;;  %v6458_v6 = vld [vmem:[%s6768_s23 + $0x698] sm:$0xff]  }
  0xa6   : > { %5556 = vmatpush3.bf16.msra.mxu0 %v6391_v52  ;;  %v6442_v52 = vld [vmem:[%s6768_s23 + $0x5b8] sm:$0xff]  }
  0xa7   : > { %5557 = vmatprep.subr.bf16.mxu0 %v6394_v55  ;;  %v6444_v55 = vld [vmem:[%s6768_s23 + $0x600] sm:$0xff]  }
  0xa8   : > { %5578 = vmatpush3.bf16.msra.mxu1 %v6393_v54  ;;  %v6443_v54 = vld [vmem:[%s6768_s23 + $0x640] sm:$0xff]  }
  0xa9   : > { %5579 = vmatprep.subr.bf16.mxu1 %v6396_v57  ;;  %v6446_v57 = vld [vmem:[%s6768_s23 + $0x680] sm:$0xff]  }
  0xaa   : > { %5558 = vmatpush3.bf16.msra.mxu0 %v6395_v56  ;;  %v6445_v56 = vld [vmem:[%s6768_s23 + $0x6c0] sm:$0xff]  }
  0xab   : > { %5559 = vmatprep.subr.bf16.mxu0 %v6398_v59  ;;  %v6447_v59 = vld [vmem:[%s6768_s23 + $0x648] sm:$0xff]  }
  0xac   : > { %5580 = vmatpush3.bf16.msra.mxu1 %v6397_v58  ;;  %v1222_v58 = vcombine.high %v1206_v53, %v1206_v53 }
  0xad   : > { %5581 = vmatprep.subr.bf16.mxu1 %v6400_v61  ;;  %v6449_v61 = vld [vmem:[%s6768_s23 + $0x6c8] sm:$0xff]  }
  0xae   : > { %5560 = vmatpush3.bf16.msra.mxu0 %v6399_v60  ;;  %v6448_v60 = vld [vmem:[%s6768_s23 + $0x608] sm:$0xff]  }
  0xaf   : > { %5561 = vmatprep.subr.bf16.mxu0 %v6402_v0  ;;  %v6452_v0 = vld [vmem:[%s6768_s23 + $0x610] sm:$0xff]  }
  0xb0   : > { %5582 = vmatpush3.bf16.msra.mxu1 %v6401_v62  ;;  %v6450_v62 = vld [vmem:[%s6768_s23 + $0x688] sm:$0xff]  }
  0xb1   : > { %5583 = vmatprep.subr.bf16.mxu1 %v6404_v4  ;;  %v6456_v4 = vld [vmem:[%s6768_s23 + $0x618] sm:$0xff]  }
  0xb2   : > { %5562 = vmatpush3.bf16.msra.mxu0 %v6403_v3  ;;  %v6455_v3 = vld [vmem:[%s6768_s23 + $0x658] sm:$0xff]  }
  0xb3   : > { %5563 = vmatprep.subr.bf16.mxu0 %v6406_v8  ;;  %v6460_v8 = vld [vmem:[%s6768_s23 + $0x620] sm:$0xff]  }
  0xb4   : > { %5584 = vmatpush3.bf16.msra.mxu1 %v6405_v7  ;;  %v6459_v7 = vld [vmem:[%s6768_s23 + $0x660] sm:$0xff]  }
  0xb5   : > { %5585 = vmatprep.subr.bf16.mxu1 %v6408_v12  ;;  %v6464_v12 = vld [vmem:[%s6768_s23 + $0x628] sm:$0xff]  }
  0xb6   : > { %5564 = vmatpush3.bf16.msra.mxu0 %v6407_v10  ;;  %v6462_v10 = vld [vmem:[%s6768_s23 + $0x6a0] sm:$0xff]  }
  0xb7   : > { %5593 = vmatprep.subr.bf16.mxu0 %v6410_v16  ;;  %v479_v16 = vld [vmem:[%s6763_s19 + $0x18] sm:$0xff] }
  0xb8   : > { %5586 = vmatpush3.bf16.msra.mxu1 %v6409_v14  ;;  %v6466_v14 = vld [vmem:[%s6768_s23 + $0x6a8] sm:$0xff]  }
  0xb9   : > { %3479 = vmatmul.mubr.bf16.vlgmr.msra.gmra.mrb[16].mxu0 %v1199_v15  ;;  %5615 = vmatprep.subr.bf16.mxu1 %v6412_v19  ;;  %v6467_v15 = vld [vmem:[%s6768_s23 + $0x670] sm:$0xff]   ;;  %v1225_v19 = vcombine.high %v479_v16, %v479_v16 }
  0xba   : > { %5594 = vmatpush3.bf16.msra.mxu0 %v6411_v17  ;;  %3558 = vmatprep.mubr.bf16.mxu0 %v1220_v18  ;;  %v6468_v17 = vld [vmem:[%s6768_s23 + $0x630] sm:$0xff]   ;;  %v1232_v18 = vrot.slane %v479_v16, %v6809_v42 }
  0xbb   : > { %3519 = vmatmul.mubr.bf16.vlgmr.msra.gmra.mrb[16].mxu1 %v1221_v21  ;;  %5595 = vmatprep.subr.bf16.mxu0 %v6414_v22  ;;  %v6470_v21 = vld [vmem:[%s6768_s23 + $0x6b0] sm:$0xff]  }
  0xbc   : > { %5616 = vmatpush3.bf16.msra.mxu1 %v6413_v20  ;;  %3598 = vmatprep.mubr.bf16.mxu1 %v1224_v24  ;;  %v6469_v20 = vld [vmem:[%s6768_s23 + $0x6f0] sm:$0xff]   ;;  %v1240_v22 = vcombine.high %v1232_v18, %v1232_v18  ;;  %v6471_v24 = vld [vmem:[%s6768_s23 + $0x678] sm:$0xff]  }
  0xbd   : > { %5617 = vmatprep.subr.bf16.mxu1 %v6416_v25  ;;  %v6472_v25 = vld [vmem:[%s6768_s23 + $0x638] sm:$0xff]  }
  0xbe   : > { %5596 = vmatpush3.bf16.msra.mxu0 %v6415_v23  ;;  %v7035_v23 = vrot.slane %v1225_v19, %v6809_v42  ;;  %v6510_v19 = vld [vmem:[%s6768_s23 + $0x8c0] sm:$0xff]  }
  0xbf   : > { %5597 = vmatprep.subr.bf16.mxu0 %v6418_v27 }
  0xc0   : > { %5618 = vmatpush3.bf16.msra.mxu1 %v6417_v26  ;;  %v1262_v26 = vrot.slane %v1240_v22, %v6809_v42  ;;  %v1241_v27 = vcombine.high %v7035_v23, %v7035_v23  ;;  %v1255_v16 = vrot.slane %v7035_v23, %v6809_v42  ;;  %v6512_v22 = vld [vmem:[%s6768_s23 + $0x848] sm:$0xff]  }
  0xc1   : > { %5619 = vmatprep.subr.bf16.mxu1 %v6420_v29  ;;  %v6474_v29 = vld [vmem:[%s6768_s23 + $0x6b8] sm:$0xff]   ;;  %v6514_v23 = vld [vmem:[%s6768_s23 + $0x8c8] sm:$0xff]  }
  0xc2   : > { %5598 = vmatpush3.bf16.msra.mxu0 %v6419_v28  ;;  %v6473_v28 = vld [vmem:[%s6768_s23 + $0x6f8] sm:$0xff]  }
  0xc3   : > { %5599 = vmatprep.subr.bf16.mxu0 %v6422_v31  ;;  %v1248_v31 = vrot.slane %v1232_v18, %v6809_v42  ;;  %v6509_v18 = vld [vmem:[%s6768_s23 + $0x800] sm:$0xff]  }
  0xc4   : > { %5620 = vmatpush3.bf16.msra.mxu1 %v6421_v30  ;;  %v1272_v30 = vcombine.high %v1262_v26, %v1262_v26 }
  0xc5   : > { %5621 = vmatprep.subr.bf16.mxu1 %v6424_v33  ;;  %v6476_v33 = vld [vmem:[%s6768_s23 + $0x700] sm:$0xff]  }
  0xc6   : > { %5600 = vmatpush3.bf16.msra.mxu0 %v6423_v32  ;;  %v6475_v32 = vld [vmem:[%s6768_s23 + $0x740] sm:$0xff]  }
  0xc7   : > { %5601 = vmatprep.subr.bf16.mxu0 %v6426_v36  ;;  %v6477_v36 = vld [vmem:[%s6768_s23 + $0x7c0] sm:$0xff]  }
  0xc8   : > { %5622 = vmatpush3.bf16.msra.mxu1 %v6425_v35  ;;  %v1269_v35 = vrot.slane %v1241_v27, %v6809_v42  ;;  %v6517_v27 = vld [vmem:[%s6768_s23 + $0x810] sm:$0xff]  }
  0xc9   : > { %5623 = vmatprep.subr.bf16.mxu1 %v6428_v38  ;;  %v1270_v38 = vcombine.high %v1248_v31, %v1248_v31 }
  0xca   : > { %5602 = vmatpush3.bf16.msra.mxu0 %v6427_v37  ;;  %v6478_v37 = vld [vmem:[%s6768_s23 + $0x780] sm:$0xff]  }
  0xcb   : > { %5603 = vmatprep.subr.bf16.mxu0 %v6430_v40  ;;  %v6480_v40 = vld [vmem:[%s6768_s23 + $0x708] sm:$0xff]  }
  0xcc   : > { %5624 = vmatpush3.bf16.msra.mxu1 %v6429_v39  ;;  %v6479_v39 = vld [vmem:[%s6768_s23 + $0x748] sm:$0xff]  }
  0xcd   : > { %5625 = vmatprep.subr.bf16.mxu1 %v6432_v43  ;;  %v6481_v43 = vld [vmem:[%s6768_s23 + $0x7c8] sm:$0xff]  }
  0xce   : > { %5604 = vmatpush3.bf16.msra.mxu0 %v6431_v41  ;;  %v1273_v41 = vcombine.high %v1269_v35, %v1269_v35 }
  0xcf   : > { %5605 = vmatprep.subr.bf16.mxu0 %v6434_v45  ;;  %v6483_v45 = vld [vmem:[%s6768_s23 + $0x750] sm:$0xff]  }
  0xd0   : > { %5626 = vmatpush3.bf16.msra.mxu1 %v6433_v44  ;;  %v6482_v44 = vld [vmem:[%s6768_s23 + $0x788] sm:$0xff]  }
  0xd1   : > { %5627 = vmatprep.subr.bf16.mxu1 %v6436_v47  ;;  %v6485_v47 = vld [vmem:[%s6768_s23 + $0x7d0] sm:$0xff]  }
  0xd2   : > { %5606 = vmatpush3.bf16.msra.mxu0 %v6435_v46  ;;  %v6484_v46 = vld [vmem:[%s6768_s23 + $0x710] sm:$0xff]  }
  0xd3   : > { %5607 = vmatprep.subr.bf16.mxu0 %v6438_v49  ;;  %v6487_v49 = vld [vmem:[%s6768_s23 + $0x758] sm:$0xff]  }
  0xd4   : > { %5628 = vmatpush3.bf16.msra.mxu1 %v6437_v48  ;;  %v6486_v48 = vld [vmem:[%s6768_s23 + $0x790] sm:$0xff]  }
  0xd5   : > { %5629 = vmatprep.subr.bf16.mxu1 %v6440_v51  ;;  %v6489_v51 = vld [vmem:[%s6768_s23 + $0x7d8] sm:$0xff]  }
  0xd6   : > { %5608 = vmatpush3.bf16.msra.mxu0 %v6439_v50  ;;  %v6488_v50 = vld [vmem:[%s6768_s23 + $0x718] sm:$0xff]  }
  0xd7   : > { %5637 = vmatprep.subr.bf16.mxu0 %v6443_v54  ;;  %v6492_v54 = vld [vmem:[%s6768_s23 + $0x720] sm:$0xff]  }
  0xd8   : > { %5630 = vmatpush3.bf16.msra.mxu1 %v6442_v52  ;;  %v6490_v52 = vld [vmem:[%s6768_s23 + $0x798] sm:$0xff]  }
  0xd9   : > { %3559 = vmatmul.mubr.bf16.vlgmr.msra.gmra.mrb[20].mxu0 %v1206_v53  ;;  %5659 = vmatprep.subr.bf16.mxu1 %v6445_v56  ;;  %v6491_v53 = vld [vmem:[%s6768_s23 + $0x760] sm:$0xff]  }
  0xda   : > { %5638 = vmatpush3.bf16.msra.mxu0 %v6444_v55  ;;  %3638 = vmatprep.mubr.bf16.mxu0 %v1262_v26  ;;  %v6493_v55 = vld [vmem:[%s6768_s23 + $0x7e0] sm:$0xff]   ;;  %v6516_v26 = vld [vmem:[%s6768_s23 + $0x850] sm:$0xff]  }
  0xdb   : > { %3599 = vmatmul.mubr.bf16.vlgmr.msra.gmra.mrb[20].mxu1 %v1222_v58  ;;  %5639 = vmatprep.subr.bf16.mxu0 %v6447_v59  ;;  %v6494_v56 = vld [vmem:[%s6768_s23 + $0x7a0] sm:$0xff]   ;;  %v6496_v58 = vld [vmem:[%s6768_s23 + $0x728] sm:$0xff]  }
  0xdc   : > { %5660 = vmatpush3.bf16.msra.mxu1 %v6446_v57  ;;  %3678 = vmatprep.mubr.bf16.mxu1 %v1272_v30  ;;  %v6495_v57 = vld [vmem:[%s6768_s23 + $0x768] sm:$0xff]   ;;  %v6520_v30 = vld [vmem:[%s6768_s23 + $0x858] sm:$0xff]  }
  0xdd   : > { %5661 = vmatprep.subr.bf16.mxu1 %v6449_v61  ;;  %v6497_v59 = vld [vmem:[%s6768_s23 + $0x7e8] sm:$0xff]   ;;  %v6499_v61 = vld [vmem:[%s6768_s23 + $0x770] sm:$0xff]  }
  0xde   : > { %5640 = vmatpush3.bf16.msra.mxu0 %v6448_v60  ;;  %v6498_v60 = vld [vmem:[%s6768_s23 + $0x7a8] sm:$0xff]  }
  0xdf   : > { %5641 = vmatprep.subr.bf16.mxu0 %v6451_v63  ;;  %v6500_v63 = vld [vmem:[%s6768_s23 + $0x730] sm:$0xff]  }
  0xe0   : > { %5662 = vmatpush3.bf16.msra.mxu1 %v6450_v62 }
  0xe1   : > { %5663 = vmatprep.subr.bf16.mxu1 %v6453_v1  ;;  %v6501_v1 = vld [vmem:[%s6768_s23 + $0x7f0] sm:$0xff]  }
  0xe2   : > { %5642 = vmatpush3.bf16.msra.mxu0 %v6452_v0 }
  0xe3   : > { %5643 = vmatprep.subr.bf16.mxu0 %v6455_v3 }
  0xe4   : > { %5664 = vmatpush3.bf16.msra.mxu1 %v6454_v2 }
  0xe5   : > { %5665 = vmatprep.subr.bf16.mxu1 %v6457_v5  ;;  %v6502_v5 = vld [vmem:[%s6768_s23 + $0x7b0] sm:$0xff]  }
  0xe6   : > { %5644 = vmatpush3.bf16.msra.mxu0 %v6456_v4 }
  0xe7   : > { %5645 = vmatprep.subr.bf16.mxu0 %v6459_v7 }
  0xe8   : > { %5666 = vmatpush3.bf16.msra.mxu1 %v6458_v6  ;;  %v6503_v6 = vld [vmem:[%s6768_s23 + $0x778] sm:$0xff]  }
  0xe9   : > { %5667 = vmatprep.subr.bf16.mxu1 %v6461_v9 }
  0xea   : > { %5646 = vmatpush3.bf16.msra.mxu0 %v6460_v8 }
  0xeb   : > { %5647 = vmatprep.subr.bf16.mxu0 %v6463_v11 }
  0xec   : > { %5668 = vmatpush3.bf16.msra.mxu1 %v6462_v10  ;;  %v6504_v10 = vld [vmem:[%s6768_s23 + $0x738] sm:$0xff]  }
  0xed   : > { %5669 = vmatprep.subr.bf16.mxu1 %v6465_v13 }
  0xee   : > { %5648 = vmatpush3.bf16.msra.mxu0 %v6464_v12  ;;  %v6505_v12 = vld [vmem:[%s6768_s23 + $0x7f8] sm:$0xff]  }
  0xef   : > { %5649 = vmatprep.subr.bf16.mxu0 %v6467_v15  ;;  %v6507_v15 = vld [vmem:[%s6768_s23 + $0x7b8] sm:$0xff]  }
  0xf0   : > { %5670 = vmatpush3.bf16.msra.mxu1 %v6466_v14 }
  0xf1   : > { %5671 = vmatprep.subr.bf16.mxu1 %v6469_v20  ;;  %v6511_v20 = vld [vmem:[%s6768_s23 + $0x880] sm:$0xff]  }
  0xf2   : > { %5650 = vmatpush3.bf16.msra.mxu0 %v6468_v17  ;;  %v6508_v17 = vld [vmem:[%s6768_s23 + $0x840] sm:$0xff]  }
  0xf3   : > { %5651 = vmatprep.subr.bf16.mxu0 %v6471_v24  ;;  %v6513_v24 = vld [vmem:[%s6768_s23 + $0x808] sm:$0xff]  }
  0xf4   : > { %5672 = vmatpush3.bf16.msra.mxu1 %v6470_v21  ;;  %v1271_v21 = vcombine.high %v1255_v16, %v1255_v16 }
  0xf5   : > { %5673 = vmatprep.subr.bf16.mxu1 %v6473_v28  ;;  %v6518_v28 = vld [vmem:[%s6768_s23 + $0x8d0] sm:$0xff]  }
  0xf6   : > { %5652 = vmatpush3.bf16.msra.mxu0 %v6472_v25  ;;  %v6515_v25 = vld [vmem:[%s6768_s23 + $0x888] sm:$0xff]  }
  0xf7   : > { %5681 = vmatprep.subr.bf16.mxu0 %v6475_v32  ;;  %v6522_v32 = vld [vmem:[%s6768_s23 + $0x8d8] sm:$0xff]  }
  0xf8   : > { %5674 = vmatpush3.bf16.msra.mxu1 %v6474_v29  ;;  %v6519_v29 = vld [vmem:[%s6768_s23 + $0x890] sm:$0xff]  }
  0xf9   : > { %3639 = vmatmul.mubr.bf16.vlgmr.msra.gmra.mrb[24].mxu0 %v1248_v31  ;;  %5703 = vmatprep.subr.bf16.mxu1 %v6477_v36  ;;  %v6521_v31 = vld [vmem:[%s6768_s23 + $0x818] sm:$0xff]   ;;  %v6525_v36 = vld [vmem:[%s6768_s23 + $0x820] sm:$0xff]  }
  0xfa   : > { %5682 = vmatpush3.bf16.msra.mxu0 %v6476_v33  ;;  %3718 = vmatprep.mubr.bf16.mxu0 %v1269_v35  ;;  %v6523_v33 = vld [vmem:[%s6768_s23 + $0x898] sm:$0xff]   ;;  %v6524_v35 = vld [vmem:[%s6768_s23 + $0x860] sm:$0xff]  }
  0xfb   : > { %3679 = vmatmul.mubr.bf16.vlgmr.msra.gmra.mrb[24].mxu1 %v1270_v38  ;;  %5683 = vmatprep.subr.bf16.mxu0 %v6479_v39  ;;  %v6527_v38 = vld [vmem:[%s6768_s23 + $0x8a0] sm:$0xff]   ;;  %v6528_v39 = vld [vmem:[%s6768_s23 + $0x868] sm:$0xff]  }
  0xfc   : > { %5704 = vmatpush3.bf16.msra.mxu1 %v6478_v37  ;;  %3758 = vmatprep.mubr.bf16.mxu1 %v1273_v41  ;;  %v6526_v37 = vld [vmem:[%s6768_s23 + $0x8e0] sm:$0xff]   ;;  %v6530_v41 = vld [vmem:[%s6768_s23 + $0x8e8] sm:$0xff]  }
  0xfd   : > { %5705 = vmatprep.subr.bf16.mxu1 %v6481_v43  ;;  %v6531_v43 = vld [vmem:[%s6768_s23 + $0x8a8] sm:$0xff]  }
  0xfe   : > { %5684 = vmatpush3.bf16.msra.mxu0 %v6480_v40  ;;  %v6529_v40 = vld [vmem:[%s6768_s23 + $0x828] sm:$0xff]  }
  0xff   : > { %5685 = vmatprep.subr.bf16.mxu0 %v6483_v45  ;;  %v7108_v45 = vld [vmem:[%s6763_s19 + $0x20] sm:$0x1f] }
 0x100   : > { %5706 = vmatpush3.bf16.msra.mxu1 %v6482_v44  ;;  %v6532_v44 = vld [vmem:[%s6768_s23 + $0x870] sm:$0xff]  }
 0x101   : > { %5707 = vmatprep.subr.bf16.mxu1 %v6485_v47  ;;  %v6533_v47 = vld [vmem:[%s6768_s23 + $0x830] sm:$0xff]  }
 0x102   : > { %5686 = vmatpush3.bf16.msra.mxu0 %v6484_v46 }
 0x103   : > { %5687 = vmatprep.subr.bf16.mxu0 %v6487_v49 }
 0x104   : > { %5708 = vmatpush3.bf16.msra.mxu1 %v6486_v48  ;;  %v1281_v48 = vrot.slane %v7108_v45, %v6809_v42 }
 0x105   : > { %5709 = vmatprep.subr.bf16.mxu1 %v6489_v51 }
 0x106   : > { %5688 = vmatpush3.bf16.msra.mxu0 %v6488_v50  ;;  %v6534_v50 = vld [vmem:[%s6768_s23 + $0x8f0] sm:$0xff]  }
 0x107   : > { %5689 = vmatprep.subr.bf16.mxu0 %v6491_v53 }
 0x108   : > { %5710 = vmatpush3.bf16.msra.mxu1 %v6490_v52 }
 0x109   : > { %5711 = vmatprep.subr.bf16.mxu1 %v6493_v55 }
 0x10a   : > { %5690 = vmatpush3.bf16.msra.mxu0 %v6492_v54  ;;  %v1289_v54 = vcombine.high %v1281_v48, %v1281_v48 }
 0x10b   : > { %5691 = vmatprep.subr.bf16.mxu0 %v6495_v57  ;;  %v6535_v57 = vld [vmem:[%s6768_s23 + $0x8b0] sm:$0xff]  }
 0x10c   : > { %v5389_v62 = vpop.f32.mrb[0].mxu0  ;;  %5712 = vmatpush3.bf16.msra.mxu1 %v6494_v56 }
 0x10d   : > { %v5390_v0 = vpop.f32.mrb[1].mxu0  ;;  %5713 = vmatprep.subr.bf16.mxu1 %v6497_v59  ;;  %v5411_v2 = vpop.f32.mrb[0].mxu1 }
 0x10e   : > { %v5391_v3 = vadd.f32 %v5390_v0, %v5389_v62  ;;  %v5392_v4 = vpop.f32.mrb[2].mxu0  ;;  %5692 = vmatpush3.bf16.msra.mxu0 %v6496_v58  ;;  %v5412_v7 = vpop.f32.mrb[1].mxu1  ;;  %v6536_v58 = vld [vmem:[%s6768_s23 + $0x878] sm:$0xff]  }
 0x10f   : > { %v5393_v8 = vpop.f32.mrb[3].mxu0  ;;  %5693 = vmatprep.subr.bf16.mxu0 %v6499_v61  ;;  %v5413_v9 = vadd.f32 %v5412_v7, %v5411_v2  ;;  %v5414_v11 = vpop.f32.mrb[2].mxu1  ;;  %v1310_v61 = vrot.slane %v1289_v54, %v6809_v42  ;;  %v6538_v62 = vld [vmem:[%s6768_s23 + $0x8f8] sm:$0xff]   ;;  %v1296_v4 = vrot.slane %v1281_v48, %v6809_v42  ;;  %v6665_v7 = vmov 0.0  }
 0x110   : > { %5714 = vmatpush3.bf16.msra.mxu1 %v6498_v60  ;;  %v5415_v13 = vpop.f32.mrb[3].mxu1  ;;  %v6544_v11 = vld [vmem:[%s6768_s23 + $0x918] sm:$0xff]  }
 0x111   : > { %5715 = vmatprep.subr.bf16.mxu1 %v6501_v1  ;;  %v7077_v14 = vadd.f32 %v5413_v9, %v5391_v3  ;;  %v6537_v1 = vld [vmem:[%s6768_s23 + $0x838] sm:$0xff]   ;;  %v1312_v2 = vcombine.high %v1310_v61, %v1310_v61  ;;  %v1311_v8 = vcombine.high %v1296_v4, %v1296_v4  ;;  %v6542_v9 = vld [vmem:[%s6768_s23 + $0x908] sm:$0xff]  }
 0x112   : > { %5694 = vmatpush3.bf16.msra.mxu0 %v6500_v63  ;;  %v6546_v13 = vld [vmem:[%s6768_s23 + $0x928] sm:$0xff]  }
 0x113   : > { %5695 = vmatprep.subr.bf16.mxu0 %v6503_v6  ;;  %v6541_v6 = vld [vmem:[%s6768_s23 + $0x900] sm:$0xff]  }
 0x114   : > { %5716 = vmatpush3.bf16.msra.mxu1 %v6502_v5  ;;  %v6540_v5 = vld [vmem:[%s6768_s23 + $0x8b8] sm:$0xff]  }
 0x115   : > { %5717 = vmatprep.subr.bf16.mxu1 %v6505_v12  ;;  %v6545_v12 = vld [vmem:[%s6768_s23 + $0x920] sm:$0xff]  }
 0x116   : > { %5696 = vmatpush3.bf16.msra.mxu0 %v6504_v10  ;;  %v6543_v10 = vld [vmem:[%s6768_s23 + $0x910] sm:$0xff]  }
 0x117   : > { %5725 = vmatprep.subr.bf16.mxu0 %v6508_v17 }
 0x118   : > { %5718 = vmatpush3.bf16.msra.mxu1 %v6507_v15  ;;  %v1274_v15 = vcombine.high %v7108_v45, %v7108_v45 }
 0x119   : > { %3719 = vmatmul.mubr.bf16.vlgmr.msra.gmra.mrb[28].mxu0 %v1255_v16  ;;  %5747 = vmatprep.subr.bf16.mxu1 %v6510_v19 }
 0x11a   : > { %5726 = vmatpush3.bf16.msra.mxu0 %v6509_v18  ;;  %3798 = vmatprep.mubr.bf16.mxu0 %v1310_v61 }
 0x11b   : > { %3759 = vmatmul.mubr.bf16.vlgmr.msra.gmra.mrb[28].mxu1 %v1271_v21  ;;  %5727 = vmatprep.subr.bf16.mxu0 %v6512_v22 }
 0x11c   : > { %5748 = vmatpush3.bf16.msra.mxu1 %v6511_v20  ;;  %3838 = vmatprep.mubr.bf16.mxu1 %v1312_v2  ;;  %v6547_v20 = vld [vmem:[%s6768_s23 + $0x930] sm:$0xff]  }
 0x11d   : > { %5749 = vmatprep.subr.bf16.mxu1 %v6514_v23 }
 0x11e   : > { %5728 = vmatpush3.bf16.msra.mxu0 %v6513_v24 }
 0x11f   : > { %5729 = vmatprep.subr.bf16.mxu0 %v6516_v26  ;;  %v1288_v26 = vrot.slane %v1274_v15, %v6809_v42 }
 0x120   : > { %5750 = vmatpush3.bf16.msra.mxu1 %v6515_v25 }
 0x121   : > { %5751 = vmatprep.subr.bf16.mxu1 %v6518_v28 }
 0x122   : > { %5730 = vmatpush3.bf16.msra.mxu0 %v6517_v27 }
 0x123   : > { %5731 = vmatprep.subr.bf16.mxu0 %v6520_v30  ;;  %v1303_v30 = vrot.slane %v1288_v26, %v6809_v42 }
 0x124   : > { %5752 = vmatpush3.bf16.msra.mxu1 %v6519_v29  ;;  %v6548_v29 = vld [vmem:[%s6768_s23 + $0x938] sm:$0xff]  }
 0x125   : > { %5753 = vmatprep.subr.bf16.mxu1 %v6522_v32 }
 0x126   : > { %5732 = vmatpush3.bf16.msra.mxu0 %v6521_v31 }
 0x127   : > { %5733 = vmatprep.subr.bf16.mxu0 %v6524_v35 }
 0x128   : > { %5754 = vmatpush3.bf16.msra.mxu1 %v6523_v33 }
 0x129   : > { %5755 = vmatprep.subr.bf16.mxu1 %v6526_v37 }
 0x12a   : > { %5734 = vmatpush3.bf16.msra.mxu0 %v6525_v36 }
 0x12b   : > { %5735 = vmatprep.subr.bf16.mxu0 %v6528_v39 }
 0x12c   : > { %v5433_v46 = vpop.f32.mrb[4].mxu0  ;;  %5756 = vmatpush3.bf16.msra.mxu1 %v6527_v38 }
 0x12d   : > { %v5434_v49 = vpop.f32.mrb[5].mxu0  ;;  %5757 = vmatprep.subr.bf16.mxu1 %v6530_v41  ;;  %v5455_v53 = vpop.f32.mrb[4].mxu1 }
 0x12e   : > { %v5435_v51 = vadd.f32 %v5434_v49, %v5433_v46  ;;  %v5436_v52 = vpop.f32.mrb[6].mxu0  ;;  %5736 = vmatpush3.bf16.msra.mxu0 %v6529_v40  ;;  %v5456_v56 = vpop.f32.mrb[5].mxu1 }
 0x12f   : > { %v5437_v55 = vpop.f32.mrb[7].mxu0  ;;  %5737 = vmatprep.subr.bf16.mxu0 %v6532_v44  ;;  %v5457_v60 = vadd.f32 %v5456_v56, %v5455_v53  ;;  %v5458_v63 = vpop.f32.mrb[6].mxu1 }
 0x130   : > { %v3241_v59 = vadd.f32 %v5435_v51, %v7077_v14  ;;  %5758 = vmatpush3.bf16.msra.mxu1 %v6531_v43  ;;  %v5459_v3 = vpop.f32.mrb[7].mxu1 }
 0x131   : > { %5759 = vmatprep.subr.bf16.mxu1 %v6534_v50 }
 0x132   : > { %v3281_v0 = vadd.f32 %v5457_v60, %v3241_v59  ;;  %5738 = vmatpush3.bf16.msra.mxu0 %v6533_v47 }
 0x133   : > { %5739 = vmatprep.subr.bf16.mxu0 %v6536_v58 }
 0x134   : > { %5760 = vmatpush3.bf16.msra.mxu1 %v6535_v57 }
 0x135   : > { %5761 = vmatprep.subr.bf16.mxu1 %v6538_v62 }
 0x136   : > { %5740 = vmatpush3.bf16.msra.mxu0 %v6537_v1 }
 0x137   : > { %5872 = vmatprep.subr.bf16.mxu0 %v6665_v7 }
 0x138   : > { %5762 = vmatpush3.bf16.msra.mxu1 %v6540_v5 }
 0x139   : > { %3799 = vmatmul.mubr.bf16.vlgmr.msra.gmra.mrb[32].mxu0 %v1296_v4 }
 0x13a   : > { %5873 = vmatpush3.bf16.msra.mxu0 %v6541_v6  ;;  %5888 = vmatprep.mubr.msk.bf16.mxu0 %vm6666_vm1, %v6665_v7 }
 0x13b   : > { %3839 = vmatmul.mubr.bf16.vlgmr.msra.gmra.mrb[32].mxu1 %v1311_v8  ;;  %5874 = vmatprep.subr.bf16.mxu0 %v6665_v7 }
 0x13e   : > { %5875 = vmatpush3.bf16.msra.mxu0 %v6542_v9 }
 0x13f   : > { %5876 = vmatprep.subr.bf16.mxu0 %v6665_v7 }
 0x142   : > { %5877 = vmatpush3.bf16.msra.mxu0 %v6543_v10 }
 0x143   : > { %5878 = vmatprep.subr.bf16.mxu0 %v6665_v7 }
 0x146   : > { %5879 = vmatpush3.bf16.msra.mxu0 %v6544_v11 }
 0x147   : > { %5880 = vmatprep.subr.bf16.mxu0 %v6665_v7 }
 0x14a   : > { %5881 = vmatpush3.bf16.msra.mxu0 %v6545_v12 }
 0x14b   : > { %5882 = vmatprep.subr.bf16.mxu0 %v6665_v7 }
 0x14c   : > { %v5477_v14 = vpop.f32.mrb[8].mxu0 }
 0x14d   : > { %v5478_v16 = vpop.f32.mrb[9].mxu0 }
 0x14e   : > { %v5479_v17 = vadd.f32 %v5478_v16, %v5477_v14  ;;  %v5480_v18 = vpop.f32.mrb[10].mxu0  ;;  %v5499_v19 = vpop.f32.mrb[8].mxu1  ;;  %5883 = vmatpush3.bf16.msra.mxu0 %v6546_v13 }
 0x14f   : > { %v5481_v21 = vpop.f32.mrb[11].mxu0  ;;  %v5500_v22 = vpop.f32.mrb[9].mxu1  ;;  %5884 = vmatprep.subr.bf16.mxu0 %v6665_v7 }
 0x150   : > { %v3321_v24 = vadd.f32 %v5479_v17, %v3281_v0  ;;  %v5501_v23 = vadd.f32 %v5500_v22, %v5499_v19  ;;  %v5502_v25 = vpop.f32.mrb[10].mxu1 }
 0x151   : > { %v5503_v27 = vpop.f32.mrb[11].mxu1 }
 0x152   : > { %v3361_v28 = vadd.f32 %v5501_v23, %v3321_v24  ;;  %5885 = vmatpush3.bf16.msra.mxu0 %v6547_v20 }
 0x153   : > { %5886 = vmatprep.subr.bf16.mxu0 %v6665_v7 }
 0x156   : > { %5887 = vmatpush3.bf16.msra.mxu0 %v6548_v29 }
 0x159   : > { %5889 = vmatmul.mubr.bf16.vlgmr.msra.gmra.mrb[36].mxu0 %v1303_v30 }
 0x16c   : > { %v5521_v31 = vpop.f32.mrb[12].mxu0 }
 0x16d   : > { %v5522_v32 = vpop.f32.mrb[13].mxu0 }
 0x16e   : > { %v5523_v33 = vadd.f32 %v5522_v32, %v5521_v31  ;;  %v5524_v35 = vpop.f32.mrb[14].mxu0  ;;  %v5543_v36 = vpop.f32.mrb[12].mxu1 }
 0x16f   : > { %v5525_v37 = vpop.f32.mrb[15].mxu0  ;;  %v5544_v38 = vpop.f32.mrb[13].mxu1 }
 0x170   : > { %v3401_v39 = vadd.f32 %v5523_v33, %v3361_v28  ;;  %v5545_v40 = vadd.f32 %v5544_v38, %v5543_v36  ;;  %v5546_v41 = vpop.f32.mrb[14].mxu1 }
 0x171   : > { %v5547_v43 = vpop.f32.mrb[15].mxu1  ;;  %v475_v41 = vld [vmem:[#allocation2] sm:$0x3] }
 0x172   : > { %v3441_v44 = vadd.f32 %v5545_v40, %v3401_v39 }
 0x18c   : > { %v5565_v45 = vpop.f32.mrb[16].mxu0 }
 0x18d   : > { %v5566_v46 = vpop.f32.mrb[17].mxu0 }
 0x18e   : > { %v5567_v47 = vadd.f32 %v5566_v46, %v5565_v45  ;;  %v5568_v48 = vpop.f32.mrb[18].mxu0  ;;  %v5587_v49 = vpop.f32.mrb[16].mxu1 }
 0x18f   : > { %v5569_v42 = vpop.f32.mrb[19].mxu0  ;;  %v5588_v50 = vpop.f32.mrb[17].mxu1 }
 0x190   : > { %v3481_v51 = vadd.f32 %v5567_v47, %v3441_v44  ;;  %v5589_v52 = vadd.f32 %v5588_v50, %v5587_v49  ;;  %v5590_v53 = vpop.f32.mrb[18].mxu1  ;;  %v3904_v49 = vld [vmem:[%s7586_s4] sm:$0xff] (!%p5349_p6)  ;;  %v3905_v42 = vld [vmem:[%s7586_s4 + $0x8] sm:$0xff] (!%p5349_p6) }
 0x191   : > { %v5591_v54 = vpop.f32.mrb[19].mxu1  ;;  %v3990_v50 = vld [vmem:[%s7586_s4 + $0xc0] sm:$0xff] (!%p5349_p6)  ;;  %v3991_v53 = vld [vmem:[%s7586_s4 + $0xc8] sm:$0xff] (!%p5349_p6) }
 0x192   : > { %v3521_v55 = vadd.f32 %v5589_v52, %v3481_v51  ;;  %v6667_v51 = vmov (!%p5349_p6), 0.0|0.0   ;;  %v6093_v52 = vpack.c.bf16 (!%p5349_p6), %v3905_v42, %v3904_v49  ;;  %v3906_v54 = vld [vmem:[%s7586_s4 + $0x10] sm:$0xff] (!%p5349_p6)  ;;  %v4340_v49 = vld [vmem:[%s7586_s4 + $0x158] sm:$0xff] (!%p5349_p6) }
 0x193   : > { %6092 = vmatprep.subr.bf16.mxu0 (!%p5349_p6), %v6667_v51  ;;  %6104 = vmatprep.subr.bf16.mxu1 (!%p5349_p6), %v6667_v51 }
 0x194   : > { %6094 = vmatpush3.bf16.msra.mxu0 (!%p5349_p6), %v6093_v52  ;;  %v4259_v52 = vld [vmem:[%s7586_s4 + $0xa0] sm:$0xff] (!%p5349_p6) }
 0x195   : > { %6095 = vmatprep.subr.bf16.mxu0 (!%p5349_p6), %v6667_v51 }
 0x1ac   : > { %v5609_v56 = vpop.f32.mrb[20].mxu0 }
 0x1ad   : > { %v5610_v57 = vpop.f32.mrb[21].mxu0 }
 0x1ae   : > { %v5611_v58 = vadd.f32 %v5610_v57, %v5609_v56  ;;  %v5612_v59 = vpop.f32.mrb[22].mxu0  ;;  %v5631_v60 = vpop.f32.mrb[20].mxu1  ;;  %v6105_v56 = vpack.c.bf16 (!%p5349_p6), %v3991_v53, %v3990_v50  ;;  %v3992_v57 = vld [vmem:[%s7586_s4 + $0xd0] sm:$0xff] (!%p5349_p6)  ;;  %v4260_v53 = vld [vmem:[%s7586_s4 + $0xa8] sm:$0xff] (!%p5349_p6) }
 0x1af   : > { %v5613_v61 = vpop.f32.mrb[23].mxu0  ;;  %v5632_v62 = vpop.f32.mrb[21].mxu1  ;;  %v6669_v59 = vmov (!%p5349_p6), 0.0  }
 0x1b0   : > { %v3561_v63 = vadd.f32 %v5611_v58, %v3521_v55  ;;  %v5633_v0 = vadd.f32 %v5632_v62, %v5631_v60  ;;  %v5634_v1 = vpop.f32.mrb[22].mxu1  ;;  %v3907_v55 = vld [vmem:[%s7586_s4 + $0x18] sm:$0xff] (!%p5349_p6)  ;;  %5908 = vmatprep.mubr.msk.f32.mxu0 (!%p5349_p6), %vm6668_vm3, %v6669_v59  ;;  %5927 = vmatprep.mubr.msk.f32.mxu1 (!%p5349_p6), %vm6668_vm3, %v6669_v59  ;;  %v3908_v62 = vld [vmem:[%s7586_s4 + $0x20] sm:$0xff] (!%p5349_p6) }
 0x1b1   : > { %v5635_v2 = vpop.f32.mrb[23].mxu1  ;;  %v3993_v58 = vld [vmem:[%s7586_s4 + $0xd8] sm:$0xff] (!%p5349_p6)  ;;  %v6096_v60 = vpack.c.bf16 (!%p5349_p6), %v3907_v55, %v3906_v54  ;;  %6106 = vmatpush3.bf16.msra.mxu1 (!%p5349_p6), %v6105_v56  ;;  %v3995_v1 = vld [vmem:[%s7586_s4 + $0xe8] sm:$0xff] (!%p5349_p6)  ;;  %v4341_v54 = vld [vmem:[%s7586_s4 + $0x160] sm:$0xff] (!%p5349_p6)  ;;  %v6147_v56 = vpack.c.bf16 (!%p5349_p6), %v4260_v53, %v4259_v52 }
 0x1b2   : > { %v3601_v3 = vadd.f32 %v5633_v0, %v3561_v63  ;;  %v6108_v61 = vpack.c.bf16 (!%p5349_p6), %v3993_v58, %v3992_v57  ;;  %v3909_v63 = vld [vmem:[%s7586_s4 + $0x28] sm:$0xff] (!%p5349_p6)  ;;  %6107 = vmatprep.subr.bf16.mxu1 (!%p5349_p6), %v6667_v51  ;;  %v3994_v0 = vld [vmem:[%s7586_s4 + $0xe0] sm:$0xff] (!%p5349_p6)  ;;  %v4261_v58 = vld [vmem:[%s7586_s4 + $0xb0] sm:$0xff] (!%p5349_p6) }
 0x1b3   : > { %6097 = vmatpush3.bf16.msra.mxu0 (!%p5349_p6), %v6096_v60  ;;  %v6099_v2 = vpack.c.bf16 (!%p5349_p6), %v3909_v63, %v3908_v62  ;;  %v4342_v55 = vld [vmem:[%s7586_s4 + $0x168] sm:$0xff] (!%p5349_p6)  ;;  %v4262_v60 = vld [vmem:[%s7586_s4 + $0xb8] sm:$0xff] (!%p5349_p6) }
 0x1b4   : > { %6098 = vmatprep.subr.bf16.mxu0 (!%p5349_p6), %v6667_v51  ;;  %v6159_v57 = vpack.c.bf16 (!%p5349_p6), %v4342_v55, %v4341_v54  ;;  %v4344_v62 = vld [vmem:[%s7586_s4 + $0x178] sm:$0xff] (!%p5349_p6)  ;;  %v6150_v63 = vpack.c.bf16 (!%p5349_p6), %v4262_v60, %v4261_v58  ;;  %v4265_v58 = vsub.s32 (!%p5349_p6), 2, %v6803_v34 }
 0x1b5   : > { %6109 = vmatpush3.bf16.msra.mxu1 (!%p5349_p6), %v6108_v61  ;;  %v4343_v61 = vld [vmem:[%s7586_s4 + $0x170] sm:$0xff] (!%p5349_p6) }
 0x1b6   : > { %6110 = vmatprep.subr.bf16.mxu1 (!%p5349_p6), %v6667_v51 }
 0x1b7   : > { %6100 = vmatpush3.bf16.msra.mxu0 (!%p5349_p6), %v6099_v2  ;;  %v4429_v2 = vld [vmem:[%s7588_s6 + $0x8] sm:$0xff] (!%p5349_p6) }
 0x1b8   : > { %6101 = vmatprep.subr.bf16.mxu0 (!%p5349_p6), %v6667_v51 }
 0x1cc   : > { %v5653_v4 = vpop.f32.mrb[24].mxu0 }
 0x1cd   : > { %v5654_v5 = vpop.f32.mrb[25].mxu0 }
 0x1ce   : > { %v5655_v6 = vadd.f32 %v5654_v5, %v5653_v4  ;;  %v5656_v7 = vpop.f32.mrb[26].mxu0  ;;  %v5675_v8 = vpop.f32.mrb[24].mxu1  ;;  %v3910_v4 = vld [vmem:[%s7586_s4 + $0x30] sm:$0xff] (!%p5349_p6)  ;;  %v3911_v5 = vld [vmem:[%s7586_s4 + $0x38] sm:$0xff] (!%p5349_p6) }
 0x1cf   : > { %v5657_v9 = vpop.f32.mrb[27].mxu0  ;;  %v5676_v10 = vpop.f32.mrb[25].mxu1  ;;  %v3997_v7 = vld [vmem:[%s7586_s4 + $0xf8] sm:$0xff] (!%p5349_p6) }
 0x1d0   : > { %v3641_v11 = vadd.f32 %v5655_v6, %v3601_v3  ;;  %v5677_v12 = vadd.f32 %v5676_v10, %v5675_v8  ;;  %v5678_v13 = vpop.f32.mrb[26].mxu1  ;;  %v6111_v3 = vpack.c.bf16 (!%p5349_p6), %v3995_v1, %v3994_v0  ;;  %v3996_v6 = vld [vmem:[%s7586_s4 + $0xf0] sm:$0xff] (!%p5349_p6)  ;;  %v6102_v8 = vpack.c.bf16 (!%p5349_p6), %v3911_v5, %v3910_v4  ;;  %v5350_v10 = vld [vmem:[%s7585_s3] ss:$0 sm:$0xff] (!%p5349_p6)  ;;  %v4515_v5 = vld [vmem:[%s7588_s6 + $0x48] sm:$0xff] (!%p5349_p6) }
 0x1d1   : > { %v5679_v14 = vpop.f32.mrb[27].mxu1  ;;  %v4084_v13 = vld [vmem:[%s7586_s4 + $0x48] sm:$0xff] (!%p5349_p6)  ;;  %v6162_v0 = vpack.c.bf16 (!%p5349_p6), %v4344_v62, %v4343_v61  ;;  %v4428_v1 = vld [vmem:[%s7588_s6] sm:$0xff] (!%p5349_p6) }
 0x1d2   : > { %v3681_v15 = vadd.f32 %v5677_v12, %v3641_v11  ;;  %6112 = vmatpush3.bf16.msra.mxu1 (!%p5349_p6), %v6111_v3  ;;  %v6114_v11 = vpack.c.bf16 (!%p5349_p6), %v3997_v7, %v3996_v6  ;;  %v4083_v12 = vld [vmem:[%s7586_s4 + $0x40] sm:$0xff] (!%p5349_p6)  ;;  %6103 = vmatpush3.bf16.msra.mxu0 (!%p5349_p6), %v6102_v8  ;;  %v6165_v4 = vpack.c.bf16 (!%p5349_p6), %v4429_v2, %v4428_v1  ;;  %v4430_v6 = vld [vmem:[%s7588_s6 + $0x10] sm:$0xff] (!%p5349_p6)  ;;  %v4431_v7 = vld [vmem:[%s7588_s6 + $0x18] sm:$0xff] (!%p5349_p6) }
 0x1d3   : > { %6113 = vmatprep.subr.bf16.mxu1 (!%p5349_p6), %v6667_v51  ;;  %v4165_v14 = vld [vmem:[%s7586_s4 + $0x100] sm:$0xff] (!%p5349_p6)  ;;  %6116 = vmatprep.subr.bf16.mxu0 (!%p5349_p6), %v6667_v51 }
 0x1d4   : > { %v4514_v3 = vld [vmem:[%s7588_s6 + $0x40] sm:$0xff] (!%p5349_p6) }
 0x1d5   : > { %v6177_v8 = vpack.c.bf16 (!%p5349_p6), %v4515_v5, %v4514_v3 }
 0x1d6   : > { %6115 = vmatpush3.bf16.msra.mxu1 (!%p5349_p6), %v6114_v11  ;;  %v6168_v11 = vpack.c.bf16 (!%p5349_p6), %v4431_v7, %v4430_v6 }
 0x1d7   : > { %6128 = vmatprep.subr.bf16.mxu1 (!%p5349_p6), %v6667_v51 }
 0x1ec   : > { %v5697_v16 = vpop.f32.mrb[28].mxu0 }
 0x1ed   : > { %v5698_v17 = vpop.f32.mrb[29].mxu0 }
 0x1ee   : > { %v5699_v18 = vadd.f32 %v5698_v17, %v5697_v16  ;;  %v5700_v19 = vpop.f32.mrb[30].mxu0  ;;  %v5719_v20 = vpop.f32.mrb[28].mxu1  ;;  %v6117_v17 = vpack.c.bf16 (!%p5349_p6), %v4084_v13, %v4083_v12  ;;  %v4432_v13 = vld [vmem:[%s7588_s6 + $0x20] sm:$0xff] (!%p5349_p6) }
 0x1ef   : > { %v5701_v21 = vpop.f32.mrb[31].mxu0  ;;  %v5720_v22 = vpop.f32.mrb[29].mxu1 }
 0x1f0   : > { %v3721_v24 = vadd.f32 %v5699_v18, %v3681_v15  ;;  %v5721_v23 = vadd.f32 %v5720_v22, %v5719_v20  ;;  %v5722_v25 = vpop.f32.mrb[30].mxu1  ;;  %v4166_v15 = vld [vmem:[%s7586_s4 + $0x108] sm:$0xff] (!%p5349_p6)  ;;  %v7217_v18 = vld [vmem:[%s7583_s1] sm:$0x3] (!%p5349_p6)  ;;  %v4085_v20 = vld [vmem:[%s7586_s4 + $0x50] sm:$0xff] (!%p5349_p6) }
 0x1f1   : > { %v5723_v26 = vpop.f32.mrb[31].mxu1  ;;  %v6129_v19 = vpack.c.bf16 (!%p5349_p6), %v4166_v15, %v4165_v14  ;;  %v4086_v21 = vld [vmem:[%s7586_s4 + $0x58] sm:$0xff] (!%p5349_p6)  ;;  %v4167_v22 = vld [vmem:[%s7586_s4 + $0x110] sm:$0xff] (!%p5349_p6)  ;;  %5928 = vmatmul.mubr.msk.f32.vlgmr.msra.gmra.mrb[0].mxu1 (!%p5349_p6), %vm3916_vm4, %v7217_v18  ;;  %v4433_v14 = vld [vmem:[%s7588_s6 + $0x28] sm:$0xff] (!%p5349_p6) }
 0x1f2   : > { %v3761_v27 = vadd.f32 %v5721_v23, %v3721_v24  ;;  %v4168_v24 = vld [vmem:[%s7586_s4 + $0x118] sm:$0xff] (!%p5349_p6)  ;;  %v6120_v23 = vpack.c.bf16 (!%p5349_p6), %v4086_v21, %v4085_v20  ;;  %v4087_v26 = vld [vmem:[%s7586_s4 + $0x60] sm:$0xff] (!%p5349_p6)  ;;  %5965 = vmatprep.mubr.msk.f32.mxu1 (!%p5349_p6), %vm6668_vm3, %v6669_v59  ;;  %v4434_v20 = vld [vmem:[%s7588_s6 + $0x30] sm:$0xff] (!%p5349_p6) }
 0x1f3   : > { %6130 = vmatpush3.bf16.msra.mxu1 (!%p5349_p6), %v6129_v19  ;;  %v6132_v25 = vpack.c.bf16 (!%p5349_p6), %v4168_v24, %v4167_v22  ;;  %v4518_v15 = vld [vmem:[%s7588_s6 + $0x60] sm:$0xff] (!%p5349_p6)  ;;  %v4435_v21 = vld [vmem:[%s7588_s6 + $0x38] sm:$0xff] (!%p5349_p6)  ;;  %v4520_v22 = vld [vmem:[%s7588_s6 + $0x70] sm:$0xff] (!%p5349_p6) }
 0x1f4   : > { %6131 = vmatprep.subr.bf16.mxu1 (!%p5349_p6), %v6667_v51  ;;  %v4521_v24 = vld [vmem:[%s7588_s6 + $0x78] sm:$0xff] (!%p5349_p6) }
 0x1f7   : > { %6133 = vmatpush3.bf16.msra.mxu1 (!%p5349_p6), %v6132_v25  ;;  %v6186_v25 = vpack.c.bf16 (!%p5349_p6), %v4521_v24, %v4520_v22  ;;  %v4603_v22 = vld [vmem:[%s7590_s8 + $0x28] sm:$0xff] (!%p5349_p6) }
 0x1f8   : > { %6134 = vmatprep.subr.bf16.mxu1 (!%p5349_p6), %v6667_v51 }
 0x20c   : > { %v5741_v28 = vpop.f32.mrb[32].mxu0 }
 0x20d   : > { %v5742_v29 = vpop.f32.mrb[33].mxu0 }
 0x20e   : > { %v5743_v30 = vadd.f32 %v5742_v29, %v5741_v28  ;;  %v5744_v31 = vpop.f32.mrb[34].mxu0  ;;  %v5763_v32 = vpop.f32.mrb[32].mxu1  ;;  %v4169_v28 = vld [vmem:[%s7586_s4 + $0x120] sm:$0xff] (!%p5349_p6)  ;;  %v4170_v29 = vld [vmem:[%s7586_s4 + $0x128] sm:$0xff] (!%p5349_p6) }
 0x20f   : > { %v5745_v33 = vpop.f32.mrb[35].mxu0  ;;  %v5764_v35 = vpop.f32.mrb[33].mxu1  ;;  %v6135_v31 = vpack.c.bf16 (!%p5349_p6), %v4170_v29, %v4169_v28  ;;  %v4074_v29 = vsub.s32 (!%p5349_p6), 3, %v6803_v34 }
 0x210   : > { %v3801_v36 = vadd.f32 %v5743_v30, %v3761_v27  ;;  %v5765_v37 = vadd.f32 %v5764_v35, %v5763_v32  ;;  %v5766_v38 = vpop.f32.mrb[34].mxu1  ;;  %v4088_v27 = vld [vmem:[%s7586_s4 + $0x68] sm:$0xff] (!%p5349_p6)  ;;  %v4089_v32 = vld [vmem:[%s7586_s4 + $0x70] sm:$0xff] (!%p5349_p6)  ;;  %v4090_v33 = vld [vmem:[%s7586_s4 + $0x78] sm:$0xff] (!%p5349_p6) }
 0x211   : > { %v5767_v39 = vpop.f32.mrb[35].mxu1  ;;  %v6123_v30 = vpack.c.bf16 (!%p5349_p6), %v4088_v27, %v4087_v26  ;;  %v4171_v35 = vld [vmem:[%s7586_s4 + $0x130] sm:$0xff] (!%p5349_p6)  ;;  %6136 = vmatpush3.bf16.msra.mxu1 (!%p5349_p6), %v6135_v31  ;;  %v7401_v26 = vsub.s32 (!%p5349_p6), 0, %v6803_v34  ;;  %v3903_v27 = vld [vmem:[%s7587_s5] sm:$0x3f] (!%p5349_p6) }
 0x212   : > { %v3841_v40 = vadd.f32 %v5765_v37, %v3801_v36  ;;  %v4172_v36 = vld [vmem:[%s7586_s4 + $0x138] sm:$0xff] (!%p5349_p6)  ;;  %v6126_v37 = vpack.c.bf16 (!%p5349_p6), %v4090_v33, %v4089_v32  ;;  %v4255_v39 = vld [vmem:[%s7586_s4 + $0x80] sm:$0xff] (!%p5349_p6)  ;;  %6137 = vmatprep.subr.bf16.mxu1 (!%p5349_p6), %v6667_v51  ;;  %v4266_v61 = vrot.slane (!%p5349_p6), %v3903_v27, %v4265_v58 }
 0x213   : > { %v6138_v38 = vpack.c.bf16 (!%p5349_p6), %v4172_v36, %v4171_v35  ;;  %v3915_v28 = vrot.slane (!%p5349_p6), %v3903_v27, %v7401_v26  ;;  %v4075_v35 = vrot.slane (!%p5349_p6), %v3903_v27, %v4074_v29 }
 0x215   : > { %6139 = vmatpush3.bf16.msra.mxu1 (!%p5349_p6), %v6138_v38 }
 0x216   : > { %6152 = vmatprep.subr.bf16.mxu1 (!%p5349_p6), %v6667_v51 }
 0x218   : > { %5966 = vmatmul.mubr.msk.f32.vlgmr.msra.gmra.mrb[2].mxu1 (!%p5349_p6), %vm3916_vm4, %v7217_v18 }
 0x219   : > { %6003 = vmatprep.mubr.msk.f32.mxu1 (!%p5349_p6), %vm6668_vm3, %v6669_v59 }
 0x22b   : > { %3892 = sbr.rel (%p5349_p6) target bundleno = 1524 (0x5f4), region = 72 }
 0x22c   : > { %v3880_v43 = vpop.f32.mrb[36].mxu0 }
 0x22d   : > { %v3881_v44 = vadd.f32 %v3880_v43, %v3841_v40  ;;  %v5890_v45 = vpop.f32.mrb[37].mxu0  ;;  %v4256_v40 = vld [vmem:[%s7586_s4 + $0x88] sm:$0xff] (!%p5349_p6) }
 0x22e   : > { %v3883_v46 = vpop.f32.mrb[38].mxu0  ;;  %v4338_v43 = vld [vmem:[%s7586_s4 + $0x148] sm:$0xff] (!%p5349_p6) }
 0x22f   : > { %v3886_v47 = vadd.f32 %v3881_v44, %v475_v41  ;;  %v5891_v48 = vpop.f32.mrb[39].mxu0  ;;  %v4337_v41 = vld [vmem:[%s7586_s4 + $0x140] sm:$0xff] (!%p5349_p6)  ;;  %v6141_v44 = vpack.c.bf16 (!%p5349_p6), %v4256_v40, %v4255_v39  ;;  %v4257_v46 = vld [vmem:[%s7586_s4 + $0x90] sm:$0xff] (!%p5349_p6) }
 0x230   : > { %v6153_v45 = vpack.c.bf16 (!%p5349_p6), %v4338_v43, %v4337_v41  ;;  %v4339_v48 = vld [vmem:[%s7586_s4 + $0x150] sm:$0xff] (!%p5349_p6)  ;;  %v7411_v41 = vsub.s32 (!%p5349_p6), 1, %v6803_v34 }
 0x231   : > { %3888 = vst.msk [vmem:[#allocation2] sm:$0x3] %vm3887_vm2, %v3886_v47  ;;  %v4258_v47 = vld [vmem:[%s7586_s4 + $0x98] sm:$0xff] (!%p5349_p6)  ;;  %v6156_v50 = vpack.c.bf16 (!%p5349_p6), %v4340_v49, %v4339_v48 }
 0x232   : > { %v6144_v42 = vpack.c.bf16 %v4258_v47, %v4257_v46  ;;  %6154 = vmatpush3.bf16.msra.mxu1 %v6153_v45  ;;  %v4094_v43 = vrot.slane %v3903_v27, %v7411_v41 }
 0x233   : > { %6155 = vmatprep.subr.bf16.mxu1 %v6667_v51 }
 0x236   : > { %6157 = vmatpush3.bf16.msra.mxu1 %v6156_v50 }
 0x237   : > { %6158 = vmatprep.subr.bf16.mxu1 %v6667_v51 }
 0x238   : > { %v3893_v9 = vld [vmem:[#allocation2] sm:$0x3] }
 0x239   : > { %v7211_v16 = vadd.f32 %v5350_v10, %v3893_v9  ;;  %v4516_v9 = vld [vmem:[%s7588_s6 + $0x50] sm:$0xff]  ;;  %v4517_v10 = vld [vmem:[%s7588_s6 + $0x58] sm:$0xff] }
 0x23a   : > { %6160 = vmatpush3.bf16.msra.mxu1 %v6159_v57  ;;  %v6180_v12 = vpack.c.bf16 %v4517_v10, %v4516_v9  ;;  %v4347_v57 = vsub.s32 5, %v6803_v34 }
 0x23b   : > { %5909 = vmatmul.mubr.msk.f32.vlgmr.msra.gmra.mrb[0].mxu0 %vm3916_vm4, %v7211_v16  ;;  %6161 = vmatprep.subr.bf16.mxu1 %v6667_v51 }
 0x23c   : > { %6118 = vmatpush3.bf16.msra.mxu0 %v6117_v17  ;;  %5946 = vmatprep.mubr.msk.f32.mxu0 %vm6668_vm3, %v6669_v59  ;;  %v6171_v17 = vpack.c.bf16 %v4433_v14, %v4432_v13  ;;  %v4348_v60 = vrot.slane %v3903_v27, %v4347_v57  ;;  %v4862_v57 = vld [vmem:[%s7590_s8 + $0x70] sm:$0xff] }
 0x23d   : > { %6119 = vmatprep.subr.bf16.mxu0 %v6667_v51 }
 0x23e   : > { %6163 = vmatpush3.bf16.msra.mxu1 %v6162_v0 }
 0x23f   : > { %6176 = vmatprep.subr.bf16.mxu1 %v6667_v51 }
 0x240   : > { %6121 = vmatpush3.bf16.msra.mxu0 %v6120_v23  ;;  %v6174_v23 = vpack.c.bf16 %v4435_v21, %v4434_v20  ;;  %v4602_v21 = vld [vmem:[%s7590_s8 + $0x20] sm:$0xff] }
 0x241   : > { %6122 = vmatprep.subr.bf16.mxu0 %v6667_v51  ;;  %6004 = vmatmul.mubr.msk.f32.vlgmr.msra.gmra.mrb[4].mxu1 %vm3916_vm4, %v7217_v18  ;;  %v6195_v24 = vpack.c.bf16 %v4603_v22, %v4602_v21 }
 0x242   : > { %6041 = vmatprep.mubr.msk.f32.mxu1 %vm6668_vm3, %v6669_v59  ;;  %6178 = vmatpush3.bf16.msra.mxu1 %v6177_v8 }
 0x243   : > { %6179 = vmatprep.subr.bf16.mxu1 %v6667_v51 }
 0x244   : > { %6124 = vmatpush3.bf16.msra.mxu0 %v6123_v30 }
 0x245   : > { %6125 = vmatprep.subr.bf16.mxu0 %v6667_v51 }
 0x246   : > { %6181 = vmatpush3.bf16.msra.mxu1 %v6180_v12  ;;  %v4599_v12 = vld [vmem:[%s7590_s8 + $0x8] sm:$0xff] }
 0x247   : > { %6182 = vmatprep.subr.bf16.mxu1 %v6667_v51 }
 0x248   : > { %6127 = vmatpush3.bf16.msra.mxu0 %v6126_v37 }
 0x249   : > { %6140 = vmatprep.subr.bf16.mxu0 %v6667_v51 }
 0x24b   : > { %5947 = vmatmul.mubr.msk.f32.vlgmr.msra.gmra.mrb[2].mxu0 %vm3916_vm4, %v7211_v16 }
 0x24c   : > { %6142 = vmatpush3.bf16.msra.mxu0 %v6141_v44  ;;  %5984 = vmatprep.mubr.msk.f32.mxu0 %vm6668_vm3, %v6669_v59  ;;  %v4246_v44 = vsub.s32 4, %v6803_v34 }
 0x24d   : > { %6143 = vmatprep.subr.bf16.mxu0 %v6667_v51 }
 0x24e   : > { %v4247_v49 = vrot.slane %v3903_v27, %v4246_v44  ;;  %v4856_v44 = vld [vmem:[%s7590_s8 + $0x40] sm:$0xff] }
 0x250   : > { %6145 = vmatpush3.bf16.msra.mxu0 %v6144_v42 }
 0x251   : > { %6146 = vmatprep.subr.bf16.mxu0 %v6667_v51 }
 0x254   : > { %6148 = vmatpush3.bf16.msra.mxu0 %v6147_v56 }
 0x255   : > { %6149 = vmatprep.subr.bf16.mxu0 %v6667_v51 }
 0x258   : > { %6151 = vmatpush3.bf16.msra.mxu0 %v6150_v63 }
 0x259   : > { %6164 = vmatprep.subr.bf16.mxu0 %v6667_v51 }
 0x25b   : > { %5985 = vmatmul.mubr.msk.f32.vlgmr.msra.gmra.mrb[4].mxu0 %vm3916_vm4, %v7211_v16  ;;  %v4519_v16 = vld [vmem:[%s7588_s6 + $0x68] sm:$0xff] }
 0x25c   : > { %6022 = vmatprep.mubr.msk.f32.mxu0 %vm6668_vm3, %v6669_v59  ;;  %6166 = vmatpush3.bf16.msra.mxu0 %v6165_v4  ;;  %v6183_v19 = vpack.c.bf16 %v4519_v16, %v4518_v15 }
 0x25d   : > { %6167 = vmatprep.subr.bf16.mxu0 %v6667_v51 }
 0x25e   : > { %6184 = vmatpush3.bf16.msra.mxu1 %v6183_v19  ;;  %v4601_v19 = vld [vmem:[%s7590_s8 + $0x18] sm:$0xff] }
 0x25f   : > { %6185 = vmatprep.subr.bf16.mxu1 %v6667_v51 }
 0x260   : > { %6169 = vmatpush3.bf16.msra.mxu0 %v6168_v11  ;;  %v4598_v11 = vld [vmem:[%s7590_s8] sm:$0xff] }
 0x261   : > { %6170 = vmatprep.subr.bf16.mxu0 %v6667_v51  ;;  %v6189_v16 = vpack.c.bf16 %v4599_v12, %v4598_v11 }
 0x262   : > { %6187 = vmatpush3.bf16.msra.mxu1 %v6186_v25  ;;  %v4605_v25 = vld [vmem:[%s7590_s8 + $0x38] sm:$0xff] }
 0x263   : > { %6068 = vmatprep.subr.mxu1 %v6669_v59 }
 0x264   : > { %6172 = vmatpush3.bf16.msra.mxu0 %v6171_v17 }
 0x265   : > { %6173 = vmatprep.subr.bf16.mxu0 %v6667_v51 }
 0x268   : > { %6175 = vmatpush3.bf16.msra.mxu0 %v6174_v23  ;;  %v4604_v23 = vld [vmem:[%s7590_s8 + $0x30] sm:$0xff] }
 0x269   : > { %6188 = vmatprep.subr.bf16.mxu0 %v6667_v51  ;;  %v6198_v27 = vpack.c.bf16 %v4605_v25, %v4604_v23 }
 0x2c4   : > { %v4067_v33 = vpop.f32.mrb[0].mxu1 }
 0x2c5   : > { %v5929_v36 = vpop.f32.mrb[1].mxu1 }
 0x2eb   : > { %v4239_v48 = vpop.f32.mrb[2].mxu1 }
 0x2ec   : > { %v5967_v42 = vpop.f32.mrb[3].mxu1 }
 0x30e   : > { %v3986_v30 = vpop.f32.mrb[0].mxu0 }
 0x30f   : > { %v3987_v31 = vadd.f32 %v3986_v30, %v3915_v28  ;;  %v5910_v32 = vpop.f32.mrb[1].mxu0  ;;  %v4769_v28 = vld [vmem:[%s7591_s9 + $0x2] sm:$0x3]  ;;  %v4427_v30 = vld [vmem:[%s7589_s7] sm:$0x3] }
 0x311   : > { %v4071_v37 = vadd.f32 %v4067_v33, %v3987_v31  ;;  %v4439_v31 = vrot.slane %v4427_v30, %v7401_v26 }
 0x313   : > { %v4076_v38 = vadd.f32 %v4075_v35, %v4071_v37 }
 0x314   : > { %v4415_v63 = vpop.f32.mrb[4].mxu1 }
 0x315   : > { %v4077_v39 = vsub.f32 0.0, %v4076_v38  ;;  %v4416_v2 = vadd.f32 %v4415_v63, %v4348_v60  ;;  %v6005_v4 = vpop.f32.mrb[5].mxu1 }
 0x317   : > { %v4078_v40 = vmul.f32 1.442695, %v4077_v39  ;;  %v4683_v39 = vld [vmem:[%s7591_s9] sm:$0x3] }
 0x319   : > { %6549 = vpow2.f32 %v4078_v40  ;;  %v4597_v40 = vld [vmem:[%s7592_s10] sm:$0xf] }
 0x31a   : > { %v4773_v63 = vrot.slane %v4597_v40, %v4265_v58 }
 0x31e   : > { %v4161_v45 = vpop.f32.mrb[2].mxu0 }
 0x31f   : > { %v4162_v46 = vadd.f32 %v4161_v45, %v4094_v43  ;;  %v5948_v47 = vpop.f32.mrb[3].mxu0  ;;  %v4609_v43 = vrot.slane %v4597_v40, %v7401_v26  ;;  %v4857_v45 = vld [vmem:[%s7590_s8 + $0x48] sm:$0xff]  ;;  %v4859_v26 = vld [vmem:[%s7590_s8 + $0x58] sm:$0xff] }
 0x321   : > { %v4243_v50 = vadd.f32 %v4239_v48, %v4162_v46  ;;  %v4525_v46 = vrot.slane %v4427_v30, %v7411_v41  ;;  %v6201_v48 = vpack.c.bf16 %v4857_v45, %v4856_v44 }
 0x323   : > { %v6550_v52 = vpop.eup %6549  ;;  %v4248_v53 = vadd.f32 %v4247_v49, %v4243_v50  ;;  %v4858_v50 = vld [vmem:[%s7590_s8 + $0x50] sm:$0xff] }
 0x324   : > { %v4080_v54 = vadd.f32 1.0, %v6550_v52 }
 0x325   : > { %v4249_v55 = vsub.f32 0.0, %v4248_v53  ;;  %v6204_v53 = vpack.c.bf16 %v4859_v26, %v4858_v50 }
 0x326   : > { %6551 = vrcp.f32 %v4080_v54  ;;  %v4860_v54 = vld [vmem:[%s7590_s8 + $0x60] sm:$0xff] }
 0x327   : > { %v4250_v56 = vmul.f32 1.442695, %v4249_v55  ;;  %v4861_v55 = vld [vmem:[%s7590_s8 + $0x68] sm:$0xff] }
 0x329   : > { %6553 = vpow2.f32 %v4250_v56  ;;  %v6207_v56 = vpack.c.bf16 %v4861_v55, %v4860_v54 }
 0x32e   : > { %v4333_v62 = vpop.f32.mrb[4].mxu0 }
 0x32f   : > { %v5986_v0 = vpop.f32.mrb[5].mxu0  ;;  %v4334_v3 = vadd.f32 %v4333_v62, %v4266_v61  ;;  %v4687_v62 = vrot.slane %v4597_v40, %v7411_v41 }
 0x330   : > { %v6552_v1 = vpop.eup %6551 }
 0x331   : > { %v4419_v5 = vmul.f32 %v6552_v1, %v4416_v2 }
 0x333   : > { %v6554_v6 = vpop.eup %6553  ;;  %v4420_v8 = vadd.f32 %v4419_v5, %v4334_v3 }
 0x334   : > { %v4252_v7 = vadd.f32 1.0, %v6554_v6 }
 0x336   : > { %6555 = vrcp.f32 %v4252_v7 }
 0x337   : > { %6557 = vtanh.f32 %v4420_v8  ;;  %v4867_v8 = vrot.slane %v4597_v40, %v4074_v29 }
 0x340   : > { %v6556_v9 = vpop.eup %6555 }
 0x341   : > { %v4422_v10 = vsub.f32 1.0, %v6556_v9  ;;  %v6558_v13 = vpop.eup %6557  ;;  %v4424_v15 = vmul.f32 %v6556_v9, %v7217_v18  ;;  %v4600_v18 = vld [vmem:[%s7590_s8 + $0x10] sm:$0xff] }
 0x342   : > { %v6192_v20 = vpack.c.bf16 %v4601_v19, %v4600_v18 }
 0x343   : > { %v4423_v14 = vmul.f32 %v6558_v13, %v4422_v10 }
 0x345   : > { %v4425_v17 = vadd.f32 %v4424_v15, %v4423_v14 }
 0x347   : > { %4426 = vst.msk [vmem:[#allocation7] sm:$0x3] %vm3887_vm2, %v4425_v17  ;;  %6023 = vmatmul.mubr.msk.f32.vlgmr.msra.gmra.mrb[6].mxu0 %vm3916_vm4, %v4425_v17  ;;  %6042 = vmatmul.mubr.msk.f32.vlgmr.msra.gmra.mrb[6].mxu1 %vm3916_vm4, %v4425_v17 }
 0x348   : > { %6190 = vmatpush3.bf16.msra.mxu0 %v6189_v16  ;;  %6060 = vmatprep.mubr.msk.f32.mxu0 %vm6668_vm3, %v6669_v59 }
 0x349   : > { %6191 = vmatprep.subr.bf16.mxu0 %v6667_v51  ;;  %6070 = vmatprep.mubr.msk.f32.mxu1 %vm6668_vm3, %v6669_v59 }
 0x34a   : > { %6069 = vmatpush3.msk.msra.mxu1 %vm4692_vm5, %v4769_v28 }
 0x34b   : > { %6200 = vmatprep.subr.bf16.mxu1 %v6667_v51 }
 0x34c   : > { %6193 = vmatpush3.bf16.msra.mxu0 %v6192_v20 }
 0x34d   : > { %6194 = vmatprep.subr.bf16.mxu0 %v6667_v51 }
 0x350   : > { %6196 = vmatpush3.bf16.msra.mxu0 %v6195_v24 }
 0x351   : > { %6197 = vmatprep.subr.bf16.mxu0 %v6667_v51 }
 0x354   : > { %6199 = vmatpush3.bf16.msra.mxu0 %v6198_v27 }
 0x355   : > { %6063 = vmatprep.subr.mxu0 %v6669_v59 }
 0x41a   : > { %v4509_v32 = vpop.f32.mrb[6].mxu0  ;;  %v4592_v33 = vpop.f32.mrb[6].mxu1 }
 0x41b   : > { %v4510_v35 = vadd.f32 %v4509_v32, %v4439_v31  ;;  %v6024_v36 = vpop.f32.mrb[7].mxu0  ;;  %v6043_v37 = vpop.f32.mrb[7].mxu1  ;;  %v4593_v52 = vadd.f32 %v4592_v33, %v4525_v46 }
 0x41d   : > { %6559 = vtanh.f32 %v4510_v35 }
 0x41e   : > { %6561 = vtanh.f32 %v4593_v52 }
 0x427   : > { %v6560_v38 = vpop.eup %6559 }
 0x428   : > { %6061 = vmatmul.mubr.msk.f32.vlgmr.msra.gmra.mrb[8].mxu0 %vm3916_vm4, %v6560_v38  ;;  %v6562_v61 = vpop.eup %6561 }
 0x429   : > { %6065 = vmatprep.mubr.msk.f32.mxu0 %vm6668_vm3, %v6669_v59  ;;  %6064 = vmatpush3.msk.msra.mxu0 %vm4692_vm5, %v4683_v39 }
 0x4fb   : > { %v4679_v47 = vpop.f32.mrb[8].mxu0 }
 0x4fc   : > { %v4680_v49 = vadd.f32 %v4679_v47, %v4609_v43  ;;  %v6062_v42 = vpop.f32.mrb[9].mxu0 }
 0x4fe   : > { %6066 = vmatmul.mubr.msk.f32.vlgmr.msra.gmra.mrb[10].mxu0 %vm4688_vm6, %v4680_v49  ;;  %6071 = vmatmul.mubr.msk.f32.vlgmr.msra.gmra.mrb[8].mxu1 %vm4688_vm6, %v4680_v49 }
 0x4ff   : > { %6202 = vmatpush3.bf16.msra.mxu1 %v6201_v48  ;;  %6089 = vmatprep.mubr.msk.f32.mxu1 %vm6668_vm3, %v6669_v59  ;;  %v4863_v59 = vld [vmem:[%s7590_s8 + $0x78] sm:$0xff] }
 0x500   : > { %6203 = vmatprep.subr.bf16.mxu1 %v6667_v51  ;;  %v6210_v60 = vpack.c.bf16 %v4863_v59, %v4862_v57 }
 0x503   : > { %6205 = vmatpush3.bf16.msra.mxu1 %v6204_v53 }
 0x504   : > { %6206 = vmatprep.subr.bf16.mxu1 %v6667_v51 }
 0x507   : > { %6208 = vmatpush3.bf16.msra.mxu1 %v6207_v56 }
 0x508   : > { %6209 = vmatprep.subr.bf16.mxu1 %v6667_v51 }
 0x50b   : > { %6211 = vmatpush3.bf16.msra.mxu1 %v6210_v60 }
 0x50e   : > { %6090 = vmatmul.mubr.msk.f32.vlgmr.msra.gmra.mrb[10].mxu1 %vm3916_vm4, %v6562_v61 }
 0x5d1   : > { %v4762_v0 = vpop.f32.mrb[10].mxu0  ;;  %v4843_v1 = vpop.f32.mrb[8].mxu1 }
 0x5d2   : > { %v4763_v2 = vadd.f32 %v4762_v0, %v4687_v62  ;;  %v4844_v3 = vadd.f32 %v4843_v1, %v4773_v63  ;;  %v6067_v4 = vpop.f32.mrb[11].mxu0  ;;  %v6072_v5 = vpop.f32.mrb[9].mxu1 }
 0x5d4   : > { %6563 = vtanh.f32 %v4763_v2  ;;  %v4848_v6 = vmin.f32 %v4844_v3, 20.0  ;;  %vm4847_vm9 = vcmp.gt.f32.partialorder %v4844_v3, 20.0 }
 0x5d6   : > { %v4849_v7 = vmul.f32 1.442695, %v4848_v6 }
 0x5d8   : > { %6565 = vpow2.f32 %v4849_v7 }
 0x5de   : > { %v6564_v51 = vpop.eup %6563 }
 0x5df   : > { %4768 = vst.msk [vmem:[#allocation3] sm:$0x3] %vm4767_vm7, %v6564_v51 }
 0x5e1   : > { %v4937_v41 = vpop.f32.mrb[10].mxu1 }
 0x5e2   : > { %v6566_v58 = vpop.eup %6565  ;;  %v4938_v9 = vadd.f32 %v4937_v41, %v4867_v8  ;;  %v6091_v10 = vpop.f32.mrb[11].mxu1 }
 0x5e3   : > { %v4851_v11 = vadd.f32 1.0, %v6566_v58 }
 0x5e4   : > { %4942 = vst.msk [vmem:[%s7595_s13] sm:$0x3] %vm4941_vm8, %v4938_v9 }
 0x5e5   : > { %6567 = vlog2.f32 %v4851_v11 }
 0x5ef   : > { %v6568_v12 = vpop.eup %6567 }
 0x5f0   : > { %v4853_v13 = vmul.f32 0.6931472, %v6568_v12 }
 0x5f2   : > { %v4854_v14 = vsel %vm4847_vm9, %v4844_v3, %v4853_v13 }
 0x5f3   : > { %4855 = vst.msk [vmem:[#allocation5] sm:$0x3] %vm4767_vm7, %v4854_v14 }
 0x5f4 PF: > { %p6224_p7 = scmp.eq.s32.totalorder %s6754_s30, 3  ;;  %s6670_s18 = smov [#allocation5]  }
 0x5f5   : > { %s4961_s19 = sshll.u32 %s6670_s18, 4  ;;  %s6671_s20 = smov [#allocation3]   ;;  %s4962_s19 = int_to_ptr.vmem [resolvable:$true] %s4961_s19 }
 0x5f6   : > { %s4950_s21 = sshll.u32 %s6671_s20, 4  ;;  %s6569_s22 = scalar_lea.vmem %s4962_s19, 32  ;;  %s4951_s21 = int_to_ptr.vmem [resolvable:$true] %s4950_s21 }
 0x5f7   : > { %p6570_p8 = scmp.ne.s32.totalorder %s4962_s19, %s6569_s22  ;;  %p6576_p11 = scmp.lt.s32.totalorder %s4962_s19, %s4962_s19 }
 0x5f8   : > { %p6577_p12 = scmp.lt.s32.totalorder %s6569_s22, %s6569_s22 }
 0x5f9   : > { %p6571_p9 = pnand %p6570_p8, %p6224_p7 }
 0x5fa   : > { %p6578_p13 = por %p6577_p12, %p6576_p11 }
 0x5fb   : > { %p6572_p10 = pneg %p6571_p9 }
 0x5fd   : > { %p6579_p0 = pnand %p6578_p13, %p6572_p10 }
 0x5ff   : > { %6582 = shalt.err (!%p6579_p0)
}
 0x600   : > { %s6583_s25 = scalar_lea.hbm %s7594_s12, 32 }
 0x601   : > { %p6584_p1 = scmp.ne.s32.totalorder %s7594_s12, %s6583_s25  ;;  %p6589_p4 = scmp.lt.u32.totalorder %s6583_s25, %s7594_s12 }
 0x603   : > { %p6585_p2 = pnand %p6584_p1, %p6224_p7 }
 0x605   : > { %p6586_p3 = pneg %p6585_p2 }
 0x607   : > { %p6591_p5 = pnand %p6589_p4, %p6586_p3 }
 0x609   : > { %6594 = shalt.err (!%p6591_p5)
}
 0x60a   : > { %6215 = dma.vmem_to_hbm [thread:$0]  (%p6224_p7), %s4962_s19, 32, %s7594_s12, [#allocation6]  }
 0x60b   : > { %s6595_s18 = scalar_lea.vmem %s4951_s21, 32  ;;  %p6602_p10 = scmp.lt.s32.totalorder %s4951_s21, %s4951_s21 }
 0x60c   : > { %p6596_p6 = scmp.ne.s32.totalorder %s4951_s21, %s6595_s18  ;;  %p6603_p11 = scmp.lt.s32.totalorder %s6595_s18, %s6595_s18 }
 0x60e   : > { %p6597_p8 = pnand %p6596_p6, %p6224_p7  ;;  %p6604_p12 = por %p6603_p11, %p6602_p10 }
 0x610   : > { %p6598_p9 = pneg %p6597_p8 }
 0x612   : > { %p6605_p13 = pnand %p6604_p12, %p6598_p9 }
 0x614   : > { %6608 = shalt.err (!%p6605_p13)
}
 0x615   : > { %s6609_s23 = scalar_lea.hbm %s7593_s11, 32 }
 0x616   : > { %p6610_p0 = scmp.ne.s32.totalorder %s7593_s11, %s6609_s23  ;;  %p6615_p3 = scmp.lt.u32.totalorder %s6609_s23, %s7593_s11 }
 0x618   : > { %p6611_p1 = pnand %p6610_p0, %p6224_p7 }
 0x61a   : > { %p6612_p2 = pneg %p6611_p1 }
 0x61c   : > { %p6617_p4 = pnand %p6615_p3, %p6612_p2 }
 0x61e   : > { %6620 = shalt.err (!%p6617_p4)
}
 0x61f   : > { %6213 = dma.vmem_to_hbm [thread:$0]  (%p6224_p7), %s4951_s21, 32, %s7593_s11, [#allocation4]  }
 0x620   : > { %s6672_s15 = smov [#allocation7]  }
 0x621   : > { %s4975_s16 = sshll.u32 %s6672_s15, 4  ;;  %s4976_s16 = int_to_ptr.vmem [resolvable:$true] %s4975_s16 }
 0x622   : > { %s6621_s17 = scalar_lea.vmem %s4976_s16, 32  ;;  %p6628_p9 = scmp.lt.s32.totalorder %s4976_s16, %s4976_s16 }
 0x623   : > { %p6622_p5 = scmp.ne.s32.totalorder %s4976_s16, %s6621_s17  ;;  %p6629_p10 = scmp.lt.s32.totalorder %s6621_s17, %s6621_s17 }
 0x625   : > { %p6623_p6 = pnand %p6622_p5, %p6224_p7  ;;  %p6630_p11 = por %p6629_p10, %p6628_p9 }
 0x627   : > { %p6624_p8 = pneg %p6623_p6 }
 0x629   : > { %p6631_p12 = pnand %p6630_p11, %p6624_p8 }
 0x62b   : > { %6634 = shalt.err (!%p6631_p12)
}
 0x62c   : > { %s6635_s22 = scalar_lea.hbm %s7596_s14, 32 }
 0x62d   : > { %p6636_p13 = scmp.ne.s32.totalorder %s7596_s14, %s6635_s22  ;;  %p6641_p2 = scmp.lt.u32.totalorder %s6635_s22, %s7596_s14 }
 0x62f   : > { %p6637_p0 = pnand %p6636_p13, %p6224_p7 }
 0x631   : > { %p6638_p1 = pneg %p6637_p0 }
 0x633   : > { %p6643_p3 = pnand %p6641_p2, %p6638_p1 }
 0x635   : > { %6646 = shalt.err (!%p6643_p3)
}
 0x636   : > { %6217 = dma.vmem_to_hbm [thread:$0]  (%p6224_p7), %s4976_s16, 32, %s7596_s14, [#allocation6]  }
 0x637   : > { %6652 = dma.done.wait (%p6224_p7), [#allocation4], 32  }
 0x638   : > { %6654 = vsyncadd (%p6224_p7), [#allocation4], 4294967264 }
 0x639   : > { %6656 = dma.done.wait (%p6224_p7), [#allocation6], 64  }
 0x63a   : > { %6658 = vsyncadd (%p6224_p7), [#allocation6], 4294967232 }
 0x63b PF: > { %s27_s29 = sadd.s32 1, %s6661_s29  }
 0x63c   : > { %p24_p4 = scmp.ge.s32.totalorder %s27_s29, 6  }
 0x63e   :  { %26 = sbr.rel (!%p24_p4) target bundleno = 2 (0x2), region = 126 }
 0x645   :  { %4999 = vsyncpa [#allocation4], 1 }
 0x646   :  { %5001 = vsyncpa [#allocation4 + $0x1], 1 }
 0x647   :  { %5002 = vsyncpa [#allocation6], 1 }

</bundles_post_ra>
